<compile_context>
chip_gen: v5e
topology: v5e:2x2
jax: 0.10.0
libtpu: 0.0.40
codegen_flags: <defaults>
</compile_context>

<pallas_src>
import functools

import jax
import jax.numpy as jnp
from jax.experimental import pallas as pl
from jax.experimental.pallas import tpu as pltpu


# ----------------------------------------------------------------------------
# in-kernel math helpers
# ----------------------------------------------------------------------------
_SQRT_2_OVER_PI = 0.7978845608028654


def _gelu(x):
    # tanh-approximate GELU: runs on the EUP (separate VLIW slot).
    return 0.5 * x * (1.0 + jnp.tanh(_SQRT_2_OVER_PI * (x + 0.044715 * x * x * x)))


def _sigmoid(x):
    return 1.0 / (1.0 + jnp.exp(-x))


def _dw_mix(pad_ref, x, w_ref, a, b, cb, H, W, K, P):
    """A * depthwise_conv_KxK(x) + B * x + Cb, stride 1, same padding.

    pad_ref: (H+2P, W+2P, C) VMEM scratch; centre already holds x, border is 0.
    x:       (H, W, C) value already in registers (reused for centre tap + B*x).
    """
    C = x.shape[-1]
    acc = x * w_ref[P * K + P, :].reshape(1, 1, C)           # centre tap: reuse x
    for idx in range(K * K):
        dy, dx = idx // K, idx % K
        if dy == P and dx == P:
            continue
        acc = acc + pad_ref[dy:dy + H, dx:dx + W, :] * w_ref[idx, :].reshape(1, 1, C)
    return acc * a + x * b + cb


def _dw_s2(pad_ref, w_ref, s, b, Ho, Wo, K):
    """BN(depthwise_conv_KxK(x)) computed directly at stride 2.

    pad_ref: (H+2P, W+2P, C) VMEM scratch with zero border.  Only the stride-2
    output positions are accumulated (strided ref reads), no B*x term.
    """
    C = w_ref.shape[-1]
    acc = jnp.zeros((Ho, Wo, C), jnp.float32)
    for idx in range(K * K):
        dy, dx = idx // K, idx % K
        tap = pad_ref[pl.ds(dy, Ho, 2), pl.ds(dx, Wo, 2), :]
        acc = acc + tap * w_ref[idx, :].reshape(1, 1, C)
    return acc * s + b


def _mlp(xf, w1_ref, s1, c1, w2_ref, s2, c2):
    """bn2(conv2_1x1(gelu(bn1(conv1_1x1(x))))) on flattened (M, C) rows."""
    h = jnp.dot(xf.astype(jnp.bfloat16), w1_ref[...],
                preferred_element_type=jnp.float32)
    h = _gelu(h * s1 + c1)
    y = jnp.dot(h.astype(jnp.bfloat16), w2_ref[...],
                preferred_element_type=jnp.float32)
    return y * s2 + c2


def _se(t, w1_ref, b1, w2_ref, b2, H, W):
    """SqueezeExcitation: t * sigmoid(fc2(relu(fc1(avgpool(t)))))."""
    C = t.shape[-1]
    pooled = jnp.mean(t.reshape(H * W, C), axis=0, keepdims=True)        # (1, C)
    h = jnp.dot(pooled.astype(jnp.bfloat16), w1_ref[...],
                preferred_element_type=jnp.float32) + b1
    h = jnp.maximum(h, 0.0)
    g = jnp.dot(h.astype(jnp.bfloat16), w2_ref[...],
                preferred_element_type=jnp.float32) + b2
    return t * _sigmoid(g).reshape(1, 1, C)


# ----------------------------------------------------------------------------
# fused Pallas kernels
# ----------------------------------------------------------------------------
def _block_kernel(x_ref, dww_ref, a_ref, b_ref, cb_ref, *rest,
                  H, W, K, P, use_se):
    """One fused RepViTBlock: token mixer (+SE) + channel-mixer MLP residual."""
    if use_se:
        (sew1_ref, seb1_ref, sew2_ref, seb2_ref,
         w1_ref, s1_ref, c1_ref, w2_ref, s2_ref, c2_ref,
         o_ref, pad_ref) = rest
    else:
        (w1_ref, s1_ref, c1_ref, w2_ref, s2_ref, c2_ref,
         o_ref, pad_ref) = rest

    C = x_ref.shape[-1]
    x = x_ref[0]

    # build zero-padded halo in VMEM (no HBM pad pass)
    pad_ref[...] = jnp.zeros_like(pad_ref)
    pad_ref[P:P + H, P:P + W, :] = x

    a = a_ref[...].reshape(1, 1, C)
    b = b_ref[...].reshape(1, 1, C)
    cb = cb_ref[...].reshape(1, 1, C)
    t = _dw_mix(pad_ref, x, dww_ref, a, b, cb, H, W, K, P)
    if use_se:
        t = _se(t, sew1_ref, seb1_ref[...], sew2_ref, seb2_ref[...], H, W)

    tf = t.reshape(H * W, C)
    y = _mlp(tf, w1_ref, s1_ref[...], c1_ref[...],
             w2_ref, s2_ref[...], c2_ref[...])
    o_ref[0] = (tf + y).reshape(H, W, C)


def _downsample_kernel(x_ref,
                       p_dww, p_a, p_b, p_cb,
                       p_w1, p_s1, p_c1, p_w2, p_s2, p_c2,
                       sdw_ref, sds_ref, sdb_ref,
                       cdw_ref, cds_ref, cdb_ref,
                       fw1_ref, fs1_ref, fc1_ref, fw2_ref, fs2_ref, fc2_ref,
                       o_ref, pad_ref, *, H, W, K, P):
    """Fused RepVitDownsample: pre-block + stride-2 dw + 1x1 + FFN residual."""
    Cin = x_ref.shape[-1]
    Cout = o_ref.shape[-1]
    Ho, Wo = H // 2, W // 2

    x = x_ref[0]
    pad_ref[...] = jnp.zeros_like(pad_ref)
    pad_ref[P:P + H, P:P + W, :] = x

    # pre-block (RepViTBlock, use_se=False)
    a = p_a[...].reshape(1, 1, Cin)
    b = p_b[...].reshape(1, 1, Cin)
    cb = p_cb[...].reshape(1, 1, Cin)
    t = _dw_mix(pad_ref, x, p_dww, a, b, cb, H, W, K, P)
    tf = t.reshape(H * W, Cin)
    tf = tf + _mlp(tf, p_w1, p_s1[...], p_c1[...], p_w2, p_s2[...], p_c2[...])

    # spatial downsample: stride-2 depthwise conv + BN, computed directly
    pad_ref[P:P + H, P:P + W, :] = tf.reshape(H, W, Cin)
    y = _dw_s2(pad_ref, sdw_ref,
               sds_ref[...].reshape(1, 1, Cin), sdb_ref[...].reshape(1, 1, Cin),
               Ho, Wo, K)

    # channel downsample: 1x1 conv + BN
    yf = y.reshape(Ho * Wo, Cin)
    z = jnp.dot(yf.astype(jnp.bfloat16), cdw_ref[...],
                preferred_element_type=jnp.float32)
    z = z * cds_ref[...] + cdb_ref[...]

    # FFN with residual
    out = z + _mlp(z, fw1_ref, fs1_ref[...], fc1_ref[...],
                   fw2_ref, fs2_ref[...], fc2_ref[...])
    o_ref[0] = out.reshape(Ho, Wo, Cout)


_CP = pltpu.CompilerParams(
    dimension_semantics=("parallel",),
    vmem_limit_bytes=32 * 1024 * 1024,
)


# ----------------------------------------------------------------------------
# pallas_call wrappers (grid over batch; whole image per grid step in VMEM)
# ----------------------------------------------------------------------------
def block_call(x, p, k):
    N, H, W, C = x.shape
    P = k // 2
    Hp, Wp = H + 2 * P, W + 2 * P
    mlp = p["mlp"]
    Hd = mlp["w1"].shape[1]
    use_se = p["tm"]["se"] is not None

    kern = functools.partial(_block_kernel, H=H, W=W, K=k, P=P, use_se=use_se)
    chan = lambda n: (0, 0)

    in_specs = [
        pl.BlockSpec((1, H, W, C), lambda n: (n, 0, 0, 0)),
        pl.BlockSpec((k * k, C), chan),
        pl.BlockSpec((1, C), chan),
        pl.BlockSpec((1, C), chan),
        pl.BlockSpec((1, C), chan),
    ]
    args = [x, p["tm"]["dww"],
            p["tm"]["A"].reshape(1, C), p["tm"]["B"].reshape(1, C),
            p["tm"]["Cb"].reshape(1, C)]
    if use_se:
        sew1, seb1, sew2, seb2 = p["tm"]["se"]
        Csq = sew1.shape[1]
        in_specs += [
            pl.BlockSpec((C, Csq), chan),
            pl.BlockSpec((1, Csq), chan),
            pl.BlockSpec((Csq, C), chan),
            pl.BlockSpec((1, C), chan),
        ]
        args += [sew1, seb1.reshape(1, Csq), sew2, seb2.reshape(1, C)]
    in_specs += [
        pl.BlockSpec((C, Hd), chan),
        pl.BlockSpec((1, Hd), chan),
        pl.BlockSpec((1, Hd), chan),
        pl.BlockSpec((Hd, C), chan),
        pl.BlockSpec((1, C), chan),
        pl.BlockSpec((1, C), chan),
    ]
    args += [mlp["w1"], mlp["s1"].reshape(1, Hd), mlp["c1"].reshape(1, Hd),
             mlp["w2"], mlp["s2"].reshape(1, C), mlp["c2"].reshape(1, C)]

    return pl.pallas_call(
        kern,
        out_shape=jax.ShapeDtypeStruct((N, H, W, C), jnp.float32),
        grid=(N,),
        in_specs=in_specs,
        out_specs=pl.BlockSpec((1, H, W, C), lambda n: (n, 0, 0, 0)),
        scratch_shapes=[pltpu.VMEM((Hp, Wp, C), jnp.float32)],
        compiler_params=_CP,
    )(*args)


def downsample_call(x, p, k):
    N, H, W, Cin = x.shape
    assert H % 2 == 0 and W % 2 == 0 and k % 2 == 1  # stride-2 "same" invariant
    P = k // 2
    Hp, Wp = H + 2 * P, W + 2 * P
    Ho, Wo = H // 2, W // 2
    Cout = p["cd_w"].shape[1]
    pre = p["pre"]
    ffn = p["ffn"]
    Hd_pre = pre["mlp"]["w1"].shape[1]
    Hd_ffn = ffn["w1"].shape[1]

    kern = functools.partial(_downsample_kernel, H=H, W=W, K=k, P=P)
    chan = lambda n: (0, 0)

    in_specs = [
        pl.BlockSpec((1, H, W, Cin), lambda n: (n, 0, 0, 0)),
        # pre-block token mixer
        pl.BlockSpec((k * k, Cin), chan),
        pl.BlockSpec((1, Cin), chan), pl.BlockSpec((1, Cin), chan),
        pl.BlockSpec((1, Cin), chan),
        # pre-block MLP
        pl.BlockSpec((Cin, Hd_pre), chan),
        pl.BlockSpec((1, Hd_pre), chan), pl.BlockSpec((1, Hd_pre), chan),
        pl.BlockSpec((Hd_pre, Cin), chan),
        pl.BlockSpec((1, Cin), chan), pl.BlockSpec((1, Cin), chan),
        # spatial downsample (stride-2 dw conv + BN)
        pl.BlockSpec((k * k, Cin), chan),
        pl.BlockSpec((1, Cin), chan), pl.BlockSpec((1, Cin), chan),
        # channel downsample (1x1 conv + BN)
        pl.BlockSpec((Cin, Cout), chan),
        pl.BlockSpec((1, Cout), chan), pl.BlockSpec((1, Cout), chan),
        # FFN
        pl.BlockSpec((Cout, Hd_ffn), chan),
        pl.BlockSpec((1, Hd_ffn), chan), pl.BlockSpec((1, Hd_ffn), chan),
        pl.BlockSpec((Hd_ffn, Cout), chan),
        pl.BlockSpec((1, Cout), chan), pl.BlockSpec((1, Cout), chan),
    ]
    args = [
        x,
        pre["tm"]["dww"],
        pre["tm"]["A"].reshape(1, Cin), pre["tm"]["B"].reshape(1, Cin),
        pre["tm"]["Cb"].reshape(1, Cin),
        pre["mlp"]["w1"], pre["mlp"]["s1"].reshape(1, Hd_pre),
        pre["mlp"]["c1"].reshape(1, Hd_pre),
        pre["mlp"]["w2"], pre["mlp"]["s2"].reshape(1, Cin),
        pre["mlp"]["c2"].reshape(1, Cin),
        p["sd_w"], p["sd_s"].reshape(1, Cin), p["sd_b"].reshape(1, Cin),
        p["cd_w"], p["cd_s"].reshape(1, Cout), p["cd_b"].reshape(1, Cout),
        ffn["w1"], ffn["s1"].reshape(1, Hd_ffn), ffn["c1"].reshape(1, Hd_ffn),
        ffn["w2"], ffn["s2"].reshape(1, Cout), ffn["c2"].reshape(1, Cout),
    ]
    return pl.pallas_call(
        kern,
        out_shape=jax.ShapeDtypeStruct((N, Ho, Wo, Cout), jnp.float32),
        grid=(N,),
        in_specs=in_specs,
        out_specs=pl.BlockSpec((1, Ho, Wo, Cout), lambda n: (n, 0, 0, 0)),
        scratch_shapes=[pltpu.VMEM((Hp, Wp, Cin), jnp.float32)],
        compiler_params=_CP,
    )(*args)


# ----------------------------------------------------------------------------
# parameter construction (deterministic; shapes follow the PyTorch __init__)
# ----------------------------------------------------------------------------
def make_divisible(v, divisor, min_value=None):
    if min_value is None:
        min_value = divisor
    new_v = max(min_value, int(v + divisor / 2) // divisor * divisor)
    if new_v < 0.9 * v:
        new_v += divisor
    return new_v


def _bn_fold(key, c):
    k1, k2, k3, k4 = jax.random.split(key, 4)
    gamma = jax.random.uniform(k1, (c,), jnp.float32, 0.5, 1.5)
    beta = 0.1 * jax.random.normal(k2, (c,), jnp.float32)
    mean = 0.1 * jax.random.normal(k3, (c,), jnp.float32)
    var = jax.random.uniform(k4, (c,), jnp.float32, 0.5, 1.5)
    scale = gamma * jax.lax.rsqrt(var + 1e-5)
    return scale, beta - mean * scale


def init_repvggdw(key, dim, k, use_se):
    ks = jax.random.split(key, 9)
    dww = 0.1 * jax.random.normal(ks[0], (k * k, dim), jnp.float32)
    s1, b1 = _bn_fold(ks[1], dim)                     # RepConvBN's BN
    w1x1 = 0.1 * jax.random.normal(ks[2], (dim,), jnp.float32)
    b1x1 = 0.1 * jax.random.normal(ks[3], (dim,), jnp.float32)
    s2, b2 = _bn_fold(ks[4], dim)                     # outer BN
    # bn2(bn1(dw(x)) + (w1x1*x + b1x1) + x) = A*dw(x) + B*x + Cb (exact fold)
    p = {"dww": dww,
         "A": s1 * s2,
         "B": s2 * (w1x1 + 1.0),
         "Cb": s2 * (b1 + b1x1) + b2,
         "se": None}
    if use_se:
        sq = make_divisible(dim // 4, 8)
        p["se"] = (
            (0.1 * jax.random.normal(ks[5], (dim, sq), jnp.float32)).astype(jnp.bfloat16),
            0.1 * jax.random.normal(ks[6], (sq,), jnp.float32),
            (0.1 * jax.random.normal(ks[7], (sq, dim), jnp.float32)).astype(jnp.bfloat16),
            0.1 * jax.random.normal(ks[8], (dim,), jnp.float32),
        )
    return p


def init_mlp(key, dim, hidden):
    ks = jax.random.split(key, 4)
    w1 = (0.1 * jax.random.normal(ks[0], (dim, hidden), jnp.float32)).astype(jnp.bfloat16)
    s1, c1 = _bn_fold(ks[1], hidden)
    w2 = (0.1 * jax.random.normal(ks[2], (hidden, dim), jnp.float32)).astype(jnp.bfloat16)
    s2, c2 = _bn_fold(ks[3], dim)
    return {"w1": w1, "s1": s1, "c1": c1, "w2": w2, "s2": s2, "c2": c2}


def init_block(key, dim, mlp_ratio, k, use_se):
    k1, k2 = jax.random.split(key)
    return {"tm": init_repvggdw(k1, dim, k, use_se),
            "mlp": init_mlp(k2, dim, int(dim * mlp_ratio))}


def init_downsample(key, in_dim, out_dim, mlp_ratio, k):
    ks = jax.random.split(key, 6)
    sd_w = 0.1 * jax.random.normal(ks[1], (k * k, in_dim), jnp.float32)
    sd_s, sd_b = _bn_fold(ks[2], in_dim)
    cd_w = (0.1 * jax.random.normal(ks[3], (in_dim, out_dim), jnp.float32)).astype(jnp.bfloat16)
    cd_s, cd_b = _bn_fold(ks[4], out_dim)
    return {"pre": init_block(ks[0], in_dim, mlp_ratio, k, use_se=False),
            "sd_w": sd_w, "sd_s": sd_s, "sd_b": sd_b,
            "cd_w": cd_w, "cd_s": cd_s, "cd_b": cd_b,
            "ffn": init_mlp(ks[5], out_dim, int(out_dim * mlp_ratio))}


def init_stage(key, in_dim, out_dim, depth, mlp_ratio, k, downsample):
    kd, kb = jax.random.split(key)
    params = {"downsample": (init_downsample(kd, in_dim, out_dim, mlp_ratio, k)
                             if downsample else None),
              "blocks": []}
    use_se = True
    for i in range(depth):
        params["blocks"].append(
            init_block(jax.random.fold_in(kb, i), out_dim, mlp_ratio, k, use_se))
        use_se = not use_se
    return params


# ----------------------------------------------------------------------------
# forward composition (glue)
# ----------------------------------------------------------------------------
def stage_fwd(x_nchw, params, k):
    x = jnp.transpose(x_nchw, (0, 2, 3, 1)).astype(jnp.float32)   # NCHW -> NHWC
    if params["downsample"] is not None:
        x = downsample_call(x, params["downsample"], k)
    for bp in params["blocks"]:
        x = block_call(x, bp, k)
    return jnp.transpose(x, (0, 3, 1, 2))                          # NHWC -> NCHW


# ----------------------------------------------------------------------------
if __name__ == "__main__":
    key = jax.random.PRNGKey(0)
    kx, kp = jax.random.split(key)

    in_dim, out_dim, depth = 8, 16, 2
    mlp_ratio, ksz = 2.0, 3
    N, H, W = 2, 16, 16

    x = jax.random.normal(kx, (N, in_dim, H, W), jnp.float32)      # NCHW input
    params = init_stage(kp, in_dim, out_dim, depth, mlp_ratio, ksz, downsample=True)

    fwd = jax.jit(lambda inp: stage_fwd(inp, params, ksz))
    out = jax.block_until_ready(fwd(x))

    assert out.shape == (N, out_dim, H // 2, W // 2), out.shape
    assert bool(jnp.all(jnp.isfinite(out)))
    print("KERNEL_OK")
</pallas_src>

<mosaic_0001>
module attributes {stable_mosaic.version = 11 : i64} {
  func.func @_block_kernel(%arg0: i32, %arg1: memref<1x8x8x16xf32, #tpu.memory_space<vmem>>, %arg2: memref<9x16xf32, #tpu.memory_space<vmem>>, %arg3: memref<1x16xf32, #tpu.memory_space<vmem>>, %arg4: memref<1x16xf32, #tpu.memory_space<vmem>>, %arg5: memref<1x16xf32, #tpu.memory_space<vmem>>, %arg6: memref<16x32xbf16, #tpu.memory_space<vmem>>, %arg7: memref<1x32xf32, #tpu.memory_space<vmem>>, %arg8: memref<1x32xf32, #tpu.memory_space<vmem>>, %arg9: memref<32x16xbf16, #tpu.memory_space<vmem>>, %arg10: memref<1x16xf32, #tpu.memory_space<vmem>>, %arg11: memref<1x16xf32, #tpu.memory_space<vmem>>, %arg12: memref<1x8x8x16xf32, #tpu.memory_space<vmem>>, %arg13: memref<10x10x16xf32, #tpu.memory_space<vmem>>) attributes {dimension_semantics = [#tpu.dimension_semantics<parallel>], iteration_bounds = array<i64: 2>, scalar_prefetch = 0 : i64, scratch_operands = 1 : i64, tpu.core_type = #tpu.core_type<tc>, window_params = [{transform_indices = @transform_0, window_bounds = array<i64: 1, 8, 8, 16>}, {pipeline_mode = #tpu.pipeline_mode<synchronous>, transform_indices = @transform_1, window_bounds = array<i64: 9, 16>}, {pipeline_mode = #tpu.pipeline_mode<synchronous>, transform_indices = @transform_2, window_bounds = array<i64: 1, 16>}, {pipeline_mode = #tpu.pipeline_mode<synchronous>, transform_indices = @transform_3, window_bounds = array<i64: 1, 16>}, {pipeline_mode = #tpu.pipeline_mode<synchronous>, transform_indices = @transform_4, window_bounds = array<i64: 1, 16>}, {pipeline_mode = #tpu.pipeline_mode<synchronous>, transform_indices = @transform_5, window_bounds = array<i64: 16, 32>}, {pipeline_mode = #tpu.pipeline_mode<synchronous>, transform_indices = @transform_6, window_bounds = array<i64: 1, 32>}, {pipeline_mode = #tpu.pipeline_mode<synchronous>, transform_indices = @transform_7, window_bounds = array<i64: 1, 32>}, {pipeline_mode = #tpu.pipeline_mode<synchronous>, transform_indices = @transform_8, window_bounds = array<i64: 32, 16>}, {pipeline_mode = #tpu.pipeline_mode<synchronous>, transform_indices = @transform_9, window_bounds = array<i64: 1, 16>}, {pipeline_mode = #tpu.pipeline_mode<synchronous>, transform_indices = @transform_10, window_bounds = array<i64: 1, 16>}, {transform_indices = @transform_11, window_bounds = array<i64: 1, 8, 8, 16>}]} {
    %c0 = arith.constant 0 : index
    %c0_0 = arith.constant 0 : index
    %c0_1 = arith.constant 0 : index
    %c0_2 = arith.constant 0 : index
    %0 = vector.load %arg1[%c0, %c0_0, %c0_1, %c0_2] : memref<1x8x8x16xf32, #tpu.memory_space<vmem>>, vector<1x8x8x16xf32>
    %1 = vector.shape_cast %0 : vector<1x8x8x16xf32> to vector<8x8x16xf32>
    %cst = arith.constant 0.000000e+00 : f32
    %2 = vector.broadcast %cst : f32 to vector<10x10x16xf32>
    %c0_3 = arith.constant 0 : index
    %c0_4 = arith.constant 0 : index
    %c0_5 = arith.constant 0 : index
    %3 = vector.load %arg13[%c0_3, %c0_4, %c0_5] : memref<10x10x16xf32, #tpu.memory_space<vmem>>, vector<10x10x16xf32>
    tpu.vector_store %arg13[%c0_3, %c0_4, %c0_5], %2 {strides = array<i32>} : memref<10x10x16xf32, #tpu.memory_space<vmem>>, vector<10x10x16xf32>,
    %c1 = arith.constant 1 : index
    %c1_6 = arith.constant 1 : index
    %c0_7 = arith.constant 0 : index
    %4 = vector.load %arg13[%c1, %c1_6, %c0_7] : memref<10x10x16xf32, #tpu.memory_space<vmem>>, vector<8x8x16xf32>
    tpu.vector_store %arg13[%c1, %c1_6, %c0_7], %1 {strides = array<i32>} : memref<10x10x16xf32, #tpu.memory_space<vmem>>, vector<8x8x16xf32>,
    %c0_8 = arith.constant 0 : index
    %c0_9 = arith.constant 0 : index
    %5 = vector.load %arg3[%c0_8, %c0_9] : memref<1x16xf32, #tpu.memory_space<vmem>>, vector<1x16xf32>
    %6 = vector.shape_cast %5 : vector<1x16xf32> to vector<1x1x16xf32>
    %c0_10 = arith.constant 0 : index
    %c0_11 = arith.constant 0 : index
    %7 = vector.load %arg4[%c0_10, %c0_11] : memref<1x16xf32, #tpu.memory_space<vmem>>, vector<1x16xf32>
    %8 = vector.shape_cast %7 : vector<1x16xf32> to vector<1x1x16xf32>
    %c0_12 = arith.constant 0 : index
    %c0_13 = arith.constant 0 : index
    %9 = vector.load %arg5[%c0_12, %c0_13] : memref<1x16xf32, #tpu.memory_space<vmem>>, vector<1x16xf32>
    %10 = vector.shape_cast %9 : vector<1x16xf32> to vector<1x1x16xf32>
    %c4 = arith.constant 4 : index
    %c0_14 = arith.constant 0 : index
    %11 = vector.load %arg2[%c4, %c0_14] : memref<9x16xf32, #tpu.memory_space<vmem>>, vector<1x16xf32>
    %12 = vector.shape_cast %11 : vector<1x16xf32> to vector<16xf32>
    %13 = vector.shape_cast %12 : vector<16xf32> to vector<1x1x16xf32>
    %14 = vector.broadcast %13 : vector<1x1x16xf32> to vector<8x8x16xf32>
    %15 = arith.mulf %1, %14 : vector<8x8x16xf32>
    %c0_15 = arith.constant 0 : index
    %c0_16 = arith.constant 0 : index
    %c0_17 = arith.constant 0 : index
    %16 = vector.load %arg13[%c0_15, %c0_16, %c0_17] : memref<10x10x16xf32, #tpu.memory_space<vmem>>, vector<8x8x16xf32>
    %c0_18 = arith.constant 0 : index
    %c0_19 = arith.constant 0 : index
    %17 = vector.load %arg2[%c0_18, %c0_19] : memref<9x16xf32, #tpu.memory_space<vmem>>, vector<1x16xf32>
    %18 = vector.shape_cast %17 : vector<1x16xf32> to vector<16xf32>
    %19 = vector.shape_cast %18 : vector<16xf32> to vector<1x1x16xf32>
    %20 = vector.broadcast %19 : vector<1x1x16xf32> to vector<8x8x16xf32>
    %21 = arith.mulf %16, %20 : vector<8x8x16xf32>
    %22 = arith.addf %15, %21 : vector<8x8x16xf32>
    %c0_20 = arith.constant 0 : index
    %c1_21 = arith.constant 1 : index
    %c0_22 = arith.constant 0 : index
    %23 = vector.load %arg13[%c0_20, %c1_21, %c0_22] : memref<10x10x16xf32, #tpu.memory_space<vmem>>, vector<8x8x16xf32>
    %c1_23 = arith.constant 1 : index
    %c0_24 = arith.constant 0 : index
    %24 = vector.load %arg2[%c1_23, %c0_24] : memref<9x16xf32, #tpu.memory_space<vmem>>, vector<1x16xf32>
    %25 = vector.shape_cast %24 : vector<1x16xf32> to vector<16xf32>
    %26 = vector.shape_cast %25 : vector<16xf32> to vector<1x1x16xf32>
    %27 = vector.broadcast %26 : vector<1x1x16xf32> to vector<8x8x16xf32>
    %28 = arith.mulf %23, %27 : vector<8x8x16xf32>
    %29 = arith.addf %22, %28 : vector<8x8x16xf32>
    %c0_25 = arith.constant 0 : index
    %c2 = arith.constant 2 : index
    %c0_26 = arith.constant 0 : index
    %30 = vector.load %arg13[%c0_25, %c2, %c0_26] : memref<10x10x16xf32, #tpu.memory_space<vmem>>, vector<8x8x16xf32>
    %c2_27 = arith.constant 2 : index
    %c0_28 = arith.constant 0 : index
    %31 = vector.load %arg2[%c2_27, %c0_28] : memref<9x16xf32, #tpu.memory_space<vmem>>, vector<1x16xf32>
    %32 = vector.shape_cast %31 : vector<1x16xf32> to vector<16xf32>
    %33 = vector.shape_cast %32 : vector<16xf32> to vector<1x1x16xf32>
    %34 = vector.broadcast %33 : vector<1x1x16xf32> to vector<8x8x16xf32>
    %35 = arith.mulf %30, %34 : vector<8x8x16xf32>
    %36 = arith.addf %29, %35 : vector<8x8x16xf32>
    %c1_29 = arith.constant 1 : index
    %c0_30 = arith.constant 0 : index
    %c0_31 = arith.constant 0 : index
    %37 = vector.load %arg13[%c1_29, %c0_30, %c0_31] : memref<10x10x16xf32, #tpu.memory_space<vmem>>, vector<8x8x16xf32>
    %c3 = arith.constant 3 : index
    %c0_32 = arith.constant 0 : index
    %38 = vector.load %arg2[%c3, %c0_32] : memref<9x16xf32, #tpu.memory_space<vmem>>, vector<1x16xf32>
    %39 = vector.shape_cast %38 : vector<1x16xf32> to vector<16xf32>
    %40 = vector.shape_cast %39 : vector<16xf32> to vector<1x1x16xf32>
    %41 = vector.broadcast %40 : vector<1x1x16xf32> to vector<8x8x16xf32>
    %42 = arith.mulf %37, %41 : vector<8x8x16xf32>
    %43 = arith.addf %36, %42 : vector<8x8x16xf32>
    %c1_33 = arith.constant 1 : index
    %c2_34 = arith.constant 2 : index
    %c0_35 = arith.constant 0 : index
    %44 = vector.load %arg13[%c1_33, %c2_34, %c0_35] : memref<10x10x16xf32, #tpu.memory_space<vmem>>, vector<8x8x16xf32>
    %c5 = arith.constant 5 : index
    %c0_36 = arith.constant 0 : index
    %45 = vector.load %arg2[%c5, %c0_36] : memref<9x16xf32, #tpu.memory_space<vmem>>, vector<1x16xf32>
    %46 = vector.shape_cast %45 : vector<1x16xf32> to vector<16xf32>
    %47 = vector.shape_cast %46 : vector<16xf32> to vector<1x1x16xf32>
    %48 = vector.broadcast %47 : vector<1x1x16xf32> to vector<8x8x16xf32>
    %49 = arith.mulf %44, %48 : vector<8x8x16xf32>
    %50 = arith.addf %43, %49 : vector<8x8x16xf32>
    %c2_37 = arith.constant 2 : index
    %c0_38 = arith.constant 0 : index
    %c0_39 = arith.constant 0 : index
    %51 = vector.load %arg13[%c2_37, %c0_38, %c0_39] : memref<10x10x16xf32, #tpu.memory_space<vmem>>, vector<8x8x16xf32>
    %c6 = arith.constant 6 : index
    %c0_40 = arith.constant 0 : index
    %52 = vector.load %arg2[%c6, %c0_40] : memref<9x16xf32, #tpu.memory_space<vmem>>, vector<1x16xf32>
    %53 = vector.shape_cast %52 : vector<1x16xf32> to vector<16xf32>
    %54 = vector.shape_cast %53 : vector<16xf32> to vector<1x1x16xf32>
    %55 = vector.broadcast %54 : vector<1x1x16xf32> to vector<8x8x16xf32>
    %56 = arith.mulf %51, %55 : vector<8x8x16xf32>
    %57 = arith.addf %50, %56 : vector<8x8x16xf32>
    %c2_41 = arith.constant 2 : index
    %c1_42 = arith.constant 1 : index
    %c0_43 = arith.constant 0 : index
    %58 = vector.load %arg13[%c2_41, %c1_42, %c0_43] : memref<10x10x16xf32, #tpu.memory_space<vmem>>, vector<8x8x16xf32>
    %c7 = arith.constant 7 : index
    %c0_44 = arith.constant 0 : index
    %59 = vector.load %arg2[%c7, %c0_44] : memref<9x16xf32, #tpu.memory_space<vmem>>, vector<1x16xf32>
    %60 = vector.shape_cast %59 : vector<1x16xf32> to vector<16xf32>
    %61 = vector.shape_cast %60 : vector<16xf32> to vector<1x1x16xf32>
    %62 = vector.broadcast %61 : vector<1x1x16xf32> to vector<8x8x16xf32>
    %63 = arith.mulf %58, %62 : vector<8x8x16xf32>
    %64 = arith.addf %57, %63 : vector<8x8x16xf32>
    %c2_45 = arith.constant 2 : index
    %c2_46 = arith.constant 2 : index
    %c0_47 = arith.constant 0 : index
    %65 = vector.load %arg13[%c2_45, %c2_46, %c0_47] : memref<10x10x16xf32, #tpu.memory_space<vmem>>, vector<8x8x16xf32>
    %c8 = arith.constant 8 : index
    %c0_48 = arith.constant 0 : index
    %66 = vector.load %arg2[%c8, %c0_48] : memref<9x16xf32, #tpu.memory_space<vmem>>, vector<1x16xf32>
    %67 = vector.shape_cast %66 : vector<1x16xf32> to vector<16xf32>
    %68 = vector.shape_cast %67 : vector<16xf32> to vector<1x1x16xf32>
    %69 = vector.broadcast %68 : vector<1x1x16xf32> to vector<8x8x16xf32>
    %70 = arith.mulf %65, %69 : vector<8x8x16xf32>
    %71 = arith.addf %64, %70 : vector<8x8x16xf32>
    %72 = vector.broadcast %6 : vector<1x1x16xf32> to vector<8x8x16xf32>
    %73 = arith.mulf %71, %72 : vector<8x8x16xf32>
    %74 = vector.broadcast %8 : vector<1x1x16xf32> to vector<8x8x16xf32>
    %75 = arith.mulf %1, %74 : vector<8x8x16xf32>
    %76 = arith.addf %73, %75 : vector<8x8x16xf32>
    %77 = vector.broadcast %10 : vector<1x1x16xf32> to vector<8x8x16xf32>
    %78 = arith.addf %76, %77 : vector<8x8x16xf32>
    %79 = vector.shape_cast %78 : vector<8x8x16xf32> to vector<64x16xf32>
    %c0_49 = arith.constant 0 : index
    %c0_50 = arith.constant 0 : index
    %80 = vector.load %arg7[%c0_49, %c0_50] : memref<1x32xf32, #tpu.memory_space<vmem>>, vector<1x32xf32>
    %c0_51 = arith.constant 0 : index
    %c0_52 = arith.constant 0 : index
    %81 = vector.load %arg8[%c0_51, %c0_52] : memref<1x32xf32, #tpu.memory_space<vmem>>, vector<1x32xf32>
    %c0_53 = arith.constant 0 : index
    %c0_54 = arith.constant 0 : index
    %82 = vector.load %arg10[%c0_53, %c0_54] : memref<1x16xf32, #tpu.memory_space<vmem>>, vector<1x16xf32>
    %c0_55 = arith.constant 0 : index
    %c0_56 = arith.constant 0 : index
    %83 = vector.load %arg11[%c0_55, %c0_56] : memref<1x16xf32, #tpu.memory_space<vmem>>, vector<1x16xf32>
    %84 = arith.truncf %79 : vector<64x16xf32> to vector<64x16xbf16>
    %c0_57 = arith.constant 0 : index
    %c0_58 = arith.constant 0 : index
    %85 = vector.load %arg6[%c0_57, %c0_58] : memref<16x32xbf16, #tpu.memory_space<vmem>>, vector<16x32xbf16>
    %cst_59 = arith.constant dense<0.000000e+00> : vector<64x32xf32>
    %86 = tpu.matmul %84, %85, %cst_59 {dimension_numbers = #tpu.dot_dimension_numbers<[1], [0], [0], [1], [0, 0, 1, 1], [], []>} : vector<64x16xbf16>, vector<16x32xbf16>, vector<64x32xf32> -> vector<64x32xf32>
    %87 = vector.broadcast %80 : vector<1x32xf32> to vector<64x32xf32>
    %88 = arith.mulf %86, %87 : vector<64x32xf32>
    %89 = vector.broadcast %81 : vector<1x32xf32> to vector<64x32xf32>
    %90 = arith.addf %88, %89 : vector<64x32xf32>
    %cst_60 = arith.constant 5.000000e-01 : f32
    %91 = vector.broadcast %cst_60 : f32 to vector<64x32xf32>
    %92 = arith.mulf %91, %90 : vector<64x32xf32>
    %cst_61 = arith.constant 4.471500e-02 : f32
    %93 = vector.broadcast %cst_61 : f32 to vector<64x32xf32>
    %94 = arith.mulf %93, %90 : vector<64x32xf32>
    %95 = arith.mulf %94, %90 : vector<64x32xf32>
    %96 = arith.mulf %95, %90 : vector<64x32xf32>
    %97 = arith.addf %90, %96 : vector<64x32xf32>
    %cst_62 = arith.constant 0.797884583 : f32
    %98 = vector.broadcast %cst_62 : f32 to vector<64x32xf32>
    %99 = arith.mulf %98, %97 : vector<64x32xf32>
    %100 = math.tanh %99 : vector<64x32xf32>
    %cst_63 = arith.constant 1.000000e+00 : f32
    %101 = vector.broadcast %cst_63 : f32 to vector<64x32xf32>
    %102 = arith.addf %101, %100 : vector<64x32xf32>
    %103 = arith.mulf %92, %102 : vector<64x32xf32>
    %104 = arith.truncf %103 : vector<64x32xf32> to vector<64x32xbf16>
    %c0_64 = arith.constant 0 : index
    %c0_65 = arith.constant 0 : index
    %105 = vector.load %arg9[%c0_64, %c0_65] : memref<32x16xbf16, #tpu.memory_space<vmem>>, vector<32x16xbf16>
    %cst_66 = arith.constant dense<0.000000e+00> : vector<64x16xf32>
    %106 = tpu.matmul %104, %105, %cst_66 {dimension_numbers = #tpu.dot_dimension_numbers<[1], [0], [0], [1], [0, 0, 1, 1], [], []>} : vector<64x32xbf16>, vector<32x16xbf16>, vector<64x16xf32> -> vector<64x16xf32>
    %107 = vector.broadcast %82 : vector<1x16xf32> to vector<64x16xf32>
    %108 = arith.mulf %106, %107 : vector<64x16xf32>
    %109 = vector.broadcast %83 : vector<1x16xf32> to vector<64x16xf32>
    %110 = arith.addf %108, %109 : vector<64x16xf32>
    %111 = arith.addf %79, %110 : vector<64x16xf32>
    %112 = vector.shape_cast %111 : vector<64x16xf32> to vector<8x8x16xf32>
    %c0_67 = arith.constant 0 : index
    %c0_68 = arith.constant 0 : index
    %c0_69 = arith.constant 0 : index
    %c0_70 = arith.constant 0 : index
    %113 = vector.load %arg12[%c0_67, %c0_68, %c0_69, %c0_70] : memref<1x8x8x16xf32, #tpu.memory_space<vmem>>, vector<1x8x8x16xf32>
    %114 = vector.shape_cast %113 : vector<1x8x8x16xf32> to vector<8x8x16xf32>
    %115 = vector.shape_cast %112 : vector<8x8x16xf32> to vector<1x8x8x16xf32>
    tpu.vector_store %arg12[%c0_67, %c0_68, %c0_69, %c0_70], %115 {strides = array<i32>} : memref<1x8x8x16xf32, #tpu.memory_space<vmem>>, vector<1x8x8x16xf32>,
    return
  }
  func.func @transform_0(%arg0: i32) -> (i32, i32, i32, i32) {
    %c0_i32 = arith.constant 0 : i32
    %c0_i32_0 = arith.constant 0 : i32
    %c0_i32_1 = arith.constant 0 : i32
    %c0_i32_2 = arith.constant 0 : i32
    return %arg0, %c0_i32, %c0_i32_0, %c0_i32_1 : i32, i32, i32, i32
  }
  func.func @transform_1(%arg0: i32) -> (i32, i32) {
    %c0_i32 = arith.constant 0 : i32
    %c0_i32_0 = arith.constant 0 : i32
    %c0_i32_1 = arith.constant 0 : i32
    return %c0_i32, %c0_i32_0 : i32, i32
  }
  func.func @transform_2(%arg0: i32) -> (i32, i32) {
    %c0_i32 = arith.constant 0 : i32
    %c0_i32_0 = arith.constant 0 : i32
    %c0_i32_1 = arith.constant 0 : i32
    return %c0_i32, %c0_i32_0 : i32, i32
  }
  func.func @transform_3(%arg0: i32) -> (i32, i32) {
    %c0_i32 = arith.constant 0 : i32
    %c0_i32_0 = arith.constant 0 : i32
    %c0_i32_1 = arith.constant 0 : i32
    return %c0_i32, %c0_i32_0 : i32, i32
  }
  func.func @transform_4(%arg0: i32) -> (i32, i32) {
    %c0_i32 = arith.constant 0 : i32
    %c0_i32_0 = arith.constant 0 : i32
    %c0_i32_1 = arith.constant 0 : i32
    return %c0_i32, %c0_i32_0 : i32, i32
  }
  func.func @transform_5(%arg0: i32) -> (i32, i32) {
    %c0_i32 = arith.constant 0 : i32
    %c0_i32_0 = arith.constant 0 : i32
    %c0_i32_1 = arith.constant 0 : i32
    return %c0_i32, %c0_i32_0 : i32, i32
  }
  func.func @transform_6(%arg0: i32) -> (i32, i32) {
    %c0_i32 = arith.constant 0 : i32
    %c0_i32_0 = arith.constant 0 : i32
    %c0_i32_1 = arith.constant 0 : i32
    return %c0_i32, %c0_i32_0 : i32, i32
  }
  func.func @transform_7(%arg0: i32) -> (i32, i32) {
    %c0_i32 = arith.constant 0 : i32
    %c0_i32_0 = arith.constant 0 : i32
    %c0_i32_1 = arith.constant 0 : i32
    return %c0_i32, %c0_i32_0 : i32, i32
  }
  func.func @transform_8(%arg0: i32) -> (i32, i32) {
    %c0_i32 = arith.constant 0 : i32
    %c0_i32_0 = arith.constant 0 : i32
    %c0_i32_1 = arith.constant 0 : i32
    return %c0_i32, %c0_i32_0 : i32, i32
  }
  func.func @transform_9(%arg0: i32) -> (i32, i32) {
    %c0_i32 = arith.constant 0 : i32
    %c0_i32_0 = arith.constant 0 : i32
    %c0_i32_1 = arith.constant 0 : i32
    return %c0_i32, %c0_i32_0 : i32, i32
  }
  func.func @transform_10(%arg0: i32) -> (i32, i32) {
    %c0_i32 = arith.constant 0 : i32
    %c0_i32_0 = arith.constant 0 : i32
    %c0_i32_1 = arith.constant 0 : i32
    return %c0_i32, %c0_i32_0 : i32, i32
  }
  func.func @transform_11(%arg0: i32) -> (i32, i32, i32, i32) {
    %c0_i32 = arith.constant 0 : i32
    %c0_i32_0 = arith.constant 0 : i32
    %c0_i32_1 = arith.constant 0 : i32
    %c0_i32_2 = arith.constant 0 : i32
    return %arg0, %c0_i32, %c0_i32_0, %c0_i32_1 : i32, i32, i32, i32
  }
}

module attributes {stable_mosaic.version = 11 : i64} {
  func.func @_block_kernel(%arg0: i32, %arg1: memref<1x8x8x16xf32, #tpu.memory_space<vmem>>, %arg2: memref<9x16xf32, #tpu.memory_space<vmem>>, %arg3: memref<1x16xf32, #tpu.memory_space<vmem>>, %arg4: memref<1x16xf32, #tpu.memory_space<vmem>>, %arg5: memref<1x16xf32, #tpu.memory_space<vmem>>, %arg6: memref<16x8xbf16, #tpu.memory_space<vmem>>, %arg7: memref<1x8xf32, #tpu.memory_space<vmem>>, %arg8: memref<8x16xbf16, #tpu.memory_space<vmem>>, %arg9: memref<1x16xf32, #tpu.memory_space<vmem>>, %arg10: memref<16x32xbf16, #tpu.memory_space<vmem>>, %arg11: memref<1x32xf32, #tpu.memory_space<vmem>>, %arg12: memref<1x32xf32, #tpu.memory_space<vmem>>, %arg13: memref<32x16xbf16, #tpu.memory_space<vmem>>, %arg14: memref<1x16xf32, #tpu.memory_space<vmem>>, %arg15: memref<1x16xf32, #tpu.memory_space<vmem>>, %arg16: memref<1x8x8x16xf32, #tpu.memory_space<vmem>>, %arg17: memref<10x10x16xf32, #tpu.memory_space<vmem>>) attributes {dimension_semantics = [#tpu.dimension_semantics<parallel>], iteration_bounds = array<i64: 2>, scalar_prefetch = 0 : i64, scratch_operands = 1 : i64, tpu.core_type = #tpu.core_type<tc>, window_params = [{transform_indices = @transform_0, window_bounds = array<i64: 1, 8, 8, 16>}, {pipeline_mode = #tpu.pipeline_mode<synchronous>, transform_indices = @transform_1, window_bounds = array<i64: 9, 16>}, {pipeline_mode = #tpu.pipeline_mode<synchronous>, transform_indices = @transform_2, window_bounds = array<i64: 1, 16>}, {pipeline_mode = #tpu.pipeline_mode<synchronous>, transform_indices = @transform_3, window_bounds = array<i64: 1, 16>}, {pipeline_mode = #tpu.pipeline_mode<synchronous>, transform_indices = @transform_4, window_bounds = array<i64: 1, 16>}, {pipeline_mode = #tpu.pipeline_mode<synchronous>, transform_indices = @transform_5, window_bounds = array<i64: 16, 8>}, {pipeline_mode = #tpu.pipeline_mode<synchronous>, transform_indices = @transform_6, window_bounds = array<i64: 1, 8>}, {pipeline_mode = #tpu.pipeline_mode<synchronous>, transform_indices = @transform_7, window_bounds = array<i64: 8, 16>}, {pipeline_mode = #tpu.pipeline_mode<synchronous>, transform_indices = @transform_8, window_bounds = array<i64: 1, 16>}, {pipeline_mode = #tpu.pipeline_mode<synchronous>, transform_indices = @transform_9, window_bounds = array<i64: 16, 32>}, {pipeline_mode = #tpu.pipeline_mode<synchronous>, transform_indices = @transform_10, window_bounds = array<i64: 1, 32>}, {pipeline_mode = #tpu.pipeline_mode<synchronous>, transform_indices = @transform_11, window_bounds = array<i64: 1, 32>}, {pipeline_mode = #tpu.pipeline_mode<synchronous>, transform_indices = @transform_12, window_bounds = array<i64: 32, 16>}, {pipeline_mode = #tpu.pipeline_mode<synchronous>, transform_indices = @transform_13, window_bounds = array<i64: 1, 16>}, {pipeline_mode = #tpu.pipeline_mode<synchronous>, transform_indices = @transform_14, window_bounds = array<i64: 1, 16>}, {transform_indices = @transform_15, window_bounds = array<i64: 1, 8, 8, 16>}]} {
    %c0 = arith.constant 0 : index
    %c0_0 = arith.constant 0 : index
    %c0_1 = arith.constant 0 : index
    %c0_2 = arith.constant 0 : index
    %0 = vector.load %arg1[%c0, %c0_0, %c0_1, %c0_2] : memref<1x8x8x16xf32, #tpu.memory_space<vmem>>, vector<1x8x8x16xf32>
    %1 = vector.shape_cast %0 : vector<1x8x8x16xf32> to vector<8x8x16xf32>
    %cst = arith.constant 0.000000e+00 : f32
    %2 = vector.broadcast %cst : f32 to vector<10x10x16xf32>
    %c0_3 = arith.constant 0 : index
    %c0_4 = arith.constant 0 : index
    %c0_5 = arith.constant 0 : index
    %3 = vector.load %arg17[%c0_3, %c0_4, %c0_5] : memref<10x10x16xf32, #tpu.memory_space<vmem>>, vector<10x10x16xf32>
    tpu.vector_store %arg17[%c0_3, %c0_4, %c0_5], %2 {strides = array<i32>} : memref<10x10x16xf32, #tpu.memory_space<vmem>>, vector<10x10x16xf32>,
    %c1 = arith.constant 1 : index
    %c1_6 = arith.constant 1 : index
    %c0_7 = arith.constant 0 : index
    %4 = vector.load %arg17[%c1, %c1_6, %c0_7] : memref<10x10x16xf32, #tpu.memory_space<vmem>>, vector<8x8x16xf32>
    tpu.vector_store %arg17[%c1, %c1_6, %c0_7], %1 {strides = array<i32>} : memref<10x10x16xf32, #tpu.memory_space<vmem>>, vector<8x8x16xf32>,
    %c0_8 = arith.constant 0 : index
    %c0_9 = arith.constant 0 : index
    %5 = vector.load %arg3[%c0_8, %c0_9] : memref<1x16xf32, #tpu.memory_space<vmem>>, vector<1x16xf32>
    %6 = vector.shape_cast %5 : vector<1x16xf32> to vector<1x1x16xf32>
    %c0_10 = arith.constant 0 : index
    %c0_11 = arith.constant 0 : index
    %7 = vector.load %arg4[%c0_10, %c0_11] : memref<1x16xf32, #tpu.memory_space<vmem>>, vector<1x16xf32>
    %8 = vector.shape_cast %7 : vector<1x16xf32> to vector<1x1x16xf32>
    %c0_12 = arith.constant 0 : index
    %c0_13 = arith.constant 0 : index
    %9 = vector.load %arg5[%c0_12, %c0_13] : memref<1x16xf32, #tpu.memory_space<vmem>>, vector<1x16xf32>
    %10 = vector.shape_cast %9 : vector<1x16xf32> to vector<1x1x16xf32>
    %c4 = arith.constant 4 : index
    %c0_14 = arith.constant 0 : index
    %11 = vector.load %arg2[%c4, %c0_14] : memref<9x16xf32, #tpu.memory_space<vmem>>, vector<1x16xf32>
    %12 = vector.shape_cast %11 : vector<1x16xf32> to vector<16xf32>
    %13 = vector.shape_cast %12 : vector<16xf32> to vector<1x1x16xf32>
    %14 = vector.broadcast %13 : vector<1x1x16xf32> to vector<8x8x16xf32>
    %15 = arith.mulf %1, %14 : vector<8x8x16xf32>
    %c0_15 = arith.constant 0 : index
    %c0_16 = arith.constant 0 : index
    %c0_17 = arith.constant 0 : index
    %16 = vector.load %arg17[%c0_15, %c0_16, %c0_17] : memref<10x10x16xf32, #tpu.memory_space<vmem>>, vector<8x8x16xf32>
    %c0_18 = arith.constant 0 : index
    %c0_19 = arith.constant 0 : index
    %17 = vector.load %arg2[%c0_18, %c0_19] : memref<9x16xf32, #tpu.memory_space<vmem>>, vector<1x16xf32>
    %18 = vector.shape_cast %17 : vector<1x16xf32> to vector<16xf32>
    %19 = vector.shape_cast %18 : vector<16xf32> to vector<1x1x16xf32>
    %20 = vector.broadcast %19 : vector<1x1x16xf32> to vector<8x8x16xf32>
    %21 = arith.mulf %16, %20 : vector<8x8x16xf32>
    %22 = arith.addf %15, %21 : vector<8x8x16xf32>
    %c0_20 = arith.constant 0 : index
    %c1_21 = arith.constant 1 : index
    %c0_22 = arith.constant 0 : index
    %23 = vector.load %arg17[%c0_20, %c1_21, %c0_22] : memref<10x10x16xf32, #tpu.memory_space<vmem>>, vector<8x8x16xf32>
    %c1_23 = arith.constant 1 : index
    %c0_24 = arith.constant 0 : index
    %24 = vector.load %arg2[%c1_23, %c0_24] : memref<9x16xf32, #tpu.memory_space<vmem>>, vector<1x16xf32>
    %25 = vector.shape_cast %24 : vector<1x16xf32> to vector<16xf32>
    %26 = vector.shape_cast %25 : vector<16xf32> to vector<1x1x16xf32>
    %27 = vector.broadcast %26 : vector<1x1x16xf32> to vector<8x8x16xf32>
    %28 = arith.mulf %23, %27 : vector<8x8x16xf32>
    %29 = arith.addf %22, %28 : vector<8x8x16xf32>
    %c0_25 = arith.constant 0 : index
    %c2 = arith.constant 2 : index
    %c0_26 = arith.constant 0 : index
    %30 = vector.load %arg17[%c0_25, %c2, %c0_26] : memref<10x10x16xf32, #tpu.memory_space<vmem>>, vector<8x8x16xf32>
    %c2_27 = arith.constant 2 : index
    %c0_28 = arith.constant 0 : index
    %31 = vector.load %arg2[%c2_27, %c0_28] : memref<9x16xf32, #tpu.memory_space<vmem>>, vector<1x16xf32>
    %32 = vector.shape_cast %31 : vector<1x16xf32> to vector<16xf32>
    %33 = vector.shape_cast %32 : vector<16xf32> to vector<1x1x16xf32>
    %34 = vector.broadcast %33 : vector<1x1x16xf32> to vector<8x8x16xf32>
    %35 = arith.mulf %30, %34 : vector<8x8x16xf32>
    %36 = arith.addf %29, %35 : vector<8x8x16xf32>
    %c1_29 = arith.constant 1 : index
    %c0_30 = arith.constant 0 : index
    %c0_31 = arith.constant 0 : index
    %37 = vector.load %arg17[%c1_29, %c0_30, %c0_31] : memref<10x10x16xf32, #tpu.memory_space<vmem>>, vector<8x8x16xf32>
    %c3 = arith.constant 3 : index
    %c0_32 = arith.constant 0 : index
    %38 = vector.load %arg2[%c3, %c0_32] : memref<9x16xf32, #tpu.memory_space<vmem>>, vector<1x16xf32>
    %39 = vector.shape_cast %38 : vector<1x16xf32> to vector<16xf32>
    %40 = vector.shape_cast %39 : vector<16xf32> to vector<1x1x16xf32>
    %41 = vector.broadcast %40 : vector<1x1x16xf32> to vector<8x8x16xf32>
    %42 = arith.mulf %37, %41 : vector<8x8x16xf32>
    %43 = arith.addf %36, %42 : vector<8x8x16xf32>
    %c1_33 = arith.constant 1 : index
    %c2_34 = arith.constant 2 : index
    %c0_35 = arith.constant 0 : index
    %44 = vector.load %arg17[%c1_33, %c2_34, %c0_35] : memref<10x10x16xf32, #tpu.memory_space<vmem>>, vector<8x8x16xf32>
    %c5 = arith.constant 5 : index
    %c0_36 = arith.constant 0 : index
    %45 = vector.load %arg2[%c5, %c0_36] : memref<9x16xf32, #tpu.memory_space<vmem>>, vector<1x16xf32>
    %46 = vector.shape_cast %45 : vector<1x16xf32> to vector<16xf32>
    %47 = vector.shape_cast %46 : vector<16xf32> to vector<1x1x16xf32>
    %48 = vector.broadcast %47 : vector<1x1x16xf32> to vector<8x8x16xf32>
    %49 = arith.mulf %44, %48 : vector<8x8x16xf32>
    %50 = arith.addf %43, %49 : vector<8x8x16xf32>
    %c2_37 = arith.constant 2 : index
    %c0_38 = arith.constant 0 : index
    %c0_39 = arith.constant 0 : index
    %51 = vector.load %arg17[%c2_37, %c0_38, %c0_39] : memref<10x10x16xf32, #tpu.memory_space<vmem>>, vector<8x8x16xf32>
    %c6 = arith.constant 6 : index
    %c0_40 = arith.constant 0 : index
    %52 = vector.load %arg2[%c6, %c0_40] : memref<9x16xf32, #tpu.memory_space<vmem>>, vector<1x16xf32>
    %53 = vector.shape_cast %52 : vector<1x16xf32> to vector<16xf32>
    %54 = vector.shape_cast %53 : vector<16xf32> to vector<1x1x16xf32>
    %55 = vector.broadcast %54 : vector<1x1x16xf32> to vector<8x8x16xf32>
    %56 = arith.mulf %51, %55 : vector<8x8x16xf32>
    %57 = arith.addf %50, %56 : vector<8x8x16xf32>
    %c2_41 = arith.constant 2 : index
    %c1_42 = arith.constant 1 : index
    %c0_43 = arith.constant 0 : index
    %58 = vector.load %arg17[%c2_41, %c1_42, %c0_43] : memref<10x10x16xf32, #tpu.memory_space<vmem>>, vector<8x8x16xf32>
    %c7 = arith.constant 7 : index
    %c0_44 = arith.constant 0 : index
    %59 = vector.load %arg2[%c7, %c0_44] : memref<9x16xf32, #tpu.memory_space<vmem>>, vector<1x16xf32>
    %60 = vector.shape_cast %59 : vector<1x16xf32> to vector<16xf32>
    %61 = vector.shape_cast %60 : vector<16xf32> to vector<1x1x16xf32>
    %62 = vector.broadcast %61 : vector<1x1x16xf32> to vector<8x8x16xf32>
    %63 = arith.mulf %58, %62 : vector<8x8x16xf32>
    %64 = arith.addf %57, %63 : vector<8x8x16xf32>
    %c2_45 = arith.constant 2 : index
    %c2_46 = arith.constant 2 : index
    %c0_47 = arith.constant 0 : index
    %65 = vector.load %arg17[%c2_45, %c2_46, %c0_47] : memref<10x10x16xf32, #tpu.memory_space<vmem>>, vector<8x8x16xf32>
    %c8 = arith.constant 8 : index
    %c0_48 = arith.constant 0 : index
    %66 = vector.load %arg2[%c8, %c0_48] : memref<9x16xf32, #tpu.memory_space<vmem>>, vector<1x16xf32>
    %67 = vector.shape_cast %66 : vector<1x16xf32> to vector<16xf32>
    %68 = vector.shape_cast %67 : vector<16xf32> to vector<1x1x16xf32>
    %69 = vector.broadcast %68 : vector<1x1x16xf32> to vector<8x8x16xf32>
    %70 = arith.mulf %65, %69 : vector<8x8x16xf32>
    %71 = arith.addf %64, %70 : vector<8x8x16xf32>
    %72 = vector.broadcast %6 : vector<1x1x16xf32> to vector<8x8x16xf32>
    %73 = arith.mulf %71, %72 : vector<8x8x16xf32>
    %74 = vector.broadcast %8 : vector<1x1x16xf32> to vector<8x8x16xf32>
    %75 = arith.mulf %1, %74 : vector<8x8x16xf32>
    %76 = arith.addf %73, %75 : vector<8x8x16xf32>
    %77 = vector.broadcast %10 : vector<1x1x16xf32> to vector<8x8x16xf32>
    %78 = arith.addf %76, %77 : vector<8x8x16xf32>
    %c0_49 = arith.constant 0 : index
    %c0_50 = arith.constant 0 : index
    %79 = vector.load %arg7[%c0_49, %c0_50] : memref<1x8xf32, #tpu.memory_space<vmem>>, vector<1x8xf32>
    %c0_51 = arith.constant 0 : index
    %c0_52 = arith.constant 0 : index
    %80 = vector.load %arg9[%c0_51, %c0_52] : memref<1x16xf32, #tpu.memory_space<vmem>>, vector<1x16xf32>
    %81 = vector.shape_cast %78 : vector<8x8x16xf32> to vector<64x16xf32>
    %cst_53 = arith.constant dense<0.000000e+00> : vector<16xf32>
    %82 = vector.multi_reduction <add>, %81, %cst_53 [0] : vector<64x16xf32> to vector<16xf32>
    %83 = vector.shape_cast %82 : vector<16xf32> to vector<1x16xf32>
    %cst_54 = arith.constant 6.400000e+01 : f32
    %84 = vector.broadcast %cst_54 : f32 to vector<1x16xf32>
    %85 = arith.divf %83, %84 : vector<1x16xf32>
    %86 = arith.truncf %85 : vector<1x16xf32> to vector<1x16xbf16>
    %c0_55 = arith.constant 0 : index
    %c0_56 = arith.constant 0 : index
    %87 = vector.load %arg6[%c0_55, %c0_56] : memref<16x8xbf16, #tpu.memory_space<vmem>>, vector<16x8xbf16>
    %cst_57 = arith.constant dense<0.000000e+00> : vector<1x8xf32>
    %88 = tpu.matmul %86, %87, %cst_57 {dimension_numbers = #tpu.dot_dimension_numbers<[1], [0], [0], [1], [0, 0, 1, 1], [], []>} : vector<1x16xbf16>, vector<16x8xbf16>, vector<1x8xf32> -> vector<1x8xf32>
    %89 = arith.addf %88, %79 : vector<1x8xf32>
    %cst_58 = arith.constant 0.000000e+00 : f32
    %90 = vector.broadcast %cst_58 : f32 to vector<1x8xf32>
    %91 = arith.maximumf %89, %90 : vector<1x8xf32>
    %92 = arith.truncf %91 : vector<1x8xf32> to vector<1x8xbf16>
    %c0_59 = arith.constant 0 : index
    %c0_60 = arith.constant 0 : index
    %93 = vector.load %arg8[%c0_59, %c0_60] : memref<8x16xbf16, #tpu.memory_space<vmem>>, vector<8x16xbf16>
    %cst_61 = arith.constant dense<0.000000e+00> : vector<1x16xf32>
    %94 = tpu.matmul %92, %93, %cst_61 {dimension_numbers = #tpu.dot_dimension_numbers<[1], [0], [0], [1], [0, 0, 1, 1], [], []>} : vector<1x8xbf16>, vector<8x16xbf16>, vector<1x16xf32> -> vector<1x16xf32>
    %95 = arith.addf %94, %80 : vector<1x16xf32>
    %cst_62 = arith.constant 0.000000e+00 : f32
    %96 = vector.broadcast %cst_62 : f32 to vector<1x16xf32>
    %97 = arith.subf %96, %95 : vector<1x16xf32>
    %98 = math.exp %97 : vector<1x16xf32>
    %cst_63 = arith.constant 1.000000e+00 : f32
    %99 = vector.broadcast %cst_63 : f32 to vector<1x16xf32>
    %100 = arith.addf %99, %98 : vector<1x16xf32>
    %cst_64 = arith.constant 1.000000e+00 : f32
    %101 = vector.broadcast %cst_64 : f32 to vector<1x16xf32>
    %102 = arith.divf %101, %100 : vector<1x16xf32>
    %103 = vector.shape_cast %102 : vector<1x16xf32> to vector<1x1x16xf32>
    %104 = vector.broadcast %103 : vector<1x1x16xf32> to vector<8x8x16xf32>
    %105 = arith.mulf %78, %104 : vector<8x8x16xf32>
    %106 = vector.shape_cast %105 : vector<8x8x16xf32> to vector<64x16xf32>
    %c0_65 = arith.constant 0 : index
    %c0_66 = arith.constant 0 : index
    %107 = vector.load %arg11[%c0_65, %c0_66] : memref<1x32xf32, #tpu.memory_space<vmem>>, vector<1x32xf32>
    %c0_67 = arith.constant 0 : index
    %c0_68 = arith.constant 0 : index
    %108 = vector.load %arg12[%c0_67, %c0_68] : memref<1x32xf32, #tpu.memory_space<vmem>>, vector<1x32xf32>
    %c0_69 = arith.constant 0 : index
    %c0_70 = arith.constant 0 : index
    %109 = vector.load %arg14[%c0_69, %c0_70] : memref<1x16xf32, #tpu.memory_space<vmem>>, vector<1x16xf32>
    %c0_71 = arith.constant 0 : index
    %c0_72 = arith.constant 0 : index
    %110 = vector.load %arg15[%c0_71, %c0_72] : memref<1x16xf32, #tpu.memory_space<vmem>>, vector<1x16xf32>
    %111 = arith.truncf %106 : vector<64x16xf32> to vector<64x16xbf16>
    %c0_73 = arith.constant 0 : index
    %c0_74 = arith.constant 0 : index
    %112 = vector.load %arg10[%c0_73, %c0_74] : memref<16x32xbf16, #tpu.memory_space<vmem>>, vector<16x32xbf16>
    %cst_75 = arith.constant dense<0.000000e+00> : vector<64x32xf32>
    %113 = tpu.matmul %111, %112, %cst_75 {dimension_numbers = #tpu.dot_dimension_numbers<[1], [0], [0], [1], [0, 0, 1, 1], [], []>} : vector<64x16xbf16>, vector<16x32xbf16>, vector<64x32xf32> -> vector<64x32xf32>
    %114 = vector.broadcast %107 : vector<1x32xf32> to vector<64x32xf32>
    %115 = arith.mulf %113, %114 : vector<64x32xf32>
    %116 = vector.broadcast %108 : vector<1x32xf32> to vector<64x32xf32>
    %117 = arith.addf %115, %116 : vector<64x32xf32>
    %cst_76 = arith.constant 5.000000e-01 : f32
    %118 = vector.broadcast %cst_76 : f32 to vector<64x32xf32>
    %119 = arith.mulf %118, %117 : vector<64x32xf32>
    %cst_77 = arith.constant 4.471500e-02 : f32
    %120 = vector.broadcast %cst_77 : f32 to vector<64x32xf32>
    %121 = arith.mulf %120, %117 : vector<64x32xf32>
    %122 = arith.mulf %121, %117 : vector<64x32xf32>
    %123 = arith.mulf %122, %117 : vector<64x32xf32>
    %124 = arith.addf %117, %123 : vector<64x32xf32>
    %cst_78 = arith.constant 0.797884583 : f32
    %125 = vector.broadcast %cst_78 : f32 to vector<64x32xf32>
    %126 = arith.mulf %125, %124 : vector<64x32xf32>
    %127 = math.tanh %126 : vector<64x32xf32>
    %cst_79 = arith.constant 1.000000e+00 : f32
    %128 = vector.broadcast %cst_79 : f32 to vector<64x32xf32>
    %129 = arith.addf %128, %127 : vector<64x32xf32>
    %130 = arith.mulf %119, %129 : vector<64x32xf32>
    %131 = arith.truncf %130 : vector<64x32xf32> to vector<64x32xbf16>
    %c0_80 = arith.constant 0 : index
    %c0_81 = arith.constant 0 : index
    %132 = vector.load %arg13[%c0_80, %c0_81] : memref<32x16xbf16, #tpu.memory_space<vmem>>, vector<32x16xbf16>
    %cst_82 = arith.constant dense<0.000000e+00> : vector<64x16xf32>
    %133 = tpu.matmul %131, %132, %cst_82 {dimension_numbers = #tpu.dot_dimension_numbers<[1], [0], [0], [1], [0, 0, 1, 1], [], []>} : vector<64x32xbf16>, vector<32x16xbf16>, vector<64x16xf32> -> vector<64x16xf32>
    %134 = vector.broadcast %109 : vector<1x16xf32> to vector<64x16xf32>
    %135 = arith.mulf %133, %134 : vector<64x16xf32>
    %136 = vector.broadcast %110 : vector<1x16xf32> to vector<64x16xf32>
    %137 = arith.addf %135, %136 : vector<64x16xf32>
    %138 = arith.addf %106, %137 : vector<64x16xf32>
    %139 = vector.shape_cast %138 : vector<64x16xf32> to vector<8x8x16xf32>
    %c0_83 = arith.constant 0 : index
    %c0_84 = arith.constant 0 : index
    %c0_85 = arith.constant 0 : index
    %c0_86 = arith.constant 0 : index
    %140 = vector.load %arg16[%c0_83, %c0_84, %c0_85, %c0_86] : memref<1x8x8x16xf32, #tpu.memory_space<vmem>>, vector<1x8x8x16xf32>
    %141 = vector.shape_cast %140 : vector<1x8x8x16xf32> to vector<8x8x16xf32>
    %142 = vector.shape_cast %139 : vector<8x8x16xf32> to vector<1x8x8x16xf32>
    tpu.vector_store %arg16[%c0_83, %c0_84, %c0_85, %c0_86], %142 {strides = array<i32>} : memref<1x8x8x16xf32, #tpu.memory_space<vmem>>, vector<1x8x8x16xf32>,
    return
  }
  func.func @transform_0(%arg0: i32) -> (i32, i32, i32, i32) {
    %c0_i32 = arith.constant 0 : i32
    %c0_i32_0 = arith.constant 0 : i32
    %c0_i32_1 = arith.constant 0 : i32
    %c0_i32_2 = arith.constant 0 : i32
    return %arg0, %c0_i32, %c0_i32_0, %c0_i32_1 : i32, i32, i32, i32
  }
  func.func @transform_1(%arg0: i32) -> (i32, i32) {
    %c0_i32 = arith.constant 0 : i32
    %c0_i32_0 = arith.constant 0 : i32
    %c0_i32_1 = arith.constant 0 : i32
    return %c0_i32, %c0_i32_0 : i32, i32
  }
  func.func @transform_2(%arg0: i32) -> (i32, i32) {
    %c0_i32 = arith.constant 0 : i32
    %c0_i32_0 = arith.constant 0 : i32
    %c0_i32_1 = arith.constant 0 : i32
    return %c0_i32, %c0_i32_0 : i32, i32
  }
  func.func @transform_3(%arg0: i32) -> (i32, i32) {
    %c0_i32 = arith.constant 0 : i32
    %c0_i32_0 = arith.constant 0 : i32
    %c0_i32_1 = arith.constant 0 : i32
    return %c0_i32, %c0_i32_0 : i32, i32
  }
  func.func @transform_4(%arg0: i32) -> (i32, i32) {
    %c0_i32 = arith.constant 0 : i32
    %c0_i32_0 = arith.constant 0 : i32
    %c0_i32_1 = arith.constant 0 : i32
    return %c0_i32, %c0_i32_0 : i32, i32
  }
  func.func @transform_5(%arg0: i32) -> (i32, i32) {
    %c0_i32 = arith.constant 0 : i32
    %c0_i32_0 = arith.constant 0 : i32
    %c0_i32_1 = arith.constant 0 : i32
    return %c0_i32, %c0_i32_0 : i32, i32
  }
  func.func @transform_6(%arg0: i32) -> (i32, i32) {
    %c0_i32 = arith.constant 0 : i32
    %c0_i32_0 = arith.constant 0 : i32
    %c0_i32_1 = arith.constant 0 : i32
    return %c0_i32, %c0_i32_0 : i32, i32
  }
  func.func @transform_7(%arg0: i32) -> (i32, i32) {
    %c0_i32 = arith.constant 0 : i32
    %c0_i32_0 = arith.constant 0 : i32
    %c0_i32_1 = arith.constant 0 : i32
    return %c0_i32, %c0_i32_0 : i32, i32
  }
  func.func @transform_8(%arg0: i32) -> (i32, i32) {
    %c0_i32 = arith.constant 0 : i32
    %c0_i32_0 = arith.constant 0 : i32
    %c0_i32_1 = arith.constant 0 : i32
    return %c0_i32, %c0_i32_0 : i32, i32
  }
  func.func @transform_9(%arg0: i32) -> (i32, i32) {
    %c0_i32 = arith.constant 0 : i32
    %c0_i32_0 = arith.constant 0 : i32
    %c0_i32_1 = arith.constant 0 : i32
    return %c0_i32, %c0_i32_0 : i32, i32
  }
  func.func @transform_10(%arg0: i32) -> (i32, i32) {
    %c0_i32 = arith.constant 0 : i32
    %c0_i32_0 = arith.constant 0 : i32
    %c0_i32_1 = arith.constant 0 : i32
    return %c0_i32, %c0_i32_0 : i32, i32
  }
  func.func @transform_11(%arg0: i32) -> (i32, i32) {
    %c0_i32 = arith.constant 0 : i32
    %c0_i32_0 = arith.constant 0 : i32
    %c0_i32_1 = arith.constant 0 : i32
    return %c0_i32, %c0_i32_0 : i32, i32
  }
  func.func @transform_12(%arg0: i32) -> (i32, i32) {
    %c0_i32 = arith.constant 0 : i32
    %c0_i32_0 = arith.constant 0 : i32
    %c0_i32_1 = arith.constant 0 : i32
    return %c0_i32, %c0_i32_0 : i32, i32
  }
  func.func @transform_13(%arg0: i32) -> (i32, i32) {
    %c0_i32 = arith.constant 0 : i32
    %c0_i32_0 = arith.constant 0 : i32
    %c0_i32_1 = arith.constant 0 : i32
    return %c0_i32, %c0_i32_0 : i32, i32
  }
  func.func @transform_14(%arg0: i32) -> (i32, i32) {
    %c0_i32 = arith.constant 0 : i32
    %c0_i32_0 = arith.constant 0 : i32
    %c0_i32_1 = arith.constant 0 : i32
    return %c0_i32, %c0_i32_0 : i32, i32
  }
  func.func @transform_15(%arg0: i32) -> (i32, i32, i32, i32) {
    %c0_i32 = arith.constant 0 : i32
    %c0_i32_0 = arith.constant 0 : i32
    %c0_i32_1 = arith.constant 0 : i32
    %c0_i32_2 = arith.constant 0 : i32
    return %arg0, %c0_i32, %c0_i32_0, %c0_i32_1 : i32, i32, i32, i32
  }
}

module attributes {stable_mosaic.version = 11 : i64} {
  func.func @_downsample_kernel(%arg0: i32, %arg1: memref<1x16x16x8xf32, #tpu.memory_space<vmem>>, %arg2: memref<9x8xf32, #tpu.memory_space<vmem>>, %arg3: memref<1x8xf32, #tpu.memory_space<vmem>>, %arg4: memref<1x8xf32, #tpu.memory_space<vmem>>, %arg5: memref<1x8xf32, #tpu.memory_space<vmem>>, %arg6: memref<8x16xbf16, #tpu.memory_space<vmem>>, %arg7: memref<1x16xf32, #tpu.memory_space<vmem>>, %arg8: memref<1x16xf32, #tpu.memory_space<vmem>>, %arg9: memref<16x8xbf16, #tpu.memory_space<vmem>>, %arg10: memref<1x8xf32, #tpu.memory_space<vmem>>, %arg11: memref<1x8xf32, #tpu.memory_space<vmem>>, %arg12: memref<9x8xf32, #tpu.memory_space<vmem>>, %arg13: memref<1x8xf32, #tpu.memory_space<vmem>>, %arg14: memref<1x8xf32, #tpu.memory_space<vmem>>, %arg15: memref<8x16xbf16, #tpu.memory_space<vmem>>, %arg16: memref<1x16xf32, #tpu.memory_space<vmem>>, %arg17: memref<1x16xf32, #tpu.memory_space<vmem>>, %arg18: memref<16x32xbf16, #tpu.memory_space<vmem>>, %arg19: memref<1x32xf32, #tpu.memory_space<vmem>>, %arg20: memref<1x32xf32, #tpu.memory_space<vmem>>, %arg21: memref<32x16xbf16, #tpu.memory_space<vmem>>, %arg22: memref<1x16xf32, #tpu.memory_space<vmem>>, %arg23: memref<1x16xf32, #tpu.memory_space<vmem>>, %arg24: memref<1x8x8x16xf32, #tpu.memory_space<vmem>>, %arg25: memref<18x18x8xf32, #tpu.memory_space<vmem>>) attributes {dimension_semantics = [#tpu.dimension_semantics<parallel>], iteration_bounds = array<i64: 2>, scalar_prefetch = 0 : i64, scratch_operands = 1 : i64, tpu.core_type = #tpu.core_type<tc>, window_params = [{transform_indices = @transform_0, window_bounds = array<i64: 1, 16, 16, 8>}, {pipeline_mode = #tpu.pipeline_mode<synchronous>, transform_indices = @transform_1, window_bounds = array<i64: 9, 8>}, {pipeline_mode = #tpu.pipeline_mode<synchronous>, transform_indices = @transform_2, window_bounds = array<i64: 1, 8>}, {pipeline_mode = #tpu.pipeline_mode<synchronous>, transform_indices = @transform_3, window_bounds = array<i64: 1, 8>}, {pipeline_mode = #tpu.pipeline_mode<synchronous>, transform_indices = @transform_4, window_bounds = array<i64: 1, 8>}, {pipeline_mode = #tpu.pipeline_mode<synchronous>, transform_indices = @transform_5, window_bounds = array<i64: 8, 16>}, {pipeline_mode = #tpu.pipeline_mode<synchronous>, transform_indices = @transform_6, window_bounds = array<i64: 1, 16>}, {pipeline_mode = #tpu.pipeline_mode<synchronous>, transform_indices = @transform_7, window_bounds = array<i64: 1, 16>}, {pipeline_mode = #tpu.pipeline_mode<synchronous>, transform_indices = @transform_8, window_bounds = array<i64: 16, 8>}, {pipeline_mode = #tpu.pipeline_mode<synchronous>, transform_indices = @transform_9, window_bounds = array<i64: 1, 8>}, {pipeline_mode = #tpu.pipeline_mode<synchronous>, transform_indices = @transform_10, window_bounds = array<i64: 1, 8>}, {pipeline_mode = #tpu.pipeline_mode<synchronous>, transform_indices = @transform_11, window_bounds = array<i64: 9, 8>}, {pipeline_mode = #tpu.pipeline_mode<synchronous>, transform_indices = @transform_12, window_bounds = array<i64: 1, 8>}, {pipeline_mode = #tpu.pipeline_mode<synchronous>, transform_indices = @transform_13, window_bounds = array<i64: 1, 8>}, {pipeline_mode = #tpu.pipeline_mode<synchronous>, transform_indices = @transform_14, window_bounds = array<i64: 8, 16>}, {pipeline_mode = #tpu.pipeline_mode<synchronous>, transform_indices = @transform_15, window_bounds = array<i64: 1, 16>}, {pipeline_mode = #tpu.pipeline_mode<synchronous>, transform_indices = @transform_16, window_bounds = array<i64: 1, 16>}, {pipeline_mode = #tpu.pipeline_mode<synchronous>, transform_indices = @transform_17, window_bounds = array<i64: 16, 32>}, {pipeline_mode = #tpu.pipeline_mode<synchronous>, transform_indices = @transform_18, window_bounds = array<i64: 1, 32>}, {pipeline_mode = #tpu.pipeline_mode<synchronous>, transform_indices = @transform_19, window_bounds = array<i64: 1, 32>}, {pipeline_mode = #tpu.pipeline_mode<synchronous>, transform_indices = @transform_20, window_bounds = array<i64: 32, 16>}, {pipeline_mode = #tpu.pipeline_mode<synchronous>, transform_indices = @transform_21, window_bounds = array<i64: 1, 16>}, {pipeline_mode = #tpu.pipeline_mode<synchronous>, transform_indices = @transform_22, window_bounds = array<i64: 1, 16>}, {transform_indices = @transform_23, window_bounds = array<i64: 1, 8, 8, 16>}]} {
    %c0 = arith.constant 0 : index
    %c0_0 = arith.constant 0 : index
    %c0_1 = arith.constant 0 : index
    %c0_2 = arith.constant 0 : index
    %0 = vector.load %arg1[%c0, %c0_0, %c0_1, %c0_2] : memref<1x16x16x8xf32, #tpu.memory_space<vmem>>, vector<1x16x16x8xf32>
    %1 = vector.shape_cast %0 : vector<1x16x16x8xf32> to vector<16x16x8xf32>
    %cst = arith.constant 0.000000e+00 : f32
    %2 = vector.broadcast %cst : f32 to vector<18x18x8xf32>
    %c0_3 = arith.constant 0 : index
    %c0_4 = arith.constant 0 : index
    %c0_5 = arith.constant 0 : index
    %3 = vector.load %arg25[%c0_3, %c0_4, %c0_5] : memref<18x18x8xf32, #tpu.memory_space<vmem>>, vector<18x18x8xf32>
    tpu.vector_store %arg25[%c0_3, %c0_4, %c0_5], %2 {strides = array<i32>} : memref<18x18x8xf32, #tpu.memory_space<vmem>>, vector<18x18x8xf32>,
    %c1 = arith.constant 1 : index
    %c1_6 = arith.constant 1 : index
    %c0_7 = arith.constant 0 : index
    %4 = vector.load %arg25[%c1, %c1_6, %c0_7] : memref<18x18x8xf32, #tpu.memory_space<vmem>>, vector<16x16x8xf32>
    tpu.vector_store %arg25[%c1, %c1_6, %c0_7], %1 {strides = array<i32>} : memref<18x18x8xf32, #tpu.memory_space<vmem>>, vector<16x16x8xf32>,
    %c0_8 = arith.constant 0 : index
    %c0_9 = arith.constant 0 : index
    %5 = vector.load %arg3[%c0_8, %c0_9] : memref<1x8xf32, #tpu.memory_space<vmem>>, vector<1x8xf32>
    %6 = vector.shape_cast %5 : vector<1x8xf32> to vector<1x1x8xf32>
    %c0_10 = arith.constant 0 : index
    %c0_11 = arith.constant 0 : index
    %7 = vector.load %arg4[%c0_10, %c0_11] : memref<1x8xf32, #tpu.memory_space<vmem>>, vector<1x8xf32>
    %8 = vector.shape_cast %7 : vector<1x8xf32> to vector<1x1x8xf32>
    %c0_12 = arith.constant 0 : index
    %c0_13 = arith.constant 0 : index
    %9 = vector.load %arg5[%c0_12, %c0_13] : memref<1x8xf32, #tpu.memory_space<vmem>>, vector<1x8xf32>
    %10 = vector.shape_cast %9 : vector<1x8xf32> to vector<1x1x8xf32>
    %c4 = arith.constant 4 : index
    %c0_14 = arith.constant 0 : index
    %11 = vector.load %arg2[%c4, %c0_14] : memref<9x8xf32, #tpu.memory_space<vmem>>, vector<1x8xf32>
    %12 = vector.shape_cast %11 : vector<1x8xf32> to vector<8xf32>
    %13 = vector.shape_cast %12 : vector<8xf32> to vector<1x1x8xf32>
    %14 = vector.broadcast %13 : vector<1x1x8xf32> to vector<16x16x8xf32>
    %15 = arith.mulf %1, %14 : vector<16x16x8xf32>
    %c0_15 = arith.constant 0 : index
    %c0_16 = arith.constant 0 : index
    %c0_17 = arith.constant 0 : index
    %16 = vector.load %arg25[%c0_15, %c0_16, %c0_17] : memref<18x18x8xf32, #tpu.memory_space<vmem>>, vector<16x16x8xf32>
    %c0_18 = arith.constant 0 : index
    %c0_19 = arith.constant 0 : index
    %17 = vector.load %arg2[%c0_18, %c0_19] : memref<9x8xf32, #tpu.memory_space<vmem>>, vector<1x8xf32>
    %18 = vector.shape_cast %17 : vector<1x8xf32> to vector<8xf32>
    %19 = vector.shape_cast %18 : vector<8xf32> to vector<1x1x8xf32>
    %20 = vector.broadcast %19 : vector<1x1x8xf32> to vector<16x16x8xf32>
    %21 = arith.mulf %16, %20 : vector<16x16x8xf32>
    %22 = arith.addf %15, %21 : vector<16x16x8xf32>
    %c0_20 = arith.constant 0 : index
    %c1_21 = arith.constant 1 : index
    %c0_22 = arith.constant 0 : index
    %23 = vector.load %arg25[%c0_20, %c1_21, %c0_22] : memref<18x18x8xf32, #tpu.memory_space<vmem>>, vector<16x16x8xf32>
    %c1_23 = arith.constant 1 : index
    %c0_24 = arith.constant 0 : index
    %24 = vector.load %arg2[%c1_23, %c0_24] : memref<9x8xf32, #tpu.memory_space<vmem>>, vector<1x8xf32>
    %25 = vector.shape_cast %24 : vector<1x8xf32> to vector<8xf32>
    %26 = vector.shape_cast %25 : vector<8xf32> to vector<1x1x8xf32>
    %27 = vector.broadcast %26 : vector<1x1x8xf32> to vector<16x16x8xf32>
    %28 = arith.mulf %23, %27 : vector<16x16x8xf32>
    %29 = arith.addf %22, %28 : vector<16x16x8xf32>
    %c0_25 = arith.constant 0 : index
    %c2 = arith.constant 2 : index
    %c0_26 = arith.constant 0 : index
    %30 = vector.load %arg25[%c0_25, %c2, %c0_26] : memref<18x18x8xf32, #tpu.memory_space<vmem>>, vector<16x16x8xf32>
    %c2_27 = arith.constant 2 : index
    %c0_28 = arith.constant 0 : index
    %31 = vector.load %arg2[%c2_27, %c0_28] : memref<9x8xf32, #tpu.memory_space<vmem>>, vector<1x8xf32>
    %32 = vector.shape_cast %31 : vector<1x8xf32> to vector<8xf32>
    %33 = vector.shape_cast %32 : vector<8xf32> to vector<1x1x8xf32>
    %34 = vector.broadcast %33 : vector<1x1x8xf32> to vector<16x16x8xf32>
    %35 = arith.mulf %30, %34 : vector<16x16x8xf32>
    %36 = arith.addf %29, %35 : vector<16x16x8xf32>
    %c1_29 = arith.constant 1 : index
    %c0_30 = arith.constant 0 : index
    %c0_31 = arith.constant 0 : index
    %37 = vector.load %arg25[%c1_29, %c0_30, %c0_31] : memref<18x18x8xf32, #tpu.memory_space<vmem>>, vector<16x16x8xf32>
    %c3 = arith.constant 3 : index
    %c0_32 = arith.constant 0 : index
    %38 = vector.load %arg2[%c3, %c0_32] : memref<9x8xf32, #tpu.memory_space<vmem>>, vector<1x8xf32>
    %39 = vector.shape_cast %38 : vector<1x8xf32> to vector<8xf32>
    %40 = vector.shape_cast %39 : vector<8xf32> to vector<1x1x8xf32>
    %41 = vector.broadcast %40 : vector<1x1x8xf32> to vector<16x16x8xf32>
    %42 = arith.mulf %37, %41 : vector<16x16x8xf32>
    %43 = arith.addf %36, %42 : vector<16x16x8xf32>
    %c1_33 = arith.constant 1 : index
    %c2_34 = arith.constant 2 : index
    %c0_35 = arith.constant 0 : index
    %44 = vector.load %arg25[%c1_33, %c2_34, %c0_35] : memref<18x18x8xf32, #tpu.memory_space<vmem>>, vector<16x16x8xf32>
    %c5 = arith.constant 5 : index
    %c0_36 = arith.constant 0 : index
    %45 = vector.load %arg2[%c5, %c0_36] : memref<9x8xf32, #tpu.memory_space<vmem>>, vector<1x8xf32>
    %46 = vector.shape_cast %45 : vector<1x8xf32> to vector<8xf32>
    %47 = vector.shape_cast %46 : vector<8xf32> to vector<1x1x8xf32>
    %48 = vector.broadcast %47 : vector<1x1x8xf32> to vector<16x16x8xf32>
    %49 = arith.mulf %44, %48 : vector<16x16x8xf32>
    %50 = arith.addf %43, %49 : vector<16x16x8xf32>
    %c2_37 = arith.constant 2 : index
    %c0_38 = arith.constant 0 : index
    %c0_39 = arith.constant 0 : index
    %51 = vector.load %arg25[%c2_37, %c0_38, %c0_39] : memref<18x18x8xf32, #tpu.memory_space<vmem>>, vector<16x16x8xf32>
    %c6 = arith.constant 6 : index
    %c0_40 = arith.constant 0 : index
    %52 = vector.load %arg2[%c6, %c0_40] : memref<9x8xf32, #tpu.memory_space<vmem>>, vector<1x8xf32>
    %53 = vector.shape_cast %52 : vector<1x8xf32> to vector<8xf32>
    %54 = vector.shape_cast %53 : vector<8xf32> to vector<1x1x8xf32>
    %55 = vector.broadcast %54 : vector<1x1x8xf32> to vector<16x16x8xf32>
    %56 = arith.mulf %51, %55 : vector<16x16x8xf32>
    %57 = arith.addf %50, %56 : vector<16x16x8xf32>
    %c2_41 = arith.constant 2 : index
    %c1_42 = arith.constant 1 : index
    %c0_43 = arith.constant 0 : index
    %58 = vector.load %arg25[%c2_41, %c1_42, %c0_43] : memref<18x18x8xf32, #tpu.memory_space<vmem>>, vector<16x16x8xf32>
    %c7 = arith.constant 7 : index
    %c0_44 = arith.constant 0 : index
    %59 = vector.load %arg2[%c7, %c0_44] : memref<9x8xf32, #tpu.memory_space<vmem>>, vector<1x8xf32>
    %60 = vector.shape_cast %59 : vector<1x8xf32> to vector<8xf32>
    %61 = vector.shape_cast %60 : vector<8xf32> to vector<1x1x8xf32>
    %62 = vector.broadcast %61 : vector<1x1x8xf32> to vector<16x16x8xf32>
    %63 = arith.mulf %58, %62 : vector<16x16x8xf32>
    %64 = arith.addf %57, %63 : vector<16x16x8xf32>
    %c2_45 = arith.constant 2 : index
    %c2_46 = arith.constant 2 : index
    %c0_47 = arith.constant 0 : index
    %65 = vector.load %arg25[%c2_45, %c2_46, %c0_47] : memref<18x18x8xf32, #tpu.memory_space<vmem>>, vector<16x16x8xf32>
    %c8 = arith.constant 8 : index
    %c0_48 = arith.constant 0 : index
    %66 = vector.load %arg2[%c8, %c0_48] : memref<9x8xf32, #tpu.memory_space<vmem>>, vector<1x8xf32>
    %67 = vector.shape_cast %66 : vector<1x8xf32> to vector<8xf32>
    %68 = vector.shape_cast %67 : vector<8xf32> to vector<1x1x8xf32>
    %69 = vector.broadcast %68 : vector<1x1x8xf32> to vector<16x16x8xf32>
    %70 = arith.mulf %65, %69 : vector<16x16x8xf32>
    %71 = arith.addf %64, %70 : vector<16x16x8xf32>
    %72 = vector.broadcast %6 : vector<1x1x8xf32> to vector<16x16x8xf32>
    %73 = arith.mulf %71, %72 : vector<16x16x8xf32>
    %74 = vector.broadcast %8 : vector<1x1x8xf32> to vector<16x16x8xf32>
    %75 = arith.mulf %1, %74 : vector<16x16x8xf32>
    %76 = arith.addf %73, %75 : vector<16x16x8xf32>
    %77 = vector.broadcast %10 : vector<1x1x8xf32> to vector<16x16x8xf32>
    %78 = arith.addf %76, %77 : vector<16x16x8xf32>
    %79 = vector.shape_cast %78 : vector<16x16x8xf32> to vector<256x8xf32>
    %c0_49 = arith.constant 0 : index
    %c0_50 = arith.constant 0 : index
    %80 = vector.load %arg7[%c0_49, %c0_50] : memref<1x16xf32, #tpu.memory_space<vmem>>, vector<1x16xf32>
    %c0_51 = arith.constant 0 : index
    %c0_52 = arith.constant 0 : index
    %81 = vector.load %arg8[%c0_51, %c0_52] : memref<1x16xf32, #tpu.memory_space<vmem>>, vector<1x16xf32>
    %c0_53 = arith.constant 0 : index
    %c0_54 = arith.constant 0 : index
    %82 = vector.load %arg10[%c0_53, %c0_54] : memref<1x8xf32, #tpu.memory_space<vmem>>, vector<1x8xf32>
    %c0_55 = arith.constant 0 : index
    %c0_56 = arith.constant 0 : index
    %83 = vector.load %arg11[%c0_55, %c0_56] : memref<1x8xf32, #tpu.memory_space<vmem>>, vector<1x8xf32>
    %84 = arith.truncf %79 : vector<256x8xf32> to vector<256x8xbf16>
    %c0_57 = arith.constant 0 : index
    %c0_58 = arith.constant 0 : index
    %85 = vector.load %arg6[%c0_57, %c0_58] : memref<8x16xbf16, #tpu.memory_space<vmem>>, vector<8x16xbf16>
    %cst_59 = arith.constant dense<0.000000e+00> : vector<256x16xf32>
    %86 = tpu.matmul %84, %85, %cst_59 {dimension_numbers = #tpu.dot_dimension_numbers<[1], [0], [0], [1], [0, 0, 1, 1], [], []>} : vector<256x8xbf16>, vector<8x16xbf16>, vector<256x16xf32> -> vector<256x16xf32>
    %87 = vector.broadcast %80 : vector<1x16xf32> to vector<256x16xf32>
    %88 = arith.mulf %86, %87 : vector<256x16xf32>
    %89 = vector.broadcast %81 : vector<1x16xf32> to vector<256x16xf32>
    %90 = arith.addf %88, %89 : vector<256x16xf32>
    %cst_60 = arith.constant 5.000000e-01 : f32
    %91 = vector.broadcast %cst_60 : f32 to vector<256x16xf32>
    %92 = arith.mulf %91, %90 : vector<256x16xf32>
    %cst_61 = arith.constant 4.471500e-02 : f32
    %93 = vector.broadcast %cst_61 : f32 to vector<256x16xf32>
    %94 = arith.mulf %93, %90 : vector<256x16xf32>
    %95 = arith.mulf %94, %90 : vector<256x16xf32>
    %96 = arith.mulf %95, %90 : vector<256x16xf32>
    %97 = arith.addf %90, %96 : vector<256x16xf32>
    %cst_62 = arith.constant 0.797884583 : f32
    %98 = vector.broadcast %cst_62 : f32 to vector<256x16xf32>
    %99 = arith.mulf %98, %97 : vector<256x16xf32>
    %100 = math.tanh %99 : vector<256x16xf32>
    %cst_63 = arith.constant 1.000000e+00 : f32
    %101 = vector.broadcast %cst_63 : f32 to vector<256x16xf32>
    %102 = arith.addf %101, %100 : vector<256x16xf32>
    %103 = arith.mulf %92, %102 : vector<256x16xf32>
    %104 = arith.truncf %103 : vector<256x16xf32> to vector<256x16xbf16>
    %c0_64 = arith.constant 0 : index
    %c0_65 = arith.constant 0 : index
    %105 = vector.load %arg9[%c0_64, %c0_65] : memref<16x8xbf16, #tpu.memory_space<vmem>>, vector<16x8xbf16>
    %cst_66 = arith.constant dense<0.000000e+00> : vector<256x8xf32>
    %106 = tpu.matmul %104, %105, %cst_66 {dimension_numbers = #tpu.dot_dimension_numbers<[1], [0], [0], [1], [0, 0, 1, 1], [], []>} : vector<256x16xbf16>, vector<16x8xbf16>, vector<256x8xf32> -> vector<256x8xf32>
    %107 = vector.broadcast %82 : vector<1x8xf32> to vector<256x8xf32>
    %108 = arith.mulf %106, %107 : vector<256x8xf32>
    %109 = vector.broadcast %83 : vector<1x8xf32> to vector<256x8xf32>
    %110 = arith.addf %108, %109 : vector<256x8xf32>
    %111 = arith.addf %79, %110 : vector<256x8xf32>
    %112 = vector.shape_cast %111 : vector<256x8xf32> to vector<16x16x8xf32>
    %c1_67 = arith.constant 1 : index
    %c1_68 = arith.constant 1 : index
    %c0_69 = arith.constant 0 : index
    %113 = vector.load %arg25[%c1_67, %c1_68, %c0_69] : memref<18x18x8xf32, #tpu.memory_space<vmem>>, vector<16x16x8xf32>
    tpu.vector_store %arg25[%c1_67, %c1_68, %c0_69], %112 {strides = array<i32>} : memref<18x18x8xf32, #tpu.memory_space<vmem>>, vector<16x16x8xf32>,
    %c0_70 = arith.constant 0 : index
    %c0_71 = arith.constant 0 : index
    %114 = vector.load %arg13[%c0_70, %c0_71] : memref<1x8xf32, #tpu.memory_space<vmem>>, vector<1x8xf32>
    %115 = vector.shape_cast %114 : vector<1x8xf32> to vector<1x1x8xf32>
    %c0_72 = arith.constant 0 : index
    %c0_73 = arith.constant 0 : index
    %116 = vector.load %arg14[%c0_72, %c0_73] : memref<1x8xf32, #tpu.memory_space<vmem>>, vector<1x8xf32>
    %117 = vector.shape_cast %116 : vector<1x8xf32> to vector<1x1x8xf32>
    %cst_74 = arith.constant 0.000000e+00 : f32
    %118 = vector.broadcast %cst_74 : f32 to vector<8x8x8xf32>
    %c0_75 = arith.constant 0 : index
    %c0_76 = arith.constant 0 : index
    %c0_77 = arith.constant 0 : index
    %119 = tpu.strided_load %arg25[%c0_75, %c0_76, %c0_77] {strides = array<i32: 2, 2, 1>} : memref<18x18x8xf32, #tpu.memory_space<vmem>>, vector<8x8x8xf32>
    %c0_78 = arith.constant 0 : index
    %c0_79 = arith.constant 0 : index
    %120 = vector.load %arg12[%c0_78, %c0_79] : memref<9x8xf32, #tpu.memory_space<vmem>>, vector<1x8xf32>
    %121 = vector.shape_cast %120 : vector<1x8xf32> to vector<8xf32>
    %122 = vector.shape_cast %121 : vector<8xf32> to vector<1x1x8xf32>
    %123 = vector.broadcast %122 : vector<1x1x8xf32> to vector<8x8x8xf32>
    %124 = arith.mulf %119, %123 : vector<8x8x8xf32>
    %125 = arith.addf %118, %124 : vector<8x8x8xf32>
    %c0_80 = arith.constant 0 : index
    %c1_81 = arith.constant 1 : index
    %c0_82 = arith.constant 0 : index
    %126 = tpu.strided_load %arg25[%c0_80, %c1_81, %c0_82] {strides = array<i32: 2, 2, 1>} : memref<18x18x8xf32, #tpu.memory_space<vmem>>, vector<8x8x8xf32>
    %c1_83 = arith.constant 1 : index
    %c0_84 = arith.constant 0 : index
    %127 = vector.load %arg12[%c1_83, %c0_84] : memref<9x8xf32, #tpu.memory_space<vmem>>, vector<1x8xf32>
    %128 = vector.shape_cast %127 : vector<1x8xf32> to vector<8xf32>
    %129 = vector.shape_cast %128 : vector<8xf32> to vector<1x1x8xf32>
    %130 = vector.broadcast %129 : vector<1x1x8xf32> to vector<8x8x8xf32>
    %131 = arith.mulf %126, %130 : vector<8x8x8xf32>
    %132 = arith.addf %125, %131 : vector<8x8x8xf32>
    %c0_85 = arith.constant 0 : index
    %c2_86 = arith.constant 2 : index
    %c0_87 = arith.constant 0 : index
    %133 = tpu.strided_load %arg25[%c0_85, %c2_86, %c0_87] {strides = array<i32: 2, 2, 1>} : memref<18x18x8xf32, #tpu.memory_space<vmem>>, vector<8x8x8xf32>
    %c2_88 = arith.constant 2 : index
    %c0_89 = arith.constant 0 : index
    %134 = vector.load %arg12[%c2_88, %c0_89] : memref<9x8xf32, #tpu.memory_space<vmem>>, vector<1x8xf32>
    %135 = vector.shape_cast %134 : vector<1x8xf32> to vector<8xf32>
    %136 = vector.shape_cast %135 : vector<8xf32> to vector<1x1x8xf32>
    %137 = vector.broadcast %136 : vector<1x1x8xf32> to vector<8x8x8xf32>
    %138 = arith.mulf %133, %137 : vector<8x8x8xf32>
    %139 = arith.addf %132, %138 : vector<8x8x8xf32>
    %c1_90 = arith.constant 1 : index
    %c0_91 = arith.constant 0 : index
    %c0_92 = arith.constant 0 : index
    %140 = tpu.strided_load %arg25[%c1_90, %c0_91, %c0_92] {strides = array<i32: 2, 2, 1>} : memref<18x18x8xf32, #tpu.memory_space<vmem>>, vector<8x8x8xf32>
    %c3_93 = arith.constant 3 : index
    %c0_94 = arith.constant 0 : index
    %141 = vector.load %arg12[%c3_93, %c0_94] : memref<9x8xf32, #tpu.memory_space<vmem>>, vector<1x8xf32>
    %142 = vector.shape_cast %141 : vector<1x8xf32> to vector<8xf32>
    %143 = vector.shape_cast %142 : vector<8xf32> to vector<1x1x8xf32>
    %144 = vector.broadcast %143 : vector<1x1x8xf32> to vector<8x8x8xf32>
    %145 = arith.mulf %140, %144 : vector<8x8x8xf32>
    %146 = arith.addf %139, %145 : vector<8x8x8xf32>
    %c1_95 = arith.constant 1 : index
    %c1_96 = arith.constant 1 : index
    %c0_97 = arith.constant 0 : index
    %147 = tpu.strided_load %arg25[%c1_95, %c1_96, %c0_97] {strides = array<i32: 2, 2, 1>} : memref<18x18x8xf32, #tpu.memory_space<vmem>>, vector<8x8x8xf32>
    %c4_98 = arith.constant 4 : index
    %c0_99 = arith.constant 0 : index
    %148 = vector.load %arg12[%c4_98, %c0_99] : memref<9x8xf32, #tpu.memory_space<vmem>>, vector<1x8xf32>
    %149 = vector.shape_cast %148 : vector<1x8xf32> to vector<8xf32>
    %150 = vector.shape_cast %149 : vector<8xf32> to vector<1x1x8xf32>
    %151 = vector.broadcast %150 : vector<1x1x8xf32> to vector<8x8x8xf32>
    %152 = arith.mulf %147, %151 : vector<8x8x8xf32>
    %153 = arith.addf %146, %152 : vector<8x8x8xf32>
    %c1_100 = arith.constant 1 : index
    %c2_101 = arith.constant 2 : index
    %c0_102 = arith.constant 0 : index
    %154 = tpu.strided_load %arg25[%c1_100, %c2_101, %c0_102] {strides = array<i32: 2, 2, 1>} : memref<18x18x8xf32, #tpu.memory_space<vmem>>, vector<8x8x8xf32>
    %c5_103 = arith.constant 5 : index
    %c0_104 = arith.constant 0 : index
    %155 = vector.load %arg12[%c5_103, %c0_104] : memref<9x8xf32, #tpu.memory_space<vmem>>, vector<1x8xf32>
    %156 = vector.shape_cast %155 : vector<1x8xf32> to vector<8xf32>
    %157 = vector.shape_cast %156 : vector<8xf32> to vector<1x1x8xf32>
    %158 = vector.broadcast %157 : vector<1x1x8xf32> to vector<8x8x8xf32>
    %159 = arith.mulf %154, %158 : vector<8x8x8xf32>
    %160 = arith.addf %153, %159 : vector<8x8x8xf32>
    %c2_105 = arith.constant 2 : index
    %c0_106 = arith.constant 0 : index
    %c0_107 = arith.constant 0 : index
    %161 = tpu.strided_load %arg25[%c2_105, %c0_106, %c0_107] {strides = array<i32: 2, 2, 1>} : memref<18x18x8xf32, #tpu.memory_space<vmem>>, vector<8x8x8xf32>
    %c6_108 = arith.constant 6 : index
    %c0_109 = arith.constant 0 : index
    %162 = vector.load %arg12[%c6_108, %c0_109] : memref<9x8xf32, #tpu.memory_space<vmem>>, vector<1x8xf32>
    %163 = vector.shape_cast %162 : vector<1x8xf32> to vector<8xf32>
    %164 = vector.shape_cast %163 : vector<8xf32> to vector<1x1x8xf32>
    %165 = vector.broadcast %164 : vector<1x1x8xf32> to vector<8x8x8xf32>
    %166 = arith.mulf %161, %165 : vector<8x8x8xf32>
    %167 = arith.addf %160, %166 : vector<8x8x8xf32>
    %c2_110 = arith.constant 2 : index
    %c1_111 = arith.constant 1 : index
    %c0_112 = arith.constant 0 : index
    %168 = tpu.strided_load %arg25[%c2_110, %c1_111, %c0_112] {strides = array<i32: 2, 2, 1>} : memref<18x18x8xf32, #tpu.memory_space<vmem>>, vector<8x8x8xf32>
    %c7_113 = arith.constant 7 : index
    %c0_114 = arith.constant 0 : index
    %169 = vector.load %arg12[%c7_113, %c0_114] : memref<9x8xf32, #tpu.memory_space<vmem>>, vector<1x8xf32>
    %170 = vector.shape_cast %169 : vector<1x8xf32> to vector<8xf32>
    %171 = vector.shape_cast %170 : vector<8xf32> to vector<1x1x8xf32>
    %172 = vector.broadcast %171 : vector<1x1x8xf32> to vector<8x8x8xf32>
    %173 = arith.mulf %168, %172 : vector<8x8x8xf32>
    %174 = arith.addf %167, %173 : vector<8x8x8xf32>
    %c2_115 = arith.constant 2 : index
    %c2_116 = arith.constant 2 : index
    %c0_117 = arith.constant 0 : index
    %175 = tpu.strided_load %arg25[%c2_115, %c2_116, %c0_117] {strides = array<i32: 2, 2, 1>} : memref<18x18x8xf32, #tpu.memory_space<vmem>>, vector<8x8x8xf32>
    %c8_118 = arith.constant 8 : index
    %c0_119 = arith.constant 0 : index
    %176 = vector.load %arg12[%c8_118, %c0_119] : memref<9x8xf32, #tpu.memory_space<vmem>>, vector<1x8xf32>
    %177 = vector.shape_cast %176 : vector<1x8xf32> to vector<8xf32>
    %178 = vector.shape_cast %177 : vector<8xf32> to vector<1x1x8xf32>
    %179 = vector.broadcast %178 : vector<1x1x8xf32> to vector<8x8x8xf32>
    %180 = arith.mulf %175, %179 : vector<8x8x8xf32>
    %181 = arith.addf %174, %180 : vector<8x8x8xf32>
    %182 = vector.broadcast %115 : vector<1x1x8xf32> to vector<8x8x8xf32>
    %183 = arith.mulf %181, %182 : vector<8x8x8xf32>
    %184 = vector.broadcast %117 : vector<1x1x8xf32> to vector<8x8x8xf32>
    %185 = arith.addf %183, %184 : vector<8x8x8xf32>
    %186 = vector.shape_cast %185 : vector<8x8x8xf32> to vector<64x8xf32>
    %187 = arith.truncf %186 : vector<64x8xf32> to vector<64x8xbf16>
    %c0_120 = arith.constant 0 : index
    %c0_121 = arith.constant 0 : index
    %188 = vector.load %arg15[%c0_120, %c0_121] : memref<8x16xbf16, #tpu.memory_space<vmem>>, vector<8x16xbf16>
    %cst_122 = arith.constant dense<0.000000e+00> : vector<64x16xf32>
    %189 = tpu.matmul %187, %188, %cst_122 {dimension_numbers = #tpu.dot_dimension_numbers<[1], [0], [0], [1], [0, 0, 1, 1], [], []>} : vector<64x8xbf16>, vector<8x16xbf16>, vector<64x16xf32> -> vector<64x16xf32>
    %c0_123 = arith.constant 0 : index
    %c0_124 = arith.constant 0 : index
    %190 = vector.load %arg16[%c0_123, %c0_124] : memref<1x16xf32, #tpu.memory_space<vmem>>, vector<1x16xf32>
    %191 = vector.broadcast %190 : vector<1x16xf32> to vector<64x16xf32>
    %192 = arith.mulf %189, %191 : vector<64x16xf32>
    %c0_125 = arith.constant 0 : index
    %c0_126 = arith.constant 0 : index
    %193 = vector.load %arg17[%c0_125, %c0_126] : memref<1x16xf32, #tpu.memory_space<vmem>>, vector<1x16xf32>
    %194 = vector.broadcast %193 : vector<1x16xf32> to vector<64x16xf32>
    %195 = arith.addf %192, %194 : vector<64x16xf32>
    %c0_127 = arith.constant 0 : index
    %c0_128 = arith.constant 0 : index
    %196 = vector.load %arg19[%c0_127, %c0_128] : memref<1x32xf32, #tpu.memory_space<vmem>>, vector<1x32xf32>
    %c0_129 = arith.constant 0 : index
    %c0_130 = arith.constant 0 : index
    %197 = vector.load %arg20[%c0_129, %c0_130] : memref<1x32xf32, #tpu.memory_space<vmem>>, vector<1x32xf32>
    %c0_131 = arith.constant 0 : index
    %c0_132 = arith.constant 0 : index
    %198 = vector.load %arg22[%c0_131, %c0_132] : memref<1x16xf32, #tpu.memory_space<vmem>>, vector<1x16xf32>
    %c0_133 = arith.constant 0 : index
    %c0_134 = arith.constant 0 : index
    %199 = vector.load %arg23[%c0_133, %c0_134] : memref<1x16xf32, #tpu.memory_space<vmem>>, vector<1x16xf32>
    %200 = arith.truncf %195 : vector<64x16xf32> to vector<64x16xbf16>
    %c0_135 = arith.constant 0 : index
    %c0_136 = arith.constant 0 : index
    %201 = vector.load %arg18[%c0_135, %c0_136] : memref<16x32xbf16, #tpu.memory_space<vmem>>, vector<16x32xbf16>
    %cst_137 = arith.constant dense<0.000000e+00> : vector<64x32xf32>
    %202 = tpu.matmul %200, %201, %cst_137 {dimension_numbers = #tpu.dot_dimension_numbers<[1], [0], [0], [1], [0, 0, 1, 1], [], []>} : vector<64x16xbf16>, vector<16x32xbf16>, vector<64x32xf32> -> vector<64x32xf32>
    %203 = vector.broadcast %196 : vector<1x32xf32> to vector<64x32xf32>
    %204 = arith.mulf %202, %203 : vector<64x32xf32>
    %205 = vector.broadcast %197 : vector<1x32xf32> to vector<64x32xf32>
    %206 = arith.addf %204, %205 : vector<64x32xf32>
    %cst_138 = arith.constant 5.000000e-01 : f32
    %207 = vector.broadcast %cst_138 : f32 to vector<64x32xf32>
    %208 = arith.mulf %207, %206 : vector<64x32xf32>
    %cst_139 = arith.constant 4.471500e-02 : f32
    %209 = vector.broadcast %cst_139 : f32 to vector<64x32xf32>
    %210 = arith.mulf %209, %206 : vector<64x32xf32>
    %211 = arith.mulf %210, %206 : vector<64x32xf32>
    %212 = arith.mulf %211, %206 : vector<64x32xf32>
    %213 = arith.addf %206, %212 : vector<64x32xf32>
    %cst_140 = arith.constant 0.797884583 : f32
    %214 = vector.broadcast %cst_140 : f32 to vector<64x32xf32>
    %215 = arith.mulf %214, %213 : vector<64x32xf32>
    %216 = math.tanh %215 : vector<64x32xf32>
    %cst_141 = arith.constant 1.000000e+00 : f32
    %217 = vector.broadcast %cst_141 : f32 to vector<64x32xf32>
    %218 = arith.addf %217, %216 : vector<64x32xf32>
    %219 = arith.mulf %208, %218 : vector<64x32xf32>
    %220 = arith.truncf %219 : vector<64x32xf32> to vector<64x32xbf16>
    %c0_142 = arith.constant 0 : index
    %c0_143 = arith.constant 0 : index
    %221 = vector.load %arg21[%c0_142, %c0_143] : memref<32x16xbf16, #tpu.memory_space<vmem>>, vector<32x16xbf16>
    %cst_144 = arith.constant dense<0.000000e+00> : vector<64x16xf32>
    %222 = tpu.matmul %220, %221, %cst_144 {dimension_numbers = #tpu.dot_dimension_numbers<[1], [0], [0], [1], [0, 0, 1, 1], [], []>} : vector<64x32xbf16>, vector<32x16xbf16>, vector<64x16xf32> -> vector<64x16xf32>
    %223 = vector.broadcast %198 : vector<1x16xf32> to vector<64x16xf32>
    %224 = arith.mulf %222, %223 : vector<64x16xf32>
    %225 = vector.broadcast %199 : vector<1x16xf32> to vector<64x16xf32>
    %226 = arith.addf %224, %225 : vector<64x16xf32>
    %227 = arith.addf %195, %226 : vector<64x16xf32>
    %228 = vector.shape_cast %227 : vector<64x16xf32> to vector<8x8x16xf32>
    %c0_145 = arith.constant 0 : index
    %c0_146 = arith.constant 0 : index
    %c0_147 = arith.constant 0 : index
    %c0_148 = arith.constant 0 : index
    %229 = vector.load %arg24[%c0_145, %c0_146, %c0_147, %c0_148] : memref<1x8x8x16xf32, #tpu.memory_space<vmem>>, vector<1x8x8x16xf32>
    %230 = vector.shape_cast %229 : vector<1x8x8x16xf32> to vector<8x8x16xf32>
    %231 = vector.shape_cast %228 : vector<8x8x16xf32> to vector<1x8x8x16xf32>
    tpu.vector_store %arg24[%c0_145, %c0_146, %c0_147, %c0_148], %231 {strides = array<i32>} : memref<1x8x8x16xf32, #tpu.memory_space<vmem>>, vector<1x8x8x16xf32>,
    return
  }
  func.func @transform_0(%arg0: i32) -> (i32, i32, i32, i32) {
    %c0_i32 = arith.constant 0 : i32
    %c0_i32_0 = arith.constant 0 : i32
    %c0_i32_1 = arith.constant 0 : i32
    %c0_i32_2 = arith.constant 0 : i32
    return %arg0, %c0_i32, %c0_i32_0, %c0_i32_1 : i32, i32, i32, i32
  }
  func.func @transform_1(%arg0: i32) -> (i32, i32) {
    %c0_i32 = arith.constant 0 : i32
    %c0_i32_0 = arith.constant 0 : i32
    %c0_i32_1 = arith.constant 0 : i32
    return %c0_i32, %c0_i32_0 : i32, i32
  }
  func.func @transform_2(%arg0: i32) -> (i32, i32) {
    %c0_i32 = arith.constant 0 : i32
    %c0_i32_0 = arith.constant 0 : i32
    %c0_i32_1 = arith.constant 0 : i32
    return %c0_i32, %c0_i32_0 : i32, i32
  }
  func.func @transform_3(%arg0: i32) -> (i32, i32) {
    %c0_i32 = arith.constant 0 : i32
    %c0_i32_0 = arith.constant 0 : i32
    %c0_i32_1 = arith.constant 0 : i32
    return %c0_i32, %c0_i32_0 : i32, i32
  }
  func.func @transform_4(%arg0: i32) -> (i32, i32) {
    %c0_i32 = arith.constant 0 : i32
    %c0_i32_0 = arith.constant 0 : i32
    %c0_i32_1 = arith.constant 0 : i32
    return %c0_i32, %c0_i32_0 : i32, i32
  }
  func.func @transform_5(%arg0: i32) -> (i32, i32) {
    %c0_i32 = arith.constant 0 : i32
    %c0_i32_0 = arith.constant 0 : i32
    %c0_i32_1 = arith.constant 0 : i32
    return %c0_i32, %c0_i32_0 : i32, i32
  }
  func.func @transform_6(%arg0: i32) -> (i32, i32) {
    %c0_i32 = arith.constant 0 : i32
    %c0_i32_0 = arith.constant 0 : i32
    %c0_i32_1 = arith.constant 0 : i32
    return %c0_i32, %c0_i32_0 : i32, i32
  }
  func.func @transform_7(%arg0: i32) -> (i32, i32) {
    %c0_i32 = arith.constant 0 : i32
    %c0_i32_0 = arith.constant 0 : i32
    %c0_i32_1 = arith.constant 0 : i32
    return %c0_i32, %c0_i32_0 : i32, i32
  }
  func.func @transform_8(%arg0: i32) -> (i32, i32) {
    %c0_i32 = arith.constant 0 : i32
    %c0_i32_0 = arith.constant 0 : i32
    %c0_i32_1 = arith.constant 0 : i32
    return %c0_i32, %c0_i32_0 : i32, i32
  }
  func.func @transform_9(%arg0: i32) -> (i32, i32) {
    %c0_i32 = arith.constant 0 : i32
    %c0_i32_0 = arith.constant 0 : i32
    %c0_i32_1 = arith.constant 0 : i32
    return %c0_i32, %c0_i32_0 : i32, i32
  }
  func.func @transform_10(%arg0: i32) -> (i32, i32) {
    %c0_i32 = arith.constant 0 : i32
    %c0_i32_0 = arith.constant 0 : i32
    %c0_i32_1 = arith.constant 0 : i32
    return %c0_i32, %c0_i32_0 : i32, i32
  }
  func.func @transform_11(%arg0: i32) -> (i32, i32) {
    %c0_i32 = arith.constant 0 : i32
    %c0_i32_0 = arith.constant 0 : i32
    %c0_i32_1 = arith.constant 0 : i32
    return %c0_i32, %c0_i32_0 : i32, i32
  }
  func.func @transform_12(%arg0: i32) -> (i32, i32) {
    %c0_i32 = arith.constant 0 : i32
    %c0_i32_0 = arith.constant 0 : i32
    %c0_i32_1 = arith.constant 0 : i32
    return %c0_i32, %c0_i32_0 : i32, i32
  }
  func.func @transform_13(%arg0: i32) -> (i32, i32) {
    %c0_i32 = arith.constant 0 : i32
    %c0_i32_0 = arith.constant 0 : i32
    %c0_i32_1 = arith.constant 0 : i32
    return %c0_i32, %c0_i32_0 : i32, i32
  }
  func.func @transform_14(%arg0: i32) -> (i32, i32) {
    %c0_i32 = arith.constant 0 : i32
    %c0_i32_0 = arith.constant 0 : i32
    %c0_i32_1 = arith.constant 0 : i32
    return %c0_i32, %c0_i32_0 : i32, i32
  }
  func.func @transform_15(%arg0: i32) -> (i32, i32) {
    %c0_i32 = arith.constant 0 : i32
    %c0_i32_0 = arith.constant 0 : i32
    %c0_i32_1 = arith.constant 0 : i32
    return %c0_i32, %c0_i32_0 : i32, i32
  }
  func.func @transform_16(%arg0: i32) -> (i32, i32) {
    %c0_i32 = arith.constant 0 : i32
    %c0_i32_0 = arith.constant 0 : i32
    %c0_i32_1 = arith.constant 0 : i32
    return %c0_i32, %c0_i32_0 : i32, i32
  }
  func.func @transform_17(%arg0: i32) -> (i32, i32) {
    %c0_i32 = arith.constant 0 : i32
    %c0_i32_0 = arith.constant 0 : i32
    %c0_i32_1 = arith.constant 0 : i32
    return %c0_i32, %c0_i32_0 : i32, i32
  }
  func.func @transform_18(%arg0: i32) -> (i32, i32) {
    %c0_i32 = arith.constant 0 : i32
    %c0_i32_0 = arith.constant 0 : i32
    %c0_i32_1 = arith.constant 0 : i32
    return %c0_i32, %c0_i32_0 : i32, i32
  }
  func.func @transform_19(%arg0: i32) -> (i32, i32) {
    %c0_i32 = arith.constant 0 : i32
    %c0_i32_0 = arith.constant 0 : i32
    %c0_i32_1 = arith.constant 0 : i32
    return %c0_i32, %c0_i32_0 : i32, i32
  }
  func.func @transform_20(%arg0: i32) -> (i32, i32) {
    %c0_i32 = arith.constant 0 : i32
    %c0_i32_0 = arith.constant 0 : i32
    %c0_i32_1 = arith.constant 0 : i32
    return %c0_i32, %c0_i32_0 : i32, i32
  }
  func.func @transform_21(%arg0: i32) -> (i32, i32) {
    %c0_i32 = arith.constant 0 : i32
    %c0_i32_0 = arith.constant 0 : i32
    %c0_i32_1 = arith.constant 0 : i32
    return %c0_i32, %c0_i32_0 : i32, i32
  }
  func.func @transform_22(%arg0: i32) -> (i32, i32) {
    %c0_i32 = arith.constant 0 : i32
    %c0_i32_0 = arith.constant 0 : i32
    %c0_i32_1 = arith.constant 0 : i32
    return %c0_i32, %c0_i32_0 : i32, i32
  }
  func.func @transform_23(%arg0: i32) -> (i32, i32, i32, i32) {
    %c0_i32 = arith.constant 0 : i32
    %c0_i32_0 = arith.constant 0 : i32
    %c0_i32_1 = arith.constant 0 : i32
    %c0_i32_2 = arith.constant 0 : i32
    return %arg0, %c0_i32, %c0_i32_0, %c0_i32_1 : i32, i32, i32, i32
  }
}

</mosaic_0001>

<bundles_post_ra>
// kernel: _lambda_.5
= control target key start
LH: loop header
LB: loop body
LE: loop exit
PB: predicated region body
PF: predicated region fallthrough
CT: control target
= control target key end

     0   :  { %s1710_s0 = inlined_call_operand.vmem [shape: f32[2,8,8,16], index: 0, kind: input, shape index: {}]   ;;  %s1711_s1 = inlined_call_operand.vmem [shape: f32[9,16], index: 1, kind: input, shape index: {}]   ;;  %s1712_s2 = inlined_call_operand.vmem [shape: f32[1,16], index: 2, kind: input, shape index: {}]   ;;  %s1713_s3 = inlined_call_operand.vmem [shape: f32[1,16], index: 3, kind: input, shape index: {}]   ;;  %s1714_s4 = inlined_call_operand.vmem [shape: f32[1,16], index: 4, kind: input, shape index: {}]   ;;  %s1715_s5 = inlined_call_operand.vmem [shape: bf16[16,32], index: 5, kind: input, shape index: {}]   ;;  %s1716_s6 = inlined_call_operand.vmem [shape: f32[1,32], index: 6, kind: input, shape index: {}]   ;;  %s1717_s7 = inlined_call_operand.vmem [shape: f32[1,32], index: 7, kind: input, shape index: {}]   ;;  %s1718_s8 = inlined_call_operand.vmem [shape: bf16[32,16], index: 8, kind: input, shape index: {}]   ;;  %s1719_s9 = inlined_call_operand.vmem [shape: f32[1,16], index: 9, kind: input, shape index: {}]   ;;  %s1720_s10 = inlined_call_operand.vmem [shape: f32[1,16], index: 10, kind: input, shape index: {}]   ;;  %s1721_s11 = inlined_call_operand.hbm [shape: f32[2,8,8,16], index: 11, kind: output, shape index: {}]  }
   0x1   :  { %1722 = sst [smem:[#allocation6_spill]] %s1710_s0 }
   0x2   :  { %16 = vsyncpa [#allocation4], 0 }
   0x3   :  { %18 = vsyncpa [#allocation4 + $0x1], 0  ;;  %s1258_s17 = smov 0   ;;  %s1260_s18 = smov 0  }
   0x4   :  { %s1262_s19 = smov 0   ;;  %s1264_s20 = smov 0  }
   0x5 LB: > { %s1279_s21 = sadd.s32 4294967295, %s1193_s20   ;;  %s1017_s22 = sadd.s32 4294967294, %s1193_s20   ;;  %s1193_s20 = sphi %s1264_s20, %s1729_s20   ;;  %s1189_s19 = sphi %s1262_s19, %s1728_s19   ;;  %s1185_s18 = sphi %s1260_s18, %s1727_s18   ;;  %s1181_s17 = sphi %s1258_s17, %s1726_s17  }
   0x6   : > { %s1283_s23 = sadd.s32 1, %s1193_s20   ;;  %s267_s24 = sadd.s32 1, %s1189_s19 }
   0x7   : > { %s264_s25 = ssub.s32 %s1193_s20, %s1283_s23  ;;  %p277_p0 = scmp.ne.s32.totalorder %s1189_s19, %s1185_s18 }
   0x8   : > { %p265_p1 = scmp.eq.s32.totalorder %s264_s25, 0  ;;  %p278_p2 = scmp.eq.s32.totalorder %s1279_s21, 1 }
   0x9   : > { %p283_p3 = scmp.ne.s32.totalorder %s1185_s18, %s1181_s17  ;;  %p284_p4 = scmp.eq.s32.totalorder %s1017_s22, 1 }
   0xa   : > { %s1294_s26 = scalar_select %p265_p1, %s1189_s19, %s267_s24  }
   0xb   : > { %p1296_p5 = por %p278_p2, %p277_p0  ;;  %p1300_p6 = por %p284_p4, %p283_p3 }
   0xc   : > { %p1020_p7 = scmp.ge.s32.totalorder %s1193_s20, 1  ;;  %p340_p8 = scmp.lt.s32.totalorder %s1193_s20, 3 }
   0xe   : > { %p341_p9 = pnand %p1020_p7, %p340_p8 }
   0xf   : > { %p380_p10 = scmp.lt.s32.totalorder (!%p341_p9), %s1279_s21, 1  ;;  %s1725_s0 = sld [smem:[#allocation6_spill]] (!%p341_p9) }
  0x10   : > { %344 = sbr.rel (%p341_p9) target bundleno = 422 (0x1a6), region = 64  ;;  %s1053_s22 = sshll.u32 (!%p341_p9), %s1279_s21, 6 }
  0x11   : > { %s951_s30 = scalar_lea.hbm (!%p341_p9), %s1721_s11, %s1053_s22  ;;  %s1151_s29 = scalar_lea.hbm (!%p341_p9), %s1721_s11, 128 }
  0x12   : > { %s954_s13 = sshll.u32 (!%p341_p9), %s951_s30, 4  ;;  %s955_s13 = int_to_ptr.hbm [resolvable:$true] %s954_s13 }
  0x13   : > { %s1145_s14 = sshra.s32 (!%p341_p9), %s955_s13, 4  ;;  %s1146_s14 = int_to_ptr.hbm [resolvable:$true] %s1145_s14 }
  0x14   : > { %p1152_p0 = scmp.lt.s32.totalorder (!%p341_p9), %s1146_s14, %s1721_s11 }
  0x15   : > { %v1050_v0 = vld [vmem:[%s1715_s5] sm:$0xff]  ;;  %vm394_vm0 = vcmask 130048   ;;  %v1195_v1 = vmov 0.0   ;;  %vm396_vm1 = vcmask 123904   ;;  %s381_s12 = scalar_select %p380_p10, %s1279_s21, 1  ;;  %vm859_vm2 = vcmask 261120  }
  0x16   : > { %395 = vst.msk [vmem:[#allocation2] sm:$0xff] %vm394_vm0, %v1195_v1  ;;  %723 = vmatpush.bf16.msra.mxu0 %v1050_v0  ;;  %1054 = vmatpush.bf16.msra.mxu3 %v1050_v0  ;;  %v1320_v2 = vld [vmem:[%s1711_s1 + $0x4] ss:$0 sm:$0xff]  ;;  %v1334_v3 = vld [vmem:[%s1711_s1] ss:$0 sm:$0xff] }
  0x17   : > { %397 = vst.msk [vmem:[#allocation2 + $0x8] sm:$0x3] %vm396_vm1, %v1195_v1  ;;  %s1049_s15 = sshll.u32 %s381_s12, 6  ;;  %v1351_v7 = vld [vmem:[%s1711_s1 + $0x1] ss:$0 sm:$0xff] }
  0x18   : > { %398 = vst.msk [vmem:[#allocation2 + $0x10] sm:$0xff] %vm394_vm0, %v1195_v1  ;;  %s1327_s24 = scalar_lea.vmem %s1725_s0, %s1049_s15  ;;  %v1364_v13 = vld [vmem:[%s1711_s1 + $0x2] ss:$0 sm:$0xff]  ;;  %v1375_v18 = vld [vmem:[%s1711_s1 + $0x3] ss:$0 sm:$0xff] }
  0x19   : > { %399 = vst.msk [vmem:[#allocation2 + $0x18] sm:$0x3] %vm396_vm1, %v1195_v1  ;;  %v1337_v4 = vld [vmem:[%s1327_s24] sm:$0xff]  ;;  %v1342_v5 = vld [vmem:[%s1327_s24 + $0x8] sm:$0xff]  ;;  %v1354_v8 = vld [vmem:[%s1327_s24 + $0x10] sm:$0xff] }
  0x1a   : > { %400 = vst.msk [vmem:[#allocation2 + $0x20] sm:$0xff] %vm394_vm0, %v1195_v1  ;;  %v430_v6 = vmul.f32 %v1320_v2, %v1337_v4  ;;  %v1380_v19 = vld [vmem:[%s1711_s1 + $0x5] ss:$0 sm:$0xff]  ;;  %v1385_v20 = vld [vmem:[%s1711_s1 + $0x6] ss:$0 sm:$0xff]  ;;  %v431_v22 = vmul.f32 %v1320_v2, %v1342_v5  ;;  %v1404_v31 = vld [vmem:[%s1327_s24 + $0x18] sm:$0xff]  ;;  %v432_v36 = vmul.f32 %v1320_v2, %v1354_v8 }
  0x1b   : > { %401 = vst.msk [vmem:[#allocation2 + $0x28] sm:$0x3] %vm396_vm1, %v1195_v1  ;;  %v1390_v21 = vld [vmem:[%s1711_s1 + $0x7] ss:$0 sm:$0xff]  ;;  %v1410_v35 = vld [vmem:[%s1711_s1 + $0x8] ss:$0 sm:$0xff]  ;;  %v433_v44 = vmul.f32 %v1320_v2, %v1404_v31 }
  0x1c   : > { %402 = vst.msk [vmem:[#allocation2 + $0x30] sm:$0xff] %vm394_vm0, %v1195_v1  ;;  %v1439_v57 = vld [vmem:[%s1713_s3] ss:$0 sm:$0xff] }
  0x1d   : > { %403 = vst.msk [vmem:[#allocation2 + $0x38] sm:$0x3] %vm396_vm1, %v1195_v1  ;;  %v438_v9 = vld [vmem:[#allocation2] sm:$0xff] }
  0x1e   : > { %417 = vst.msk [vmem:[#allocation2 + $0x11] sm:$0xff] %vm394_vm0, %v1337_v4  ;;  %v448_v10 = vmul.f32 %v1334_v3, %v438_v9  ;;  %v464_v11 = vld [vmem:[#allocation2 + $0x1] sm:$0xff] }
  0x1f   : > { %v490_v12 = vld [vmem:[#allocation2 + $0x2] sm:$0xff]  ;;  %418 = vst.msk [vmem:[#allocation2 + $0x21] sm:$0xff] %vm394_vm0, %v1342_v5  ;;  %v474_v14 = vmul.f32 %v1351_v7, %v464_v11  ;;  %v1459_v11 = vld [vmem:[%s1327_s24 + $0x30] sm:$0xff] }
  0x20   : > { %419 = vst.msk [vmem:[#allocation2 + $0x31] sm:$0xff] %vm394_vm0, %v1354_v8  ;;  %v456_v15 = vadd.f32 %v448_v10, %v430_v6  ;;  %v500_v16 = vmul.f32 %v1364_v13, %v490_v12  ;;  %v1448_v61 = vld [vmem:[%s1327_s24 + $0x20] sm:$0xff] }
  0x21   : > { %404 = vst.msk [vmem:[#allocation2 + $0x40] sm:$0xff] %vm394_vm0, %v1195_v1  ;;  %v1453_v6 = vld [vmem:[%s1712_s2] ss:$0 sm:$0xff] }
  0x22   : > { %v482_v17 = vadd.f32 %v474_v14, %v456_v15  ;;  %405 = vst.msk [vmem:[#allocation2 + $0x48] sm:$0x3] %vm396_vm1, %v1195_v1 }
  0x23   : > { %406 = vst.msk [vmem:[#allocation2 + $0x50] sm:$0xff] %vm394_vm0, %v1195_v1 }
  0x24   : > { %v508_v23 = vadd.f32 %v500_v16, %v482_v17  ;;  %407 = vst.msk [vmem:[#allocation2 + $0x58] sm:$0x3] %vm396_vm1, %v1195_v1  ;;  %v661_v17 = vmul.f32 %v1439_v57, %v1337_v4 }
  0x25   : > { %v439_v24 = vld [vmem:[#allocation2 + $0x10] sm:$0xff]  ;;  %408 = vst.msk [vmem:[#allocation2 + $0x60] sm:$0xff] %vm394_vm0, %v1195_v1 }
  0x26   : > { %v465_v25 = vld [vmem:[#allocation2 + $0x11] sm:$0xff]  ;;  %v449_v27 = vmul.f32 %v1334_v3, %v439_v24  ;;  %v517_v29 = vld [vmem:[#allocation2 + $0x20] sm:$0xff]  ;;  %v526_v30 = vmul.f32 %v1375_v18, %v439_v24  ;;  %409 = vst.msk [vmem:[#allocation2 + $0x68] sm:$0x3] %vm396_vm1, %v1195_v1 }
  0x27   : > { %v491_v26 = vld [vmem:[#allocation2 + $0x12] sm:$0xff]  ;;  %v475_v28 = vmul.f32 %v1351_v7, %v465_v25  ;;  %v595_v34 = vld [vmem:[#allocation2 + $0x21] sm:$0xff]  ;;  %v579_v41 = vmul.f32 %v1385_v20, %v517_v29  ;;  %v527_v42 = vmul.f32 %v1375_v18, %v517_v29  ;;  %v450_v45 = vmul.f32 %v1334_v3, %v517_v29  ;;  %410 = vst.msk [vmem:[#allocation2 + $0x70] sm:$0xff] %vm394_vm0, %v1195_v1  ;;  %v1485_v29 = vld [vmem:[%s1714_s4] ss:$0 sm:$0xff] }
  0x28   : > { %v552_v32 = vmul.f32 %v1380_v19, %v491_v26  ;;  %v570_v33 = vld [vmem:[#allocation2 + $0x30] sm:$0xff]  ;;  %v457_v37 = vadd.f32 %v449_v27, %v431_v22  ;;  %v501_v38 = vmul.f32 %v1364_v13, %v491_v26  ;;  %v534_v39 = vadd.f32 %v526_v30, %v508_v23  ;;  %v543_v40 = vld [vmem:[#allocation2 + $0x22] sm:$0xff]  ;;  %411 = vst.msk [vmem:[#allocation2 + $0x78] sm:$0x3] %vm396_vm1, %v1195_v1  ;;  %v1477_v25 = vld [vmem:[%s1327_s24 + $0x38] sm:$0xff] }
  0x29   : > { %v605_v43 = vmul.f32 %v1390_v21, %v595_v34  ;;  %v596_v48 = vld [vmem:[#allocation2 + $0x31] sm:$0xff]  ;;  %v451_v49 = vmul.f32 %v1334_v3, %v570_v33  ;;  %v476_v50 = vmul.f32 %v1351_v7, %v595_v34  ;;  %v458_v51 = vadd.f32 %v450_v45, %v432_v36  ;;  %412 = vst.msk [vmem:[#allocation2 + $0x80] sm:$0xff] %vm394_vm0, %v1195_v1  ;;  %v1469_v22 = vld [vmem:[%s1327_s24 + $0x28] sm:$0xff]  ;;  %s377_s24 = sand.u32 1, %s1185_s18  }
  0x2a   : > { %v483_v46 = vadd.f32 %v475_v28, %v457_v37  ;;  %v560_v47 = vadd.f32 %v552_v32, %v534_v39  ;;  %v502_v52 = vmul.f32 %v1364_v13, %v543_v40  ;;  %v553_v54 = vmul.f32 %v1380_v19, %v543_v40  ;;  %413 = vst.msk [vmem:[#allocation2 + $0x88] sm:$0x3] %vm396_vm1, %v1195_v1  ;;  %v622_v0 = vld [vmem:[#allocation2 + $0x32] sm:$0xff]  ;;  %s1021_s15 = sshll.u32 %s377_s24, 6  ;;  %s940_s21 = scalar_lea.sflag [#allocation4], %s377_s24 }
  0x2b   : > { %v631_v56 = vmul.f32 %v1410_v35, %v543_v40  ;;  %v580_v58 = vmul.f32 %v1385_v20, %v570_v33  ;;  %v477_v59 = vmul.f32 %v1351_v7, %v596_v48  ;;  %v484_v60 = vadd.f32 %v476_v50, %v458_v51  ;;  %414 = vst.msk [vmem:[#allocation2 + $0x90] sm:$0xff] %vm394_vm0, %v1195_v1  ;;  %s1651_s16 = scalar_lea.vmem [#allocation3], %s1021_s15  ;;  %s1147_s15 = scalar_lea.hbm %s1146_s14, 64 }
  0x2c   : > { %v509_v53 = vadd.f32 %v501_v38, %v483_v46  ;;  %v587_v55 = vadd.f32 %v579_v41, %v560_v47  ;;  %v459_v9 = vadd.f32 %v451_v49, %v433_v44  ;;  %v528_v10 = vmul.f32 %v1375_v18, %v570_v33  ;;  %415 = vst.msk [vmem:[#allocation2 + $0x98] sm:$0x3] %vm396_vm1, %v1195_v1  ;;  %s952_s12 = sshll.u32 %s1651_s16, 4  ;;  %p1148_p11 = scmp.ne.s32.totalorder %s1146_s14, %s1147_s15  ;;  %s953_s12 = int_to_ptr.vmem [resolvable:$true] %s952_s12 }
  0x2d   : > { %v510_v12 = vadd.f32 %v502_v52, %v484_v60  ;;  %v606_v15 = vmul.f32 %v1390_v21, %v596_v48  ;;  %420 = vst.msk [vmem:[#allocation2 + $0x41] sm:$0xff] %vm394_vm0, %v1404_v31  ;;  %v632_v23 = vmul.f32 %v1410_v35, %v622_v0  ;;  %v503_v1 = vmul.f32 %v1364_v13, %v622_v0  ;;  %p1153_p1 = scmp.lt.s32.totalorder %s1151_s29, %s1147_s15 }
  0x2e   : > { %v535_v62 = vadd.f32 %v527_v42, %v509_v53  ;;  %v613_v63 = vadd.f32 %v605_v43, %v587_v55  ;;  %421 = vst.msk [vmem:[#allocation2 + $0x51] sm:$0xff] %vm394_vm0, %v1448_v61  ;;  %v554_v24 = vmul.f32 %v1380_v19, %v622_v0  ;;  %v485_v4 = vadd.f32 %v477_v59, %v459_v9  ;;  %p1149_p12 = pnand %p1148_p11, %p1296_p5 }
  0x2f   : > { %v536_v28 = vadd.f32 %v528_v10, %v510_v12  ;;  %423 = vst.msk [vmem:[#allocation2 + $0x71] sm:$0xff] %vm394_vm0, %v1459_v11  ;;  %v662_v33 = vmul.f32 %v1439_v57, %v1342_v5  ;;  %v434_v34 = vmul.f32 %v1320_v2, %v1448_v61  ;;  %v435_v36 = vmul.f32 %v1320_v2, %v1469_v22  ;;  %p1154_p2 = por %p1153_p1, %p1152_p0 }
  0x30   : > { %v561_v14 = vadd.f32 %v553_v54, %v535_v62  ;;  %v639_v16 = vadd.f32 %v631_v56, %v613_v63  ;;  %422 = vst.msk [vmem:[#allocation2 + $0x61] sm:$0xff] %vm394_vm0, %v1469_v22  ;;  %v511_v38 = vadd.f32 %v503_v1, %v485_v4  ;;  %v663_v40 = vmul.f32 %v1439_v57, %v1354_v8  ;;  %p1150_p13 = pneg %p1149_p12 }
  0x31   : > { %424 = vst.msk [vmem:[#allocation2 + $0x81] sm:$0xff] %vm394_vm0, %v1477_v25  ;;  %v562_v39 = vadd.f32 %v554_v24, %v536_v28  ;;  %v1504_v5 = vmul.f32 %v1439_v57, %v1404_v31  ;;  %v1508_v45 = vmul.f32 %v1320_v2, %v1459_v11  ;;  %v1512_v46 = vmul.f32 %v1320_v2, %v1477_v25 }
  0x32   : > { %v588_v26 = vadd.f32 %v580_v58, %v561_v14  ;;  %v650_v27 = vmul.f32 %v1453_v6, %v639_v16  ;;  %p1155_p3 = pnand %p1154_p2, %p1150_p13 }
  0x34   : > { %v614_v30 = vadd.f32 %v606_v15, %v588_v26  ;;  %v669_v32 = vadd.f32 %v661_v17, %v650_v27  ;;  %v519_v42 = vld [vmem:[#allocation2 + $0x40] sm:$0xff] }
  0x35   : > { %v545_v43 = vld [vmem:[#allocation2 + $0x42] sm:$0xff]  ;;  %v529_v47 = vmul.f32 %v1375_v18, %v519_v42  ;;  %v572_v49 = vld [vmem:[#allocation2 + $0x50] sm:$0xff]  ;;  %v581_v50 = vmul.f32 %v1385_v20, %v519_v42  ;;  %v452_v60 = vmul.f32 %v1334_v3, %v519_v42 }
  0x36   : > { %v640_v37 = vadd.f32 %v632_v23, %v614_v30  ;;  %v1500_v41 = vadd.f32 %v1485_v29, %v669_v32  ;;  %v597_v44 = vld [vmem:[#allocation2 + $0x41] sm:$0xff]  ;;  %v555_v48 = vmul.f32 %v1380_v19, %v545_v43  ;;  %v598_v51 = vld [vmem:[#allocation2 + $0x51] sm:$0xff]  ;;  %v582_v52 = vmul.f32 %v1385_v20, %v572_v49 }
  0x37   : > { %v624_v31 = vld [vmem:[#allocation2 + $0x52] sm:$0xff]  ;;  %v607_v53 = vmul.f32 %v1390_v21, %v597_v44  ;;  %v608_v54 = vmul.f32 %v1390_v21, %v598_v51  ;;  %v633_v2 = vmul.f32 %v1410_v35, %v545_v43  ;;  %v537_v56 = vadd.f32 %v529_v47, %v511_v38  ;;  %v521_v9 = vld [vmem:[#allocation2 + $0x60] sm:$0xff] }
  0x38   : > { %v651_v8 = vmul.f32 %v1453_v6, %v640_v37  ;;  %v589_v58 = vadd.f32 %v581_v50, %v562_v39  ;;  %v634_v59 = vmul.f32 %v1410_v35, %v624_v31  ;;  %v453_v62 = vmul.f32 %v1334_v3, %v572_v49  ;;  %v547_v16 = vld [vmem:[#allocation2 + $0x62] sm:$0xff]  ;;  %v574_v26 = vld [vmem:[#allocation2 + $0x70] sm:$0xff] }
  0x39   : > { %v478_v63 = vmul.f32 %v1351_v7, %v597_v44  ;;  %v479_v0 = vmul.f32 %v1351_v7, %v598_v51  ;;  %v563_v12 = vadd.f32 %v555_v48, %v537_v56  ;;  %v504_v15 = vmul.f32 %v1364_v13, %v545_v43  ;;  %v599_v32 = vld [vmem:[#allocation2 + $0x61] sm:$0xff] }
  0x3a   : > { %v670_v55 = vadd.f32 %v662_v33, %v651_v8  ;;  %v615_v14 = vadd.f32 %v607_v53, %v589_v58  ;;  %v460_v17 = vadd.f32 %v452_v60, %v434_v34  ;;  %v461_v23 = vadd.f32 %v453_v62, %v435_v36  ;;  %v600_v33 = vld [vmem:[#allocation2 + $0x71] sm:$0xff] }
  0x3b   : > { %v505_v1 = vmul.f32 %v1364_v13, %v624_v31  ;;  %v530_v24 = vmul.f32 %v1375_v18, %v572_v49  ;;  %v590_v4 = vadd.f32 %v582_v52, %v563_v12  ;;  %v531_v30 = vmul.f32 %v1375_v18, %v521_v9  ;;  %v626_v36 = vld [vmem:[#allocation2 + $0x72] sm:$0xff] }
  0x3c   : > { %v1528_v10 = vadd.f32 %v1485_v29, %v670_v55  ;;  %v641_v28 = vadd.f32 %v633_v2, %v615_v14  ;;  %v486_v37 = vadd.f32 %v478_v63, %v460_v17  ;;  %v487_v38 = vadd.f32 %v479_v0, %v461_v23  ;;  %v523_v14 = vld [vmem:[#allocation2 + $0x80] sm:$0xff] }
  0x3d   : > { %v556_v39 = vmul.f32 %v1380_v19, %v624_v31  ;;  %v557_v34 = vmul.f32 %v1380_v19, %v547_v16  ;;  %v616_v42 = vadd.f32 %v608_v54, %v590_v4  ;;  %v583_v44 = vmul.f32 %v1385_v20, %v521_v9 }
  0x3e   : > { %v692_v27 = vpack.c.bf16 %v1528_v10, %v1500_v41  ;;  %v652_v43 = vmul.f32 %v1453_v6, %v641_v28  ;;  %v584_v8 = vmul.f32 %v1385_v20, %v574_v26  ;;  %v512_v47 = vadd.f32 %v504_v15, %v486_v37  ;;  %v549_v15 = vld [vmem:[#allocation2 + $0x82] sm:$0xff] }
  0x3f   : > { %v513_v48 = vadd.f32 %v505_v1, %v487_v38  ;;  %v609_v49 = vmul.f32 %v1390_v21, %v599_v32  ;;  %v610_v50 = vmul.f32 %v1390_v21, %v600_v33  ;;  %v642_v51 = vadd.f32 %v634_v59, %v616_v42  ;;  %v601_v42 = vld [vmem:[#allocation2 + $0x81] sm:$0xff] }
  0x40   : > { %1028 = vmatmul.msk.bf16.vlgmr.msra.gmra.mxu0 %vm394_vm0, %v692_v27  ;;  %v671_v31 = vadd.f32 %v663_v40, %v652_v43  ;;  %v635_v52 = vmul.f32 %v1410_v35, %v547_v16  ;;  %v636_v53 = vmul.f32 %v1410_v35, %v626_v36  ;;  %v538_v2 = vadd.f32 %v530_v24, %v512_v47  ;;  %v602_v43 = vld [vmem:[#allocation2 + $0x91] sm:$0xff] }
  0x41   : > { %v539_v54 = vadd.f32 %v531_v30, %v513_v48  ;;  %v454_v55 = vmul.f32 %v1334_v3, %v521_v9  ;;  %v455_v56 = vmul.f32 %v1334_v3, %v574_v26  ;;  %v653_v58 = vmul.f32 %v1453_v6, %v642_v51 }
  0x42   : > { %v1550_v60 = vadd.f32 %v1485_v29, %v671_v31  ;;  %v480_v62 = vmul.f32 %v1351_v7, %v599_v32  ;;  %v481_v59 = vmul.f32 %v1351_v7, %v600_v33  ;;  %v564_v40 = vadd.f32 %v556_v39, %v538_v2 }
  0x43   : > { %v565_v63 = vadd.f32 %v557_v34, %v539_v54  ;;  %v462_v0 = vadd.f32 %v454_v55, %v1508_v45  ;;  %v463_v12 = vadd.f32 %v455_v56, %v1512_v46  ;;  %v672_v9 = vadd.f32 %v1504_v5, %v653_v58 }
  0x44   : > { %v506_v3 = vmul.f32 %v1364_v13, %v547_v16  ;;  %v507_v17 = vmul.f32 %v1364_v13, %v626_v36  ;;  %v532_v23 = vmul.f32 %v1375_v18, %v574_v26  ;;  %v591_v1 = vadd.f32 %v583_v44, %v564_v40  ;;  %v576_v13 = vld [vmem:[#allocation2 + $0x90] sm:$0xff] }
  0x45   : > { %v592_v24 = vadd.f32 %v584_v8, %v565_v63  ;;  %v488_v27 = vadd.f32 %v480_v62, %v462_v0  ;;  %v489_v7 = vadd.f32 %v481_v59, %v463_v12  ;;  %v1561_v4 = vadd.f32 %v1485_v29, %v672_v9 }
  0x46   : > { %v533_v45 = vmul.f32 %v1375_v18, %v523_v14  ;;  %v558_v46 = vmul.f32 %v1380_v19, %v626_v36  ;;  %v559_v28 = vmul.f32 %v1380_v19, %v549_v15  ;;  %v617_v5 = vadd.f32 %v609_v49, %v591_v1 }
  0x47   : > { %v618_v30 = vadd.f32 %v610_v50, %v592_v24  ;;  %v514_v16 = vadd.f32 %v506_v3, %v488_v27  ;;  %v515_v32 = vadd.f32 %v507_v17, %v489_v7  ;;  %v693_v26 = vpack.c.bf16 %v1561_v4, %v1550_v60  ;;  %v1052_v17 = vld [vmem:[%s1718_s8 + $0x8] sm:$0xff] }
  0x48   : > { %v643_v33 = vadd.f32 %v635_v52, %v617_v5  ;;  %v665_v18 = vmul.f32 %v1439_v57, %v1448_v61  ;;  %v666_v19 = vmul.f32 %v1439_v57, %v1469_v22  ;;  %v585_v34 = vmul.f32 %v1385_v20, %v523_v14  ;;  %v628_v52 = vld [vmem:[#allocation2 + $0x92] sm:$0xff]  ;;  %878 = vmatpush.bf16.msra.mxu1 %v1052_v17 }
  0x49   : > { %v644_v37 = vadd.f32 %v636_v53, %v618_v30  ;;  %v540_v38 = vadd.f32 %v532_v23, %v514_v16  ;;  %v541_v39 = vadd.f32 %v533_v45, %v515_v32  ;;  %1029 = vmatmul.msk.bf16.vlgmr.msra.gmra.mxu3 %vm394_vm0, %v693_v26  ;;  %v586_v36 = vmul.f32 %v1385_v20, %v576_v13  ;;  %v1051_v45 = vld [vmem:[%s1718_s8] sm:$0xff] }
  0x4a   : > { %v654_v44 = vmul.f32 %v1453_v6, %v643_v33  ;;  %v611_v49 = vmul.f32 %v1390_v21, %v601_v42  ;;  %v612_v50 = vmul.f32 %v1390_v21, %v602_v43  ;;  %v637_v53 = vmul.f32 %v1410_v35, %v549_v15  ;;  %1055 = vmatpush.bf16.msra.mxu2 %v1052_v17 }
  0x4b   : > { %v655_v8 = vmul.f32 %v1453_v6, %v644_v37  ;;  %v566_v47 = vadd.f32 %v558_v46, %v540_v38  ;;  %v567_v48 = vadd.f32 %v559_v28, %v541_v39  ;;  %v638_v20 = vmul.f32 %v1410_v35, %v628_v52 }
  0x4c   : > { %v673_v61 = vadd.f32 %v665_v18, %v654_v44  ;;  %v667_v35 = vmul.f32 %v1439_v57, %v1459_v11  ;;  %v668_v63 = vmul.f32 %v1439_v57, %v1477_v25  ;;  %v1614_v25 = vld [vmem:[%s1717_s7] ss:$0 sm:$0xff]  ;;  %879 = vmatpush.bf16.msra.mxu1 %v1051_v45 }
  0x4d   : > { %v674_v51 = vadd.f32 %v666_v19, %v655_v8  ;;  %v593_v31 = vadd.f32 %v585_v34, %v566_v47  ;;  %v594_v22 = vadd.f32 %v586_v36, %v567_v48 }
  0x4e   : > { %v1582_v2 = vadd.f32 %v1485_v29, %v673_v61  ;;  %1056 = vmatpush.bf16.msra.mxu2 %v1051_v45 }
  0x4f   : > { %v1585_v54 = vadd.f32 %v1485_v29, %v674_v51  ;;  %v619_v55 = vadd.f32 %v611_v49, %v593_v31  ;;  %v620_v56 = vadd.f32 %v612_v50, %v594_v22 }
  0x51   : > { %v694_v21 = vpack.c.bf16 %v1585_v54, %v1582_v2  ;;  %v645_v58 = vadd.f32 %v637_v53, %v619_v55  ;;  %v646_v62 = vadd.f32 %v638_v20, %v620_v56 }
  0x53   : > { %v656_v59 = vmul.f32 %v1453_v6, %v645_v58  ;;  %v657_v40 = vmul.f32 %v1453_v6, %v646_v62  ;;  %v1608_v6 = vld [vmem:[%s1716_s6] ss:$0 sm:$0xff] }
  0x55   : > { %v675_v0 = vadd.f32 %v667_v35, %v656_v59  ;;  %v676_v12 = vadd.f32 %v668_v63, %v657_v40 }
  0x57   : > { %v1597_v14 = vadd.f32 %v1485_v29, %v675_v0  ;;  %v1600_v15 = vadd.f32 %v1485_v29, %v676_v12 }
  0x59   : > { %1030 = vmatmul.msk.bf16.gmra.mxu3 %vm394_vm0, %v694_v21  ;;  %v695_v9 = vpack.c.bf16 %v1600_v15, %v1597_v14 }
  0x69   : > { %1031 = vmatmul.msk.bf16.gmra.mxu3 %vm394_vm0, %v695_v9 }
  0xbd   : > { %v725_v11 = vpop.f32.mrf.mxu0 }
  0xbe   : > { %v748_v57 = vmul.f32 %v1608_v6, %v725_v11 }
  0xc0   : > { %v759_v29 = vadd.f32 %v1614_v25, %v748_v57 }
  0xc2   : > { %v775_v3 = vmul.f32 0.044715, %v759_v29  ;;  %v767_v34 = vmul.f32 0.5, %v759_v29 }
  0xc4   : > { %v783_v23 = vmul.f32 %v775_v3, %v759_v29 }
  0xc5   : > { %v727_v1 = vpop.f32.mrf.mxu0 }
  0xc6   : > { %v749_v24 = vmul.f32 %v1608_v6, %v727_v1  ;;  %v791_v27 = vmul.f32 %v783_v23, %v759_v29 }
  0xc8   : > { %v760_v7 = vadd.f32 %v1614_v25, %v749_v24  ;;  %v799_v46 = vadd.f32 %v791_v27, %v759_v29 }
  0xca   : > { %v776_v28 = vmul.f32 0.044715, %v760_v7  ;;  %v807_v5 = vmul.f32 0.7978846, %v799_v46  ;;  %v768_v44 = vmul.f32 0.5, %v760_v7 }
  0xcc   : > { %v784_v30 = vmul.f32 %v776_v28, %v760_v7  ;;  %1115 = vtanh.f32 %v807_v5  ;;  %v730_v32 = vpop.f32.mrf.mxu3 }
  0xcd   : > { %v750_v13 = vmul.f32 %v1608_v6, %v730_v32 }
  0xce   : > { %v792_v16 = vmul.f32 %v784_v30, %v760_v7 }
  0xcf   : > { %v761_v33 = vadd.f32 %v1614_v25, %v750_v13 }
  0xd0   : > { %v800_v26 = vadd.f32 %v792_v16, %v760_v7 }
  0xd1   : > { %v777_v39 = vmul.f32 0.044715, %v761_v33  ;;  %v769_v3 = vmul.f32 0.5, %v761_v33 }
  0xd2   : > { %v808_v37 = vmul.f32 0.7978846, %v800_v26  ;;  %v1116_v38 = vpop.eup %1115 }
  0xd3   : > { %v785_v18 = vmul.f32 %v777_v39, %v761_v33  ;;  %v823_v36 = vadd.f32 1.0, %v1116_v38 }
  0xd4   : > { %1117 = vtanh.f32 %v808_v37  ;;  %v732_v19 = vpop.f32.mrf.mxu3 }
  0xd5   : > { %v751_v42 = vmul.f32 %v1608_v6, %v732_v19  ;;  %v793_v43 = vmul.f32 %v785_v18, %v761_v33  ;;  %v831_v50 = vmul.f32 %v823_v36, %v767_v34 }
  0xd7   : > { %v762_v47 = vadd.f32 %v1614_v25, %v751_v42  ;;  %v801_v48 = vadd.f32 %v793_v43, %v761_v33 }
  0xd9   : > { %v778_v61 = vmul.f32 0.044715, %v762_v47  ;;  %v809_v22 = vmul.f32 0.7978846, %v801_v48  ;;  %v770_v17 = vmul.f32 0.5, %v762_v47 }
  0xda   : > { %v1118_v8 = vpop.eup %1117 }
  0xdb   : > { %v824_v49 = vadd.f32 1.0, %v1118_v8  ;;  %v786_v31 = vmul.f32 %v778_v61, %v762_v47  ;;  %1119 = vtanh.f32 %v809_v22 }
  0xdc   : > { %v735_v52 = vpop.f32.mrf.mxu3 }
  0xdd   : > { %v832_v51 = vmul.f32 %v824_v49, %v768_v44  ;;  %v752_v20 = vmul.f32 %v1608_v6, %v735_v52  ;;  %v794_v55 = vmul.f32 %v786_v31, %v762_v47 }
  0xdf   : > { %v839_v53 = vpack.c.bf16 %v832_v51, %v831_v50  ;;  %v763_v56 = vadd.f32 %v1614_v25, %v752_v20  ;;  %v802_v21 = vadd.f32 %v794_v55, %v762_v47 }
  0xe1   : > { %1040 = vmatmul.msk.bf16.vlgmr.msra.gmra.mxu1 %vm859_vm2, %v839_v53  ;;  %v779_v58 = vmul.f32 0.044715, %v763_v56  ;;  %v810_v62 = vmul.f32 0.7978846, %v802_v21  ;;  %v1120_v35 = vpop.eup %1119  ;;  %v771_v43 = vmul.f32 0.5, %v763_v56 }
  0xe2   : > { %v825_v11 = vadd.f32 1.0, %v1120_v35 }
  0xe3   : > { %1121 = vtanh.f32 %v810_v62  ;;  %v787_v59 = vmul.f32 %v779_v58, %v763_v56  ;;  %v1113_v62 = vld [vmem:[%s1719_s9] ss:$0 sm:$0xff] }
  0xe4   : > { %v737_v40 = vpop.f32.mrf.mxu3  ;;  %v833_v7 = vmul.f32 %v825_v11, %v769_v3 }
  0xe5   : > { %v753_v63 = vmul.f32 %v1608_v6, %v737_v40  ;;  %v795_v0 = vmul.f32 %v787_v59, %v763_v56  ;;  %v1114_v59 = vld [vmem:[%s1720_s10] ss:$0 sm:$0xff] }
  0xe7   : > { %v764_v12 = vadd.f32 %v1614_v25, %v753_v63  ;;  %v803_v9 = vadd.f32 %v795_v0, %v763_v56 }
  0xe9   : > { %v1122_v57 = vpop.eup %1121  ;;  %v780_v29 = vmul.f32 0.044715, %v764_v12  ;;  %v811_v24 = vmul.f32 0.7978846, %v803_v9  ;;  %v772_v44 = vmul.f32 0.5, %v764_v12 }
  0xea   : > { %v826_v23 = vadd.f32 1.0, %v1122_v57 }
  0xeb   : > { %v788_v1 = vmul.f32 %v780_v29, %v764_v12  ;;  %1123 = vtanh.f32 %v811_v24 }
  0xec   : > { %v740_v27 = vpop.f32.mrf.mxu3  ;;  %v834_v45 = vmul.f32 %v826_v23, %v770_v17 }
  0xed   : > { %v754_v46 = vmul.f32 %v1608_v6, %v740_v27  ;;  %v796_v28 = vmul.f32 %v788_v1, %v764_v12 }
  0xee   : > { %v840_v5 = vpack.c.bf16 %v834_v45, %v833_v7 }
  0xef   : > { %v765_v30 = vadd.f32 %v1614_v25, %v754_v46  ;;  %v804_v16 = vadd.f32 %v796_v28, %v764_v12 }
  0xf1   : > { %1041 = vmatmul.msk.bf16.gmra.mxu1 %vm859_vm2, %v840_v5  ;;  %v781_v32 = vmul.f32 0.044715, %v765_v30  ;;  %v812_v13 = vmul.f32 0.7978846, %v804_v16  ;;  %v1124_v37 = vpop.eup %1123  ;;  %v773_v53 = vmul.f32 0.5, %v765_v30 }
  0xf2   : > { %v827_v34 = vadd.f32 1.0, %v1124_v37 }
  0xf3   : > { %1125 = vtanh.f32 %v812_v13  ;;  %v789_v26 = vmul.f32 %v781_v32, %v765_v30 }
  0xf4   : > { %v742_v33 = vpop.f32.mrf.mxu3  ;;  %v835_v49 = vmul.f32 %v827_v34, %v771_v43 }
  0xf5   : > { %v755_v38 = vmul.f32 %v1608_v6, %v742_v33  ;;  %v797_v39 = vmul.f32 %v789_v26, %v765_v30 }
  0xf7   : > { %v766_v18 = vadd.f32 %v1614_v25, %v755_v38  ;;  %v805_v19 = vadd.f32 %v797_v39, %v765_v30 }
  0xf9   : > { %v1126_v36 = vpop.eup %1125  ;;  %v782_v42 = vmul.f32 0.044715, %v766_v18  ;;  %v813_v48 = vmul.f32 0.7978846, %v805_v19  ;;  %v774_v20 = vmul.f32 0.5, %v766_v18 }
  0xfa   : > { %v828_v8 = vadd.f32 1.0, %v1126_v36 }
  0xfb   : > { %v790_v47 = vmul.f32 %v782_v42, %v766_v18  ;;  %1127 = vtanh.f32 %v813_v48 }
  0xfc   : > { %v836_v50 = vmul.f32 %v828_v8, %v772_v44 }
  0xfd   : > { %v798_v61 = vmul.f32 %v790_v47, %v766_v18 }
  0xfe   : > { %v841_v51 = vpack.c.bf16 %v836_v50, %v835_v49 }
  0xff   : > { %v806_v31 = vadd.f32 %v798_v61, %v766_v18 }
 0x100   : > { %1042 = vmatmul.msk.bf16.vlgmr.msra.gmra.mxu2 %vm859_vm2, %v841_v51 }
 0x101   : > { %v814_v6 = vmul.f32 0.7978846, %v806_v31  ;;  %v1128_v25 = vpop.eup %1127 }
 0x102   : > { %v829_v22 = vadd.f32 1.0, %v1128_v25 }
 0x103   : > { %1129 = vtanh.f32 %v814_v6 }
 0x104   : > { %v837_v56 = vmul.f32 %v829_v22, %v773_v53 }
 0x109   : > { %v1130_v52 = vpop.eup %1129 }
 0x10a   : > { %v830_v55 = vadd.f32 1.0, %v1130_v52 }
 0x10c   : > { %v838_v21 = vmul.f32 %v830_v55, %v774_v20 }
 0x10e   : > { %v842_v58 = vpack.c.bf16 %v838_v21, %v837_v56 }
 0x110   : > { %1043 = vmatmul.msk.bf16.gmra.mxu2 %vm859_vm2, %v842_v58 }
 0x15e   : > { %v881_v40 = vpop.f32.mrf.mxu1 }
 0x15f   : > { %v904_v35 = vmul.f32 %v1113_v62, %v881_v40 }
 0x161   : > { %v915_v63 = vadd.f32 %v1114_v59, %v904_v35 }
 0x163   : > { %v923_v0 = vadd.f32 %v915_v63, %v1500_v41 }
 0x165   : > { %931 = vst.msk [vmem:[%s1651_s16] sm:$0xff] %vm394_vm0, %v923_v0 }
 0x166   : > { %v883_v12 = vpop.f32.mrf.mxu1 }
 0x167   : > { %v905_v9 = vmul.f32 %v1113_v62, %v883_v12 }
 0x169   : > { %v916_v11 = vadd.f32 %v1114_v59, %v905_v9 }
 0x16b   : > { %v924_v57 = vadd.f32 %v916_v11, %v1528_v10 }
 0x16d   : > { %932 = vst.msk [vmem:[%s1651_s16 + $0x8] sm:$0xff] %vm394_vm0, %v924_v57 }
 0x16e   : > { %v886_v29 = vpop.f32.mrf.mxu1 }
 0x16f   : > { %v906_v3 = vmul.f32 %v1113_v62, %v886_v29 }
 0x171   : > { %v917_v17 = vadd.f32 %v1114_v59, %v906_v3 }
 0x173   : > { %v925_v41 = vadd.f32 %v917_v17, %v1550_v60 }
 0x175   : > { %933 = vst.msk [vmem:[%s1651_s16 + $0x10] sm:$0xff] %vm394_vm0, %v925_v41 }
 0x176   : > { %v888_v23 = vpop.f32.mrf.mxu1 }
 0x177   : > { %v907_v1 = vmul.f32 %v1113_v62, %v888_v23 }
 0x179   : > { %v918_v24 = vadd.f32 %v1114_v59, %v907_v1 }
 0x17b   : > { %v926_v27 = vadd.f32 %v918_v24, %v1561_v4 }
 0x17d   : > { %934 = vst.msk [vmem:[%s1651_s16 + $0x18] sm:$0xff] %vm394_vm0, %v926_v27 }
 0x183   : > { %v891_v10 = vpop.f32.mrf.mxu2 }
 0x184   : > { %v908_v7 = vmul.f32 %v1113_v62, %v891_v10 }
 0x186   : > { %v919_v45 = vadd.f32 %v1114_v59, %v908_v7 }
 0x188   : > { %v927_v46 = vadd.f32 %v919_v45, %v1582_v2 }
 0x18a   : > { %935 = vst.msk [vmem:[%s1651_s16 + $0x20] sm:$0xff] %vm394_vm0, %v927_v46 }
 0x18b   : > { %v893_v60 = vpop.f32.mrf.mxu2 }
 0x18c   : > { %v909_v28 = vmul.f32 %v1113_v62, %v893_v60 }
 0x18e   : > { %v920_v5 = vadd.f32 %v1114_v59, %v909_v28 }
 0x190   : > { %v928_v30 = vadd.f32 %v920_v5, %v1585_v54 }
 0x192   : > { %936 = vst.msk [vmem:[%s1651_s16 + $0x28] sm:$0xff] %vm394_vm0, %v928_v30 }
 0x193   : > { %v896_v4 = vpop.f32.mrf.mxu2 }
 0x194   : > { %v910_v16 = vmul.f32 %v1113_v62, %v896_v4 }
 0x196   : > { %v921_v32 = vadd.f32 %v1114_v59, %v910_v16 }
 0x198   : > { %v929_v13 = vadd.f32 %v921_v32, %v1597_v14 }
 0x19a   : > { %937 = vst.msk [vmem:[%s1651_s16 + $0x30] sm:$0xff] %vm394_vm0, %v929_v13 }
 0x19b   : > { %v898_v2 = vpop.f32.mrf.mxu2 }
 0x19c   : > { %v911_v26 = vmul.f32 %v1113_v62, %v898_v2 }
 0x19e   : > { %v922_v54 = vadd.f32 %v1114_v59, %v911_v26 }
 0x1a0   : > { %v930_v33 = vadd.f32 %v922_v54, %v1600_v15 }
 0x1a2   : > { %938 = vst.msk [vmem:[%s1651_s16 + $0x38] sm:$0xff] %vm394_vm0, %v930_v33 }
 0x1a3   : > { %1158 = shalt.err (!%p1155_p3)
}
 0x1a4   : > { %s1196_s24 = smov 128   ;;  %s1197_s16 = smov 8  }
 0x1a5   : > { %1057 = dma.vmem_to_hbm [thread:$0]  (%p1296_p5), %s953_s12, 1024, %s955_s13, %s940_s21, %s1196_s24, %s1196_s24, %s1197_s16  }
 0x1a6 PF: > { %p1063_p4 = scmp.ge.s32.totalorder %s1193_s20, 2  ;;  %s969_s22 = sand.u32 1, %s1181_s17  }
 0x1a7   : > { %s970_s0 = scalar_lea.sflag [#allocation4], %s969_s22 }
 0x1a8   : > { %p1060_p7 = pnand %p1063_p4, %p1300_p6 }
 0x1aa   : > { %p1061_p8 = pneg %p1060_p7 }
 0x1ac   : > { %1176 = dma.done.wait (%p1061_p8), %s970_s0, 1024  }
 0x1ad   : > { %1178 = vsyncadd (%p1061_p8), %s970_s0, 4294966272  ;;  %p21_p9 = scmp.ge.s32.totalorder %s1283_s23, 4   ;;  %s1726_s17 = smov %s1185_s18 }
 0x1ae   : > { %s1727_s18 = smov %s1189_s19  ;;  %s1728_s19 = smov %s1294_s26 }
 0x1af   : > { %s1729_s20 = smov %s1283_s23  ;;  %23 = sbr.rel (!%p21_p9) target bundleno = 5 (0x5), region = 101 }
 0x1b4   :  { %976 = vsyncpa [#allocation4], 1 }
 0x1b5   :  { %978 = vsyncpa [#allocation4 + $0x1], 1 }

// kernel: _lambda_.4
= control target key start
LH: loop header
LB: loop body
LE: loop exit
PB: predicated region body
PF: predicated region fallthrough
CT: control target
= control target key end

     0   :  { %s1396_s18 = smov 0   ;;  %s1872_s0 = inlined_call_operand.vmem [shape: f32[2,8,8,16], index: 0, kind: input, shape index: {}]   ;;  %s1873_s1 = inlined_call_operand.vmem [shape: f32[9,16], index: 1, kind: input, shape index: {}]   ;;  %s1874_s2 = inlined_call_operand.vmem [shape: f32[1,16], index: 2, kind: input, shape index: {}]   ;;  %s1875_s3 = inlined_call_operand.vmem [shape: f32[1,16], index: 3, kind: input, shape index: {}]   ;;  %s1876_s4 = inlined_call_operand.vmem [shape: f32[1,16], index: 4, kind: input, shape index: {}]   ;;  %s1877_s5 = inlined_call_operand.vmem [shape: bf16[16,8], index: 5, kind: input, shape index: {}]   ;;  %s1878_s6 = inlined_call_operand.vmem [shape: f32[1,8], index: 6, kind: input, shape index: {}]   ;;  %s1879_s7 = inlined_call_operand.vmem [shape: bf16[8,16], index: 7, kind: input, shape index: {}]   ;;  %s1880_s8 = inlined_call_operand.vmem [shape: f32[1,16], index: 8, kind: input, shape index: {}]   ;;  %s1881_s9 = inlined_call_operand.vmem [shape: bf16[16,32], index: 9, kind: input, shape index: {}]   ;;  %s1882_s10 = inlined_call_operand.vmem [shape: f32[1,32], index: 10, kind: input, shape index: {}]   ;;  %s1883_s11 = inlined_call_operand.vmem [shape: f32[1,32], index: 11, kind: input, shape index: {}]   ;;  %s1884_s12 = inlined_call_operand.vmem [shape: bf16[32,16], index: 12, kind: input, shape index: {}]   ;;  %s1885_s13 = inlined_call_operand.vmem [shape: f32[1,16], index: 13, kind: input, shape index: {}]   ;;  %s1886_s14 = inlined_call_operand.vmem [shape: f32[1,16], index: 14, kind: input, shape index: {}]   ;;  %s1887_s15 = inlined_call_operand.vmem [shape: f32[2,8,8,16], index: 15, kind: output, shape index: {}]  }
   0x1 LB: > { %s1212_s19 = sadd.s32 4294967295, %s1312_s18   ;;  %p1216_p0 = scmp.ge.s32.totalorder %s1312_s18, 1  ;;  %s1312_s18 = sphi %s1396_s18, %s25_s18  }
   0x2   : > { %p437_p1 = scmp.lt.s32.totalorder %s1312_s18, 3 }
   0x4   : > { %p438_p2 = pnand %p1216_p0, %p437_p1 }
   0x6   : > { %441 = sbr.rel (%p438_p2) target bundleno = 752 (0x2f0), region = 80 }
   0xb   : > { %v1251_v0 = vld [vmem:[%s1877_s5] sm:$0xff]  ;;  %p485_p3 = scmp.lt.s32.totalorder %s1212_s19, 1  ;;  %vm504_vm0 = vcmask 130048   ;;  %v1314_v1 = vmov 0.0   ;;  %vm506_vm1 = vcmask 123904   ;;  %vm861_vm3 = vcmask 1043456  }
   0xc   : > { %505 = vst.msk [vmem:[#allocation2] sm:$0xff] %vm504_vm0, %v1314_v1  ;;  %848 = vmatpush.bf16.msra.mxu0 %v1251_v0  ;;  %v1268_v2 = vld [vmem:[%s1873_s1 + $0x4] ss:$0 sm:$0xff]  ;;  %v1434_v3 = vld [vmem:[%s1873_s1] ss:$0 sm:$0xff]  ;;  %vm857_vm4 = vcmask 64512  }
   0xd   : > { %507 = vst.msk [vmem:[#allocation2 + $0x8] sm:$0x3] %vm506_vm1, %v1314_v1  ;;  %s1901_s19 = smov (!%p485_p3, %s1212_s19), 1  ;;  %v1445_v9 = vld [vmem:[%s1873_s1 + $0x1] ss:$0 sm:$0xff]  ;;  %vm1077_vm9 = vcmask 261120  }
   0xe   : > { %508 = vst.msk [vmem:[#allocation2 + $0x10] sm:$0xff] %vm504_vm0, %v1314_v1  ;;  %s1249_s22 = sshll.u32 %s1901_s19, 6  ;;  %v1456_v13 = vld [vmem:[%s1873_s1 + $0x2] ss:$0 sm:$0xff]  ;;  %v1481_v22 = vld [vmem:[%s1873_s1 + $0x3] ss:$0 sm:$0xff] }
   0xf   : > { %509 = vst.msk [vmem:[#allocation2 + $0x18] sm:$0x3] %vm506_vm1, %v1314_v1  ;;  %s1424_s25 = scalar_lea.vmem %s1872_s0, %s1249_s22  ;;  %v1491_v26 = vld [vmem:[%s1873_s1 + $0x6] ss:$0 sm:$0xff]  ;;  %v1496_v27 = vld [vmem:[%s1875_s3] ss:$0 sm:$0xff]  ;;  %s1843_s24 = scalar_lea.vmem %s1887_s15, %s1249_s22 }
  0x10   : > { %510 = vst.msk [vmem:[#allocation2 + $0x20] sm:$0xff] %vm504_vm0, %v1314_v1  ;;  %v496_v5 = vld [vmem:[%s1424_s25] sm:$0xff]  ;;  %v497_v10 = vld [vmem:[%s1424_s25 + $0x8] sm:$0xff]  ;;  %v498_v14 = vld [vmem:[%s1424_s25 + $0x10] sm:$0xff] }
  0x11   : > { %511 = vst.msk [vmem:[#allocation2 + $0x28] sm:$0x3] %vm506_vm1, %v1314_v1  ;;  %v540_v6 = vmul.f32 %v1268_v2, %v496_v5  ;;  %v1461_v16 = vld [vmem:[%s1424_s25 + $0x18] sm:$0xff]  ;;  %v1465_v17 = vld [vmem:[%s1424_s25 + $0x20] sm:$0xff]  ;;  %v1469_v18 = vld [vmem:[%s1424_s25 + $0x28] sm:$0xff]  ;;  %v541_v24 = vmul.f32 %v1268_v2, %v497_v10  ;;  %v542_v25 = vmul.f32 %v1268_v2, %v498_v14  ;;  %v1529_v40 = vmul.f32 %v1496_v27, %v496_v5 }
  0x12   : > { %512 = vst.msk [vmem:[#allocation2 + $0x30] sm:$0xff] %vm504_vm0, %v1314_v1  ;;  %v1474_v21 = vld [vmem:[%s1424_s25 + $0x30] sm:$0xff]  ;;  %v1484_v23 = vld [vmem:[%s1424_s25 + $0x38] sm:$0xff]  ;;  %v543_v28 = vmul.f32 %v1268_v2, %v1461_v16  ;;  %v544_v29 = vmul.f32 %v1268_v2, %v1465_v17  ;;  %v1503_v30 = vmul.f32 %v1268_v2, %v1469_v18  ;;  %v1511_v33 = vld [vmem:[%s1873_s1 + $0x7] ss:$0 sm:$0xff]  ;;  %v1542_v46 = vmul.f32 %v1496_v27, %v497_v10 }
  0x13   : > { %513 = vst.msk [vmem:[#allocation2 + $0x38] sm:$0x3] %vm506_vm1, %v1314_v1  ;;  %v548_v4 = vld [vmem:[#allocation2] sm:$0xff]  ;;  %v1506_v31 = vmul.f32 %v1268_v2, %v1474_v21  ;;  %v1516_v34 = vld [vmem:[%s1873_s1 + $0x8] ss:$0 sm:$0xff]  ;;  %v1521_v35 = vmul.f32 %v1268_v2, %v1484_v23  ;;  %v1545_v47 = vmul.f32 %v1496_v27, %v498_v14 }
  0x14   : > { %514 = vst.msk [vmem:[#allocation2 + $0x40] sm:$0xff] %vm504_vm0, %v1314_v1  ;;  %v558_v7 = vmul.f32 %v1434_v3, %v548_v4  ;;  %v574_v8 = vld [vmem:[#allocation2 + $0x1] sm:$0xff] }
  0x15   : > { %515 = vst.msk [vmem:[#allocation2 + $0x48] sm:$0x3] %vm506_vm1, %v1314_v1  ;;  %v584_v12 = vmul.f32 %v1445_v9, %v574_v8  ;;  %v600_v15 = vld [vmem:[#allocation2 + $0x2] sm:$0xff] }
  0x16   : > { %516 = vst.msk [vmem:[#allocation2 + $0x50] sm:$0xff] %vm504_vm0, %v1314_v1  ;;  %v566_v11 = vadd.f32 %v558_v7, %v540_v6  ;;  %v610_v20 = vmul.f32 %v1456_v13, %v600_v15 }
  0x17   : > { %517 = vst.msk [vmem:[#allocation2 + $0x58] sm:$0x3] %vm506_vm1, %v1314_v1 }
  0x18   : > { %518 = vst.msk [vmem:[#allocation2 + $0x60] sm:$0xff] %vm504_vm0, %v1314_v1  ;;  %v592_v19 = vadd.f32 %v584_v12, %v566_v11 }
  0x19   : > { %519 = vst.msk [vmem:[#allocation2 + $0x68] sm:$0x3] %vm506_vm1, %v1314_v1 }
  0x1a   : > { %520 = vst.msk [vmem:[#allocation2 + $0x70] sm:$0xff] %vm504_vm0, %v1314_v1  ;;  %v1523_v36 = vadd.f32 %v610_v20, %v592_v19 }
  0x1b   : > { %521 = vst.msk [vmem:[#allocation2 + $0x78] sm:$0x3] %vm506_vm1, %v1314_v1 }
  0x1c   : > { %522 = vst.msk [vmem:[#allocation2 + $0x80] sm:$0xff] %vm504_vm0, %v1314_v1 }
  0x1d   : > { %523 = vst.msk [vmem:[#allocation2 + $0x88] sm:$0x3] %vm506_vm1, %v1314_v1 }
  0x1e   : > { %524 = vst.msk [vmem:[#allocation2 + $0x90] sm:$0xff] %vm504_vm0, %v1314_v1 }
  0x1f   : > { %525 = vst.msk [vmem:[#allocation2 + $0x98] sm:$0x3] %vm506_vm1, %v1314_v1 }
  0x20   : > { %527 = vst.msk [vmem:[#allocation2 + $0x11] sm:$0xff] %vm504_vm0, %v496_v5 }
  0x21   : > { %528 = vst.msk [vmem:[#allocation2 + $0x21] sm:$0xff] %vm504_vm0, %v497_v10 }
  0x22   : > { %529 = vst.msk [vmem:[#allocation2 + $0x31] sm:$0xff] %vm504_vm0, %v498_v14 }
  0x23   : > { %1890 = vst [vmem:[#allocation3_spill] sm:$0xff] %v1474_v21 }
  0x24   : > { %530 = vst.msk [vmem:[#allocation2 + $0x41] sm:$0xff] %vm504_vm0, %v1461_v16 }
  0x25   : > { %1891 = vst [vmem:[#allocation4_spill] sm:$0xff] %v1484_v23  ;;  %v686_v32 = vld [vmem:[#allocation2 + $0x90] sm:$0xff] }
  0x26   : > { %531 = vst.msk [vmem:[#allocation2 + $0x51] sm:$0xff] %vm504_vm0, %v1465_v17  ;;  %v1526_v37 = vmul.f32 %v1491_v26, %v686_v32  ;;  %v712_v38 = vld [vmem:[#allocation2 + $0x91] sm:$0xff] }
  0x27   : > { %532 = vst.msk [vmem:[#allocation2 + $0x61] sm:$0xff] %vm504_vm0, %v1469_v18  ;;  %v738_v39 = vld [vmem:[#allocation2 + $0x92] sm:$0xff]  ;;  %v1536_v44 = vmul.f32 %v1511_v33, %v712_v38 }
  0x28   : > { %533 = vst.msk [vmem:[#allocation2 + $0x71] sm:$0xff] %vm504_vm0, %v1474_v21  ;;  %v549_v41 = vld [vmem:[#allocation2 + $0x10] sm:$0xff]  ;;  %v1539_v45 = vmul.f32 %v1516_v34, %v738_v39  ;;  %v1547_v48 = vld [vmem:[#allocation2 + $0x20] sm:$0xff] }
  0x29   : > { %1892 = vst [vmem:[#allocation5_spill] sm:$0xff] %v1529_v40  ;;  %v575_v42 = vld [vmem:[#allocation2 + $0x11] sm:$0xff]  ;;  %v559_v49 = vmul.f32 %v1434_v3, %v549_v41  ;;  %v1550_v50 = vld [vmem:[#allocation2 + $0x21] sm:$0xff]  ;;  %v1558_v54 = vmul.f32 %v1481_v22, %v549_v41  ;;  %v560_v56 = vmul.f32 %v1434_v3, %v1547_v48  ;;  %v637_v61 = vmul.f32 %v1481_v22, %v1547_v48 }
  0x2a   : > { %534 = vst.msk [vmem:[#allocation2 + $0x81] sm:$0xff] %vm504_vm0, %v1484_v23  ;;  %v1533_v43 = vld [vmem:[#allocation2 + $0x12] sm:$0xff]  ;;  %v585_v51 = vmul.f32 %v1445_v9, %v575_v42  ;;  %v1553_v52 = vld [vmem:[#allocation2 + $0x22] sm:$0xff]  ;;  %v586_v58 = vmul.f32 %v1445_v9, %v1550_v50 }
  0x2b   : > { %1893 = vst [vmem:[#allocation6_spill] sm:$0xff] %v1542_v46  ;;  %v611_v53 = vmul.f32 %v1456_v13, %v1533_v43  ;;  %v1560_v55 = vld [vmem:[#allocation2 + $0x30] sm:$0xff]  ;;  %v612_v60 = vmul.f32 %v1456_v13, %v1553_v52  ;;  %v1574_v62 = vld [vmem:[#allocation2 + $0x40] sm:$0xff]  ;;  %v567_v0 = vadd.f32 %v559_v49, %v541_v24  ;;  %v568_v8 = vadd.f32 %v560_v56, %v542_v25 }
  0x2c   : > { %1894 = vst [vmem:[#allocation7_spill] sm:$0xff] %v1545_v47  ;;  %v1564_v57 = vld [vmem:[#allocation2 + $0x31] sm:$0xff]  ;;  %v561_v63 = vmul.f32 %v1434_v3, %v1560_v55  ;;  %v1578_v1 = vld [vmem:[#allocation2 + $0x41] sm:$0xff]  ;;  %v562_v7 = vmul.f32 %v1434_v3, %v1574_v62 }
  0x2d   : > { %v1568_v59 = vld [vmem:[#allocation2 + $0x32] sm:$0xff]  ;;  %v587_v2 = vmul.f32 %v1445_v9, %v1564_v57  ;;  %v1582_v4 = vld [vmem:[#allocation2 + $0x42] sm:$0xff]  ;;  %v588_v11 = vmul.f32 %v1445_v9, %v1578_v1  ;;  %v593_v32 = vadd.f32 %v585_v51, %v567_v0 }
  0x2e   : > { %v613_v5 = vmul.f32 %v1456_v13, %v1568_v59  ;;  %v1586_v6 = vld [vmem:[#allocation2 + $0x50] sm:$0xff]  ;;  %v614_v14 = vmul.f32 %v1456_v13, %v1582_v4  ;;  %v1598_v15 = vld [vmem:[#allocation2 + $0x60] sm:$0xff]  ;;  %v569_v20 = vadd.f32 %v561_v63, %v543_v28  ;;  %v570_v42 = vadd.f32 %v562_v7, %v544_v29 }
  0x2f   : > { %v1590_v10 = vld [vmem:[#allocation2 + $0x51] sm:$0xff]  ;;  %v563_v19 = vmul.f32 %v1434_v3, %v1586_v6  ;;  %v1602_v24 = vld [vmem:[#allocation2 + $0x61] sm:$0xff]  ;;  %v564_v41 = vmul.f32 %v1434_v3, %v1598_v15  ;;  %v594_v28 = vadd.f32 %v586_v58, %v568_v8 }
  0x30   : > { %v1594_v12 = vld [vmem:[#allocation2 + $0x52] sm:$0xff]  ;;  %v589_v25 = vmul.f32 %v1445_v9, %v1590_v10  ;;  %v1606_v38 = vld [vmem:[#allocation2 + $0x62] sm:$0xff]  ;;  %v590_v56 = vmul.f32 %v1445_v9, %v1602_v24  ;;  %v595_v47 = vadd.f32 %v587_v2, %v569_v20  ;;  %v596_v29 = vadd.f32 %v588_v11, %v570_v42 }
  0x31   : > { %v1608_v39 = vld [vmem:[#allocation2 + $0x70] sm:$0xff]  ;;  %v571_v51 = vadd.f32 %v563_v19, %v1503_v30  ;;  %v572_v46 = vadd.f32 %v564_v41, %v1506_v31  ;;  %v615_v7 = vmul.f32 %v1456_v13, %v1594_v12  ;;  %v616_v58 = vmul.f32 %v1456_v13, %v1606_v38  ;;  %v633_v20 = vld [vmem:[#allocation2 + $0x80] sm:$0xff] }
  0x32   : > { %v1612_v49 = vld [vmem:[#allocation2 + $0x71] sm:$0xff]  ;;  %v565_v23 = vmul.f32 %v1434_v3, %v1608_v39  ;;  %v619_v30 = vadd.f32 %v611_v53, %v593_v32  ;;  %v620_v21 = vadd.f32 %v612_v60, %v594_v28  ;;  %v622_v2 = vadd.f32 %v614_v14, %v596_v29  ;;  %v659_v28 = vld [vmem:[#allocation2 + $0x82] sm:$0xff] }
  0x33   : > { %v1616_v63 = vld [vmem:[#allocation2 + $0x72] sm:$0xff]  ;;  %v591_v0 = vmul.f32 %v1445_v9, %v1612_v49  ;;  %v597_v40 = vadd.f32 %v589_v25, %v571_v51  ;;  %v598_v19 = vadd.f32 %v590_v56, %v572_v46  ;;  %v621_v9 = vadd.f32 %v613_v5, %v595_v47 }
  0x34   : > { %v573_v8 = vadd.f32 %v565_v23, %v1521_v35  ;;  %v617_v3 = vmul.f32 %v1456_v13, %v1616_v63  ;;  %v638_v41 = vmul.f32 %v1481_v22, %v1560_v55  ;;  %v639_v42 = vmul.f32 %v1481_v22, %v1574_v62  ;;  %v1273_v23 = vld [vmem:[%s1873_s1 + $0x5] ss:$0 sm:$0xff] }
  0x35   : > { %v623_v11 = vadd.f32 %v615_v7, %v597_v40  ;;  %v624_v35 = vadd.f32 %v616_v58, %v598_v19  ;;  %v640_v13 = vmul.f32 %v1481_v22, %v1586_v6  ;;  %v641_v46 = vmul.f32 %v1481_v22, %v1598_v15 }
  0x36   : > { %v599_v31 = vadd.f32 %v591_v0, %v573_v8  ;;  %v642_v40 = vmul.f32 %v1481_v22, %v1608_v39  ;;  %v643_v53 = vmul.f32 %v1481_v22, %v633_v20  ;;  %v644_v60 = vadd.f32 %v1558_v54, %v1523_v36 }
  0x37   : > { %v645_v5 = vadd.f32 %v637_v61, %v619_v30  ;;  %v646_v14 = vadd.f32 %v638_v41, %v620_v21  ;;  %v647_v25 = vadd.f32 %v639_v42, %v621_v9  ;;  %v648_v32 = vadd.f32 %v640_v13, %v622_v2 }
  0x38   : > { %v625_v47 = vadd.f32 %v617_v3, %v599_v31  ;;  %v649_v56 = vadd.f32 %v641_v46, %v623_v11  ;;  %v650_v51 = vadd.f32 %v642_v40, %v624_v35  ;;  %v662_v29 = vmul.f32 %v1273_v23, %v1533_v43 }
  0x39   : > { %v663_v7 = vmul.f32 %v1273_v23, %v1553_v52  ;;  %v664_v58 = vmul.f32 %v1273_v23, %v1568_v59  ;;  %v665_v8 = vmul.f32 %v1273_v23, %v1582_v4  ;;  %v666_v22 = vmul.f32 %v1273_v23, %v1594_v12 }
  0x3a   : > { %v651_v0 = vadd.f32 %v643_v53, %v625_v47  ;;  %v667_v36 = vmul.f32 %v1273_v23, %v1606_v38  ;;  %v668_v21 = vmul.f32 %v1273_v23, %v1616_v63  ;;  %v669_v54 = vmul.f32 %v1273_v23, %v659_v28  ;;  %v711_v53 = vld [vmem:[#allocation2 + $0x81] sm:$0xff] }
  0x3b   : > { %v670_v61 = vadd.f32 %v662_v29, %v644_v60  ;;  %v671_v3 = vadd.f32 %v663_v7, %v645_v5  ;;  %v672_v30 = vadd.f32 %v664_v58, %v646_v14  ;;  %v673_v19 = vadd.f32 %v665_v8, %v647_v25 }
  0x3c   : > { %v674_v9 = vadd.f32 %v666_v22, %v648_v32  ;;  %v675_v2 = vadd.f32 %v667_v36, %v649_v56  ;;  %v676_v43 = vadd.f32 %v668_v21, %v650_v51  ;;  %v677_v31 = vadd.f32 %v669_v54, %v651_v0 }
  0x3d   : > { %v689_v11 = vmul.f32 %v1491_v26, %v1547_v48  ;;  %v690_v41 = vmul.f32 %v1491_v26, %v1560_v55  ;;  %v691_v42 = vmul.f32 %v1491_v26, %v1574_v62  ;;  %v692_v23 = vmul.f32 %v1491_v26, %v1586_v6 }
  0x3e   : > { %v693_v35 = vmul.f32 %v1491_v26, %v1598_v15  ;;  %v694_v13 = vmul.f32 %v1491_v26, %v1608_v39  ;;  %v695_v46 = vmul.f32 %v1491_v26, %v633_v20  ;;  %v704_v48 = vadd.f32 %v1526_v37, %v677_v31  ;;  %v1896_v31 = vld [vmem:[#allocation5_spill] sm:$0xff] }
  0x3f   : > { %v697_v40 = vadd.f32 %v689_v11, %v670_v61  ;;  %v698_v47 = vadd.f32 %v690_v41, %v671_v3  ;;  %v699_v55 = vadd.f32 %v691_v42, %v672_v30  ;;  %v700_v60 = vadd.f32 %v692_v23, %v673_v19  ;;  %v1897_v41 = vld [vmem:[#allocation6_spill] sm:$0xff]  ;;  %v1898_v23 = vld [vmem:[#allocation7_spill] sm:$0xff] }
  0x40   : > { %v701_v5 = vadd.f32 %v693_v35, %v674_v9  ;;  %v702_v62 = vadd.f32 %v694_v13, %v675_v2  ;;  %v703_v14 = vadd.f32 %v695_v46, %v676_v43  ;;  %v715_v6 = vmul.f32 %v1511_v33, %v1550_v50  ;;  %v1895_v43 = vld [vmem:[#allocation3_spill] sm:$0xff] }
  0x41   : > { %v716_v15 = vmul.f32 %v1511_v33, %v1564_v57  ;;  %v717_v39 = vmul.f32 %v1511_v33, %v1578_v1  ;;  %v718_v26 = vmul.f32 %v1511_v33, %v1590_v10  ;;  %v719_v37 = vmul.f32 %v1511_v33, %v1602_v24 }
  0x42   : > { %v720_v20 = vmul.f32 %v1511_v33, %v1612_v49  ;;  %v721_v25 = vmul.f32 %v1511_v33, %v711_v53  ;;  %v723_v32 = vadd.f32 %v715_v6, %v697_v40  ;;  %v730_v51 = vadd.f32 %v1536_v44, %v704_v48  ;;  %v1277_v44 = vld [vmem:[%s1874_s2] ss:$0 sm:$0xff] }
  0x43   : > { %v724_v56 = vadd.f32 %v716_v15, %v698_v47  ;;  %v725_v50 = vadd.f32 %v717_v39, %v699_v55  ;;  %v726_v57 = vadd.f32 %v718_v26, %v700_v60  ;;  %v727_v0 = vadd.f32 %v719_v37, %v701_v5  ;;  %v1899_v47 = vld [vmem:[#allocation4_spill] sm:$0xff] }
  0x44   : > { %v728_v29 = vadd.f32 %v720_v20, %v702_v62  ;;  %v729_v1 = vadd.f32 %v721_v25, %v703_v14  ;;  %v741_v10 = vmul.f32 %v1516_v34, %v1553_v52  ;;  %v742_v24 = vmul.f32 %v1516_v34, %v1568_v59 }
  0x45   : > { %v743_v49 = vmul.f32 %v1516_v34, %v1582_v4  ;;  %v744_v33 = vmul.f32 %v1516_v34, %v1594_v12  ;;  %v745_v7 = vmul.f32 %v1516_v34, %v1606_v38  ;;  %v746_v58 = vmul.f32 %v1516_v34, %v1616_v63 }
  0x46   : > { %v747_v52 = vmul.f32 %v1516_v34, %v659_v28  ;;  %v774_v59 = vmul.f32 %v1496_v27, %v1461_v16  ;;  %v749_v8 = vadd.f32 %v741_v10, %v723_v32  ;;  %v750_v4 = vadd.f32 %v742_v24, %v724_v56  ;;  %v1279_v34 = vld [vmem:[%s1876_s4] ss:$0 sm:$0xff] }
  0x47   : > { %v751_v22 = vadd.f32 %v743_v49, %v725_v50  ;;  %v752_v36 = vadd.f32 %v744_v33, %v726_v57  ;;  %v753_v12 = vadd.f32 %v745_v7, %v727_v0  ;;  %v754_v21 = vadd.f32 %v746_v58, %v728_v29 }
  0x48   : > { %v755_v54 = vadd.f32 %v747_v52, %v729_v1  ;;  %v756_v61 = vadd.f32 %v1539_v45, %v730_v51  ;;  %v760_v3 = vmul.f32 %v1277_v44, %v749_v8  ;;  %v761_v30 = vmul.f32 %v1277_v44, %v750_v4 }
  0x49   : > { %v762_v38 = vmul.f32 %v1277_v44, %v751_v22  ;;  %v763_v19 = vmul.f32 %v1277_v44, %v752_v36  ;;  %v764_v63 = vmul.f32 %v1277_v44, %v753_v12  ;;  %v765_v28 = vmul.f32 %v1277_v44, %v754_v21 }
  0x4a   : > { %v775_v16 = vmul.f32 %v1496_v27, %v1465_v17  ;;  %v766_v9 = vmul.f32 %v1277_v44, %v755_v54  ;;  %v776_v2 = vmul.f32 %v1496_v27, %v1469_v18  ;;  %v777_v45 = vmul.f32 %v1496_v27, %v1895_v43 }
  0x4b   : > { %v779_v11 = vadd.f32 %v1896_v31, %v760_v3  ;;  %v780_v42 = vadd.f32 %v1897_v41, %v761_v30  ;;  %v781_v35 = vadd.f32 %v1898_v23, %v762_v38  ;;  %v782_v13 = vadd.f32 %v774_v59, %v763_v19  ;;  %v856_v3 = vld [vmem:[%s1879_s7] sm:$0xf] }
  0x4c   : > { %v783_v46 = vadd.f32 %v775_v16, %v764_v63  ;;  %v767_v40 = vmul.f32 %v1277_v44, %v756_v61  ;;  %v778_v48 = vmul.f32 %v1496_v27, %v1899_v47  ;;  %v784_v53 = vadd.f32 %v776_v2, %v765_v28  ;;  %v798_v38 = vld [vmem:[%s1878_s6] sm:$0x1] }
  0x4d   : > { %v1715_v17 = vadd.f32 %v1279_v34, %v779_v11  ;;  %v1717_v55 = vadd.f32 %v1279_v34, %v780_v42  ;;  %v1719_v18 = vadd.f32 %v1279_v34, %v781_v35  ;;  %v1721_v60 = vadd.f32 %v1279_v34, %v782_v13 }
  0x4e   : > { %v785_v62 = vadd.f32 %v777_v45, %v766_v9  ;;  %v1725_v14 = vadd.f32 %v1279_v34, %v783_v46  ;;  %v786_v39 = vadd.f32 %v778_v48, %v767_v40  ;;  %v1731_v26 = vadd.f32 %v1279_v34, %v784_v53  ;;  %v799_v9 = vld [vmem:[%s1880_s8] sm:$0x1] }
  0x4f   : > { %v800_v5 = vsel %vm504_vm0, %v1715_v17, 0.0  ;;  %v801_v6 = vsel %vm504_vm0, %v1717_v55, 0.0  ;;  %v803_v27 = vsel %vm504_vm0, %v1719_v18, 0.0  ;;  %v805_v37 = vsel %vm504_vm0, %v1721_v60, 0.0  ;;  %v1252_v45 = vld [vmem:[%s1881_s9] sm:$0xff] }
  0x50   : > { %v802_v15 = vadd.f32 %v801_v6, %v800_v5  ;;  %v1315_v25 = vmov 64.0   ;;  %v1735_v32 = vadd.f32 %v1279_v34, %v785_v62  ;;  %v807_v56 = vsel %vm504_vm0, %v1725_v14, 0.0  ;;  %1255 = vmatpush.bf16.msra.mxu2 %v1252_v45 }
  0x51   : > { %1284 = vrcp.f32 %v1315_v25  ;;  %v1739_v51 = vadd.f32 %v1279_v34, %v786_v39  ;;  %v809_v57 = vsel %vm504_vm0, %v1731_v26, 0.0  ;;  %v863_v30 = vsel %vm861_vm3, %v856_v3, 0 }
  0x52   : > { %v804_v20 = vadd.f32 %v803_v27, %v802_v15  ;;  %v811_v29 = vsel %vm504_vm0, %v1735_v32, 0.0  ;;  %872 = vmatpush.bf16.msra.mxu1 %v863_v30 }
  0x53   : > { %v813_v24 = vsel %vm504_vm0, %v1739_v51, 0.0 }
  0x54   : > { %v806_v50 = vadd.f32 %v805_v37, %v804_v20 }
  0x56   : > { %v808_v0 = vadd.f32 %v807_v56, %v806_v50  ;;  %941 = vmatpush.bf16.msrb.mxu1 %v1252_v45 }
  0x57   : > { %v1285_v1 = vpop.eup %1284 }
  0x58   : > { %v810_v10 = vadd.f32 %v809_v57, %v808_v0  ;;  %v822_v49 = vmul.f32 64.0, %v1285_v1  ;;  %vm826_vm2 = vweird.f32 %v1285_v1  ;;  %v1253_v0 = vld [vmem:[%s1884_s12] sm:$0xff] }
  0x5a   : > { %v812_v33 = vadd.f32 %v811_v29, %v810_v10  ;;  %v823_v44 = vsub.f32 1.0, %v822_v49 }
  0x5c   : > { %v814_v7 = vadd.f32 %v813_v24, %v812_v33  ;;  %v824_v52 = vmul.f32 %v1285_v1, %v823_v44 }
  0x5e   : > { %v815_v58 = vrot.slane %v814_v7, 4  ;;  %v825_v4 = vadd.f32 %v1285_v1, %v824_v52 }
  0x60   : > { %v816_v59 = vadd.f32 %v815_v58, %v814_v7  ;;  %v827_v12 = vsel %vm826_vm2, %v1285_v1, %v825_v4 }
  0x62   : > { %v817_v8 = vrot.slane %v816_v59, 2 }
  0x64   : > { %v818_v22 = vadd.f32 %v817_v8, %v816_v59 }
  0x66   : > { %v819_v36 = vrot.slane %v818_v22, 1 }
  0x68   : > { %v820_v21 = vadd.f32 %v819_v36, %v818_v22 }
  0x6a   : > { %v828_v54 = vmul.f32 %v827_v12, %v820_v21 }
  0x6c   : > { %v829_v61 = vpack.c.bf16 %v828_v54, %v828_v54 }
  0x6e   : > { %1225 = vmatmul.msk.bf16.vlgmr.msra.gmra.mxu0 %vm504_vm0, %v829_v61 }
  0xeb   : > { %v850_v19 = vpop.f32.mrf.mxu0 }
  0xec   : > { %v851_v34 = vadd.f32 %v850_v19, %v798_v38 }
  0xee   : > { %v854_v63 = vmax.f32 %v851_v34, 0.0 }
  0xf0   : > { %v855_v28 = vpack.c.bf16 %v854_v63, %v854_v63 }
  0xf2   : > { %1226 = vmatmul.msk.bf16.vlgmr.msra.gmra.mxu1 %vm857_vm4, %v855_v28 }
  0xf3   : > { %v852_v16 = vpop.f32.mrf.mxu0 }
 0x16f   : > { %v874_v2 = vpop.f32.mrf.mxu1 }
 0x170   : > { %v875_v43 = vadd.f32 %v874_v2, %v799_v9 }
 0x172   : > { %v878_v31 = vsub.f32 0.0, %v875_v43 }
 0x174   : > { %v879_v11 = vmul.f32 1.442695, %v878_v31 }
 0x176   : > { %1286 = vpow2.f32 %v879_v11 }
 0x177   : > { %v876_v41 = vpop.f32.mrf.mxu1 }
 0x17c   : > { %v1287_v42 = vpop.eup %1286 }
 0x17d   : > { %v881_v23 = vadd.f32 1.0, %v1287_v42 }
 0x17f   : > { %1288 = vrcp.f32 %v881_v23  ;;  %v893_v40 = vand.u32 2147483648, %v881_v23  ;;  %v891_v48 = vand.u32 2147483647, %v881_v23  ;;  %vm887_vm6 = vweird.f32 %v881_v23 }
 0x181   : > { %v894_v5 = vor.u32 1.1754944e-38, %v893_v40  ;;  %vm892_vm8 = vcmp.eq.f32.partialorder %v891_v48, 8.507059e+37 }
 0x185   : > { %v1289_v35 = vpop.eup %1288 }
 0x186   : > { %v883_v13 = vmul.f32 %v1289_v35, %v881_v23  ;;  %vm888_vm5 = vweird.f32 %v1289_v35 }
 0x187   : > { %vm889_vm7 = vmor %vm887_vm6, %vm888_vm5 }
 0x188   : > { %v884_v46 = vsub.f32 1.0, %v883_v13 }
 0x18a   : > { %v885_v47 = vmul.f32 %v1289_v35, %v884_v46 }
 0x18c   : > { %v886_v53 = vadd.f32 %v1289_v35, %v885_v47 }
 0x18e   : > { %v890_v62 = vsel %vm889_vm7, %v1289_v35, %v886_v53 }
 0x18f   : > { %v895_v6 = vsel %vm892_vm8, %v894_v5, %v890_v62 }
 0x190   : > { %v897_v27 = vperm.slane %v895_v6, 0 }
 0x192   : > { %v1761_v15 = vmul.f32 %v897_v27, %v1715_v17  ;;  %v1764_v39 = vmul.f32 %v897_v27, %v1717_v55  ;;  %v1767_v37 = vmul.f32 %v897_v27, %v1719_v18  ;;  %v1770_v20 = vmul.f32 %v897_v27, %v1721_v60 }
 0x193   : > { %v1779_v17 = vmul.f32 %v897_v27, %v1725_v14  ;;  %v1782_v55 = vmul.f32 %v897_v27, %v1731_v26  ;;  %v1788_v60 = vmul.f32 %v897_v27, %v1735_v32  ;;  %v1791_v50 = vmul.f32 %v897_v27, %v1739_v51  ;;  %v1254_v14 = vld [vmem:[%s1884_s12 + $0x8] sm:$0xff]  ;;  %v1802_v26 = vld [vmem:[%s1882_s10] ss:$0 sm:$0xff] }
 0x194   : > { %v910_v25 = vpack.c.bf16 %v1764_v39, %v1761_v15  ;;  %v911_v56 = vpack.c.bf16 %v1770_v20, %v1767_v37  ;;  %1096 = vmatpush.bf16.msrb.mxu0 %v1254_v14  ;;  %1256 = vmatpush.bf16.msra.mxu3 %v1254_v14  ;;  %v1807_v32 = vld [vmem:[%s1883_s11] ss:$0 sm:$0xff] }
 0x195   : > { %v912_v18 = vpack.c.bf16 %v1782_v55, %v1779_v17  ;;  %v913_v57 = vpack.c.bf16 %v1791_v50, %v1788_v60 }
 0x196   : > { %1231 = vmatmul.msk.bf16.vlgmr.msrb.gmra.mxu1 %vm504_vm0, %v910_v25  ;;  %1232 = vmatmul.msk.bf16.vlgmr.msra.gmra.mxu2 %vm504_vm0, %v911_v56 }
 0x198   : > { %1097 = vmatpush.bf16.msrb.mxu0 %v1253_v0  ;;  %1257 = vmatpush.bf16.msra.mxu3 %v1253_v0 }
 0x1a6   : > { %1233 = vmatmul.msk.bf16.gmra.mxu2 %vm504_vm0, %v912_v18 }
 0x1b6   : > { %1234 = vmatmul.msk.bf16.gmra.mxu2 %vm504_vm0, %v913_v57 }
 0x213   : > { %v943_v51 = vpop.f32.mrf.mxu1 }
 0x214   : > { %v966_v29 = vmul.f32 %v1802_v26, %v943_v51 }
 0x216   : > { %v977_v1 = vadd.f32 %v1807_v32, %v966_v29 }
 0x218   : > { %v993_v10 = vmul.f32 0.044715, %v977_v1  ;;  %v985_v47 = vmul.f32 0.5, %v977_v1 }
 0x219   : > { %v948_v24 = vpop.f32.mrf.mxu2 }
 0x21a   : > { %v1001_v49 = vmul.f32 %v993_v10, %v977_v1  ;;  %v968_v33 = vmul.f32 %v1802_v26, %v948_v24 }
 0x21b   : > { %v945_v44 = vpop.f32.mrf.mxu1 }
 0x21c   : > { %v1009_v7 = vmul.f32 %v1001_v49, %v977_v1  ;;  %v979_v58 = vadd.f32 %v1807_v32, %v968_v33  ;;  %v967_v52 = vmul.f32 %v1802_v26, %v945_v44 }
 0x21e   : > { %v995_v59 = vmul.f32 0.044715, %v979_v58  ;;  %v978_v8 = vadd.f32 %v1807_v32, %v967_v52  ;;  %v1017_v4 = vadd.f32 %v1009_v7, %v977_v1  ;;  %v987_v29 = vmul.f32 0.5, %v979_v58 }
 0x220   : > { %v994_v22 = vmul.f32 0.044715, %v978_v8  ;;  %v1003_v36 = vmul.f32 %v995_v59, %v979_v58  ;;  %v1025_v61 = vmul.f32 0.7978846, %v1017_v4  ;;  %v986_v48 = vmul.f32 0.5, %v978_v8 }
 0x221   : > { %v950_v12 = vpop.f32.mrf.mxu2 }
 0x222   : > { %v1002_v21 = vmul.f32 %v994_v22, %v978_v8  ;;  %v969_v54 = vmul.f32 %v1802_v26, %v950_v12  ;;  %v1011_v3 = vmul.f32 %v1003_v36, %v979_v58  ;;  %1290 = vtanh.f32 %v1025_v61 }
 0x224   : > { %v1010_v30 = vmul.f32 %v1002_v21, %v978_v8  ;;  %v980_v38 = vadd.f32 %v1807_v32, %v969_v54  ;;  %v1019_v19 = vadd.f32 %v1011_v3, %v979_v58 }
 0x226   : > { %v996_v34 = vmul.f32 0.044715, %v980_v38  ;;  %v1018_v63 = vadd.f32 %v1010_v30, %v978_v8  ;;  %v1027_v9 = vmul.f32 0.7978846, %v1019_v19  ;;  %v988_v1 = vmul.f32 0.5, %v980_v38 }
 0x228   : > { %v1026_v28 = vmul.f32 0.7978846, %v1018_v63  ;;  %v1004_v16 = vmul.f32 %v996_v34, %v980_v38  ;;  %v1291_v31 = vpop.eup %1290 }
 0x229   : > { %v953_v2 = vpop.f32.mrf.mxu2  ;;  %v1041_v35 = vadd.f32 1.0, %v1291_v31 }
 0x22a   : > { %v970_v43 = vmul.f32 %v1802_v26, %v953_v2  ;;  %1292 = vtanh.f32 %v1026_v28  ;;  %v1012_v45 = vmul.f32 %v1004_v16, %v980_v38 }
 0x22b   : > { %1294 = vtanh.f32 %v1027_v9  ;;  %v1049_v27 = vmul.f32 %v1041_v35, %v985_v47 }
 0x22c   : > { %v981_v11 = vadd.f32 %v1807_v32, %v970_v43  ;;  %v1020_v41 = vadd.f32 %v1012_v45, %v980_v38 }
 0x22e   : > { %v997_v42 = vmul.f32 0.044715, %v981_v11  ;;  %v1028_v23 = vmul.f32 0.7978846, %v1020_v41  ;;  %v989_v28 = vmul.f32 0.5, %v981_v11 }
 0x230   : > { %v1293_v13 = vpop.eup %1292  ;;  %1296 = vtanh.f32 %v1028_v23  ;;  %v1005_v46 = vmul.f32 %v997_v42, %v981_v11 }
 0x231   : > { %v955_v40 = vpop.f32.mrf.mxu2  ;;  %v1042_v53 = vadd.f32 1.0, %v1293_v13  ;;  %v1295_v5 = vpop.eup %1294 }
 0x232   : > { %v971_v62 = vmul.f32 %v1802_v26, %v955_v40  ;;  %v1013_v6 = vmul.f32 %v1005_v46, %v981_v11  ;;  %v1043_v14 = vadd.f32 1.0, %v1295_v5  ;;  %v1282_v5 = vld [vmem:[%s1885_s13] ss:$0 sm:$0xff] }
 0x233   : > { %v1050_v25 = vmul.f32 %v1042_v53, %v986_v48 }
 0x234   : > { %v982_v56 = vadd.f32 %v1807_v32, %v971_v62  ;;  %v1021_v18 = vadd.f32 %v1013_v6, %v981_v11  ;;  %v1051_v44 = vmul.f32 %v1043_v14, %v987_v29  ;;  %v1283_v62 = vld [vmem:[%s1886_s14] ss:$0 sm:$0xff] }
 0x235   : > { %v1057_v57 = vpack.c.bf16 %v1050_v25, %v1049_v27 }
 0x236   : > { %v1297_v51 = vpop.eup %1296  ;;  %v998_v0 = vmul.f32 0.044715, %v982_v56  ;;  %v1029_v49 = vmul.f32 0.7978846, %v1021_v18  ;;  %v990_v16 = vmul.f32 0.5, %v982_v56 }
 0x237   : > { %1243 = vmatmul.msk.bf16.vlgmr.msrb.gmra.mxu0 %vm1077_vm9, %v1057_v57  ;;  %v1044_v10 = vadd.f32 1.0, %v1297_v51 }
 0x238   : > { %v1006_v24 = vmul.f32 %v998_v0, %v982_v56  ;;  %1298 = vtanh.f32 %v1029_v49 }
 0x239   : > { %v958_v33 = vpop.f32.mrf.mxu2  ;;  %v1052_v7 = vmul.f32 %v1044_v10, %v988_v1 }
 0x23a   : > { %v972_v52 = vmul.f32 %v1802_v26, %v958_v33  ;;  %v1014_v59 = vmul.f32 %v1006_v24, %v982_v56 }
 0x23b   : > { %v1058_v8 = vpack.c.bf16 %v1052_v7, %v1051_v44 }
 0x23c   : > { %v983_v4 = vadd.f32 %v1807_v32, %v972_v52  ;;  %v1022_v22 = vadd.f32 %v1014_v59, %v982_v56 }
 0x23d   : > { %1244 = vmatmul.msk.bf16.vlgmr.msra.gmra.mxu3 %vm1077_vm9, %v1058_v8 }
 0x23e   : > { %v999_v36 = vmul.f32 0.044715, %v983_v4  ;;  %v1030_v12 = vmul.f32 0.7978846, %v1022_v22  ;;  %v1299_v54 = vpop.eup %1298  ;;  %v991_v46 = vmul.f32 0.5, %v983_v4 }
 0x23f   : > { %v1045_v19 = vadd.f32 1.0, %v1299_v54 }
 0x240   : > { %1300 = vtanh.f32 %v1030_v12  ;;  %v1007_v58 = vmul.f32 %v999_v36, %v983_v4 }
 0x241   : > { %v960_v21 = vpop.f32.mrf.mxu2  ;;  %v1053_v45 = vmul.f32 %v1045_v19, %v989_v28 }
 0x242   : > { %v973_v61 = vmul.f32 %v1802_v26, %v960_v21  ;;  %v1015_v3 = vmul.f32 %v1007_v58, %v983_v4 }
 0x244   : > { %v984_v30 = vadd.f32 %v1807_v32, %v973_v61  ;;  %v1023_v38 = vadd.f32 %v1015_v3, %v983_v4 }
 0x246   : > { %v1301_v34 = vpop.eup %1300  ;;  %v1000_v63 = vmul.f32 0.044715, %v984_v30  ;;  %v1031_v43 = vmul.f32 0.7978846, %v1023_v38  ;;  %v992_v11 = vmul.f32 0.5, %v984_v30 }
 0x247   : > { %v1046_v9 = vadd.f32 1.0, %v1301_v34 }
 0x248   : > { %v1008_v2 = vmul.f32 %v1000_v63, %v984_v30  ;;  %1302 = vtanh.f32 %v1031_v43 }
 0x249   : > { %v1054_v31 = vmul.f32 %v1046_v9, %v990_v16 }
 0x24a   : > { %v1016_v41 = vmul.f32 %v1008_v2, %v984_v30 }
 0x24b   : > { %v1059_v42 = vpack.c.bf16 %v1054_v31, %v1053_v45 }
 0x24c   : > { %v1024_v23 = vadd.f32 %v1016_v41, %v984_v30 }
 0x24d   : > { %1245 = vmatmul.msk.bf16.gmra.mxu3 %vm1077_vm9, %v1059_v42 }
 0x24e   : > { %v1032_v26 = vmul.f32 0.7978846, %v1024_v23  ;;  %v1303_v32 = vpop.eup %1302 }
 0x24f   : > { %v1047_v35 = vadd.f32 1.0, %v1303_v32 }
 0x250   : > { %1304 = vtanh.f32 %v1032_v26 }
 0x251   : > { %v1055_v47 = vmul.f32 %v1047_v35, %v991_v46 }
 0x256   : > { %v1305_v13 = vpop.eup %1304 }
 0x257   : > { %v1048_v40 = vadd.f32 1.0, %v1305_v13 }
 0x259   : > { %v1056_v48 = vmul.f32 %v1048_v40, %v992_v11 }
 0x25b   : > { %v1060_v53 = vpack.c.bf16 %v1056_v48, %v1055_v47 }
 0x25d   : > { %1246 = vmatmul.msk.bf16.gmra.mxu3 %vm1077_vm9, %v1060_v53 }
 0x2b4   : > { %v1099_v6 = vpop.f32.mrf.mxu0 }
 0x2b5   : > { %v1122_v27 = vmul.f32 %v1282_v5, %v1099_v6 }
 0x2b7   : > { %v1133_v25 = vadd.f32 %v1283_v62, %v1122_v27 }
 0x2b9   : > { %v1141_v56 = vadd.f32 %v1133_v25, %v1761_v15 }
 0x2bb   : > { %1149 = vst.msk [vmem:[%s1843_s24] sm:$0xff] %vm504_vm0, %v1141_v56 }
 0x2bc   : > { %v1101_v18 = vpop.f32.mrf.mxu0 }
 0x2bd   : > { %v1123_v57 = vmul.f32 %v1282_v5, %v1101_v18 }
 0x2bf   : > { %v1134_v14 = vadd.f32 %v1283_v62, %v1123_v57 }
 0x2c0   : > { %v1104_v51 = vpop.f32.mrf.mxu3 }
 0x2c1   : > { %v1142_v0 = vadd.f32 %v1134_v14, %v1764_v39  ;;  %v1124_v29 = vmul.f32 %v1282_v5, %v1104_v51 }
 0x2c3   : > { %1150 = vst.msk [vmem:[%s1843_s24 + $0x8] sm:$0xff] %vm504_vm0, %v1142_v0  ;;  %v1135_v1 = vadd.f32 %v1283_v62, %v1124_v29 }
 0x2c5   : > { %v1143_v10 = vadd.f32 %v1135_v1, %v1767_v37 }
 0x2c7   : > { %1151 = vst.msk [vmem:[%s1843_s24 + $0x10] sm:$0xff] %vm504_vm0, %v1143_v10 }
 0x2c8   : > { %v1106_v15 = vpop.f32.mrf.mxu3 }
 0x2c9   : > { %v1125_v24 = vmul.f32 %v1282_v5, %v1106_v15 }
 0x2cb   : > { %v1136_v49 = vadd.f32 %v1283_v62, %v1125_v24 }
 0x2cd   : > { %v1144_v33 = vadd.f32 %v1136_v49, %v1770_v20 }
 0x2cf   : > { %1152 = vst.msk [vmem:[%s1843_s24 + $0x18] sm:$0xff] %vm504_vm0, %v1144_v33 }
 0x2d0   : > { %v1109_v44 = vpop.f32.mrf.mxu3 }
 0x2d1   : > { %v1126_v7 = vmul.f32 %v1282_v5, %v1109_v44 }
 0x2d3   : > { %v1137_v39 = vadd.f32 %v1283_v62, %v1126_v7 }
 0x2d5   : > { %v1145_v52 = vadd.f32 %v1137_v39, %v1779_v17 }
 0x2d7   : > { %1153 = vst.msk [vmem:[%s1843_s24 + $0x20] sm:$0xff] %vm504_vm0, %v1145_v52 }
 0x2d8   : > { %v1111_v37 = vpop.f32.mrf.mxu3 }
 0x2d9   : > { %v1127_v59 = vmul.f32 %v1282_v5, %v1111_v37 }
 0x2db   : > { %v1138_v8 = vadd.f32 %v1283_v62, %v1127_v59 }
 0x2dd   : > { %v1146_v4 = vadd.f32 %v1138_v8, %v1782_v55 }
 0x2df   : > { %1154 = vst.msk [vmem:[%s1843_s24 + $0x28] sm:$0xff] %vm504_vm0, %v1146_v4 }
 0x2e0   : > { %v1114_v22 = vpop.f32.mrf.mxu3 }
 0x2e1   : > { %v1128_v20 = vmul.f32 %v1282_v5, %v1114_v22 }
 0x2e3   : > { %v1139_v36 = vadd.f32 %v1283_v62, %v1128_v20 }
 0x2e5   : > { %v1147_v12 = vadd.f32 %v1139_v36, %v1788_v60 }
 0x2e7   : > { %1155 = vst.msk [vmem:[%s1843_s24 + $0x30] sm:$0xff] %vm504_vm0, %v1147_v12 }
 0x2e8   : > { %v1116_v58 = vpop.f32.mrf.mxu3 }
 0x2e9   : > { %v1129_v21 = vmul.f32 %v1282_v5, %v1116_v58 }
 0x2eb   : > { %v1140_v17 = vadd.f32 %v1283_v62, %v1129_v21 }
 0x2ed   : > { %v1148_v54 = vadd.f32 %v1140_v17, %v1791_v50 }
 0x2ef   : > { %1156 = vst.msk [vmem:[%s1843_s24 + $0x38] sm:$0xff] %vm504_vm0, %v1148_v54 }
 0x2f0 PF: > { %s25_s18 = sadd.s32 1, %s1312_s18  }
 0x2f1   : > { %p22_p4 = scmp.ge.s32.totalorder %s25_s18, 4  }
 0x2f3   :  { %24 = sbr.rel (!%p22_p4) target bundleno = 1 (0x1), region = 112 }

// kernel: _lambda_.3
= control target key start
LH: loop header
LB: loop body
LE: loop exit
PB: predicated region body
PF: predicated region fallthrough
CT: control target
= control target key end

     0   :  { %s6151_s0 = inlined_call_operand.vmem [shape: f32[2,16,16,8], index: 0, kind: input, shape index: {}]   ;;  %s6152_s1 = inlined_call_operand.vmem [shape: f32[9,8], index: 1, kind: input, shape index: {}]   ;;  %s6153_s2 = inlined_call_operand.vmem [shape: f32[1,8], index: 2, kind: input, shape index: {}]   ;;  %s6154_s3 = inlined_call_operand.vmem [shape: f32[1,8], index: 3, kind: input, shape index: {}]   ;;  %s6155_s4 = inlined_call_operand.vmem [shape: f32[1,8], index: 4, kind: input, shape index: {}]   ;;  %s6156_s5 = inlined_call_operand.vmem [shape: bf16[8,16], index: 5, kind: input, shape index: {}]   ;;  %s6157_s6 = inlined_call_operand.vmem [shape: f32[1,16], index: 6, kind: input, shape index: {}]   ;;  %s6158_s7 = inlined_call_operand.vmem [shape: f32[1,16], index: 7, kind: input, shape index: {}]   ;;  %s6159_s8 = inlined_call_operand.vmem [shape: bf16[16,8], index: 8, kind: input, shape index: {}]   ;;  %s6160_s9 = inlined_call_operand.vmem [shape: f32[1,8], index: 9, kind: input, shape index: {}]   ;;  %s6161_s10 = inlined_call_operand.vmem [shape: f32[1,8], index: 10, kind: input, shape index: {}]   ;;  %s6162_s11 = inlined_call_operand.vmem [shape: f32[9,8], index: 11, kind: input, shape index: {}]   ;;  %s6163_s12 = inlined_call_operand.vmem [shape: f32[1,8], index: 12, kind: input, shape index: {}]   ;;  %s6164_s13 = inlined_call_operand.vmem [shape: f32[1,8], index: 13, kind: input, shape index: {}]   ;;  %s6165_s14 = inlined_call_operand.vmem [shape: bf16[8,16], index: 14, kind: input, shape index: {}]   ;;  %s6166_s15 = inlined_call_operand.hbm [shape: f32[1,16], index: 15, kind: input, shape index: {}]   ;;  %s6167_s16 = inlined_call_operand.hbm [shape: f32[1,16], index: 16, kind: input, shape index: {}]   ;;  %s6168_s17 = inlined_call_operand.vmem [shape: bf16[16,32], index: 17, kind: input, shape index: {}]   ;;  %s6169_s18 = inlined_call_operand.hbm [shape: f32[1,32], index: 18, kind: input, shape index: {}]   ;;  %s6170_s19 = inlined_call_operand.hbm [shape: f32[1,32], index: 19, kind: input, shape index: {}]   ;;  %s6171_s20 = inlined_call_operand.vmem [shape: bf16[32,16], index: 20, kind: input, shape index: {}]   ;;  %s6172_s21 = inlined_call_operand.hbm [shape: f32[1,16], index: 21, kind: input, shape index: {}]   ;;  %s6173_s22 = inlined_call_operand.hbm [shape: f32[1,16], index: 22, kind: input, shape index: {}]   ;;  %s6174_s23 = inlined_call_operand.vmem [shape: f32[2,8,8,16], index: 23, kind: output, shape index: {}]  }
   0x1   :  { %6234 = sst [smem:[#allocation43_spill]] %s6151_s0 }
   0x2   :  { %6235 = sst [smem:[#allocation44_spill]] %s6152_s1 }
   0x3   :  { %6236 = sst [smem:[#allocation45_spill]] %s6153_s2 }
   0x4   :  { %6237 = sst [smem:[#allocation46_spill]] %s6154_s3 }
   0x5   :  { %6238 = sst [smem:[#allocation47_spill]] %s6155_s4 }
   0x6   :  { %6239 = sst [smem:[#allocation48_spill]] %s6156_s5 }
   0x7   :  { %6240 = sst [smem:[#allocation49_spill]] %s6157_s6 }
   0x8   :  { %6241 = sst [smem:[#allocation50_spill]] %s6158_s7 }
   0x9   :  { %6242 = sst [smem:[#allocation51_spill]] %s6166_s15 }
   0xa   :  { %6243 = sst [smem:[#allocation52_spill]] %s6167_s16 }
   0xb   :  { %6244 = sst [smem:[#allocation53_spill]] %s6170_s19 }
   0xc   :  { %28 = vsyncpa [#allocation4], 0 }
   0xd   :  { %29 = vsyncpa [#allocation6], 0 }
   0xe   :  { %30 = vsyncpa [#allocation9], 0 }
   0xf   :  { %31 = vsyncpa [#allocation12], 0  ;;  %s4128_s4 = smov 0  }
  0x10 LB: > { %s6245_s16 = sld [smem:[#allocation52_spill]]  ;;  %s4137_s5 = sadd.s32 4294967295, %s3999_s4   ;;  %s3999_s4 = sphi %s4128_s4, %s37_s4  }
  0x11   : > { %p3510_p0 = scmp.ge.s32.totalorder %s3999_s4, 1  ;;  %p556_p1 = scmp.lt.s32.totalorder %s3999_s4, 3 }
  0x12   : > { %p3643_p2 = scmp.eq.s32.totalorder %s4137_s5, 0  ;;  %s4001_s26 = smov [#allocation5]  }
  0x13   : > { %p4142_p3 = pnand %p3510_p0, %p556_p1  ;;  %s624_s2 = sshll.u32 %s4001_s26, 4  ;;  %s625_s2 = int_to_ptr.vmem [resolvable:$true] %s624_s2 }
  0x14   : > { %s6247_s19 = sld [smem:[#allocation53_spill]]  ;;  %s4002_s30 = smov [#allocation8]  }
  0x15   : > { %p3624_p4 = pneg %p4142_p3  ;;  %s6248_s15 = sld [smem:[#allocation51_spill]] }
  0x16   : > { %s622_s25 = sshll.u32 %s6245_s16, 4  ;;  %s651_s24 = sshll.u32 %s4002_s30, 4  ;;  %s623_s25 = int_to_ptr.hbm [resolvable:$true] %s622_s25  ;;  %s652_s24 = int_to_ptr.vmem [resolvable:$true] %s651_s24 }
  0x17   : > { %p4156_p5 = pnand %p3643_p2, %p3624_p4  ;;  %s4003_s26 = smov [#allocation3]  }
  0x18   : > { %s612_s6 = sshll.u32 %s4003_s26, 4  ;;  %s637_s29 = sshll.u32 %s6169_s18, 4  ;;  %s613_s6 = int_to_ptr.vmem [resolvable:$true] %s612_s6  ;;  %s638_s29 = int_to_ptr.hbm [resolvable:$true] %s637_s29 }
  0x19   : > { %3630 = dma.hbm_to_vmem [thread:$0]  (!%p4156_p5), %s623_s25, 16, %s625_s2, [#allocation6]  }
  0x1a   : > { %s649_s7 = sshll.u32 %s6247_s19, 4  ;;  %s664_s16 = sshll.u32 %s6172_s21, 4  ;;  %s650_s7 = int_to_ptr.hbm [resolvable:$true] %s649_s7  ;;  %s665_s16 = int_to_ptr.hbm [resolvable:$true] %s664_s16 }
  0x1b   : > { %s610_s3 = sshll.u32 %s6248_s15, 4  ;;  %s4004_s19 = smov [#allocation7]   ;;  %s611_s3 = int_to_ptr.hbm [resolvable:$true] %s610_s3 }
  0x1c   : > { %3636 = dma.hbm_to_vmem [thread:$0]  (!%p4156_p5), %s650_s7, 16, %s652_s24, [#allocation9]  }
  0x1d   : > { %3627 = dma.hbm_to_vmem [thread:$0]  (!%p4156_p5), %s611_s3, 16, %s613_s6, [#allocation4]  }
  0x1e   : > { %s639_s25 = sshll.u32 %s4004_s19, 4  ;;  %s4005_s2 = smov [#allocation10]   ;;  %s640_s25 = int_to_ptr.vmem [resolvable:$true] %s639_s25 }
  0x1f   : > { %3633 = dma.hbm_to_vmem [thread:$0]  (!%p4156_p5), %s638_s29, 16, %s640_s25, [#allocation6]  }
  0x20   : > { %s666_s7 = sshll.u32 %s4005_s2, 4  ;;  %s676_s27 = sshll.u32 %s6173_s22, 4  ;;  %s667_s7 = int_to_ptr.vmem [resolvable:$true] %s666_s7  ;;  %s677_s27 = int_to_ptr.hbm [resolvable:$true] %s676_s27 }
  0x21   : > { %3639 = dma.hbm_to_vmem [thread:$0]  (!%p4156_p5), %s665_s16, 16, %s667_s7, [#allocation9]  }
  0x22   : > { %s4006_s3 = smov [#allocation11]   ;;  %699 = sbr.rel (%p4142_p3) target bundleno = 1108 (0x454), region = 112 }
  0x23   : > { %s678_s15 = sshll.u32 %s4006_s3, 4  ;;  %s679_s15 = int_to_ptr.vmem [resolvable:$true] %s678_s15 }
  0x24   : > { %3642 = dma.hbm_to_vmem [thread:$0]  (!%p4156_p5), %s677_s27, 16, %s679_s15, [#allocation12]  }
  0x27   : > { %3982 = dma.done.wait (%p3643_p2), [#allocation4], 16  }
  0x28   : > { %3984 = vsyncadd (%p3643_p2), [#allocation4], 4294967280 }
  0x29   : > { %3986 = dma.done.wait (%p3643_p2), [#allocation6], 32  }
  0x2a   : > { %3988 = vsyncadd (%p3643_p2), [#allocation6], 4294967264 }
  0x2b   : > { %3990 = dma.done.wait (%p3643_p2), [#allocation9], 32  }
  0x2c   : > { %3992 = vsyncadd (%p3643_p2), [#allocation9], 4294967264 }
  0x2d   : > { %3994 = dma.done.wait (%p3643_p2), [#allocation12], 16  }
  0x2e   : > { %3996 = vsyncadd (%p3643_p2), [#allocation12], 4294967280  ;;  %p789_p6 = scmp.lt.s32.totalorder %s4137_s5, 1  ;;  %vm832_vm0 = vcmask 64512   ;;  %v4007_v0 = vmov 0.0   ;;  %vm835_vm1 = vcmask 58368  }
  0x2f   : > { %833 = vst.msk [vmem:[#allocation2] sm:$0xff] %vm832_vm0, %v4007_v0  ;;  %vm1949_vm2 = vcmask 1043456   ;;  %s6250_s0 = sld [smem:[#allocation43_spill]]  ;;  %vm2424_vm3 = vcmask 130048   ;;  %vm3267_vm4 = vcmask 261120  }
  0x30   : > { %s6337_s5 = smov (!%p789_p6, %s4137_s5), 1  ;;  %834 = vst.msk [vmem:[#allocation2 + $0x8] sm:$0xff] %vm832_vm0, %v4007_v0  ;;  %s6251_s30 = sld [smem:[#allocation48_spill]] }
  0x31   : > { %836 = vst.msk [vmem:[#allocation2 + $0x10] sm:$0x3] %vm835_vm1, %v4007_v0  ;;  %s3591_s16 = sshll.u32 %s6337_s5, 8  ;;  %s6252_s7 = sld [smem:[#allocation44_spill]] }
  0x32   : > { %837 = vst.msk [vmem:[#allocation2 + $0x18] sm:$0xff] %vm832_vm0, %v4007_v0  ;;  %s6253_s15 = sld [smem:[#allocation46_spill]] }
  0x33   : > { %838 = vst.msk [vmem:[#allocation2 + $0x20] sm:$0xff] %vm832_vm0, %v4007_v0  ;;  %s6254_s1 = sld [smem:[#allocation45_spill]] }
  0x34   : > { %839 = vst.msk [vmem:[#allocation2 + $0x28] sm:$0x3] %vm835_vm1, %v4007_v0  ;;  %s6255_s29 = sld [smem:[#allocation47_spill]] }
  0x35   : > { %s4215_s6 = scalar_lea.vmem %s6250_s0, %s3591_s16  ;;  %840 = vst.msk [vmem:[#allocation2 + $0x30] sm:$0xff] %vm832_vm0, %v4007_v0  ;;  %s6317_s24 = sld [smem:[#allocation49_spill]] }
  0x36   : > { %v1900_v1 = vld [vmem:[%s6251_s30] sm:$0xf]  ;;  %v4228_v3 = vld [vmem:[%s4215_s6 + $0x8] sm:$0xff]  ;;  %v4234_v5 = vld [vmem:[%s4215_s6 + $0x10] sm:$0xff]  ;;  %841 = vst.msk [vmem:[#allocation2 + $0x38] sm:$0xff] %vm832_vm0, %v4007_v0  ;;  %s6318_s3 = sld [smem:[#allocation50_spill]] }
  0x37   : > { %v4225_v2 = vld [vmem:[%s4215_s6] sm:$0xff]  ;;  %v1951_v4 = vsel %vm1949_vm2, %v1900_v1, 0  ;;  %v4237_v6 = vld [vmem:[%s4215_s6 + $0x18] sm:$0xff]  ;;  %842 = vst.msk [vmem:[#allocation2 + $0x40] sm:$0x3] %vm835_vm1, %v4007_v0  ;;  %v959_v9 = vld [vmem:[#allocation2 + $0x8] sm:$0xff] }
  0x38   : > { %1960 = vmatpush.bf16.msra.mxu0 %v1951_v4  ;;  %3597 = vmatpush.bf16.msra.mxu3 %v1951_v4  ;;  %889 = vst.msk [vmem:[#allocation2 + $0x19] sm:$0xff] %vm832_vm0, %v4225_v2  ;;  %v4248_v7 = vld [vmem:[%s6252_s7 + $0x4] ss:$0 sm:$0xff]  ;;  %v4255_v10 = vld [vmem:[%s6252_s7] ss:$0 sm:$0xff]  ;;  %v1057_v14 = vld [vmem:[#allocation2 + $0x9] sm:$0xff] }
  0x39   : > { %v958_v8 = vld [vmem:[#allocation2] sm:$0xff]  ;;  %890 = vst.msk [vmem:[#allocation2 + $0x21] sm:$0xff] %vm832_vm0, %v4228_v3  ;;  %v926_v11 = vmul.f32 %v4248_v7, %v4225_v2  ;;  %v927_v12 = vmul.f32 %v4248_v7, %v4228_v3  ;;  %v993_v16 = vmul.f32 %v4255_v10, %v959_v9  ;;  %v1155_v19 = vld [vmem:[#allocation2 + $0xa] sm:$0xff]  ;;  %v4340_v51 = vld [vmem:[%s6252_s7 + $0x8] ss:$0 sm:$0xff]  ;;  %s3592_s16 = sshll.u32 %s6337_s5, 6 }
  0x3a   : > { %891 = vst.msk [vmem:[#allocation2 + $0x31] sm:$0xff] %vm832_vm0, %v4234_v5  ;;  %v1056_v13 = vld [vmem:[#allocation2 + $0x1] sm:$0xff]  ;;  %v992_v15 = vmul.f32 %v4255_v10, %v958_v8  ;;  %v4357_v58 = vld [vmem:[%s6253_s15] ss:$0 sm:$0xff]  ;;  %s6121_s28 = scalar_lea.vmem %s6174_s23, %s3592_s16 }
  0x3b   : > { %892 = vst.msk [vmem:[#allocation2 + $0x39] sm:$0xff] %vm832_vm0, %v4237_v6  ;;  %v4270_v17 = vld [vmem:[%s6252_s7 + $0x1] ss:$0 sm:$0xff]  ;;  %v1154_v18 = vld [vmem:[#allocation2 + $0x2] sm:$0xff]  ;;  %v1025_v22 = vadd.f32 %v993_v16, %v927_v12  ;;  %v4374_v4 = vld [vmem:[%s6254_s1] ss:$0 sm:$0xff]  ;;  %v1782_v12 = vmul.f32 %v4357_v58, %v4228_v3 }
  0x3c   : > { %v4275_v20 = vld [vmem:[%s6252_s7 + $0x2] ss:$0 sm:$0xff]  ;;  %v1024_v21 = vadd.f32 %v992_v15, %v926_v11  ;;  %v1090_v23 = vmul.f32 %v4270_v17, %v1056_v13  ;;  %v1091_v24 = vmul.f32 %v4270_v17, %v1057_v14  ;;  %v4282_v25 = vld [vmem:[%s6252_s7 + $0x3] ss:$0 sm:$0xff]  ;;  %v4287_v26 = vld [vmem:[%s6252_s7 + $0x5] ss:$0 sm:$0xff]  ;;  %v1781_v11 = vmul.f32 %v4357_v58, %v4225_v2 }
  0x3d   : > { %v1188_v27 = vmul.f32 %v4275_v20, %v1154_v18  ;;  %v1189_v28 = vmul.f32 %v4275_v20, %v1155_v19  ;;  %v4296_v32 = vld [vmem:[%s6252_s7 + $0x6] ss:$0 sm:$0xff]  ;;  %843 = vst.msk [vmem:[#allocation2 + $0x48] sm:$0xff] %vm832_vm0, %v4007_v0  ;;  %v4319_v42 = vld [vmem:[%s6252_s7 + $0x7] ss:$0 sm:$0xff] }
  0x3e   : > { %v1122_v29 = vadd.f32 %v1090_v23, %v1024_v21  ;;  %v1123_v30 = vadd.f32 %v1091_v24, %v1025_v22  ;;  %844 = vst.msk [vmem:[#allocation2 + $0x50] sm:$0xff] %vm832_vm0, %v4007_v0  ;;  %v4393_v15 = vld [vmem:[%s6255_s29] ss:$0 sm:$0xff]  ;;  %v928_v21 = vmul.f32 %v4248_v7, %v4234_v5  ;;  %v929_v23 = vmul.f32 %v4248_v7, %v4237_v6 }
  0x3f   : > { %v4291_v31 = vld [vmem:[#allocation2 + $0x18] sm:$0xff]  ;;  %845 = vst.msk [vmem:[#allocation2 + $0x58] sm:$0x3] %vm835_vm1, %v4007_v0 }
  0x40   : > { %v4300_v33 = vld [vmem:[#allocation2 + $0x20] sm:$0xff]  ;;  %v1286_v34 = vmul.f32 %v4282_v25, %v4291_v31  ;;  %v1220_v37 = vadd.f32 %v1188_v27, %v1122_v29  ;;  %v1221_v38 = vadd.f32 %v1189_v28, %v1123_v30  ;;  %846 = vst.msk [vmem:[#allocation2 + $0x60] sm:$0xff] %vm832_vm0, %v4007_v0  ;;  %v994_v22 = vmul.f32 %v4255_v10, %v4291_v31 }
  0x41   : > { %v4304_v35 = vld [vmem:[#allocation2 + $0x1a] sm:$0xff]  ;;  %v4306_v36 = vld [vmem:[#allocation2 + $0x22] sm:$0xff]  ;;  %v1287_v39 = vmul.f32 %v4282_v25, %v4300_v33  ;;  %v4314_v41 = vld [vmem:[#allocation2 + $0x30] sm:$0xff]  ;;  %847 = vst.msk [vmem:[#allocation2 + $0x68] sm:$0xff] %vm832_vm0, %v4007_v0  ;;  %v995_v24 = vmul.f32 %v4255_v10, %v4300_v33 }
  0x42   : > { %v1384_v40 = vmul.f32 %v4287_v26, %v4304_v35  ;;  %v1385_v43 = vmul.f32 %v4287_v26, %v4306_v36  ;;  %v4325_v44 = vld [vmem:[#allocation2 + $0x38] sm:$0xff]  ;;  %v1318_v47 = vadd.f32 %v1286_v34, %v1220_v37  ;;  %v1483_v49 = vmul.f32 %v4296_v32, %v4314_v41  ;;  %848 = vst.msk [vmem:[#allocation2 + $0x70] sm:$0x3] %vm835_vm1, %v4007_v0  ;;  %v1059_v28 = vld [vmem:[#allocation2 + $0x21] sm:$0xff] }
  0x43   : > { %v4327_v45 = vld [vmem:[#allocation2 + $0x31] sm:$0xff]  ;;  %v4329_v46 = vld [vmem:[#allocation2 + $0x39] sm:$0xff]  ;;  %v1319_v48 = vadd.f32 %v1287_v39, %v1221_v38  ;;  %v1484_v50 = vmul.f32 %v4296_v32, %v4325_v44  ;;  %849 = vst.msk [vmem:[#allocation2 + $0x78] sm:$0xff] %vm832_vm0, %v4007_v0  ;;  %v1026_v29 = vadd.f32 %v994_v22, %v928_v21  ;;  %v1027_v31 = vadd.f32 %v995_v24, %v929_v23 }
  0x44   : > { %v4344_v52 = vld [vmem:[#allocation2 + $0x32] sm:$0xff]  ;;  %v4346_v53 = vld [vmem:[#allocation2 + $0x3a] sm:$0xff]  ;;  %v1416_v54 = vadd.f32 %v1384_v40, %v1318_v47  ;;  %v1581_v56 = vmul.f32 %v4319_v42, %v4327_v45  ;;  %v1582_v57 = vmul.f32 %v4319_v42, %v4329_v46  ;;  %850 = vst.msk [vmem:[#allocation2 + $0x80] sm:$0xff] %vm832_vm0, %v4007_v0  ;;  %v1093_v33 = vmul.f32 %v4270_v17, %v1059_v28 }
  0x45   : > { %v1417_v55 = vadd.f32 %v1385_v43, %v1319_v48  ;;  %v1679_v61 = vmul.f32 %v4340_v51, %v4344_v52  ;;  %v1680_v62 = vmul.f32 %v4340_v51, %v4346_v53  ;;  %851 = vst.msk [vmem:[#allocation2 + $0x88] sm:$0x3] %vm835_vm1, %v4007_v0  ;;  %v1058_v27 = vld [vmem:[#allocation2 + $0x19] sm:$0xff]  ;;  %v1190_v37 = vmul.f32 %v4275_v20, %v4304_v35  ;;  %v4472_v43 = vld [vmem:[%s4215_s6 + $0x28] sm:$0xff]  ;;  %v4552_v23 = vld [vmem:[%s4215_s6 + $0xd0] sm:$0xff] }
  0x46   : > { %v1515_v59 = vadd.f32 %v1483_v49, %v1416_v54  ;;  %852 = vst.msk [vmem:[#allocation2 + $0x90] sm:$0xff] %vm832_vm0, %v4007_v0  ;;  %v1092_v30 = vmul.f32 %v4270_v17, %v1058_v27  ;;  %v1125_v38 = vadd.f32 %v1093_v33, %v1027_v31  ;;  %v1191_v39 = vmul.f32 %v4275_v20, %v4306_v36  ;;  %v804_v40 = vld [vmem:[%s4215_s6 + $0x20] sm:$0xff] }
  0x47   : > { %v1516_v60 = vadd.f32 %v1484_v50, %v1417_v55  ;;  %853 = vst.msk [vmem:[#allocation2 + $0x98] sm:$0xff] %vm832_vm0, %v4007_v0  ;;  %v930_v47 = vmul.f32 %v4248_v7, %v804_v40  ;;  %v931_v35 = vmul.f32 %v4248_v7, %v4472_v43  ;;  %v996_v48 = vmul.f32 %v4255_v10, %v4314_v41 }
  0x48   : > { %v1613_v63 = vadd.f32 %v1581_v56, %v1515_v59  ;;  %854 = vst.msk [vmem:[#allocation2 + $0xa0] sm:$0x3] %vm835_vm1, %v4007_v0  ;;  %v1124_v34 = vadd.f32 %v1092_v30, %v1026_v29  ;;  %v997_v36 = vmul.f32 %v4255_v10, %v4325_v44  ;;  %v1288_v50 = vmul.f32 %v4282_v25, %v4314_v41  ;;  %v4496_v56 = vld [vmem:[%s4215_s6 + $0xa0] sm:$0xff] }
  0x49   : > { %v1614_v1 = vadd.f32 %v1582_v57, %v1516_v60  ;;  %855 = vst.msk [vmem:[#allocation2 + $0xa8] sm:$0xff] %vm832_vm0, %v4007_v0  ;;  %v1223_v54 = vadd.f32 %v1191_v39, %v1125_v38  ;;  %v1289_v55 = vmul.f32 %v4282_v25, %v4325_v44  ;;  %v1028_v57 = vadd.f32 %v996_v48, %v930_v47 }
  0x4a   : > { %v1711_v8 = vadd.f32 %v1679_v61, %v1613_v63  ;;  %856 = vst.msk [vmem:[#allocation2 + $0xb0] sm:$0xff] %vm832_vm0, %v4007_v0  ;;  %v1222_v49 = vadd.f32 %v1190_v37, %v1124_v34  ;;  %v1029_v41 = vadd.f32 %v997_v36, %v931_v35  ;;  %v1094_v59 = vmul.f32 %v4270_v17, %v4327_v45  ;;  %v822_v45 = vld [vmem:[%s4215_s6 + $0xb0] sm:$0xff]  ;;  %v4579_v34 = vld [vmem:[%s4215_s6 + $0xd8] sm:$0xff] }
  0x4b   : > { %v1712_v9 = vadd.f32 %v1680_v62, %v1614_v1  ;;  %857 = vst.msk [vmem:[#allocation2 + $0xb8] sm:$0x3] %vm835_vm1, %v4007_v0  ;;  %v1095_v60 = vmul.f32 %v4270_v17, %v4329_v46  ;;  %v1386_v61 = vmul.f32 %v4287_v26, %v4344_v52  ;;  %v4506_v62 = vld [vmem:[%s4215_s6 + $0xa8] sm:$0xff]  ;;  %v1387_v63 = vmul.f32 %v4287_v26, %v4346_v53  ;;  %v823_v1 = vld [vmem:[%s4215_s6 + $0xb8] sm:$0xff]  ;;  %v4517_v46 = vld [vmem:[%s4215_s6 + $0xc0] sm:$0xff] }
  0x4c   : > { %v1746_v13 = vmul.f32 %v4374_v4, %v1711_v8  ;;  %858 = vst.msk [vmem:[#allocation2 + $0xc0] sm:$0xff] %vm832_vm0, %v4007_v0  ;;  %v1320_v44 = vadd.f32 %v1288_v50, %v1222_v49  ;;  %v1126_v8 = vadd.f32 %v1094_v59, %v1028_v57  ;;  %v949_v21 = vmul.f32 %v4248_v7, %v823_v1 }
  0x4d   : > { %v1747_v14 = vmul.f32 %v4374_v4, %v1712_v9  ;;  %859 = vst.msk [vmem:[#allocation2 + $0xc8] sm:$0xff] %vm832_vm0, %v4007_v0  ;;  %v1127_v9 = vadd.f32 %v1095_v60, %v1029_v41  ;;  %v4546_v22 = vmul.f32 %v4357_v58, %v822_v45  ;;  %v4556_v24 = vmul.f32 %v4248_v7, %v4517_v46 }
  0x4e   : > { %v1813_v2 = vadd.f32 %v1781_v11, %v1746_v13  ;;  %860 = vst.msk [vmem:[#allocation2 + $0xd0] sm:$0x3] %vm835_vm1, %v4007_v0  ;;  %v1192_v11 = vmul.f32 %v4275_v20, %v4344_v52  ;;  %v1418_v13 = vadd.f32 %v1386_v61, %v1320_v44  ;;  %v4537_v52 = vld [vmem:[%s4215_s6 + $0x30] sm:$0xff]  ;;  %v4569_v29 = vmul.f32 %v4357_v58, %v823_v1 }
  0x4f   : > { %v1814_v3 = vadd.f32 %v1782_v12, %v1747_v14  ;;  %861 = vst.msk [vmem:[#allocation2 + $0xd8] sm:$0xff] %vm832_vm0, %v4007_v0  ;;  %v1193_v12 = vmul.f32 %v4275_v20, %v4346_v53  ;;  %v4526_v14 = vld [vmem:[%s4215_s6 + $0xc8] sm:$0xff]  ;;  %v4541_v53 = vmul.f32 %v4357_v58, %v4237_v6  ;;  %v4576_v33 = vmul.f32 %v4357_v58, %v804_v40 }
  0x50   : > { %v4404_v16 = vadd.f32 %v4393_v15, %v1813_v2  ;;  %862 = vst.msk [vmem:[#allocation2 + $0xe0] sm:$0xff] %vm832_vm0, %v4007_v0  ;;  %v4560_v27 = vmul.f32 %v4248_v7, %v4526_v14  ;;  %v4571_v30 = vadd.f32 %v1192_v11, %v1126_v8  ;;  %v4597_v48 = vmul.f32 %v4357_v58, %v4472_v43 }
  0x51   : > { %v4407_v18 = vadd.f32 %v4393_v15, %v1814_v3  ;;  %863 = vst.msk [vmem:[#allocation2 + $0xe8] sm:$0x3] %vm835_vm1, %v4007_v0  ;;  %v4531_v3 = vmul.f32 %v4357_v58, %v4234_v5  ;;  %v4549_v5 = vld [vmem:[%s4215_s6 + $0x38] sm:$0xff]  ;;  %v4573_v31 = vadd.f32 %v1193_v12, %v1127_v9 }
  0x52   : > { %6256 = vst [vmem:[#allocation17_spill] sm:$0xff] %v4404_v16 }
  0x53   : > { %6257 = vst [vmem:[#allocation18_spill] sm:$0xff] %v4407_v18  ;;  %v1884_v19 = vpack.c.bf16 %v4407_v18, %v4404_v16 }
  0x54   : > { %864 = vst.msk [vmem:[#allocation2 + $0xf0] sm:$0xff] %vm832_vm0, %v4007_v0 }
  0x55   : > { %3529 = vmatmul.msk.bf16.vlgmr.msra.gmra.mxu0 %vm832_vm0, %v1884_v19  ;;  %865 = vst.msk [vmem:[#allocation2 + $0xf8] sm:$0xff] %vm832_vm0, %v4007_v0  ;;  %v948_v19 = vmul.f32 %v4248_v7, %v822_v45 }
  0x56   : > { %866 = vst.msk [vmem:[#allocation2 + $0x100] sm:$0x3] %vm835_vm1, %v4007_v0 }
  0x57   : > { %867 = vst.msk [vmem:[#allocation2 + $0x108] sm:$0xff] %vm832_vm0, %v4007_v0 }
  0x58   : > { %868 = vst.msk [vmem:[#allocation2 + $0x110] sm:$0xff] %vm832_vm0, %v4007_v0 }
  0x59   : > { %869 = vst.msk [vmem:[#allocation2 + $0x118] sm:$0x3] %vm835_vm1, %v4007_v0 }
  0x5a   : > { %870 = vst.msk [vmem:[#allocation2 + $0x120] sm:$0xff] %vm832_vm0, %v4007_v0 }
  0x5b   : > { %871 = vst.msk [vmem:[#allocation2 + $0x128] sm:$0xff] %vm832_vm0, %v4007_v0 }
  0x5c   : > { %872 = vst.msk [vmem:[#allocation2 + $0x130] sm:$0x3] %vm835_vm1, %v4007_v0 }
  0x5d   : > { %873 = vst.msk [vmem:[#allocation2 + $0x138] sm:$0xff] %vm832_vm0, %v4007_v0 }
  0x5e   : > { %874 = vst.msk [vmem:[#allocation2 + $0x140] sm:$0xff] %vm832_vm0, %v4007_v0 }
  0x5f   : > { %875 = vst.msk [vmem:[#allocation2 + $0x148] sm:$0x3] %vm835_vm1, %v4007_v0 }
  0x60   : > { %876 = vst.msk [vmem:[#allocation2 + $0x150] sm:$0xff] %vm832_vm0, %v4007_v0 }
  0x61   : > { %877 = vst.msk [vmem:[#allocation2 + $0x158] sm:$0xff] %vm832_vm0, %v4007_v0 }
  0x62   : > { %878 = vst.msk [vmem:[#allocation2 + $0x160] sm:$0x3] %vm835_vm1, %v4007_v0 }
  0x63   : > { %879 = vst.msk [vmem:[#allocation2 + $0x168] sm:$0xff] %vm832_vm0, %v4007_v0 }
  0x64   : > { %880 = vst.msk [vmem:[#allocation2 + $0x170] sm:$0xff] %vm832_vm0, %v4007_v0 }
  0x65   : > { %881 = vst.msk [vmem:[#allocation2 + $0x178] sm:$0x3] %vm835_vm1, %v4007_v0 }
  0x66   : > { %882 = vst.msk [vmem:[#allocation2 + $0x180] sm:$0xff] %vm832_vm0, %v4007_v0 }
  0x67   : > { %883 = vst.msk [vmem:[#allocation2 + $0x188] sm:$0xff] %vm832_vm0, %v4007_v0 }
  0x68   : > { %884 = vst.msk [vmem:[#allocation2 + $0x190] sm:$0x3] %vm835_vm1, %v4007_v0 }
  0x69   : > { %885 = vst.msk [vmem:[#allocation2 + $0x198] sm:$0xff] %vm832_vm0, %v4007_v0 }
  0x6a   : > { %886 = vst.msk [vmem:[#allocation2 + $0x1a0] sm:$0xff] %vm832_vm0, %v4007_v0 }
  0x6b   : > { %887 = vst.msk [vmem:[#allocation2 + $0x1a8] sm:$0x3] %vm835_vm1, %v4007_v0  ;;  %v1321_v0 = vadd.f32 %v1289_v55, %v1223_v54 }
  0x6c   : > { %6258 = vst [vmem:[#allocation19_spill] sm:$0xff] %v4496_v56 }
  0x6d   : > { %893 = vst.msk [vmem:[#allocation2 + $0x49] sm:$0xff] %vm832_vm0, %v804_v40  ;;  %v1419_v2 = vadd.f32 %v1387_v63, %v1321_v0 }
  0x6e   : > { %6259 = vst [vmem:[#allocation20_spill] sm:$0xff] %v4506_v62 }
  0x6f   : > { %894 = vst.msk [vmem:[#allocation2 + $0x51] sm:$0xff] %vm832_vm0, %v4472_v43 }
  0x70   : > { %909 = vst.msk [vmem:[#allocation2 + $0x109] sm:$0xff] %vm832_vm0, %v4496_v56 }
  0x71   : > { %910 = vst.msk [vmem:[#allocation2 + $0x111] sm:$0xff] %vm832_vm0, %v4506_v62 }
  0x72   : > { %6260 = vst [vmem:[#allocation21_spill] sm:$0xff] %v4526_v14 }
  0x73   : > { %911 = vst.msk [vmem:[#allocation2 + $0x121] sm:$0xff] %vm832_vm0, %v822_v45 }
  0x74   : > { %912 = vst.msk [vmem:[#allocation2 + $0x129] sm:$0xff] %vm832_vm0, %v823_v1  ;;  %v4562_v6 = vld [vmem:[#allocation2 + $0x48] sm:$0xff] }
  0x75   : > { %913 = vst.msk [vmem:[#allocation2 + $0x139] sm:$0xff] %vm832_vm0, %v4517_v46  ;;  %v4564_v28 = vld [vmem:[#allocation2 + $0x49] sm:$0xff]  ;;  %v1485_v38 = vmul.f32 %v4296_v32, %v4562_v6  ;;  %v1290_v40 = vmul.f32 %v4282_v25, %v4562_v6 }
  0x76   : > { %6261 = vst [vmem:[#allocation22_spill] sm:$0xff] %v4552_v23  ;;  %v4581_v37 = vld [vmem:[#allocation2 + $0x50] sm:$0xff]  ;;  %v1583_v47 = vmul.f32 %v4319_v42, %v4564_v28 }
  0x77   : > { %6262 = vst [vmem:[#allocation23_spill] sm:$0xff] %v4564_v28  ;;  %v4585_v39 = vld [vmem:[#allocation2 + $0x51] sm:$0xff]  ;;  %v1486_v36 = vmul.f32 %v4296_v32, %v4581_v37  ;;  %v980_v55 = vld [vmem:[#allocation2 + $0x108] sm:$0xff]  ;;  %v1291_v43 = vmul.f32 %v4282_v25, %v4581_v37  ;;  %v1517_v41 = vadd.f32 %v1485_v38, %v1418_v13 }
  0x78   : > { %914 = vst.msk [vmem:[#allocation2 + $0x141] sm:$0xff] %vm832_vm0, %v4526_v14  ;;  %v4589_v35 = vld [vmem:[#allocation2 + $0x4a] sm:$0xff]  ;;  %v1584_v49 = vmul.f32 %v4319_v42, %v4585_v39  ;;  %v4603_v50 = vld [vmem:[#allocation2 + $0x52] sm:$0xff]  ;;  %v1014_v44 = vmul.f32 %v4255_v10, %v980_v55 }
  0x79   : > { %6263 = vst [vmem:[#allocation24_spill] sm:$0xff] %v4579_v34  ;;  %v1681_v54 = vmul.f32 %v4340_v51, %v4589_v35  ;;  %v1078_v57 = vld [vmem:[#allocation2 + $0x109] sm:$0xff]  ;;  %v1682_v59 = vmul.f32 %v4340_v51, %v4603_v50  ;;  %v1079_v61 = vld [vmem:[#allocation2 + $0x111] sm:$0xff]  ;;  %v1518_v45 = vadd.f32 %v1486_v36, %v1419_v2  ;;  %v1615_v13 = vadd.f32 %v1583_v47, %v1517_v41 }
  0x7a   : > { %6264 = vst [vmem:[#allocation25_spill] sm:$0xff] %v4585_v39  ;;  %v981_v60 = vld [vmem:[#allocation2 + $0x110] sm:$0xff]  ;;  %v1112_v0 = vmul.f32 %v4270_v17, %v1078_v57  ;;  %v1113_v8 = vmul.f32 %v4270_v17, %v1079_v61  ;;  %v4620_v12 = vld [vmem:[#allocation2 + $0x120] sm:$0xff]  ;;  %v1046_v38 = vadd.f32 %v1014_v44, %v948_v19 }
  0x7b   : > { %6265 = vst [vmem:[#allocation26_spill] sm:$0xff] %v4589_v35  ;;  %v1176_v63 = vld [vmem:[#allocation2 + $0x10a] sm:$0xff]  ;;  %v1015_v1 = vmul.f32 %v4255_v10, %v981_v60  ;;  %v1177_v9 = vld [vmem:[#allocation2 + $0x112] sm:$0xff]  ;;  %v1308_v2 = vmul.f32 %v4282_v25, %v4620_v12  ;;  %v4629_v36 = vld [vmem:[#allocation2 + $0x122] sm:$0xff]  ;;  %v1616_v61 = vadd.f32 %v1584_v49, %v1518_v45  ;;  %v1713_v44 = vadd.f32 %v1681_v54, %v1615_v13 }
  0x7c   : > { %895 = vst.msk [vmem:[#allocation2 + $0x61] sm:$0xff] %vm832_vm0, %v4537_v52  ;;  %v1210_v11 = vmul.f32 %v4275_v20, %v1176_v63  ;;  %v1211_v55 = vmul.f32 %v4275_v20, %v1177_v9  ;;  %v4625_v57 = vld [vmem:[#allocation2 + $0x128] sm:$0xff]  ;;  %v1406_v47 = vmul.f32 %v4287_v26, %v4629_v36  ;;  %v4637_v19 = vld [vmem:[#allocation2 + $0x138] sm:$0xff]  ;;  %v1144_v9 = vadd.f32 %v1112_v0, %v1046_v38 }
  0x7d   : > { %6266 = vst [vmem:[#allocation27_spill] sm:$0xff] %v4603_v50  ;;  %v4631_v60 = vld [vmem:[#allocation2 + $0x12a] sm:$0xff]  ;;  %v1047_v63 = vadd.f32 %v1015_v1, %v949_v21  ;;  %v1309_v18 = vmul.f32 %v4282_v25, %v4625_v57  ;;  %v4639_v41 = vld [vmem:[#allocation2 + $0x139] sm:$0xff]  ;;  %v1505_v21 = vmul.f32 %v4296_v32, %v4637_v19  ;;  %v1714_v1 = vadd.f32 %v1682_v59, %v1616_v61 }
  0x7e   : > { %896 = vst.msk [vmem:[#allocation2 + $0x69] sm:$0xff] %vm832_vm0, %v4549_v5  ;;  %v1407_v16 = vmul.f32 %v4287_v26, %v4631_v60  ;;  %v1603_v54 = vmul.f32 %v4319_v42, %v4639_v41  ;;  %v1748_v13 = vmul.f32 %v4374_v4, %v1713_v44  ;;  %v1242_v38 = vadd.f32 %v1210_v11, %v1144_v9 }
  0x7f   : > { %915 = vst.msk [vmem:[#allocation2 + $0x151] sm:$0xff] %vm832_vm0, %v4552_v23  ;;  %v4643_v62 = vld [vmem:[#allocation2 + $0x140] sm:$0xff]  ;;  %v1145_v56 = vadd.f32 %v1113_v8, %v1047_v63  ;;  %v1749_v59 = vmul.f32 %v4374_v4, %v1714_v1  ;;  %v1322_v63 = vadd.f32 %v1290_v40, %v4571_v30  ;;  %v1389_v30 = vmul.f32 %v4287_v26, %v4603_v50 }
  0x80   : > { %916 = vst.msk [vmem:[#allocation2 + $0x159] sm:$0xff] %vm832_vm0, %v4579_v34  ;;  %v4647_v49 = vld [vmem:[#allocation2 + $0x141] sm:$0xff]  ;;  %v1506_v34 = vmul.f32 %v4296_v32, %v4643_v62  ;;  %v1815_v11 = vadd.f32 %v4531_v3, %v1748_v13  ;;  %v1340_v9 = vadd.f32 %v1308_v2, %v1242_v38 }
  0x81   : > { %6267 = vst [vmem:[#allocation28_spill] sm:$0xff] %v4639_v41  ;;  %v4649_v45 = vld [vmem:[#allocation2 + $0x13a] sm:$0xff]  ;;  %v4655_v0 = vld [vmem:[#allocation2 + $0x142] sm:$0xff]  ;;  %v1604_v23 = vmul.f32 %v4319_v42, %v4647_v49  ;;  %v1243_v8 = vadd.f32 %v1211_v55, %v1145_v56  ;;  %v1388_v41 = vmul.f32 %v4287_v26, %v4589_v35  ;;  %v1816_v55 = vadd.f32 %v4541_v53, %v1749_v59 }
  0x82   : > { %6268 = vst [vmem:[#allocation29_spill] sm:$0xff] %v4647_v49  ;;  %v1701_v14 = vmul.f32 %v4340_v51, %v4649_v45  ;;  %v1702_v61 = vmul.f32 %v4340_v51, %v4655_v0  ;;  %v1323_v49 = vadd.f32 %v1291_v43, %v4573_v31  ;;  %v4686_v31 = vld [vmem:[%s4215_s6 + $0x40] sm:$0xff]  ;;  %v4689_v43 = vld [vmem:[%s4215_s6 + $0x48] sm:$0xff]  ;;  %v4692_v2 = vadd.f32 %v4393_v15, %v1815_v11 }
  0x83   : > { %v4662_v39 = vld [vmem:[#allocation2 + $0x60] sm:$0xff]  ;;  %v1341_v28 = vadd.f32 %v1309_v18, %v1243_v8  ;;  %6271 = vst [vmem:[#allocation32_spill] sm:$0xff] %v4686_v31  ;;  %v1438_v13 = vadd.f32 %v1406_v47, %v1340_v9  ;;  %v1420_v38 = vadd.f32 %v1388_v41, %v1322_v63  ;;  %v4704_v8 = vld [vmem:[%s4215_s6 + $0xe8] sm:$0xff] }
  0x84   : > { %6269 = vst [vmem:[#allocation30_spill] sm:$0xff] %v4662_v39  ;;  %v4674_v1 = vld [vmem:[#allocation2 + $0x61] sm:$0xff]  ;;  %v1487_v3 = vmul.f32 %v4296_v32, %v4662_v39  ;;  %v4707_v39 = vadd.f32 %v4393_v15, %v1816_v55  ;;  %v1421_v11 = vadd.f32 %v1389_v30, %v1323_v49  ;;  %v1081_v35 = vld [vmem:[#allocation2 + $0x129] sm:$0xff] }
  0x85   : > { %v4668_v44 = vld [vmem:[#allocation2 + $0x68] sm:$0xff]  ;;  %6272 = vst [vmem:[#allocation33_spill] sm:$0xff] %v4692_v2  ;;  %v4701_v59 = vld [vmem:[%s4215_s6 + $0xe0] sm:$0xff]  ;;  %v1439_v50 = vadd.f32 %v1407_v16, %v1341_v28  ;;  %v1585_v47 = vmul.f32 %v4319_v42, %v4674_v1  ;;  %v1537_v41 = vadd.f32 %v1505_v21, %v1438_v13  ;;  %v1017_v13 = vmul.f32 %v4255_v10, %v4625_v57 }
  0x86   : > { %6270 = vst [vmem:[#allocation31_spill] sm:$0xff] %v4668_v44  ;;  %v4676_v56 = vld [vmem:[#allocation2 + $0x69] sm:$0xff]  ;;  %v1488_v18 = vmul.f32 %v4296_v32, %v4668_v44  ;;  %v1519_v63 = vadd.f32 %v1487_v3, %v1420_v38  ;;  %v1080_v44 = vld [vmem:[#allocation2 + $0x121] sm:$0xff]  ;;  %v1885_v16 = vpack.c.bf16 %v4707_v39, %v4692_v2  ;;  %v1016_v3 = vmul.f32 %v4255_v10, %v4620_v12 }
  0x87   : > { %v4683_v40 = vld [vmem:[#allocation2 + $0x62] sm:$0xff]  ;;  %v4696_v53 = vld [vmem:[#allocation2 + $0x6a] sm:$0xff]  ;;  %897 = vst.msk [vmem:[#allocation2 + $0x79] sm:$0xff] %vm832_vm0, %v4686_v31  ;;  %v1586_v9 = vmul.f32 %v4319_v42, %v4676_v56  ;;  %v1538_v28 = vadd.f32 %v1506_v34, %v1439_v50  ;;  %v1635_v55 = vadd.f32 %v1603_v54, %v1537_v41  ;;  %v1114_v34 = vmul.f32 %v4270_v17, %v1080_v44 }
  0x88   : > { %6273 = vst [vmem:[#allocation34_spill] sm:$0xff] %v4707_v39  ;;  %v1683_v31 = vmul.f32 %v4340_v51, %v4683_v40  ;;  %v1520_v49 = vadd.f32 %v1488_v18, %v1421_v11  ;;  %v1684_v21 = vmul.f32 %v4340_v51, %v4696_v53  ;;  %v1617_v30 = vadd.f32 %v1585_v47, %v1519_v63 }
  0x89   : > { %898 = vst.msk [vmem:[#allocation2 + $0x81] sm:$0xff] %vm832_vm0, %v4689_v43  ;;  %3530 = vmatmul.msk.bf16.gmra.mxu0 %vm832_vm0, %v1885_v16  ;;  %v1636_v38 = vadd.f32 %v1604_v23, %v1538_v28  ;;  %v1115_v50 = vmul.f32 %v4270_v17, %v1081_v35  ;;  %v1733_v18 = vadd.f32 %v1701_v14, %v1635_v55  ;;  %v4752_v16 = vld [vmem:[#allocation2 + $0x151] sm:$0xff] }
  0x8a   : > { %917 = vst.msk [vmem:[#allocation2 + $0x169] sm:$0xff] %vm832_vm0, %v4701_v59  ;;  %v1618_v39 = vadd.f32 %v1586_v9, %v1520_v49  ;;  %v1715_v11 = vadd.f32 %v1683_v31, %v1617_v30  ;;  %v1048_v2 = vadd.f32 %v1016_v3, %v4556_v24  ;;  %v1049_v54 = vadd.f32 %v1017_v13, %v4560_v27  ;;  %v4750_v9 = vld [vmem:[#allocation2 + $0x158] sm:$0xff]  ;;  %v4763_v55 = vld [vmem:[%s4215_s6 + $0x50] sm:$0xff] }
  0x8b   : > { %918 = vst.msk [vmem:[#allocation2 + $0x171] sm:$0xff] %vm832_vm0, %v4704_v8  ;;  %v1734_v47 = vadd.f32 %v1702_v61, %v1636_v38  ;;  %v1212_v12 = vmul.f32 %v4275_v20, %v4629_v36  ;;  %v1213_v57 = vmul.f32 %v4275_v20, %v4631_v60  ;;  %v1768_v23 = vmul.f32 %v4374_v4, %v1733_v18  ;;  %v4766_v30 = vld [vmem:[%s4215_s6 + $0x58] sm:$0xff] }
  0x8c   : > { %v1716_v41 = vadd.f32 %v1684_v21, %v1618_v39  ;;  %v1750_v44 = vmul.f32 %v4374_v4, %v1715_v11  ;;  %v1146_v63 = vadd.f32 %v1114_v34, %v1048_v2  ;;  %v1147_v35 = vadd.f32 %v1115_v50, %v1049_v54  ;;  %v4748_v2 = vld [vmem:[#allocation2 + $0x150] sm:$0xff]  ;;  %6274 = vst [vmem:[#allocation35_spill] sm:$0xff] %v4763_v55  ;;  %v4782_v50 = vld [vmem:[%s4215_s6 + $0xf8] sm:$0xff] }
  0x8d   : > { %v1769_v14 = vmul.f32 %v4374_v4, %v1734_v47  ;;  %v1310_v27 = vmul.f32 %v4282_v25, %v4637_v19  ;;  %v1311_v39 = vmul.f32 %v4282_v25, %v4643_v62  ;;  %v1835_v36 = vadd.f32 %v4546_v22, %v1768_v23  ;;  %6275 = vst [vmem:[#allocation36_spill] sm:$0xff] %v4766_v30  ;;  %v4774_v38 = vld [vmem:[#allocation2 + $0x152] sm:$0xff] }
  0x8e   : > { %v1751_v24 = vmul.f32 %v4374_v4, %v1716_v41  ;;  %v1817_v60 = vadd.f32 %v4576_v33, %v1750_v44  ;;  %v1244_v61 = vadd.f32 %v1212_v12, %v1146_v63  ;;  %v1245_v31 = vadd.f32 %v1213_v57, %v1147_v35  ;;  %v4760_v33 = vld [vmem:[#allocation2 + $0x159] sm:$0xff]  ;;  %899 = vst.msk [vmem:[#allocation2 + $0x91] sm:$0xff] %vm832_vm0, %v4763_v55  ;;  %v4779_v34 = vld [vmem:[%s4215_s6 + $0xf0] sm:$0xff] }
  0x8f   : > { %v1836_v28 = vadd.f32 %v4569_v29, %v1769_v14  ;;  %v1408_v21 = vmul.f32 %v4287_v26, %v4649_v45  ;;  %v1409_v22 = vmul.f32 %v4287_v26, %v4655_v0  ;;  %v4769_v3 = vadd.f32 %v4393_v15, %v1835_v36  ;;  %6278 = vst [vmem:[#allocation39_spill] sm:$0xff] %v4779_v34  ;;  %v4794_v41 = vld [vmem:[#allocation2 + $0x15a] sm:$0xff] }
  0x90   : > { %v1818_v49 = vadd.f32 %v4597_v48, %v1751_v24  ;;  %v4772_v13 = vadd.f32 %v4393_v15, %v1817_v60  ;;  %v1342_v29 = vadd.f32 %v1310_v27, %v1244_v61  ;;  %v1343_v48 = vadd.f32 %v1311_v39, %v1245_v31  ;;  %6279 = vst [vmem:[#allocation40_spill] sm:$0xff] %v4782_v50 }
  0x91   : > { %6276 = vst [vmem:[#allocation37_spill] sm:$0xff] %v4769_v3  ;;  %v4785_v18 = vadd.f32 %v4393_v15, %v1836_v28  ;;  %v1507_v54 = vmul.f32 %v4296_v32, %v4748_v2  ;;  %v1508_v47 = vmul.f32 %v4296_v32, %v4750_v9  ;;  %v1605_v23 = vmul.f32 %v4319_v42, %v4752_v16 }
  0x92   : > { %6277 = vst [vmem:[#allocation38_spill] sm:$0xff] %v4772_v13  ;;  %v4788_v11 = vadd.f32 %v4393_v15, %v1818_v49  ;;  %v1440_v12 = vadd.f32 %v1408_v21, %v1342_v29  ;;  %v1441_v57 = vadd.f32 %v1409_v22, %v1343_v48  ;;  %v1606_v44 = vmul.f32 %v4319_v42, %v4760_v33  ;;  %v6282_v22 = vld [vmem:[#allocation23_spill] sm:$0xff] }
  0x93   : > { %6280 = vst [vmem:[#allocation41_spill] sm:$0xff] %v4785_v18  ;;  %v1895_v63 = vpack.c.bf16 %v4785_v18, %v4769_v3  ;;  %v1703_v14 = vmul.f32 %v4340_v51, %v4774_v38  ;;  %v1704_v39 = vmul.f32 %v4340_v51, %v4794_v41  ;;  %v1805_v36 = vmul.f32 %v4357_v58, %v4517_v46  ;;  %v6283_v46 = vld [vmem:[#allocation25_spill] sm:$0xff]  ;;  %v4896_v55 = vld [vmem:[#allocation2 + $0x170] sm:$0xff] }
  0x94   : > { %6281 = vst [vmem:[#allocation42_spill] sm:$0xff] %v4788_v11  ;;  %v1886_v35 = vpack.c.bf16 %v4788_v11, %v4772_v13  ;;  %v1539_v24 = vadd.f32 %v1507_v54, %v1440_v12  ;;  %v1540_v27 = vadd.f32 %v1508_v47, %v1441_v57  ;;  %v932_v60 = vmul.f32 %v4248_v7, %v4537_v52  ;;  %v6284_v12 = vld [vmem:[#allocation26_spill] sm:$0xff] }
  0x95   : > { %900 = vst.msk [vmem:[#allocation2 + $0x99] sm:$0xff] %vm832_vm0, %v4766_v30  ;;  %3540 = vmatmul.msk.bf16.vlgmr.msra.gmra.mxu3 %vm832_vm0, %v1895_v63  ;;  %v933_v61 = vmul.f32 %v4248_v7, %v4549_v5  ;;  %v998_v31 = vmul.f32 %v4255_v10, %v4562_v6  ;;  %v999_v28 = vmul.f32 %v4255_v10, %v4581_v37  ;;  %v6285_v63 = vld [vmem:[#allocation27_spill] sm:$0xff]  ;;  %v4833_v6 = vld [vmem:[#allocation2 + $0x78] sm:$0xff] }
  0x96   : > { %919 = vst.msk [vmem:[#allocation2 + $0x181] sm:$0xff] %vm832_vm0, %v4779_v34  ;;  %v1637_v49 = vadd.f32 %v1605_v23, %v1539_v24  ;;  %v1638_v21 = vadd.f32 %v1606_v44, %v1540_v27  ;;  %v1096_v29 = vmul.f32 %v4270_v17, %v6282_v22  ;;  %v1097_v48 = vmul.f32 %v4270_v17, %v6283_v46  ;;  %v6286_v23 = vld [vmem:[#allocation21_spill] sm:$0xff]  ;;  %v6287_v24 = vld [vmem:[#allocation30_spill] sm:$0xff] }
  0x97   : > { %920 = vst.msk [vmem:[#allocation2 + $0x189] sm:$0xff] %vm832_vm0, %v4782_v50  ;;  %v1030_v54 = vadd.f32 %v998_v31, %v932_v60  ;;  %v1031_v47 = vadd.f32 %v999_v28, %v933_v61  ;;  %v1194_v57 = vmul.f32 %v4275_v20, %v6284_v12  ;;  %v1195_v18 = vmul.f32 %v4275_v20, %v6285_v63  ;;  %v4839_v22 = vld [vmem:[#allocation2 + $0x80] sm:$0xff]  ;;  %v6289_v28 = vld [vmem:[#allocation31_spill] sm:$0xff] }
  0x98   : > { %v1735_v11 = vadd.f32 %v1703_v14, %v1637_v49  ;;  %v1736_v37 = vadd.f32 %v1704_v39, %v1638_v21  ;;  %v1806_v44 = vmul.f32 %v4357_v58, %v6286_v23  ;;  %v1292_v27 = vmul.f32 %v4282_v25, %v6287_v24  ;;  %v4841_v60 = vld [vmem:[#allocation2 + $0x79] sm:$0xff]  ;;  %v4848_v39 = vld [vmem:[#allocation2 + $0x81] sm:$0xff] }
  0x99   : > { %6288 = vst [vmem:[#allocation23_spill] sm:$0xff] %v4841_v60  ;;  %3531 = vmatmul.msk.bf16.gmra.mxu0 %vm832_vm0, %v1886_v35  ;;  %v1128_v61 = vadd.f32 %v1096_v29, %v1030_v54  ;;  %v1129_v31 = vadd.f32 %v1097_v48, %v1031_v47  ;;  %v1293_v46 = vmul.f32 %v4282_v25, %v6289_v28  ;;  %v4850_v49 = vld [vmem:[#allocation2 + $0x7a] sm:$0xff]  ;;  %v4858_v29 = vld [vmem:[#allocation2 + $0x82] sm:$0xff] }
  0x9a   : > { %v1390_v14 = vmul.f32 %v4287_v26, %v4683_v40  ;;  %6290 = vst [vmem:[#allocation25_spill] sm:$0xff] %v4848_v39  ;;  %v1770_v21 = vmul.f32 %v4374_v4, %v1735_v11  ;;  %v1771_v12 = vmul.f32 %v4374_v4, %v1736_v37  ;;  %v1391_v63 = vmul.f32 %v4287_v26, %v4696_v53 }
  0x9b   : > { %v1489_v35 = vmul.f32 %v4296_v32, %v4833_v6  ;;  %v1226_v48 = vadd.f32 %v1194_v57, %v1128_v61  ;;  %v1227_v54 = vadd.f32 %v1195_v18, %v1129_v31  ;;  %v1490_v47 = vmul.f32 %v4296_v32, %v4839_v22 }
  0x9c   : > { %v1587_v23 = vmul.f32 %v4319_v42, %v4841_v60  ;;  %v1837_v3 = vadd.f32 %v1805_v36, %v1770_v21  ;;  %v1838_v11 = vadd.f32 %v1806_v44, %v1771_v12  ;;  %v1588_v37 = vmul.f32 %v4319_v42, %v4848_v39  ;;  %v6293_v44 = vld [vmem:[#allocation22_spill] sm:$0xff]  ;;  %v6294_v21 = vld [vmem:[#allocation24_spill] sm:$0xff]  ;;  %v6296_v39 = vld [vmem:[#allocation29_spill] sm:$0xff] }
  0x9d   : > { %v1685_v13 = vmul.f32 %v4340_v51, %v4850_v49  ;;  %v1324_v50 = vadd.f32 %v1292_v27, %v1226_v48  ;;  %v1325_v34 = vadd.f32 %v1293_v46, %v1227_v54  ;;  %v1686_v57 = vmul.f32 %v4340_v51, %v4858_v29  ;;  %v6295_v54 = vld [vmem:[#allocation28_spill] sm:$0xff] }
  0x9e   : > { %v1787_v18 = vmul.f32 %v4357_v58, %v4537_v52  ;;  %v4873_v61 = vadd.f32 %v4393_v15, %v1837_v3  ;;  %v4876_v36 = vadd.f32 %v4393_v15, %v1838_v11  ;;  %v952_v31 = vmul.f32 %v4248_v7, %v6293_v44 }
  0x9f   : > { %v953_v12 = vmul.f32 %v4248_v7, %v6294_v21  ;;  %v1422_v27 = vadd.f32 %v1390_v14, %v1324_v50  ;;  %v1423_v46 = vadd.f32 %v1391_v63, %v1325_v34  ;;  %v1018_v48 = vmul.f32 %v4255_v10, %v4637_v19  ;;  %v4894_v19 = vld [vmem:[#allocation2 + $0x168] sm:$0xff] }
  0xa0   : > { %6291 = vst [vmem:[#allocation26_spill] sm:$0xff] %v4873_v61  ;;  %v1019_v52 = vmul.f32 %v4255_v10, %v4643_v62  ;;  %v1896_v3 = vpack.c.bf16 %v4876_v36, %v4873_v61  ;;  %v1116_v11 = vmul.f32 %v4270_v17, %v6295_v54  ;;  %v1117_v60 = vmul.f32 %v4270_v17, %v6296_v39 }
  0xa1   : > { %6292 = vst [vmem:[#allocation27_spill] sm:$0xff] %v4876_v36  ;;  %v1214_v30 = vmul.f32 %v4275_v20, %v4649_v45  ;;  %v1521_v50 = vadd.f32 %v1489_v35, %v1422_v27  ;;  %v1522_v34 = vadd.f32 %v1490_v47, %v1423_v46  ;;  %v1050_v14 = vadd.f32 %v1018_v48, %v952_v31  ;;  %v4906_v35 = vld [vmem:[#allocation2 + $0x169] sm:$0xff]  ;;  %v4908_v46 = vld [vmem:[#allocation2 + $0x171] sm:$0xff] }
  0xa2   : > { %v1051_v63 = vadd.f32 %v1019_v52, %v953_v12  ;;  %6297 = vst [vmem:[#allocation21_spill] sm:$0xff] %v4894_v19  ;;  %v1788_v62 = vmul.f32 %v4357_v58, %v4549_v5  ;;  %v1215_v54 = vmul.f32 %v4275_v20, %v4655_v0  ;;  %v1312_v39 = vmul.f32 %v4282_v25, %v4748_v2  ;;  %v4910_v5 = vld [vmem:[#allocation2 + $0x16a] sm:$0xff]  ;;  %v4912_v48 = vld [vmem:[#allocation2 + $0x172] sm:$0xff] }
  0xa3   : > { %v1313_v45 = vmul.f32 %v4282_v25, %v4750_v9  ;;  %v1619_v47 = vadd.f32 %v1587_v23, %v1521_v50  ;;  %v1620_v31 = vadd.f32 %v1588_v37, %v1522_v34  ;;  %v1148_v12 = vadd.f32 %v1116_v11, %v1050_v14  ;;  %6298 = vst [vmem:[#allocation30_spill] sm:$0xff] %v4908_v46  ;;  %v4924_v14 = vld [vmem:[%s4215_s6 + $0x60] sm:$0xff] }
  0xa4   : > { %v1149_v27 = vadd.f32 %v1117_v60, %v1051_v63  ;;  %v1410_v0 = vmul.f32 %v4287_v26, %v4774_v38  ;;  %v1411_v52 = vmul.f32 %v4287_v26, %v4794_v41  ;;  %v1509_v23 = vmul.f32 %v4296_v32, %v4894_v19  ;;  %6299 = vst [vmem:[#allocation31_spill] sm:$0xff] %v4924_v14  ;;  %v4927_v63 = vld [vmem:[%s4215_s6 + $0x68] sm:$0xff] }
  0xa5   : > { %v1510_v37 = vmul.f32 %v4296_v32, %v4896_v55  ;;  %3541 = vmatmul.msk.bf16.gmra.mxu3 %vm832_vm0, %v1896_v3  ;;  %v1717_v60 = vadd.f32 %v1685_v13, %v1619_v47  ;;  %v1718_v11 = vadd.f32 %v1686_v57, %v1620_v31  ;;  %v1246_v50 = vadd.f32 %v1214_v30, %v1148_v12  ;;  %v6301_v31 = vld [vmem:[#allocation32_spill] sm:$0xff] }
  0xa6   : > { %v1247_v34 = vadd.f32 %v1215_v54, %v1149_v27  ;;  %6300 = vst [vmem:[#allocation22_spill] sm:$0xff] %v4927_v63  ;;  %v1607_v36 = vmul.f32 %v4319_v42, %v4906_v35  ;;  %v1608_v61 = vmul.f32 %v4319_v42, %v4908_v46  ;;  %v1705_v19 = vmul.f32 %v4340_v51, %v4910_v5 }
  0xa7   : > { %v1706_v3 = vmul.f32 %v4340_v51, %v4912_v48  ;;  %901 = vst.msk [vmem:[#allocation2 + $0xa9] sm:$0xff] %vm832_vm0, %v4924_v14  ;;  %v1752_v30 = vmul.f32 %v4374_v4, %v1717_v60  ;;  %v1753_v13 = vmul.f32 %v4374_v4, %v1718_v11  ;;  %v1344_v57 = vadd.f32 %v1312_v39, %v1246_v50 }
  0xa8   : > { %v1345_v54 = vadd.f32 %v1313_v45, %v1247_v34  ;;  %902 = vst.msk [vmem:[#allocation2 + $0xb1] sm:$0xff] %vm832_vm0, %v4927_v63  ;;  %v1807_v47 = vmul.f32 %v4357_v58, %v6293_v44  ;;  %v934_v12 = vmul.f32 %v4248_v7, %v6301_v31  ;;  %v935_v27 = vmul.f32 %v4248_v7, %v4689_v43 }
  0xa9   : > { %v1000_v14 = vmul.f32 %v4255_v10, %v6287_v24  ;;  %v1819_v60 = vadd.f32 %v1787_v18, %v1752_v30  ;;  %v1820_v46 = vadd.f32 %v1788_v62, %v1753_v13  ;;  %v1442_v11 = vadd.f32 %v1410_v0, %v1344_v57  ;;  %v4981_v30 = vld [vmem:[#allocation2 + $0x99] sm:$0xff] }
  0xaa   : > { %v1443_v39 = vadd.f32 %v1411_v52, %v1345_v54  ;;  %v1001_v45 = vmul.f32 %v4255_v10, %v6289_v28  ;;  %v1098_v44 = vmul.f32 %v4270_v17, %v4674_v1  ;;  %v1099_v34 = vmul.f32 %v4270_v17, %v4676_v56  ;;  %v4988_v54 = vld [vmem:[#allocation2 + $0x92] sm:$0xff] }
  0xab   : > { %v1032_v50 = vadd.f32 %v1000_v14, %v934_v12  ;;  %v4958_v63 = vadd.f32 %v4393_v15, %v1819_v60  ;;  %v4961_v7 = vadd.f32 %v4393_v15, %v1820_v46  ;;  %v1541_v24 = vadd.f32 %v1509_v23, %v1442_v11  ;;  %v4971_v46 = vld [vmem:[#allocation2 + $0x90] sm:$0xff]  ;;  %v4973_v23 = vld [vmem:[#allocation2 + $0x98] sm:$0xff] }
  0xac   : > { %v1542_v18 = vadd.f32 %v1510_v37, %v1443_v39  ;;  %v1033_v62 = vadd.f32 %v1001_v45, %v935_v27  ;;  %v1196_v10 = vmul.f32 %v4275_v20, %v4683_v40  ;;  %v1197_v28 = vmul.f32 %v4275_v20, %v4696_v53  ;;  %v4979_v53 = vld [vmem:[#allocation2 + $0x91] sm:$0xff] }
  0xad   : > { %v1130_v0 = vadd.f32 %v1098_v44, %v1032_v50  ;;  %v1887_v1 = vpack.c.bf16 %v4961_v7, %v4958_v63  ;;  %v1639_v17 = vadd.f32 %v1607_v36, %v1541_v24  ;;  %v1294_v52 = vmul.f32 %v4282_v25, %v4833_v6 }
  0xae   : > { %v1640_v56 = vadd.f32 %v1608_v61, %v1542_v18  ;;  %v1131_v37 = vadd.f32 %v1099_v34, %v1033_v62  ;;  %v1295_v40 = vmul.f32 %v4282_v25, %v4839_v22  ;;  %v1392_v20 = vmul.f32 %v4287_v26, %v4850_v49  ;;  %v4990_v25 = vld [vmem:[#allocation2 + $0x9a] sm:$0xff]  ;;  %v5011_v18 = vld [vmem:[%s6252_s7 + $0x4] ss:$0 sm:$0xff] }
  0xaf   : > { %v1228_v14 = vadd.f32 %v1196_v10, %v1130_v0  ;;  %3532 = vmatmul.msk.bf16.gmra.mxu0 %vm832_vm0, %v1887_v1  ;;  %v1737_v61 = vadd.f32 %v1705_v19, %v1639_v17  ;;  %v1808_v13 = vmul.f32 %v4357_v58, %v6294_v21  ;;  %v1393_v57 = vmul.f32 %v4287_v26, %v4858_v29  ;;  %v5035_v17 = vld [vmem:[%s6252_s7 + $0x1] ss:$0 sm:$0xff] }
  0xb0   : > { %v1738_v36 = vadd.f32 %v1706_v3, %v1640_v56  ;;  %v1229_v12 = vadd.f32 %v1197_v28, %v1131_v37  ;;  %v1491_v60 = vmul.f32 %v4296_v32, %v4971_v46  ;;  %v1492_v11 = vmul.f32 %v4296_v32, %v4973_v23 }
  0xb1   : > { %v1326_v27 = vadd.f32 %v1294_v52, %v1228_v14  ;;  %v1772_v19 = vmul.f32 %v4374_v4, %v1737_v61  ;;  %v1589_v21 = vmul.f32 %v4319_v42, %v4979_v53  ;;  %v1590_v26 = vmul.f32 %v4319_v42, %v4981_v30 }
  0xb2   : > { %v1773_v3 = vmul.f32 %v4374_v4, %v1738_v36  ;;  %v1327_v39 = vadd.f32 %v1295_v40, %v1229_v12  ;;  %v1687_v50 = vmul.f32 %v4340_v51, %v4988_v54  ;;  %v1688_v44 = vmul.f32 %v4340_v51, %v4990_v25  ;;  %v5020_v51 = vld [vmem:[%s6252_s7] ss:$0 sm:$0xff] }
  0xb3   : > { %v1424_v45 = vadd.f32 %v1392_v20, %v1326_v27  ;;  %v1839_v34 = vadd.f32 %v1807_v47, %v1772_v19  ;;  %v1789_v24 = vmul.f32 %v4357_v58, %v6301_v31  ;;  %v954_v42 = vmul.f32 %v5011_v18, %v4701_v59  ;;  %v6304_v12 = vld [vmem:[#allocation21_spill] sm:$0xff] }
  0xb4   : > { %v1840_v32 = vadd.f32 %v1808_v13, %v1773_v3  ;;  %v1425_v62 = vadd.f32 %v1393_v57, %v1327_v39  ;;  %v955_v10 = vmul.f32 %v5011_v18, %v4704_v8  ;;  %v1020_v47 = vmul.f32 %v5020_v51, %v4748_v2  ;;  %v1576_v39 = vld [vmem:[#allocation2 + $0x189] sm:$0xff] }
  0xb5   : > { %v1523_v0 = vadd.f32 %v1491_v60, %v1424_v45  ;;  %v5025_v31 = vadd.f32 %v4393_v15, %v1839_v34  ;;  %v1021_v1 = vmul.f32 %v5020_v51, %v4750_v9  ;;  %v1118_v56 = vmul.f32 %v5035_v17, %v4752_v16  ;;  %v5046_v9 = vld [vmem:[%s6252_s7 + $0x2] ss:$0 sm:$0xff] }
  0xb6   : > { %v5028_v28 = vadd.f32 %v4393_v15, %v1840_v32  ;;  %v1524_v52 = vadd.f32 %v1492_v11, %v1425_v62  ;;  %v1052_v2 = vadd.f32 %v1020_v47, %v954_v42  ;;  %v1119_v14 = vmul.f32 %v5035_v17, %v4760_v33  ;;  %v5055_v33 = vld [vmem:[%s6252_s7 + $0x3] ss:$0 sm:$0xff]  ;;  %v5061_v11 = vld [vmem:[#allocation2 + $0x188] sm:$0xff]  ;;  %v5083_v42 = vld [vmem:[%s4215_s6 + $0x70] sm:$0xff] }
  0xb7   : > { %6302 = vst [vmem:[#allocation24_spill] sm:$0xff] %v5025_v31  ;;  %v1621_v37 = vadd.f32 %v1589_v21, %v1523_v0  ;;  %v1053_v20 = vadd.f32 %v1021_v1, %v955_v10  ;;  %v1216_v61 = vmul.f32 %v5046_v9, %v4774_v38  ;;  %v1217_v16 = vmul.f32 %v5046_v9, %v4794_v41  ;;  %v5059_v60 = vld [vmem:[#allocation2 + $0x180] sm:$0xff]  ;;  %v5086_v62 = vld [vmem:[%s4215_s6 + $0x78] sm:$0xff] }
  0xb8   : > { %6303 = vst [vmem:[#allocation28_spill] sm:$0xff] %v5028_v28  ;;  %v1897_v40 = vpack.c.bf16 %v5028_v28, %v5025_v31  ;;  %v1622_v36 = vadd.f32 %v1590_v26, %v1524_v52  ;;  %v1150_v57 = vadd.f32 %v1118_v56, %v1052_v2  ;;  %v1314_v27 = vmul.f32 %v5055_v33, %v6304_v12  ;;  %v1575_v38 = vld [vmem:[#allocation2 + $0x181] sm:$0xff] }
  0xb9   : > { %v1719_v13 = vadd.f32 %v1687_v50, %v1621_v37  ;;  %v1790_v41 = vmul.f32 %v4357_v58, %v4689_v43  ;;  %v1151_v19 = vadd.f32 %v1119_v14, %v1053_v20  ;;  %v1315_v3 = vmul.f32 %v5055_v33, %v4896_v55  ;;  %v5071_v21 = vld [vmem:[%s6252_s7 + $0x5] ss:$0 sm:$0xff]  ;;  %v5080_v43 = vld [vmem:[#allocation2 + $0x18a] sm:$0xff]  ;;  %v5091_v10 = vld [vmem:[%s6252_s7 + $0x6] ss:$0 sm:$0xff]  ;;  %903 = vst.msk [vmem:[#allocation2 + $0xc1] sm:$0xff] %vm832_vm0, %v5083_v42 }
  0xba   : > { %3542 = vmatmul.msk.bf16.gmra.mxu3 %vm832_vm0, %v1897_v40  ;;  %v1412_v26 = vmul.f32 %v5071_v21, %v4910_v5  ;;  %v5075_v45 = vld [vmem:[#allocation2 + $0x182] sm:$0xff]  ;;  %v1720_v50 = vadd.f32 %v1688_v44, %v1622_v36  ;;  %v1248_v32 = vadd.f32 %v1216_v61, %v1150_v57  ;;  %v1413_v58 = vmul.f32 %v5071_v21, %v4912_v48 }
  0xbb   : > { %v1754_v34 = vmul.f32 %v4374_v4, %v1719_v13  ;;  %v1249_v0 = vadd.f32 %v1217_v16, %v1151_v19  ;;  %v1511_v44 = vmul.f32 %v5091_v10, %v5059_v60  ;;  %v1512_v47 = vmul.f32 %v5091_v10, %v5061_v11  ;;  %v5100_v1 = vld [vmem:[%s6252_s7 + $0x7] ss:$0 sm:$0xff]  ;;  %904 = vst.msk [vmem:[#allocation2 + $0xc9] sm:$0xff] %vm832_vm0, %v5086_v62  ;;  %v5112_v20 = vld [vmem:[%s6252_s7 + $0x8] ss:$0 sm:$0xff] }
  0xbc   : > { %v1609_v56 = vmul.f32 %v5100_v1, %v1575_v38  ;;  %v1755_v52 = vmul.f32 %v4374_v4, %v1720_v50  ;;  %v1346_v2 = vadd.f32 %v1314_v27, %v1248_v32  ;;  %v1610_v14 = vmul.f32 %v5100_v1, %v1576_v39  ;;  %v5121_v4 = vld [vmem:[%s6253_s15] ss:$0 sm:$0xff]  ;;  %v6306_v27 = vld [vmem:[#allocation35_spill] sm:$0xff] }
  0xbd   : > { %v1821_v37 = vadd.f32 %v1789_v24, %v1754_v34  ;;  %v1347_v40 = vadd.f32 %v1315_v3, %v1249_v0  ;;  %v1707_v61 = vmul.f32 %v5112_v20, %v5075_v45  ;;  %v1708_v16 = vmul.f32 %v5112_v20, %v5080_v43  ;;  %v6307_v3 = vld [vmem:[#allocation36_spill] sm:$0xff]  ;;  %v6309_v32 = vld [vmem:[#allocation23_spill] sm:$0xff]  ;;  %v6310_v0 = vld [vmem:[#allocation25_spill] sm:$0xff] }
  0xbe   : > { %v1809_v24 = vmul.f32 %v5121_v4, %v4701_v59  ;;  %v1822_v36 = vadd.f32 %v1790_v41, %v1755_v52  ;;  %v1444_v57 = vadd.f32 %v1412_v26, %v1346_v2  ;;  %v936_v38 = vmul.f32 %v5011_v18, %v6306_v27 }
  0xbf   : > { %v5126_v13 = vadd.f32 %v4393_v15, %v1821_v37  ;;  %v1445_v19 = vadd.f32 %v1413_v58, %v1347_v40  ;;  %v937_v39 = vmul.f32 %v5011_v18, %v6307_v3  ;;  %v1002_v50 = vmul.f32 %v5020_v51, %v4833_v6 }
  0xc0   : > { %v1003_v34 = vmul.f32 %v5020_v51, %v4839_v22  ;;  %v5137_v59 = vadd.f32 %v4393_v15, %v1822_v36  ;;  %v1543_v41 = vadd.f32 %v1511_v44, %v1444_v57  ;;  %v1100_v26 = vmul.f32 %v5035_v17, %v6309_v32  ;;  %v5151_v36 = vld [vmem:[#allocation2 + $0xa8] sm:$0xff] }
  0xc1   : > { %6305 = vst [vmem:[#allocation29_spill] sm:$0xff] %v5126_v13  ;;  %v1101_v52 = vmul.f32 %v5035_v17, %v6310_v0  ;;  %v1544_v58 = vadd.f32 %v1512_v47, %v1445_v19  ;;  %v1034_v37 = vadd.f32 %v1002_v50, %v936_v38  ;;  %v1198_v40 = vmul.f32 %v5046_v9, %v4850_v49  ;;  %v5155_v19 = vld [vmem:[#allocation2 + $0xb0] sm:$0xff] }
  0xc2   : > { %6308 = vst [vmem:[#allocation32_spill] sm:$0xff] %v5137_v59  ;;  %v1035_v2 = vadd.f32 %v1003_v34, %v937_v39  ;;  %v1888_v6 = vpack.c.bf16 %v5137_v59, %v5126_v13  ;;  %v1641_v22 = vadd.f32 %v1609_v56, %v1543_v41  ;;  %v1199_v15 = vmul.f32 %v5046_v9, %v4858_v29  ;;  %v5157_v49 = vld [vmem:[#allocation2 + $0xa9] sm:$0xff]  ;;  %v5159_v39 = vld [vmem:[#allocation2 + $0xb1] sm:$0xff] }
  0xc3   : > { %v1296_v44 = vmul.f32 %v5055_v33, %v4971_v46  ;;  %v1642_v57 = vadd.f32 %v1610_v14, %v1544_v58  ;;  %v1132_v32 = vadd.f32 %v1100_v26, %v1034_v37  ;;  %v1297_v38 = vmul.f32 %v5055_v33, %v4973_v23  ;;  %v5168_v34 = vld [vmem:[#allocation2 + $0xaa] sm:$0xff]  ;;  %v5172_v58 = vld [vmem:[#allocation2 + $0xb2] sm:$0xff] }
  0xc4   : > { %v1133_v47 = vadd.f32 %v1101_v52, %v1035_v2  ;;  %3533 = vmatmul.msk.bf16.gmra.mxu0 %vm832_vm0, %v1888_v6  ;;  %v1739_v29 = vadd.f32 %v1707_v61, %v1641_v22  ;;  %v1810_v56 = vmul.f32 %v5121_v4, %v4704_v8  ;;  %v1394_v14 = vmul.f32 %v5071_v21, %v4988_v54  ;;  %v5177_v8 = vld [vmem:[%s6254_s1] ss:$0 sm:$0xff] }
  0xc5   : > { %v1395_v50 = vmul.f32 %v5071_v21, %v4990_v25  ;;  %v1740_v41 = vadd.f32 %v1708_v16, %v1642_v57  ;;  %v1230_v26 = vadd.f32 %v1198_v40, %v1132_v32  ;;  %v1493_v52 = vmul.f32 %v5091_v10, %v5151_v36 }
  0xc6   : > { %v1231_v0 = vadd.f32 %v1199_v15, %v1133_v47  ;;  %v1774_v61 = vmul.f32 %v5177_v8, %v1739_v29  ;;  %v1494_v37 = vmul.f32 %v5091_v10, %v5155_v19  ;;  %v1591_v16 = vmul.f32 %v5100_v1, %v5157_v49  ;;  %v6311_v29 = vld [vmem:[#allocation39_spill] sm:$0xff] }
  0xc7   : > { %v1592_v2 = vmul.f32 %v5100_v1, %v5159_v39  ;;  %v1775_v40 = vmul.f32 %v5177_v8, %v1740_v41  ;;  %v1328_v6 = vadd.f32 %v1296_v44, %v1230_v26  ;;  %v1689_v15 = vmul.f32 %v5112_v20, %v5168_v34  ;;  %v6312_v44 = vld [vmem:[#allocation40_spill] sm:$0xff]  ;;  %v5200_v26 = vld [vmem:[%s6255_s29] ss:$0 sm:$0xff] }
  0xc8   : > { %v1329_v22 = vadd.f32 %v1297_v38, %v1231_v0  ;;  %v1841_v57 = vadd.f32 %v1809_v24, %v1774_v61  ;;  %v1690_v32 = vmul.f32 %v5112_v20, %v5172_v58  ;;  %v1791_v47 = vmul.f32 %v5121_v4, %v6306_v27 }
  0xc9   : > { %v956_v28 = vmul.f32 %v5011_v18, %v6311_v29  ;;  %v1842_v59 = vadd.f32 %v1810_v56, %v1775_v40  ;;  %v1426_v31 = vadd.f32 %v1394_v14, %v1328_v6  ;;  %v957_v38 = vmul.f32 %v5011_v18, %v6312_v44  ;;  %v5212_v14 = vld [vmem:[%s4215_s6 + $0x80] sm:$0xff] }
  0xca   : > { %v1427_v41 = vadd.f32 %v1395_v50, %v1329_v22  ;;  %v5203_v24 = vadd.f32 %v5200_v26, %v1841_v57  ;;  %v1022_v27 = vmul.f32 %v5020_v51, %v6304_v12  ;;  %v1023_v0 = vmul.f32 %v5020_v51, %v4896_v55  ;;  %v5215_v50 = vld [vmem:[%s4215_s6 + $0x88] sm:$0xff]  ;;  %905 = vst.msk [vmem:[#allocation2 + $0xd9] sm:$0xff] %vm832_vm0, %v5212_v14 }
  0xcb   : > { %v1120_v56 = vmul.f32 %v5035_v17, %v4906_v35  ;;  %v5218_v61 = vadd.f32 %v5200_v26, %v1842_v59  ;;  %v1525_v40 = vadd.f32 %v1493_v52, %v1426_v31  ;;  %v6314_v22 = vld [vmem:[#allocation30_spill] sm:$0xff]  ;;  %v1218_v35 = vmul.f32 %v5046_v9, %v4910_v5  ;;  %906 = vst.msk [vmem:[#allocation2 + $0xe1] sm:$0xff] %vm832_vm0, %v5215_v50 }
  0xcc   : > { %v1526_v6 = vadd.f32 %v1494_v37, %v1427_v41  ;;  %v1121_v57 = vmul.f32 %v5035_v17, %v6314_v22  ;;  %v1054_v12 = vadd.f32 %v1022_v27, %v956_v28  ;;  %v1055_v55 = vadd.f32 %v1023_v0, %v957_v38  ;;  %v1479_v41 = vld [vmem:[#allocation2 + $0x198] sm:$0xff]  ;;  %v1480_v28 = vld [vmem:[#allocation2 + $0x1a0] sm:$0xff] }
  0xcd   : > { %6313 = vst [vmem:[#allocation21_spill] sm:$0xff] %v5218_v61  ;;  %v1219_v13 = vmul.f32 %v5046_v9, %v4912_v48  ;;  %v1898_v31 = vpack.c.bf16 %v5218_v61, %v5203_v24  ;;  %v1623_v59 = vadd.f32 %v1591_v16, %v1525_v40  ;;  %v1792_v37 = vmul.f32 %v5121_v4, %v6307_v3  ;;  %v1577_v0 = vld [vmem:[#allocation2 + $0x199] sm:$0xff]  ;;  %v1578_v22 = vld [vmem:[#allocation2 + $0x1a1] sm:$0xff] }
  0xce   : > { %v1624_v52 = vadd.f32 %v1592_v2, %v1526_v6  ;;  %v1152_v38 = vadd.f32 %v1120_v56, %v1054_v12  ;;  %v1153_v27 = vadd.f32 %v1121_v57, %v1055_v55  ;;  %v1316_v5 = vmul.f32 %v5055_v33, %v5059_v60  ;;  %v1675_v56 = vld [vmem:[#allocation2 + $0x19a] sm:$0xff]  ;;  %v1676_v40 = vld [vmem:[#allocation2 + $0x1a2] sm:$0xff] }
  0xcf   : > { %v1317_v48 = vmul.f32 %v5055_v33, %v5061_v11  ;;  %3543 = vmatmul.msk.bf16.gmra.mxu3 %vm832_vm0, %v1898_v31  ;;  %v1721_v61 = vadd.f32 %v1689_v15, %v1623_v59  ;;  %v1414_v2 = vmul.f32 %v5071_v21, %v5075_v45  ;;  %v1415_v3 = vmul.f32 %v5071_v21, %v5080_v43 }
  0xd0   : > { %v1722_v16 = vadd.f32 %v1690_v32, %v1624_v52  ;;  %v1250_v6 = vadd.f32 %v1218_v35, %v1152_v38  ;;  %v1251_v57 = vadd.f32 %v1219_v13, %v1153_v27  ;;  %v1513_v60 = vmul.f32 %v5091_v10, %v1479_v41  ;;  %v6315_v41 = vld [vmem:[#allocation31_spill] sm:$0xff]  ;;  %v6316_v27 = vld [vmem:[#allocation22_spill] sm:$0xff] }
  0xd1   : > { %v1514_v11 = vmul.f32 %v5091_v10, %v1480_v28  ;;  %v1756_v12 = vmul.f32 %v5177_v8, %v1721_v61  ;;  %v1611_v15 = vmul.f32 %v5100_v1, %v1577_v0  ;;  %v1612_v32 = vmul.f32 %v5100_v1, %v1578_v22 }
  0xd2   : > { %v1757_v55 = vmul.f32 %v5177_v8, %v1722_v16  ;;  %v1348_v45 = vadd.f32 %v1316_v5, %v1250_v6  ;;  %v1349_v31 = vadd.f32 %v1317_v48, %v1251_v57  ;;  %v1709_v43 = vmul.f32 %v5112_v20, %v1675_v56 }
  0xd3   : > { %v1710_v59 = vmul.f32 %v5112_v20, %v1676_v40  ;;  %v1823_v35 = vadd.f32 %v1791_v47, %v1756_v12  ;;  %v1811_v52 = vmul.f32 %v5121_v4, %v6311_v29  ;;  %v938_v61 = vmul.f32 %v5011_v18, %v6315_v41 }
  0xd4   : > { %v1824_v13 = vadd.f32 %v1792_v37, %v1757_v55  ;;  %v1446_v28 = vadd.f32 %v1414_v2, %v1348_v45  ;;  %v1447_v38 = vadd.f32 %v1415_v3, %v1349_v31  ;;  %v939_v0 = vmul.f32 %v5011_v18, %v6316_v27  ;;  %v5294_v45 = vld [vmem:[#allocation2 + $0xc2] sm:$0xff] }
  0xd5   : > { %v1004_v5 = vmul.f32 %v5020_v51, %v4971_v46  ;;  %v5260_v48 = vadd.f32 %v5200_v26, %v1823_v35  ;;  %v1005_v29 = vmul.f32 %v5020_v51, %v4973_v23  ;;  %v1102_v37 = vmul.f32 %v5035_v17, %v4979_v53 }
  0xd6   : > { %v5263_v47 = vadd.f32 %v5200_v26, %v1824_v13  ;;  %v1545_v22 = vadd.f32 %v1513_v60, %v1446_v28  ;;  %v1546_v16 = vadd.f32 %v1514_v11, %v1447_v38  ;;  %v1103_v3 = vmul.f32 %v5035_v17, %v4981_v30  ;;  %v5279_v60 = vld [vmem:[#allocation2 + $0xc0] sm:$0xff]  ;;  %v5281_v30 = vld [vmem:[#allocation2 + $0xc8] sm:$0xff]  ;;  %v5304_v38 = vld [vmem:[%s4215_s6 + $0x98] sm:$0xff] }
  0xd7   : > { %v1036_v2 = vadd.f32 %v1004_v5, %v938_v61  ;;  %v1037_v56 = vadd.f32 %v1005_v29, %v939_v0  ;;  %v1200_v40 = vmul.f32 %v5046_v9, %v4988_v54  ;;  %v1201_v6 = vmul.f32 %v5046_v9, %v4990_v25  ;;  %v5283_v11 = vld [vmem:[#allocation2 + $0xc1] sm:$0xff]  ;;  %v5298_v28 = vld [vmem:[#allocation2 + $0xca] sm:$0xff]  ;;  %908 = vst.msk [vmem:[#allocation2 + $0xf9] sm:$0xff] %vm832_vm0, %v5304_v38 }
  0xd8   : > { %v1889_v46 = vpack.c.bf16 %v5263_v47, %v5260_v48  ;;  %v1643_v23 = vadd.f32 %v1611_v15, %v1545_v22  ;;  %v1644_v57 = vadd.f32 %v1612_v32, %v1546_v16  ;;  %v1298_v53 = vmul.f32 %v5055_v33, %v5151_v36  ;;  %v5292_v32 = vld [vmem:[#allocation2 + $0xc9] sm:$0xff] }
  0xd9   : > { %v1134_v12 = vadd.f32 %v1102_v37, %v1036_v2  ;;  %v1812_v54 = vmul.f32 %v5121_v4, %v6312_v44  ;;  %v1135_v25 = vadd.f32 %v1103_v3, %v1037_v56  ;;  %v1299_v55 = vmul.f32 %v5055_v33, %v5155_v19  ;;  %v5301_v44 = vld [vmem:[%s4215_s6 + $0x90] sm:$0xff] }
  0xda   : > { %3534 = vmatmul.msk.bf16.gmra.mxu0 %vm832_vm0, %v1889_v46  ;;  %v1396_v15 = vmul.f32 %v5071_v21, %v5168_v34  ;;  %v1741_v31 = vadd.f32 %v1709_v43, %v1643_v23  ;;  %v1742_v35 = vadd.f32 %v1710_v59, %v1644_v57  ;;  %v1397_v61 = vmul.f32 %v5071_v21, %v5172_v58 }
  0xdb   : > { %v1232_v13 = vadd.f32 %v1200_v40, %v1134_v12  ;;  %v1233_v0 = vadd.f32 %v1201_v6, %v1135_v25  ;;  %v1495_v5 = vmul.f32 %v5091_v10, %v5279_v60  ;;  %v1496_v29 = vmul.f32 %v5091_v10, %v5281_v30  ;;  %907 = vst.msk [vmem:[#allocation2 + $0xf1] sm:$0xff] %vm832_vm0, %v5301_v44 }
  0xdc   : > { %v1593_v43 = vmul.f32 %v5100_v1, %v5283_v11  ;;  %v1776_v59 = vmul.f32 %v5177_v8, %v1741_v31  ;;  %v1777_v37 = vmul.f32 %v5177_v8, %v1742_v35  ;;  %v1594_v16 = vmul.f32 %v5100_v1, %v5292_v32 }
  0xdd   : > { %v1330_v22 = vadd.f32 %v1298_v53, %v1232_v13  ;;  %v1331_v2 = vadd.f32 %v1299_v55, %v1233_v0  ;;  %v1691_v3 = vmul.f32 %v5112_v20, %v5294_v45  ;;  %v1692_v46 = vmul.f32 %v5112_v20, %v5298_v28 }
  0xde   : > { %v1793_v56 = vmul.f32 %v5121_v4, %v6315_v41  ;;  %v1843_v40 = vadd.f32 %v1811_v52, %v1776_v59  ;;  %v1844_v6 = vadd.f32 %v1812_v54, %v1777_v37  ;;  %v940_v57 = vmul.f32 %v5011_v18, %v5083_v42 }
  0xdf   : > { %v1428_v23 = vadd.f32 %v1396_v15, %v1330_v22  ;;  %v1429_v12 = vadd.f32 %v1397_v61, %v1331_v2  ;;  %v941_v53 = vmul.f32 %v5011_v18, %v5086_v62  ;;  %v1006_v25 = vmul.f32 %v5020_v51, %v5151_v36 }
  0xe0   : > { %v1007_v55 = vmul.f32 %v5020_v51, %v5155_v19  ;;  %v5335_v31 = vadd.f32 %v5200_v26, %v1843_v40  ;;  %v5338_v52 = vadd.f32 %v5200_v26, %v1844_v6  ;;  %v1104_v54 = vmul.f32 %v5035_v17, %v5157_v49 }
  0xe1   : > { %v1527_v41 = vadd.f32 %v1495_v5, %v1428_v23  ;;  %v1528_v15 = vadd.f32 %v1496_v29, %v1429_v12  ;;  %v1038_v35 = vadd.f32 %v1006_v25, %v940_v57  ;;  %v1105_v61 = vmul.f32 %v5035_v17, %v5159_v39  ;;  %v5352_v29 = vld [vmem:[#allocation2 + $0xd8] sm:$0xff] }
  0xe2   : > { %v1039_v13 = vadd.f32 %v1007_v55, %v941_v53  ;;  %v1899_v36 = vpack.c.bf16 %v5338_v52, %v5335_v31  ;;  %v1202_v0 = vmul.f32 %v5046_v9, %v5168_v34  ;;  %v1203_v59 = vmul.f32 %v5046_v9, %v5172_v58  ;;  %v5365_v57 = vld [vmem:[#allocation2 + $0xd9] sm:$0xff] }
  0xe3   : > { %v1625_v19 = vadd.f32 %v1593_v43, %v1527_v41  ;;  %v1626_v5 = vadd.f32 %v1594_v16, %v1528_v15  ;;  %v1136_v37 = vadd.f32 %v1104_v54, %v1038_v35  ;;  %v1300_v49 = vmul.f32 %v5055_v33, %v5279_v60  ;;  %v5361_v16 = vld [vmem:[#allocation2 + $0xe0] sm:$0xff] }
  0xe4   : > { %v1137_v22 = vadd.f32 %v1105_v61, %v1039_v13  ;;  %3544 = vmatmul.msk.bf16.gmra.mxu3 %vm832_vm0, %v1899_v36  ;;  %v1794_v43 = vmul.f32 %v5121_v4, %v6316_v27  ;;  %v1301_v34 = vmul.f32 %v5055_v33, %v5281_v30  ;;  %v1398_v58 = vmul.f32 %v5071_v21, %v5294_v45  ;;  %v5372_v53 = vld [vmem:[#allocation2 + $0xda] sm:$0xff]  ;;  %v5381_v13 = vld [vmem:[#allocation2 + $0xe2] sm:$0xff] }
  0xe5   : > { %v1723_v39 = vadd.f32 %v1691_v3, %v1625_v19  ;;  %v1724_v2 = vadd.f32 %v1692_v46, %v1626_v5  ;;  %v1234_v40 = vadd.f32 %v1202_v0, %v1136_v37  ;;  %v1399_v23 = vmul.f32 %v5071_v21, %v5298_v28  ;;  %v5367_v3 = vld [vmem:[#allocation2 + $0xe1] sm:$0xff] }
  0xe6   : > { %v1235_v6 = vadd.f32 %v1203_v59, %v1137_v22  ;;  %v1497_v12 = vmul.f32 %v5091_v10, %v5352_v29  ;;  %v1498_v41 = vmul.f32 %v5091_v10, %v5361_v16  ;;  %v1595_v15 = vmul.f32 %v5100_v1, %v5365_v57 }
  0xe7   : > { %v1758_v27 = vmul.f32 %v5177_v8, %v1723_v39  ;;  %v1759_v25 = vmul.f32 %v5177_v8, %v1724_v2  ;;  %v1332_v55 = vadd.f32 %v1300_v49, %v1234_v40  ;;  %v1596_v35 = vmul.f32 %v5100_v1, %v5367_v3 }
  0xe8   : > { %v1333_v46 = vadd.f32 %v1301_v34, %v1235_v6  ;;  %v1693_v0 = vmul.f32 %v5112_v20, %v5372_v53  ;;  %v943_v5 = vmul.f32 %v5011_v18, %v5215_v50  ;;  %v1008_v37 = vmul.f32 %v5020_v51, %v5279_v60 }
  0xe9   : > { %v1825_v54 = vadd.f32 %v1793_v56, %v1758_v27  ;;  %v1826_v61 = vadd.f32 %v1794_v43, %v1759_v25  ;;  %v1430_v36 = vadd.f32 %v1398_v58, %v1332_v55  ;;  %v942_v56 = vmul.f32 %v5011_v18, %v5212_v14 }
  0xea   : > { %v1431_v19 = vadd.f32 %v1399_v23, %v1333_v46  ;;  %v1694_v43 = vmul.f32 %v5112_v20, %v5381_v13  ;;  %v1009_v34 = vmul.f32 %v5020_v51, %v5281_v30  ;;  %v1106_v2 = vmul.f32 %v5035_v17, %v5283_v11 }
  0xeb   : > { %v5386_v59 = vadd.f32 %v5200_v26, %v1825_v54  ;;  %v5395_v22 = vadd.f32 %v5200_v26, %v1826_v61  ;;  %v1529_v49 = vadd.f32 %v1497_v12, %v1430_v36  ;;  %v1040_v58 = vadd.f32 %v1008_v37, %v942_v56  ;;  %v5418_v54 = vld [vmem:[#allocation2 + $0xf0] sm:$0xff]  ;;  %v5426_v36 = vld [vmem:[#allocation2 + $0xf8] sm:$0xff] }
  0xec   : > { %v1530_v39 = vadd.f32 %v1498_v41, %v1431_v19  ;;  %v1107_v40 = vmul.f32 %v5035_v17, %v5292_v32  ;;  %v1795_v27 = vmul.f32 %v5121_v4, %v5083_v42  ;;  %v1041_v12 = vadd.f32 %v1009_v34, %v943_v5  ;;  %v1962_v19 = vpop.f32.mrf.mxu0 }
  0xed   : > { %v1890_v60 = vpack.c.bf16 %v5395_v22, %v5386_v59  ;;  %v1627_v6 = vadd.f32 %v1595_v15, %v1529_v49  ;;  %v1138_v25 = vadd.f32 %v1106_v2, %v1040_v58  ;;  %v1204_v30 = vmul.f32 %v5046_v9, %v5294_v45  ;;  %v5434_v49 = vld [vmem:[#allocation2 + $0xf9] sm:$0xff] }
  0xee   : > { %v1628_v23 = vadd.f32 %v1596_v35, %v1530_v39  ;;  %v1205_v55 = vmul.f32 %v5046_v9, %v5298_v28  ;;  %v1796_v46 = vmul.f32 %v5121_v4, %v5086_v62  ;;  %v1302_v41 = vmul.f32 %v5055_v33, %v5352_v29  ;;  %v5428_v62 = vld [vmem:[#allocation2 + $0xf1] sm:$0xff] }
  0xef   : > { %3535 = vmatmul.msk.bf16.gmra.mxu0 %vm832_vm0, %v1890_v60  ;;  %v1725_v11 = vadd.f32 %v1693_v0, %v1627_v6  ;;  %v1139_v42 = vadd.f32 %v1107_v40, %v1041_v12  ;;  %v1236_v15 = vadd.f32 %v1204_v30, %v1138_v25  ;;  %v1303_v45 = vmul.f32 %v5055_v33, %v5361_v16  ;;  %v5436_v39 = vld [vmem:[#allocation2 + $0xf2] sm:$0xff] }
  0xf0   : > { %v1726_v32 = vadd.f32 %v1694_v43, %v1628_v23  ;;  %v1400_v28 = vmul.f32 %v5071_v21, %v5372_v53  ;;  %v1401_v5 = vmul.f32 %v5071_v21, %v5381_v13  ;;  %v1499_v37 = vmul.f32 %v5091_v10, %v5418_v54  ;;  %v5438_v43 = vld [vmem:[#allocation2 + $0xfa] sm:$0xff] }
  0xf1   : > { %v1760_v35 = vmul.f32 %v5177_v8, %v1725_v11  ;;  %v1237_v0 = vadd.f32 %v1205_v55, %v1139_v42  ;;  %v1334_v56 = vadd.f32 %v1302_v41, %v1236_v15  ;;  %v1500_v60 = vmul.f32 %v5091_v10, %v5426_v36 }
  0xf2   : > { %v1761_v61 = vmul.f32 %v5177_v8, %v1726_v32  ;;  %v1597_v6 = vmul.f32 %v5100_v1, %v5428_v62  ;;  %v1598_v23 = vmul.f32 %v5100_v1, %v5434_v49  ;;  %v1695_v12 = vmul.f32 %v5112_v20, %v5436_v39 }
  0xf3   : > { %v1827_v34 = vadd.f32 %v1795_v27, %v1760_v35  ;;  %v1335_v2 = vadd.f32 %v1303_v45, %v1237_v0  ;;  %v1432_v40 = vadd.f32 %v1400_v28, %v1334_v56  ;;  %v1696_v25 = vmul.f32 %v5112_v20, %v5438_v43 }
  0xf4   : > { %v1828_v58 = vadd.f32 %v1796_v46, %v1761_v61  ;;  %v944_v27 = vmul.f32 %v5011_v18, %v5301_v44  ;;  %v945_v11 = vmul.f32 %v5011_v18, %v5304_v38  ;;  %v1010_v32 = vmul.f32 %v5020_v51, %v5352_v29  ;;  %v5471_v29 = vld [vmem:[%s6317_s24] ss:$0 sm:$0xff] }
  0xf5   : > { %v1433_v30 = vadd.f32 %v1401_v5, %v1335_v2  ;;  %v1531_v55 = vadd.f32 %v1499_v37, %v1432_v40  ;;  %v5457_v46 = vadd.f32 %v5200_v26, %v1827_v34  ;;  %v1011_v42 = vmul.f32 %v5020_v51, %v5361_v16 }
  0xf6   : > { %v5460_v41 = vadd.f32 %v5200_v26, %v1828_v58  ;;  %v1108_v15 = vmul.f32 %v5035_v17, %v5365_v57  ;;  %v1042_v35 = vadd.f32 %v1010_v32, %v944_v27  ;;  %v1109_v61 = vmul.f32 %v5035_v17, %v5367_v3  ;;  %v1468_v27 = vld [vmem:[#allocation2 + $0x110] sm:$0xff] }
  0xf7   : > { %v1532_v45 = vadd.f32 %v1500_v60, %v1433_v30  ;;  %v1629_v28 = vadd.f32 %v1597_v6, %v1531_v55  ;;  %v1043_v0 = vadd.f32 %v1011_v42, %v945_v11  ;;  %v1206_v56 = vmul.f32 %v5046_v9, %v5372_v53  ;;  %v1467_v53 = vld [vmem:[#allocation2 + $0x108] sm:$0xff]  ;;  %v1964_v6 = vpop.f32.mrf.mxu0  ;;  %v1566_v32 = vld [vmem:[#allocation2 + $0x111] sm:$0xff] }
  0xf8   : > { %v1207_v16 = vmul.f32 %v5046_v9, %v5381_v13  ;;  %v1140_v37 = vadd.f32 %v1108_v15, %v1042_v35  ;;  %v1304_v34 = vmul.f32 %v5055_v33, %v5418_v54  ;;  %v1891_v3 = vpack.c.bf16 %v5460_v41, %v5457_v46  ;;  %v1565_v30 = vld [vmem:[#allocation2 + $0x109] sm:$0xff] }
  0xf9   : > { %v1630_v5 = vadd.f32 %v1598_v23, %v1532_v45  ;;  %v1727_v57 = vadd.f32 %v1695_v12, %v1629_v28  ;;  %v1797_v58 = vmul.f32 %v5121_v4, %v5212_v14  ;;  %v1141_v2 = vadd.f32 %v1109_v61, %v1043_v0  ;;  %v5502_v0 = vld [vmem:[%s6318_s3] ss:$0 sm:$0xff] }
  0xfa   : > { %v1305_v40 = vmul.f32 %v5055_v33, %v5426_v36  ;;  %v1238_v23 = vadd.f32 %v1206_v56, %v1140_v37  ;;  %v1402_v12 = vmul.f32 %v5071_v21, %v5436_v39  ;;  %v2045_v55 = vmul.f32 %v5471_v29, %v1962_v19 }
  0xfb   : > { %v1728_v60 = vadd.f32 %v1696_v25, %v1630_v5  ;;  %v1762_v13 = vmul.f32 %v5177_v8, %v1727_v57  ;;  %v1239_v11 = vadd.f32 %v1207_v16, %v1141_v2  ;;  %v1403_v14 = vmul.f32 %v5071_v21, %v5438_v43  ;;  %v6319_v5 = vld [vmem:[#allocation19_spill] sm:$0xff] }
  0xfc   : > { %v1798_v25 = vmul.f32 %v5121_v4, %v5215_v50  ;;  %v1336_v15 = vadd.f32 %v1304_v34, %v1238_v23  ;;  %v1501_v45 = vmul.f32 %v5091_v10, %v1467_v53  ;;  %v2046_v28 = vmul.f32 %v5471_v29, %v1964_v6  ;;  %v1663_v34 = vld [vmem:[#allocation2 + $0x10a] sm:$0xff] }
  0xfd   : > { %v1763_v42 = vmul.f32 %v5177_v8, %v1728_v60  ;;  %v1337_v35 = vadd.f32 %v1305_v40, %v1239_v11  ;;  %v1502_v19 = vmul.f32 %v5091_v10, %v1468_v27  ;;  %v1599_v61 = vmul.f32 %v5100_v1, %v1565_v30 }
  0xfe   : > { %v1829_v56 = vadd.f32 %v1797_v58, %v1762_v13  ;;  %v1434_v16 = vadd.f32 %v1402_v12, %v1336_v15  ;;  %v1600_v50 = vmul.f32 %v5100_v1, %v1566_v32  ;;  %v946_v57 = vmul.f32 %v5011_v18, %v6319_v5  ;;  %v1664_v58 = vld [vmem:[#allocation2 + $0x112] sm:$0xff] }
  0xff   : > { %3536 = vmatmul.msk.bf16.gmra.mxu0 %vm832_vm0, %v1891_v3  ;;  %v1435_v37 = vadd.f32 %v1403_v14, %v1337_v35  ;;  %v6320_v3 = vld [vmem:[#allocation20_spill] sm:$0xff]  ;;  %v1012_v40 = vmul.f32 %v5020_v51, %v5418_v54  ;;  %v1013_v60 = vmul.f32 %v5020_v51, %v5426_v36  ;;  %v1830_v6 = vadd.f32 %v1798_v25, %v1763_v42 }
 0x100   : > { %v947_v2 = vmul.f32 %v5011_v18, %v6320_v3  ;;  %v1533_v23 = vadd.f32 %v1501_v45, %v1434_v16  ;;  %v1110_v13 = vmul.f32 %v5035_v17, %v5428_v62  ;;  %v1111_v12 = vmul.f32 %v5035_v17, %v5434_v49  ;;  %v3593_v49 = vld [vmem:[%s6159_s8] sm:$0xff] }
 0x101   : > { %v1534_v30 = vadd.f32 %v1502_v19, %v1435_v37  ;;  %v1044_v11 = vadd.f32 %v1012_v40, %v946_v57  ;;  %v1208_v18 = vmul.f32 %v5046_v9, %v5436_v39  ;;  %v5520_v54 = vadd.f32 %v5502_v0, %v2045_v55  ;;  %2480 = vmatpush.bf16.msra.mxu1 %v3593_v49 }
 0x102   : > { %v1045_v14 = vadd.f32 %v1013_v60, %v947_v2  ;;  %v5523_v51 = vadd.f32 %v5502_v0, %v2046_v28  ;;  %v1697_v36 = vmul.f32 %v5112_v20, %v1663_v34  ;;  %v1209_v62 = vmul.f32 %v5046_v9, %v5438_v43  ;;  %3598 = vmatpush.bf16.msra.mxu2 %v3593_v49  ;;  %v1470_v60 = vld [vmem:[#allocation2 + $0x128] sm:$0xff] }
 0x103   : > { %v5529_v32 = vadd.f32 %v5200_v26, %v1829_v56  ;;  %v1698_v17 = vmul.f32 %v5112_v20, %v1664_v58  ;;  %v1142_v39 = vadd.f32 %v1110_v13, %v1044_v11  ;;  %v5536_v42 = vadd.f32 %v5200_v26, %v1830_v6  ;;  %3599 = vmatpush.bf16.msrb.mxu3 %v3593_v49 }
 0x104   : > { %v1143_v55 = vadd.f32 %v1111_v12, %v1045_v14  ;;  %v1631_v15 = vadd.f32 %v1599_v61, %v1533_v23  ;;  %v1632_v45 = vadd.f32 %v1600_v50, %v1534_v30  ;;  %v1306_v28 = vmul.f32 %v5055_v33, %v1467_v53 }
 0x105   : > { %v1240_v43 = vadd.f32 %v1208_v18, %v1142_v39  ;;  %v1307_v19 = vmul.f32 %v5055_v33, %v1468_v27  ;;  %v2144_v56 = vmul.f32 0.044715, %v5520_v54  ;;  %v1892_v61 = vpack.c.bf16 %v5536_v42, %v5529_v32  ;;  %v1469_v27 = vld [vmem:[#allocation2 + $0x120] sm:$0xff] }
 0x106   : > { %v1967_v25 = vpop.f32.mrf.mxu0  ;;  %v1241_v35 = vadd.f32 %v1209_v62, %v1143_v55  ;;  %v2145_v50 = vmul.f32 0.044715, %v5523_v51  ;;  %v1729_v53 = vadd.f32 %v1697_v36, %v1631_v15  ;;  %v1730_v57 = vadd.f32 %v1698_v17, %v1632_v45  ;;  %v1568_v62 = vld [vmem:[#allocation2 + $0x129] sm:$0xff] }
 0x107   : > { %v2047_v9 = vmul.f32 %v5471_v29, %v1967_v25  ;;  %v1338_v37 = vadd.f32 %v1306_v28, %v1240_v43  ;;  %v1404_v40 = vmul.f32 %v5071_v21, %v1663_v34  ;;  %v1405_v33 = vmul.f32 %v5071_v21, %v1664_v58  ;;  %v1567_v21 = vld [vmem:[#allocation2 + $0x121] sm:$0xff] }
 0x108   : > { %v1339_v2 = vadd.f32 %v1307_v19, %v1241_v35  ;;  %v1799_v23 = vmul.f32 %v5121_v4, %v5301_v44  ;;  %v1800_v13 = vmul.f32 %v5121_v4, %v5304_v38  ;;  %v2176_v12 = vmul.f32 %v2144_v56, %v5520_v54  ;;  %v1665_v28 = vld [vmem:[#allocation2 + $0x122] sm:$0xff] }
 0x109   : > { %v5543_v16 = vadd.f32 %v5502_v0, %v2047_v9  ;;  %v1764_v30 = vmul.f32 %v5177_v8, %v1729_v53  ;;  %v1765_v11 = vmul.f32 %v5177_v8, %v1730_v57  ;;  %v1503_v34 = vmul.f32 %v5091_v10, %v1469_v27 }
 0x10a   : > { %v2177_v58 = vmul.f32 %v2145_v50, %v5523_v51  ;;  %v1436_v44 = vadd.f32 %v1404_v40, %v1338_v37  ;;  %v1437_v36 = vadd.f32 %v1405_v33, %v1339_v2  ;;  %v1504_v38 = vmul.f32 %v5091_v10, %v1470_v60 }
 0x10b   : > { %v2146_v6 = vmul.f32 0.044715, %v5543_v16  ;;  %v2208_v17 = vmul.f32 %v2176_v12, %v5520_v54  ;;  %v1601_v55 = vmul.f32 %v5100_v1, %v1567_v21  ;;  %v1831_v15 = vadd.f32 %v1799_v23, %v1764_v30 }
 0x10c   : > { %v2209_v49 = vmul.f32 %v2177_v58, %v5523_v51  ;;  %v1832_v45 = vadd.f32 %v1800_v13, %v1765_v11  ;;  %v1535_v35 = vadd.f32 %v1503_v34, %v1436_v44  ;;  %v1536_v19 = vadd.f32 %v1504_v38, %v1437_v36 }
 0x10d   : > { %v2178_v25 = vmul.f32 %v2146_v6, %v5543_v16  ;;  %v2240_v9 = vadd.f32 %v2208_v17, %v5520_v54  ;;  %v1602_v56 = vmul.f32 %v5100_v1, %v1568_v62  ;;  %v1699_v57 = vmul.f32 %v5112_v20, %v1665_v28 }
 0x10e   : > { %v1969_v14 = vpop.f32.mrf.mxu0  ;;  %v2241_v43 = vadd.f32 %v2209_v49, %v5523_v51  ;;  %v5578_v40 = vadd.f32 %v5200_v26, %v1831_v15  ;;  %v5581_v33 = vadd.f32 %v5200_v26, %v1832_v45  ;;  %v1633_v6 = vadd.f32 %v1601_v55, %v1535_v35 }
 0x10f   : > { %3537 = vmatmul.msk.bf16.gmra.mxu0 %vm832_vm0, %v1892_v61  ;;  %v2048_v18 = vmul.f32 %v5471_v29, %v1969_v14  ;;  %v1666_v61 = vld [vmem:[#allocation2 + $0x12a] sm:$0xff]  ;;  %v2272_v50 = vmul.f32 0.7978846, %v2240_v9  ;;  %v2210_v2 = vmul.f32 %v2178_v25, %v5543_v16  ;;  %v1634_v23 = vadd.f32 %v1602_v56, %v1536_v19 }
 0x110   : > { %v2273_v53 = vmul.f32 0.7978846, %v2241_v43  ;;  %v1700_v60 = vmul.f32 %v5112_v20, %v1666_v61  ;;  %v1893_v34 = vpack.c.bf16 %v5581_v33, %v5578_v40  ;;  %v1731_v20 = vadd.f32 %v1699_v57, %v1633_v6 }
 0x111   : > { %v5566_v39 = vadd.f32 %v5502_v0, %v2048_v18  ;;  %3703 = vtanh.f32 %v2272_v50  ;;  %v2242_v11 = vadd.f32 %v2210_v2, %v5543_v16  ;;  %v1801_v38 = vmul.f32 %v5121_v4, %v6319_v5 }
 0x112   : > { %3705 = vtanh.f32 %v2273_v53  ;;  %v1732_v21 = vadd.f32 %v1700_v60, %v1634_v23  ;;  %v1802_v49 = vmul.f32 %v5121_v4, %v6320_v3  ;;  %v2112_v55 = vmul.f32 0.5, %v5520_v54 }
 0x113   : > { %v2147_v10 = vmul.f32 0.044715, %v5566_v39  ;;  %v2274_v17 = vmul.f32 0.7978846, %v2242_v11  ;;  %v2113_v25 = vmul.f32 0.5, %v5523_v51  ;;  %v1766_v28 = vmul.f32 %v5177_v8, %v1731_v20 }
 0x114   : > { %v1767_v9 = vmul.f32 %v5177_v8, %v1732_v21  ;;  %v2115_v20 = vmul.f32 0.5, %v5566_v39 }
 0x115   : > { %v2179_v37 = vmul.f32 %v2147_v10, %v5566_v39  ;;  %v1833_v56 = vadd.f32 %v1801_v38, %v1766_v28 }
 0x116   : > { %v1972_v27 = vpop.f32.mrf.mxu0  ;;  %v1834_v8 = vadd.f32 %v1802_v49, %v1767_v9 }
 0x117   : > { %v2049_v1 = vmul.f32 %v5471_v29, %v1972_v27  ;;  %v2211_v12 = vmul.f32 %v2179_v37, %v5566_v39  ;;  %v3704_v58 = vpop.eup %3703  ;;  %v5621_v60 = vadd.f32 %v5200_v26, %v1833_v56 }
 0x118   : > { %v2017_v13 = vpop.f32.mrf.mxu3  ;;  %v3706_v44 = vpop.eup %3705  ;;  %v2336_v62 = vadd.f32 1.0, %v3704_v58 }
 0x119   : > { %v5587_v30 = vadd.f32 %v5502_v0, %v2049_v1  ;;  %v2243_v14 = vadd.f32 %v2211_v12, %v5566_v39  ;;  %v2337_v15 = vadd.f32 1.0, %v3706_v44  ;;  %v2067_v5 = vmul.f32 %v5471_v29, %v2017_v13 }
 0x11a   : > { %v2368_v35 = vmul.f32 %v2336_v62, %v2112_v55  ;;  %v5624_v1 = vadd.f32 %v5200_v26, %v1834_v8  ;;  %v2114_v44 = vmul.f32 0.5, %v5543_v16 }
 0x11b   : > { %v2275_v18 = vmul.f32 0.7978846, %v2243_v14  ;;  %v2148_v36 = vmul.f32 0.044715, %v5587_v30  ;;  %v2369_v4 = vmul.f32 %v2337_v15, %v2113_v25  ;;  %v5612_v50 = vadd.f32 %v5502_v0, %v2067_v5 }
 0x11c   : > { %v1894_v58 = vpack.c.bf16 %v5624_v1, %v5621_v60 }
 0x11d   : > { %3707 = vtanh.f32 %v2275_v18  ;;  %v2180_v51 = vmul.f32 %v2148_v36, %v5587_v30  ;;  %v2400_v19 = vpack.c.bf16 %v2369_v4, %v2368_v35  ;;  %v2166_v23 = vmul.f32 0.044715, %v5612_v50 }
 0x11e   : > { %v1974_v45 = vpop.f32.mrf.mxu0  ;;  %3709 = vtanh.f32 %v2274_v17 }
 0x11f   : > { %3538 = vmatmul.msk.bf16.gmra.mxu0 %vm832_vm0, %v1893_v34  ;;  %v2050_v43 = vmul.f32 %v5471_v29, %v1974_v45  ;;  %3549 = vmatmul.msk.bf16.vlgmr.msra.gmra.mxu1 %vm2424_vm3, %v2400_v19  ;;  %v2212_v2 = vmul.f32 %v2180_v51, %v5587_v30  ;;  %v2198_v38 = vmul.f32 %v2166_v23, %v5612_v50 }
 0x120   : > { %v2019_v10 = vpop.f32.mrf.mxu3 }
 0x121   : > { %v2068_v3 = vmul.f32 %v5471_v29, %v2019_v10  ;;  %v5607_v54 = vadd.f32 %v5502_v0, %v2050_v43  ;;  %v2244_v14 = vadd.f32 %v2212_v2, %v5587_v30  ;;  %v2230_v25 = vmul.f32 %v2198_v38, %v5612_v50 }
 0x123   : > { %v2149_v61 = vmul.f32 0.044715, %v5607_v54  ;;  %v5615_v53 = vadd.f32 %v5502_v0, %v2068_v3  ;;  %v3708_v57 = vpop.eup %3707  ;;  %v2276_v49 = vmul.f32 0.7978846, %v2244_v14  ;;  %v2262_v9 = vadd.f32 %v2230_v25, %v5612_v50 }
 0x124   : > { %v3710_v27 = vpop.eup %3709  ;;  %v2339_v11 = vadd.f32 1.0, %v3708_v57  ;;  %v2116_v14 = vmul.f32 0.5, %v5587_v30 }
 0x125   : > { %v2181_v37 = vmul.f32 %v2149_v61, %v5607_v54  ;;  %v2167_v13 = vmul.f32 0.044715, %v5615_v53  ;;  %v2338_v21 = vadd.f32 1.0, %v3710_v27  ;;  %v2294_v35 = vmul.f32 0.7978846, %v2262_v9 }
 0x126   : > { %v2371_v36 = vmul.f32 %v2339_v11, %v2115_v20 }
 0x127   : > { %v2213_v6 = vmul.f32 %v2181_v37, %v5607_v54  ;;  %v2199_v62 = vmul.f32 %v2167_v13, %v5615_v53  ;;  %v2370_v55 = vmul.f32 %v2338_v21, %v2114_v44 }
 0x128   : > { %v2022_v12 = vpop.f32.mrf.mxu3 }
 0x129   : > { %v2245_v34 = vadd.f32 %v2213_v6, %v5607_v54  ;;  %v2231_v39 = vmul.f32 %v2199_v62, %v5615_v53  ;;  %v2069_v16 = vmul.f32 %v5471_v29, %v2022_v12  ;;  %v2401_v28 = vpack.c.bf16 %v2371_v36, %v2370_v55 }
 0x12b   : > { %v2277_v26 = vmul.f32 0.7978846, %v2245_v34  ;;  %v2263_v43 = vadd.f32 %v2231_v39, %v5615_v53  ;;  %v5651_v51 = vadd.f32 %v5502_v0, %v2069_v16  ;;  %v2117_v34 = vmul.f32 0.5, %v5607_v54 }
 0x12c   : > { %v1977_v18 = vpop.f32.mrf.mxu0 }
 0x12d   : > { %v2051_v17 = vmul.f32 %v5471_v29, %v1977_v18  ;;  %3711 = vtanh.f32 %v2277_v26  ;;  %v2295_v4 = vmul.f32 0.7978846, %v2263_v43  ;;  %v2168_v27 = vmul.f32 0.044715, %v5651_v51 }
 0x12e   : > { %3713 = vtanh.f32 %v2276_v49  ;;  %v2135_v26 = vmul.f32 0.5, %v5615_v53 }
 0x12f   : > { %3539 = vmatmul.msk.bf16.gmra.mxu0 %vm832_vm0, %v1894_v58  ;;  %v5642_v15 = vadd.f32 %v5502_v0, %v2051_v17  ;;  %3550 = vmatmul.msk.bf16.gmra.mxu1 %vm2424_vm3, %v2401_v28  ;;  %3715 = vtanh.f32 %v2294_v35  ;;  %v2134_v58 = vmul.f32 0.5, %v5612_v50  ;;  %v2200_v17 = vmul.f32 %v2168_v27, %v5651_v51 }
 0x130   : > { %v2024_v45 = vpop.f32.mrf.mxu3  ;;  %3717 = vtanh.f32 %v2295_v4 }
 0x131   : > { %v2070_v5 = vmul.f32 %v5471_v29, %v2024_v45  ;;  %v2150_v10 = vmul.f32 0.044715, %v5642_v15  ;;  %v2232_v16 = vmul.f32 %v2200_v17, %v5651_v51 }
 0x133   : > { %v2182_v3 = vmul.f32 %v2150_v10, %v5642_v15  ;;  %v5654_v19 = vadd.f32 %v5502_v0, %v2070_v5  ;;  %v3712_v8 = vpop.eup %3711  ;;  %v2264_v9 = vadd.f32 %v2232_v16, %v5651_v51 }
 0x134   : > { %v1979_v56 = vpop.f32.mrf.mxu0  ;;  %v3714_v37 = vpop.eup %3713  ;;  %v2341_v23 = vadd.f32 1.0, %v3712_v8 }
 0x135   : > { %v2052_v61 = vmul.f32 %v5471_v29, %v1979_v56  ;;  %v2214_v57 = vmul.f32 %v2182_v3, %v5642_v15  ;;  %v2169_v6 = vmul.f32 0.044715, %v5654_v19  ;;  %v3716_v11 = vpop.eup %3715  ;;  %v2340_v20 = vadd.f32 1.0, %v3714_v37 }
 0x136   : > { %v3718_v21 = vpop.eup %3717  ;;  %v2358_v18 = vadd.f32 1.0, %v3716_v11  ;;  %v2373_v38 = vmul.f32 %v2341_v23, %v2117_v34  ;;  %v2296_v3 = vmul.f32 0.7978846, %v2264_v9  ;;  %v2137_v17 = vmul.f32 0.5, %v5654_v19 }
 0x137   : > { %v2087_v2 = vadd.f32 %v5502_v0, %v2052_v61  ;;  %v2246_v12 = vadd.f32 %v2214_v57, %v5642_v15  ;;  %v2359_v62 = vadd.f32 1.0, %v3718_v21  ;;  %v2201_v49 = vmul.f32 %v2169_v6, %v5654_v19 }
 0x138   : > { %v2390_v55 = vmul.f32 %v2358_v18, %v2134_v58  ;;  %v2372_v39 = vmul.f32 %v2340_v20, %v2116_v14 }
 0x139   : > { %v2151_v13 = vmul.f32 0.044715, %v2087_v2  ;;  %v2278_v30 = vmul.f32 0.7978846, %v2246_v12  ;;  %v2391_v54 = vmul.f32 %v2359_v62, %v2135_v26  ;;  %v2233_v50 = vmul.f32 %v2201_v49, %v5654_v19 }
 0x13a   : > { %v2402_v53 = vpack.c.bf16 %v2373_v38, %v2372_v39  ;;  %v2119_v20 = vmul.f32 0.5, %v2087_v2  ;;  %v2118_v38 = vmul.f32 0.5, %v5642_v15  ;;  %v2136_v62 = vmul.f32 0.5, %v5651_v51 }
 0x13b   : > { %v2183_v44 = vmul.f32 %v2151_v13, %v2087_v2  ;;  %v2411_v28 = vpack.c.bf16 %v2391_v54, %v2390_v55  ;;  %v2265_v43 = vadd.f32 %v2233_v50, %v5654_v19  ;;  %3719 = vtanh.f32 %v2278_v30 }
 0x13d   : > { %v2027_v36 = vpop.f32.mrf.mxu3  ;;  %v2215_v25 = vmul.f32 %v2183_v44, %v2087_v2  ;;  %3560 = vmatmul.msk.bf16.vlgmr.msra.gmra.mxu2 %vm2424_vm3, %v2411_v28  ;;  %v2297_v56 = vmul.f32 0.7978846, %v2265_v43 }
 0x13e   : > { %v2071_v5 = vmul.f32 %v5471_v29, %v2027_v36 }
 0x13f   : > { %v2247_v45 = vadd.f32 %v2215_v25, %v2087_v2  ;;  %3551 = vmatmul.msk.bf16.gmra.mxu1 %vm2424_vm3, %v2402_v53 }
 0x140   : > { %v5681_v57 = vadd.f32 %v5502_v0, %v2071_v5 }
 0x141   : > { %v1982_v10 = vpop.f32.mrf.mxu0  ;;  %v2279_v35 = vmul.f32 0.7978846, %v2247_v45  ;;  %v3720_v6 = vpop.eup %3719 }
 0x142   : > { %v2053_v4 = vmul.f32 %v5471_v29, %v1982_v10  ;;  %v2170_v11 = vmul.f32 0.044715, %v5681_v57  ;;  %v2342_v26 = vadd.f32 1.0, %v3720_v6 }
 0x143   : > { %3721 = vtanh.f32 %v2279_v35 }
 0x144   : > { %v5677_v61 = vadd.f32 %v5502_v0, %v2053_v4  ;;  %3723 = vtanh.f32 %v2296_v3  ;;  %v2202_v54 = vmul.f32 %v2170_v11, %v5681_v57  ;;  %v2374_v45 = vmul.f32 %v2342_v26, %v2118_v38 }
 0x145   : > { %v2029_v8 = vpop.f32.mrf.mxu3  ;;  %3725 = vtanh.f32 %v2297_v56 }
 0x146   : > { %v2072_v37 = vmul.f32 %v5471_v29, %v2029_v8  ;;  %v2152_v27 = vmul.f32 0.044715, %v5677_v61  ;;  %v2234_v15 = vmul.f32 %v2202_v54, %v5681_v57 }
 0x148   : > { %v2107_v23 = vadd.f32 %v5502_v0, %v2072_v37  ;;  %v2184_v13 = vmul.f32 %v2152_v27, %v5677_v61  ;;  %v2266_v5 = vadd.f32 %v2234_v15, %v5681_v57 }
 0x149   : > { %v3722_v12 = vpop.eup %3721  ;;  %v1984_v34 = vpop.f32.mrf.mxu0 }
 0x14a   : > { %v2171_v14 = vmul.f32 0.044715, %v2107_v23  ;;  %v3724_v21 = vpop.eup %3723  ;;  %v2054_v58 = vmul.f32 %v5471_v29, %v1984_v34  ;;  %v2343_v18 = vadd.f32 1.0, %v3722_v12  ;;  %v2216_v44 = vmul.f32 %v2184_v13, %v5677_v61 }
 0x14b   : > { %v3726_v36 = vpop.eup %3725  ;;  %v2360_v49 = vadd.f32 1.0, %v3724_v21  ;;  %v2298_v56 = vmul.f32 0.7978846, %v2266_v5 }
 0x14c   : > { %v2089_v55 = vadd.f32 %v5502_v0, %v2054_v58  ;;  %v2375_v25 = vmul.f32 %v2343_v18, %v2119_v20  ;;  %v2361_v30 = vadd.f32 1.0, %v3726_v36  ;;  %v2248_v2 = vadd.f32 %v2216_v44, %v5677_v61 }
 0x14d   : > { %v2392_v39 = vmul.f32 %v2360_v49, %v2136_v62  ;;  %v2203_v16 = vmul.f32 %v2171_v14, %v2107_v23  ;;  %v2138_v36 = vmul.f32 0.5, %v5681_v57 }
 0x14e   : > { %v2153_v50 = vmul.f32 0.044715, %v2089_v55  ;;  %v2393_v53 = vmul.f32 %v2361_v30, %v2137_v17  ;;  %v2280_v28 = vmul.f32 0.7978846, %v2248_v2  ;;  %v2403_v9 = vpack.c.bf16 %v2375_v25, %v2374_v45 }
 0x14f   : > { %v2235_v51 = vmul.f32 %v2203_v16, %v2107_v23  ;;  %v2139_v17 = vmul.f32 0.5, %v2107_v23  ;;  %v2121_v15 = vmul.f32 0.5, %v2089_v55 }
 0x150   : > { %v2412_v19 = vpack.c.bf16 %v2393_v53, %v2392_v39  ;;  %v2185_v43 = vmul.f32 %v2153_v50, %v2089_v55  ;;  %3727 = vtanh.f32 %v2280_v28  ;;  %3552 = vmatmul.msk.bf16.gmra.mxu1 %vm2424_vm3, %v2403_v9  ;;  %v2120_v50 = vmul.f32 0.5, %v5677_v61 }
 0x151   : > { %v2267_v10 = vadd.f32 %v2235_v51, %v2107_v23  ;;  %3729 = vtanh.f32 %v2298_v56 }
 0x152   : > { %v2032_v35 = vpop.f32.mrf.mxu3  ;;  %3561 = vmatmul.msk.bf16.gmra.mxu2 %vm2424_vm3, %v2412_v19  ;;  %v2217_v4 = vmul.f32 %v2185_v43, %v2089_v55 }
 0x153   : > { %v2073_v3 = vmul.f32 %v5471_v29, %v2032_v35  ;;  %v2299_v8 = vmul.f32 0.7978846, %v2267_v10 }
 0x154   : > { %v2249_v37 = vadd.f32 %v2217_v4, %v2089_v55 }
 0x155   : > { %v2108_v27 = vadd.f32 %v5502_v0, %v2073_v3  ;;  %3731 = vtanh.f32 %v2299_v8 }
 0x156   : > { %v2281_v13 = vmul.f32 0.7978846, %v2249_v37  ;;  %v3728_v14 = vpop.eup %3727 }
 0x157   : > { %v1987_v6 = vpop.f32.mrf.mxu0  ;;  %v2172_v12 = vmul.f32 0.044715, %v2108_v27  ;;  %v3730_v58 = vpop.eup %3729  ;;  %v2344_v62 = vadd.f32 1.0, %v3728_v14 }
 0x158   : > { %v2055_v11 = vmul.f32 %v5471_v29, %v1987_v6  ;;  %3733 = vtanh.f32 %v2281_v13  ;;  %v2362_v49 = vadd.f32 1.0, %v3730_v58 }
 0x159   : > { %v2204_v34 = vmul.f32 %v2172_v12, %v2108_v27  ;;  %v2376_v5 = vmul.f32 %v2344_v62, %v2120_v50 }
 0x15a   : > { %v5704_v20 = vadd.f32 %v5502_v0, %v2055_v11  ;;  %v2034_v21 = vpop.f32.mrf.mxu3  ;;  %v2394_v45 = vmul.f32 %v2362_v49, %v2138_v36 }
 0x15b   : > { %v2236_v26 = vmul.f32 %v2204_v34, %v2108_v27  ;;  %v2074_v18 = vmul.f32 %v5471_v29, %v2034_v21  ;;  %v3732_v38 = vpop.eup %3731 }
 0x15c   : > { %v2154_v44 = vmul.f32 0.044715, %v5704_v20  ;;  %v2363_v2 = vadd.f32 1.0, %v3732_v38 }
 0x15d   : > { %v2109_v25 = vadd.f32 %v5502_v0, %v2074_v18  ;;  %v2268_v30 = vadd.f32 %v2236_v26, %v2108_v27 }
 0x15e   : > { %v2186_v39 = vmul.f32 %v2154_v44, %v5704_v20  ;;  %v3734_v54 = vpop.eup %3733  ;;  %v2395_v9 = vmul.f32 %v2363_v2, %v2139_v17  ;;  %v2140_v44 = vmul.f32 0.5, %v2108_v27 }
 0x15f   : > { %v1989_v16 = vpop.f32.mrf.mxu0  ;;  %v2173_v53 = vmul.f32 0.044715, %v2109_v25  ;;  %v2345_v57 = vadd.f32 1.0, %v3734_v54  ;;  %v2300_v51 = vmul.f32 0.7978846, %v2268_v30  ;;  %v2141_v17 = vmul.f32 0.5, %v2109_v25 }
 0x160   : > { %v2056_v28 = vmul.f32 %v5471_v29, %v1989_v16  ;;  %v2218_v23 = vmul.f32 %v2186_v39, %v5704_v20  ;;  %v2413_v35 = vpack.c.bf16 %v2395_v9, %v2394_v45 }
 0x161   : > { %v2205_v19 = vmul.f32 %v2173_v53, %v2109_v25  ;;  %v2377_v10 = vmul.f32 %v2345_v57, %v2121_v15  ;;  %3735 = vtanh.f32 %v2300_v51 }
 0x162   : > { %v2091_v43 = vadd.f32 %v5502_v0, %v2056_v28  ;;  %v2250_v4 = vadd.f32 %v2218_v23, %v5704_v20  ;;  %3562 = vmatmul.msk.bf16.gmra.mxu2 %vm2424_vm3, %v2413_v35 }
 0x163   : > { %v2237_v3 = vmul.f32 %v2205_v19, %v2109_v25  ;;  %v2404_v56 = vpack.c.bf16 %v2377_v10, %v2376_v5 }
 0x164   : > { %v2155_v61 = vmul.f32 0.044715, %v2091_v43  ;;  %v2282_v55 = vmul.f32 0.7978846, %v2250_v4  ;;  %v2123_v10 = vmul.f32 0.5, %v2091_v43 }
 0x165   : > { %3553 = vmatmul.msk.bf16.gmra.mxu1 %vm2424_vm3, %v2404_v56  ;;  %v2269_v8 = vadd.f32 %v2237_v3, %v2109_v25  ;;  %v2122_v25 = vmul.f32 0.5, %v5704_v20 }
 0x166   : > { %v2187_v37 = vmul.f32 %v2155_v61, %v2091_v43  ;;  %3737 = vtanh.f32 %v2282_v55 }
 0x167   : > { %v2037_v6 = vpop.f32.mrf.mxu3  ;;  %v2301_v13 = vmul.f32 0.7978846, %v2269_v8  ;;  %v3736_v14 = vpop.eup %3735 }
 0x168   : > { %v2219_v12 = vmul.f32 %v2187_v37, %v2091_v43  ;;  %v2075_v11 = vmul.f32 %v5471_v29, %v2037_v6  ;;  %v2364_v36 = vadd.f32 1.0, %v3736_v14 }
 0x169   : > { %3739 = vtanh.f32 %v2301_v13 }
 0x16a   : > { %v2251_v34 = vadd.f32 %v2219_v12, %v2091_v43  ;;  %v2110_v21 = vadd.f32 %v5502_v0, %v2075_v11  ;;  %v2396_v50 = vmul.f32 %v2364_v36, %v2140_v44 }
 0x16c   : > { %v2283_v58 = vmul.f32 0.7978846, %v2251_v34  ;;  %v2174_v26 = vmul.f32 0.044715, %v2110_v21  ;;  %v1992_v18 = vpop.f32.mrf.mxu0  ;;  %v3738_v62 = vpop.eup %3737 }
 0x16d   : > { %v2057_v38 = vmul.f32 %v5471_v29, %v1992_v18  ;;  %v2346_v15 = vadd.f32 1.0, %v3738_v62 }
 0x16e   : > { %3741 = vtanh.f32 %v2283_v58  ;;  %v2206_v49 = vmul.f32 %v2174_v26, %v2110_v21 }
 0x16f   : > { %v3740_v30 = vpop.eup %3739  ;;  %v2039_v2 = vpop.f32.mrf.mxu3  ;;  %v5722_v39 = vadd.f32 %v5502_v0, %v2057_v38  ;;  %v2378_v56 = vmul.f32 %v2346_v15, %v2122_v25 }
 0x170   : > { %v2076_v54 = vmul.f32 %v5471_v29, %v2039_v2  ;;  %v2365_v16 = vadd.f32 1.0, %v3740_v30  ;;  %v2238_v45 = vmul.f32 %v2206_v49, %v2110_v21 }
 0x171   : > { %v2156_v53 = vmul.f32 0.044715, %v5722_v39 }
 0x172   : > { %v2111_v27 = vadd.f32 %v5502_v0, %v2076_v54  ;;  %v2397_v28 = vmul.f32 %v2365_v16, %v2141_v17  ;;  %v2270_v57 = vadd.f32 %v2238_v45, %v2110_v21  ;;  %v2142_v17 = vmul.f32 0.5, %v2110_v21 }
 0x173   : > { %v2188_v9 = vmul.f32 %v2156_v53, %v5722_v39 }
 0x174   : > { %v3742_v51 = vpop.eup %3741  ;;  %v2175_v23 = vmul.f32 0.044715, %v2111_v27  ;;  %v1994_v19 = vpop.f32.mrf.mxu0  ;;  %v2414_v5 = vpack.c.bf16 %v2397_v28, %v2396_v50  ;;  %v2302_v3 = vmul.f32 0.7978846, %v2270_v57  ;;  %v2143_v2 = vmul.f32 0.5, %v2111_v27 }
 0x175   : > { %v2347_v35 = vadd.f32 1.0, %v3742_v51  ;;  %v2058_v4 = vmul.f32 %v5471_v29, %v1994_v19  ;;  %v2220_v61 = vmul.f32 %v2188_v9, %v5722_v39 }
 0x176   : > { %3563 = vmatmul.msk.bf16.vlgmr.msrb.gmra.mxu3 %vm2424_vm3, %v2414_v5  ;;  %v2207_v8 = vmul.f32 %v2175_v23, %v2111_v27  ;;  %3743 = vtanh.f32 %v2302_v3 }
 0x177   : > { %v2379_v55 = vmul.f32 %v2347_v35, %v2123_v10  ;;  %v2093_v37 = vadd.f32 %v5502_v0, %v2058_v4  ;;  %v2252_v20 = vadd.f32 %v2220_v61, %v5722_v39 }
 0x178   : > { %v2239_v13 = vmul.f32 %v2207_v8, %v2111_v27 }
 0x179   : > { %v2405_v6 = vpack.c.bf16 %v2379_v55, %v2378_v56  ;;  %v2157_v12 = vmul.f32 0.044715, %v2093_v37  ;;  %v2284_v14 = vmul.f32 0.7978846, %v2252_v20  ;;  %v2125_v10 = vmul.f32 0.5, %v2093_v37 }
 0x17a   : > { %v2271_v43 = vadd.f32 %v2239_v13, %v2111_v27  ;;  %v2124_v27 = vmul.f32 0.5, %v5722_v39 }
 0x17b   : > { %3554 = vmatmul.msk.bf16.gmra.mxu1 %vm2424_vm3, %v2405_v6  ;;  %v2189_v11 = vmul.f32 %v2157_v12, %v2093_v37 }
 0x17c   : > { %v1997_v34 = vpop.f32.mrf.mxu0  ;;  %v2303_v58 = vmul.f32 0.7978846, %v2271_v43  ;;  %v3744_v44 = vpop.eup %3743 }
 0x17d   : > { %v2059_v26 = vmul.f32 %v5471_v29, %v1997_v34  ;;  %v2221_v18 = vmul.f32 %v2189_v11, %v2093_v37  ;;  %v2366_v49 = vadd.f32 1.0, %v3744_v44 }
 0x17e   : > { %3745 = vtanh.f32 %v2303_v58 }
 0x17f   : > { %v2094_v36 = vadd.f32 %v5502_v0, %v2059_v26  ;;  %v2253_v38 = vadd.f32 %v2221_v18, %v2093_v37  ;;  %3747 = vtanh.f32 %v2284_v14  ;;  %v2398_v15 = vmul.f32 %v2366_v49, %v2142_v17 }
 0x181   : > { %v2158_v62 = vmul.f32 0.044715, %v2094_v36  ;;  %v2285_v30 = vmul.f32 0.7978846, %v2253_v38  ;;  %v2126_v17 = vmul.f32 0.5, %v2094_v36 }
 0x183   : > { %3749 = vtanh.f32 %v2285_v30  ;;  %v2190_v54 = vmul.f32 %v2158_v62, %v2094_v36 }
 0x184   : > { %v3746_v16 = vpop.eup %3745  ;;  %v1999_v50 = vpop.f32.mrf.mxu0 }
 0x185   : > { %v3748_v45 = vpop.eup %3747  ;;  %v2060_v53 = vmul.f32 %v5471_v29, %v1999_v50  ;;  %v2367_v28 = vadd.f32 1.0, %v3746_v16  ;;  %v2222_v57 = vmul.f32 %v2190_v54, %v2094_v36 }
 0x186   : > { %v2348_v23 = vadd.f32 1.0, %v3748_v45 }
 0x187   : > { %v2095_v51 = vadd.f32 %v5502_v0, %v2060_v53  ;;  %v2399_v25 = vmul.f32 %v2367_v28, %v2143_v2  ;;  %v2254_v9 = vadd.f32 %v2222_v57, %v2094_v36  ;;  %v5750_v57 = vld [vmem:[%s6160_s9] ss:$0 sm:$0xff] }
 0x188   : > { %v2380_v56 = vmul.f32 %v2348_v23, %v2124_v27 }
 0x189   : > { %v3750_v19 = vpop.eup %3749  ;;  %v2159_v21 = vmul.f32 0.044715, %v2095_v51  ;;  %v2415_v5 = vpack.c.bf16 %v2399_v25, %v2398_v15  ;;  %v2286_v3 = vmul.f32 0.7978846, %v2254_v9  ;;  %v2127_v49 = vmul.f32 0.5, %v2095_v51 }
 0x18a   : > { %v2349_v35 = vadd.f32 1.0, %v3750_v19 }
 0x18b   : > { %3564 = vmatmul.msk.bf16.gmra.mxu3 %vm2424_vm3, %v2415_v5  ;;  %v2191_v4 = vmul.f32 %v2159_v21, %v2095_v51  ;;  %3751 = vtanh.f32 %v2286_v3 }
 0x18c   : > { %v2002_v61 = vpop.f32.mrf.mxu0  ;;  %v2381_v55 = vmul.f32 %v2349_v35, %v2125_v10 }
 0x18d   : > { %v2061_v8 = vmul.f32 %v5471_v29, %v2002_v61  ;;  %v2223_v20 = vmul.f32 %v2191_v4, %v2095_v51  ;;  %v6321_v61 = vld [vmem:[#allocation17_spill] sm:$0xff] }
 0x18e   : > { %v2406_v6 = vpack.c.bf16 %v2381_v55, %v2380_v56 }
 0x18f   : > { %v2096_v13 = vadd.f32 %v5502_v0, %v2061_v8  ;;  %v2255_v12 = vadd.f32 %v2223_v20, %v2095_v51  ;;  %v5759_v51 = vld [vmem:[%s6161_s10] ss:$0 sm:$0xff] }
 0x190   : > { %3555 = vmatmul.msk.bf16.gmra.mxu1 %vm2424_vm3, %v2406_v6 }
 0x191   : > { %v2160_v39 = vmul.f32 0.044715, %v2096_v13  ;;  %v2287_v37 = vmul.f32 0.7978846, %v2255_v12  ;;  %v3752_v14 = vpop.eup %3751 }
 0x192   : > { %v2350_v44 = vadd.f32 1.0, %v3752_v14 }
 0x193   : > { %3753 = vtanh.f32 %v2287_v37  ;;  %v2192_v43 = vmul.f32 %v2160_v39, %v2096_v13  ;;  %v2128_v37 = vmul.f32 0.5, %v2096_v13 }
 0x194   : > { %v2004_v11 = vpop.f32.mrf.mxu0  ;;  %v2382_v50 = vmul.f32 %v2350_v44, %v2126_v17 }
 0x195   : > { %v2062_v34 = vmul.f32 %v5471_v29, %v2004_v11  ;;  %v2224_v58 = vmul.f32 %v2192_v43, %v2096_v13 }
 0x197   : > { %v2097_v26 = vadd.f32 %v5502_v0, %v2062_v34  ;;  %v2256_v18 = vadd.f32 %v2224_v58, %v2096_v13 }
 0x199   : > { %v3754_v38 = vpop.eup %3753  ;;  %v2161_v62 = vmul.f32 0.044715, %v2097_v26  ;;  %v2288_v54 = vmul.f32 0.7978846, %v2256_v18  ;;  %v2129_v43 = vmul.f32 0.5, %v2097_v26 }
 0x19a   : > { %v2351_v30 = vadd.f32 1.0, %v3754_v38 }
 0x19b   : > { %v2193_v2 = vmul.f32 %v2161_v62, %v2097_v26  ;;  %3755 = vtanh.f32 %v2288_v54  ;;  %v3795_v62 = vld [vmem:[%s6317_s24] ss:$0 sm:$0xff] }
 0x19c   : > { %v2007_v16 = vpop.f32.mrf.mxu0  ;;  %v2383_v45 = vmul.f32 %v2351_v30, %v2127_v49  ;;  %v2482_v23 = vpop.f32.mrf.mxu1 }
 0x19d   : > { %v2063_v53 = vmul.f32 %v5471_v29, %v2007_v16  ;;  %v2225_v28 = vmul.f32 %v2193_v2, %v2097_v26  ;;  %v2565_v21 = vmul.f32 %v5750_v57, %v2482_v23  ;;  %v6322_v2 = vld [vmem:[#allocation18_spill] sm:$0xff] }
 0x19e   : > { %v2407_v15 = vpack.c.bf16 %v2383_v45, %v2382_v50 }
 0x19f   : > { %v5753_v25 = vadd.f32 %v5502_v0, %v2063_v53  ;;  %v2257_v36 = vadd.f32 %v2225_v28, %v2097_v26  ;;  %v2600_v10 = vadd.f32 %v5759_v51, %v2565_v21 }
 0x1a0   : > { %3556 = vmatmul.msk.bf16.gmra.mxu1 %vm2424_vm3, %v2407_v15 }
 0x1a1   : > { %v2162_v9 = vmul.f32 0.044715, %v5753_v25  ;;  %v2289_v19 = vmul.f32 0.7978846, %v2257_v36  ;;  %v3756_v35 = vpop.eup %3755  ;;  %v2632_v56 = vadd.f32 %v2600_v10, %v6321_v61 }
 0x1a2   : > { %v2352_v20 = vadd.f32 1.0, %v3756_v35 }
 0x1a3   : > { %3757 = vtanh.f32 %v2289_v19  ;;  %v2194_v5 = vmul.f32 %v2162_v9, %v5753_v25  ;;  %2664 = vst.msk [vmem:[#allocation2 + $0x19] sm:$0xff] %vm832_vm0, %v2632_v56  ;;  %v2130_v56 = vmul.f32 0.5, %v5753_v25 }
 0x1a4   : > { %v2009_v27 = vpop.f32.mrf.mxu0  ;;  %v2484_v39 = vpop.f32.mrf.mxu1  ;;  %v2384_v18 = vmul.f32 %v2352_v20, %v2128_v37 }
 0x1a5   : > { %v2064_v4 = vmul.f32 %v5471_v29, %v2009_v27  ;;  %v2226_v3 = vmul.f32 %v2194_v5, %v5753_v25  ;;  %v2566_v14 = vmul.f32 %v5750_v57, %v2484_v39  ;;  %v3796_v5 = vld [vmem:[%s6318_s3] ss:$0 sm:$0xff] }
 0x1a7   : > { %v2099_v55 = vadd.f32 %v5502_v0, %v2064_v4  ;;  %v2258_v8 = vadd.f32 %v2226_v3, %v5753_v25  ;;  %v2601_v38 = vadd.f32 %v5759_v51, %v2566_v14 }
 0x1a9   : > { %v3758_v6 = vpop.eup %3757  ;;  %v2163_v12 = vmul.f32 0.044715, %v2099_v55  ;;  %v2290_v34 = vmul.f32 0.7978846, %v2258_v8  ;;  %v2633_v13 = vadd.f32 %v2601_v38, %v6322_v2  ;;  %v2131_v8 = vmul.f32 0.5, %v2099_v55 }
 0x1aa   : > { %v2353_v11 = vadd.f32 1.0, %v3758_v6 }
 0x1ab   : > { %v2195_v29 = vmul.f32 %v2163_v12, %v2099_v55  ;;  %3759 = vtanh.f32 %v2290_v34  ;;  %2665 = vst.msk [vmem:[#allocation2 + $0x21] sm:$0xff] %vm832_vm0, %v2633_v13  ;;  %v6324_v34 = vld [vmem:[#allocation34_spill] sm:$0xff]  ;;  %v5800_v13 = vld [vmem:[%s6162_s11] ss:$0 sm:$0xff] }
 0x1ac   : > { %v2012_v58 = vpop.f32.mrf.mxu0  ;;  %v2385_v44 = vmul.f32 %v2353_v11, %v2129_v43  ;;  %v2487_v50 = vpop.f32.mrf.mxu1 }
 0x1ad   : > { %v2065_v17 = vmul.f32 %v3795_v62, %v2012_v58  ;;  %v2227_v49 = vmul.f32 %v2195_v29, %v2099_v55  ;;  %v2567_v53 = vmul.f32 %v5750_v57, %v2487_v50  ;;  %v2698_v50 = vld [vmem:[#allocation2] ss:$2 sm:$0xff] }
 0x1ae   : > { %v2408_v30 = vpack.c.bf16 %v2385_v44, %v2384_v18 }
 0x1af   : > { %v2100_v26 = vadd.f32 %v5502_v0, %v2065_v17  ;;  %v2259_v54 = vadd.f32 %v2227_v49, %v2099_v55  ;;  %v2602_v36 = vadd.f32 %v5759_v51, %v2567_v53  ;;  %v6323_v0 = vld [vmem:[#allocation33_spill] sm:$0xff]  ;;  %v6325_v49 = vld [vmem:[#allocation38_spill] sm:$0xff] }
 0x1b0   : > { %3557 = vmatmul.msk.bf16.gmra.mxu1 %vm2424_vm3, %v2408_v30 }
 0x1b1   : > { %v2164_v16 = vmul.f32 0.044715, %v2100_v26  ;;  %v2291_v45 = vmul.f32 0.7978846, %v2259_v54  ;;  %v3760_v9 = vpop.eup %3759  ;;  %v2634_v21 = vadd.f32 %v2602_v36, %v6323_v0  ;;  %v2732_v36 = vld [vmem:[#allocation2 + $0x1] ss:$2 sm:$0xff] }
 0x1b2   : > { %v2354_v35 = vadd.f32 1.0, %v3760_v9  ;;  %v6326_v0 = vld [vmem:[#allocation37_spill] sm:$0xff] }
 0x1b3   : > { %3761 = vtanh.f32 %v2291_v45  ;;  %v2196_v28 = vmul.f32 %v2164_v16, %v2100_v26  ;;  %2666 = vst.msk [vmem:[#allocation2 + $0x31] sm:$0xff] %vm832_vm0, %v2634_v21  ;;  %v5807_v45 = vld [vmem:[%s6162_s11 + $0x1] ss:$0 sm:$0xff] }
 0x1b4   : > { %v2014_v15 = vpop.f32.mrf.mxu0  ;;  %v2489_v61 = vpop.f32.mrf.mxu1  ;;  %v2386_v37 = vmul.f32 %v2354_v35, %v2130_v56 }
 0x1b5   : > { %v2066_v23 = vmul.f32 %v3795_v62, %v2014_v15  ;;  %v2228_v19 = vmul.f32 %v2196_v28, %v2100_v26  ;;  %v2568_v6 = vmul.f32 %v5750_v57, %v2489_v61  ;;  %v2132_v28 = vmul.f32 0.5, %v2100_v26  ;;  %v2766_v61 = vld [vmem:[#allocation2 + $0x2] ss:$2 sm:$0xff] }
 0x1b7   : > { %v2101_v27 = vadd.f32 %v3796_v5, %v2066_v23  ;;  %v2260_v10 = vadd.f32 %v2228_v19, %v2100_v26  ;;  %v2603_v11 = vadd.f32 %v5759_v51, %v2568_v6  ;;  %v2715_v5 = vmul.f32 %v5800_v13, %v2698_v50  ;;  %v5818_v26 = vld [vmem:[%s6162_s11 + $0x2] ss:$0 sm:$0xff] }
 0x1b9   : > { %v3762_v4 = vpop.eup %3761  ;;  %v2165_v3 = vmul.f32 0.044715, %v2101_v27  ;;  %v2292_v39 = vmul.f32 0.7978846, %v2260_v10  ;;  %v2635_v58 = vadd.f32 %v2603_v11, %v6324_v34  ;;  %v2133_v9 = vmul.f32 0.5, %v2101_v27  ;;  %v6328_v34 = vld [vmem:[#allocation41_spill] sm:$0xff] }
 0x1ba   : > { %v2355_v20 = vadd.f32 1.0, %v3762_v4 }
 0x1bb   : > { %v2197_v12 = vmul.f32 %v2165_v3, %v2101_v27  ;;  %3763 = vtanh.f32 %v2292_v39  ;;  %2667 = vst.msk [vmem:[#allocation2 + $0x39] sm:$0xff] %vm832_vm0, %v2635_v58  ;;  %v2749_v3 = vmul.f32 %v5807_v45, %v2732_v36  ;;  %v5850_v36 = vld [vmem:[%s6162_s11 + $0x5] ss:$0 sm:$0xff] }
 0x1bc   : > { %v2387_v43 = vmul.f32 %v2355_v20, %v2131_v8  ;;  %v2492_v25 = vpop.f32.mrf.mxu1  ;;  %v6327_v8 = vld [vmem:[#allocation42_spill] sm:$0xff] }
 0x1bd   : > { %v2229_v14 = vmul.f32 %v2197_v12, %v2101_v27  ;;  %v2569_v44 = vmul.f32 %v5750_v57, %v2492_v25  ;;  %v2757_v39 = vadd.f32 %v2749_v3, %v2715_v5  ;;  %v2867_v5 = vld [vmem:[#allocation2 + $0x1a] ss:$2 sm:$0xff] }
 0x1be   : > { %v2409_v29 = vpack.c.bf16 %v2387_v43, %v2386_v37  ;;  %v2783_v37 = vmul.f32 %v5818_v26, %v2766_v61  ;;  %v5829_v43 = vld [vmem:[%s6162_s11 + $0x3] ss:$0 sm:$0xff] }
 0x1bf   : > { %v2261_v18 = vadd.f32 %v2229_v14, %v2101_v27  ;;  %v2604_v38 = vadd.f32 %v5759_v51, %v2569_v44  ;;  %v2799_v14 = vld [vmem:[#allocation2 + $0x18] ss:$2 sm:$0xff] }
 0x1c0   : > { %3558 = vmatmul.msk.bf16.gmra.mxu1 %vm2424_vm3, %v2409_v29  ;;  %v2537_v17 = vpop.f32.mrf.mxu2  ;;  %v2791_v44 = vadd.f32 %v2783_v37, %v2757_v39 }
 0x1c1   : > { %v2293_v55 = vmul.f32 0.7978846, %v2261_v18  ;;  %v3764_v62 = vpop.eup %3763  ;;  %v2636_v30 = vadd.f32 %v2604_v38, %v6325_v49  ;;  %v2587_v2 = vmul.f32 %v5750_v57, %v2537_v17  ;;  %v2816_v38 = vmul.f32 %v5829_v43, %v2799_v14  ;;  %v3027_v14 = vld [vmem:[%s6165_s14] sm:$0xf] }
 0x1c2   : > { %v2356_v54 = vadd.f32 1.0, %v3764_v62  ;;  %v2700_v18 = vld [vmem:[#allocation2 + $0x30] ss:$2 sm:$0xff]  ;;  %v2734_v25 = vld [vmem:[#allocation2 + $0x31] ss:$2 sm:$0xff] }
 0x1c3   : > { %3765 = vtanh.f32 %v2293_v55  ;;  %2668 = vst.msk [vmem:[#allocation2 + $0x49] sm:$0xff] %vm832_vm0, %v2636_v30  ;;  %v2622_v16 = vadd.f32 %v5759_v51, %v2587_v2  ;;  %v2716_v30 = vmul.f32 %v5800_v13, %v2700_v18  ;;  %v2750_v2 = vmul.f32 %v5807_v45, %v2734_v25  ;;  %v2934_v18 = vld [vmem:[#allocation2 + $0x31] ss:$2 sm:$0xff] }
 0x1c4   : > { %v2494_v15 = vpop.f32.mrf.mxu1  ;;  %v2388_v10 = vmul.f32 %v2356_v54, %v2132_v28  ;;  %v5843_v54 = vld [vmem:[%s6162_s11 + $0x4] ss:$0 sm:$0xff] }
 0x1c5   : > { %v2570_v19 = vmul.f32 %v5750_v57, %v2494_v15  ;;  %v2654_v21 = vadd.f32 %v2622_v16, %v6326_v0  ;;  %v2833_v16 = vld [vmem:[#allocation2 + $0x19] ss:$2 sm:$0xff]  ;;  %v2768_v15 = vld [vmem:[#allocation2 + $0x32] ss:$2 sm:$0xff]  ;;  %v2758_v0 = vadd.f32 %v2750_v2, %v2716_v30 }
 0x1c6   : > { %v2784_v3 = vmul.f32 %v5818_v26, %v2768_v15 }
 0x1c7   : > { %v2605_v4 = vadd.f32 %v5759_v51, %v2570_v19  ;;  %2686 = vst.msk [vmem:[#allocation2 + $0x121] sm:$0xff] %vm832_vm0, %v2654_v21  ;;  %v2850_v21 = vmul.f32 %v5843_v54, %v2833_v16  ;;  %v5887_v16 = vld [vmem:[%s6162_s11 + $0x8] ss:$0 sm:$0xff] }
 0x1c8   : > { %v2539_v27 = vpop.f32.mrf.mxu2 }
 0x1c9   : > { %v3766_v53 = vpop.eup %3765  ;;  %v2637_v20 = vadd.f32 %v2605_v4, %v6327_v8  ;;  %v2588_v6 = vmul.f32 %v5750_v57, %v2539_v27  ;;  %v2884_v8 = vmul.f32 %v5850_v36, %v2867_v5 }
 0x1ca   : > { %v2357_v23 = vadd.f32 1.0, %v3766_v53  ;;  %v2824_v53 = vadd.f32 %v2816_v38, %v2791_v44 }
 0x1cb   : > { %2669 = vst.msk [vmem:[#allocation2 + $0x51] sm:$0xff] %vm832_vm0, %v2637_v20  ;;  %v2623_v12 = vadd.f32 %v5759_v51, %v2588_v6 }
 0x1cc   : > { %v2389_v35 = vmul.f32 %v2357_v23, %v2133_v9  ;;  %v6329_v23 = vld [vmem:[#allocation26_spill] sm:$0xff]  ;;  %v2858_v61 = vadd.f32 %v2850_v21, %v2824_v53  ;;  %v2968_v53 = vld [vmem:[#allocation2 + $0x32] ss:$2 sm:$0xff] }
 0x1cd   : > { %v2497_v11 = vpop.f32.mrf.mxu1  ;;  %v2655_v58 = vadd.f32 %v2623_v12, %v6328_v34  ;;  %v2792_v12 = vadd.f32 %v2784_v3, %v2758_v0 }
 0x1ce   : > { %v2410_v56 = vpack.c.bf16 %v2389_v35, %v2388_v10  ;;  %v2571_v29 = vmul.f32 %v5750_v57, %v2497_v11  ;;  %v5858_v10 = vld [vmem:[%s6162_s11 + $0x6] ss:$0 sm:$0xff]  ;;  %v2900_v35 = vld [vmem:[#allocation2 + $0x30] ss:$2 sm:$0xff]  ;;  %v2892_v34 = vadd.f32 %v2884_v8, %v2858_v61 }
 0x1cf   : > { %2687 = vst.msk [vmem:[#allocation2 + $0x129] sm:$0xff] %vm832_vm0, %v2655_v58  ;;  %v2917_v39 = vmul.f32 %v5858_v10, %v2900_v35  ;;  %v3041_v58 = vsel %vm1949_vm2, %v3027_v14, 0 }
 0x1d0   : > { %3559 = vmatmul.msk.bf16.gmra.mxu1 %vm2424_vm3, %v2410_v56  ;;  %v2606_v55 = vadd.f32 %v5759_v51, %v2571_v29  ;;  %3050 = vmatpush.bf16.msrb.mxu2 %v3041_v58 }
 0x1d2   : > { %v2638_v17 = vadd.f32 %v2606_v55, %v4958_v63  ;;  %v2801_v63 = vld [vmem:[#allocation2 + $0x48] ss:$2 sm:$0xff]  ;;  %v2835_v37 = vld [vmem:[#allocation2 + $0x49] ss:$2 sm:$0xff] }
 0x1d3   : > { %v2817_v27 = vmul.f32 %v5829_v43, %v2801_v63  ;;  %v6330_v55 = vld [vmem:[#allocation27_spill] sm:$0xff]  ;;  %v2851_v38 = vmul.f32 %v5843_v54, %v2835_v37  ;;  %v6331_v63 = vld [vmem:[#allocation29_spill] sm:$0xff] }
 0x1d4   : > { %2670 = vst.msk [vmem:[#allocation2 + $0x61] sm:$0xff] %vm832_vm0, %v2638_v17 }
 0x1d5   : > { %v2542_v62 = vpop.f32.mrf.mxu2  ;;  %v2499_v28 = vpop.f32.mrf.mxu1  ;;  %v2825_v29 = vadd.f32 %v2817_v27, %v2792_v12 }
 0x1d6   : > { %v2589_v49 = vmul.f32 %v5750_v57, %v2542_v62  ;;  %v2572_v9 = vmul.f32 %v5750_v57, %v2499_v28  ;;  %v2925_v62 = vadd.f32 %v2917_v39, %v2892_v34  ;;  %v6332_v39 = vld [vmem:[#allocation24_spill] sm:$0xff] }
 0x1d7   : > { %v2859_v30 = vadd.f32 %v2851_v38, %v2825_v29 }
 0x1d8   : > { %v2624_v50 = vadd.f32 %v5759_v51, %v2589_v49  ;;  %v2607_v4 = vadd.f32 %v5759_v51, %v2572_v9  ;;  %v2869_v49 = vld [vmem:[#allocation2 + $0x4a] ss:$2 sm:$0xff] }
 0x1d9   : > { %v2885_v28 = vmul.f32 %v5850_v36, %v2869_v49 }
 0x1da   : > { %v2656_v19 = vadd.f32 %v2624_v50, %v6329_v23  ;;  %v2639_v20 = vadd.f32 %v2607_v4, %v4961_v7  ;;  %v5876_v7 = vld [vmem:[%s6162_s11 + $0x7] ss:$0 sm:$0xff]  ;;  %v2985_v4 = vmul.f32 %v5887_v16, %v2968_v53 }
 0x1db   : > { %v2951_v2 = vmul.f32 %v5876_v7, %v2934_v18  ;;  %v2893_v5 = vadd.f32 %v2885_v28, %v2859_v30  ;;  %v5912_v18 = vld [vmem:[%s6164_s13] ss:$0 sm:$0xff] }
 0x1dc   : > { %2688 = vst.msk [vmem:[#allocation2 + $0x139] sm:$0xff] %vm832_vm0, %v2656_v19 }
 0x1dd   : > { %v2544_v56 = vpop.f32.mrf.mxu2  ;;  %2671 = vst.msk [vmem:[#allocation2 + $0x69] sm:$0xff] %vm832_vm0, %v2639_v20  ;;  %v2959_v15 = vadd.f32 %v2951_v2, %v2925_v62 }
 0x1de   : > { %v2590_v6 = vmul.f32 %v5750_v57, %v2544_v56 }
 0x1df   : > { %v2993_v20 = vadd.f32 %v2985_v4, %v2959_v15 }
 0x1e0   : > { %v2625_v11 = vadd.f32 %v5759_v51, %v2590_v6  ;;  %v5901_v6 = vld [vmem:[%s6163_s12] ss:$0 sm:$0xff] }
 0x1e1   : > { %v3004_v58 = vmul.f32 %v5901_v6, %v2993_v20 }
 0x1e2   : > { %v2502_v25 = vpop.f32.mrf.mxu1  ;;  %v2657_v44 = vadd.f32 %v2625_v11, %v6330_v55 }
 0x1e3   : > { %v2573_v17 = vmul.f32 %v5750_v57, %v2502_v25  ;;  %v6333_v25 = vld [vmem:[#allocation32_spill] sm:$0xff] }
 0x1e4   : > { %2689 = vst.msk [vmem:[#allocation2 + $0x141] sm:$0xff] %vm832_vm0, %v2657_v44  ;;  %v2902_v19 = vld [vmem:[#allocation2 + $0x60] ss:$2 sm:$0xff]  ;;  %v2936_v0 = vld [vmem:[#allocation2 + $0x61] ss:$2 sm:$0xff] }
 0x1e5   : > { %v2608_v50 = vadd.f32 %v5759_v51, %v2573_v17  ;;  %v2547_v23 = vpop.f32.mrf.mxu2  ;;  %v2918_v35 = vmul.f32 %v5858_v10, %v2902_v19  ;;  %v2970_v3 = vld [vmem:[#allocation2 + $0x62] ss:$2 sm:$0xff]  ;;  %v2952_v8 = vmul.f32 %v5876_v7, %v2936_v0  ;;  %v3015_v17 = vadd.f32 %v5912_v18, %v3004_v58 }
 0x1e6   : > { %v2591_v21 = vmul.f32 %v5750_v57, %v2547_v23  ;;  %v2986_v14 = vmul.f32 %v5887_v16, %v2970_v3 }
 0x1e7   : > { %v2640_v9 = vadd.f32 %v2608_v50, %v6331_v63  ;;  %v2926_v56 = vadd.f32 %v2918_v35, %v2893_v5  ;;  %v6334_v50 = vld [vmem:[#allocation28_spill] sm:$0xff] }
 0x1e8   : > { %v2626_v61 = vadd.f32 %v5759_v51, %v2591_v21 }
 0x1e9   : > { %2672 = vst.msk [vmem:[#allocation2 + $0x79] sm:$0xff] %vm832_vm0, %v2640_v9  ;;  %v2960_v11 = vadd.f32 %v2952_v8, %v2926_v56  ;;  %v6335_v8 = vld [vmem:[#allocation21_spill] sm:$0xff] }
 0x1ea   : > { %v2504_v27 = vpop.f32.mrf.mxu1  ;;  %v2658_v37 = vadd.f32 %v2626_v61, %v6332_v39 }
 0x1eb   : > { %v2574_v12 = vmul.f32 %v5750_v57, %v2504_v27  ;;  %v2994_v34 = vadd.f32 %v2986_v14, %v2960_v11 }
 0x1ec   : > { %2690 = vst.msk [vmem:[#allocation2 + $0x151] sm:$0xff] %vm832_vm0, %v2658_v37 }
 0x1ed   : > { %v2609_v29 = vadd.f32 %v5759_v51, %v2574_v12  ;;  %v2549_v44 = vpop.f32.mrf.mxu2  ;;  %v3005_v38 = vmul.f32 %v5901_v6, %v2994_v34 }
 0x1ee   : > { %v2592_v62 = vmul.f32 %v5750_v57, %v2549_v44  ;;  %v2736_v44 = vld [vmem:[#allocation2 + $0x61] ss:$2 sm:$0xff] }
 0x1ef   : > { %v2641_v55 = vadd.f32 %v2609_v29, %v6333_v25  ;;  %v3016_v49 = vadd.f32 %v5912_v18, %v3005_v38 }
 0x1f0   : > { %v2627_v30 = vadd.f32 %v5759_v51, %v2592_v62 }
 0x1f1   : > { %2673 = vst.msk [vmem:[#allocation2 + $0x81] sm:$0xff] %vm832_vm0, %v2641_v55  ;;  %v3023_v2 = vpack.c.bf16 %v3016_v49, %v3015_v17  ;;  %v2702_v55 = vld [vmem:[#allocation2 + $0x60] ss:$2 sm:$0xff]  ;;  %v2751_v17 = vmul.f32 %v5807_v45, %v2736_v44 }
 0x1f2   : > { %v2659_v53 = vadd.f32 %v2627_v30, %v6334_v50 }
 0x1f3   : > { %3565 = vmatmul.msk.bf16.vlgmr.msrb.gmra.mxu2 %vm832_vm0, %v3023_v2  ;;  %v2770_v2 = vld [vmem:[#allocation2 + $0x62] ss:$2 sm:$0xff] }
 0x1f4   : > { %2691 = vst.msk [vmem:[#allocation2 + $0x159] sm:$0xff] %vm832_vm0, %v2659_v53 }
 0x1f8   : > { %v2507_v28 = vpop.f32.mrf.mxu1  ;;  %v2803_v50 = vld [vmem:[#allocation2 + $0x78] ss:$2 sm:$0xff] }
 0x1f9   : > { %v2575_v15 = vmul.f32 %v5750_v57, %v2507_v28  ;;  %v2552_v63 = vpop.f32.mrf.mxu3 }
 0x1fa   : > { %v2593_v9 = vmul.f32 %v5750_v57, %v2552_v63 }
 0x1fb   : > { %v2610_v23 = vadd.f32 %v5759_v51, %v2575_v15 }
 0x1fc   : > { %v2628_v19 = vadd.f32 %v5759_v51, %v2593_v9  ;;  %v2785_v9 = vmul.f32 %v5818_v26, %v2770_v2 }
 0x1fd   : > { %v2642_v0 = vadd.f32 %v2610_v23, %v5260_v48  ;;  %v2818_v23 = vmul.f32 %v5829_v43, %v2803_v50 }
 0x1fe   : > { %v2660_v21 = vadd.f32 %v2628_v19, %v5203_v24 }
 0x1ff   : > { %2674 = vst.msk [vmem:[#allocation2 + $0x91] sm:$0xff] %vm832_vm0, %v2642_v0 }
 0x200   : > { %v2509_v5 = vpop.f32.mrf.mxu1  ;;  %2692 = vst.msk [vmem:[#allocation2 + $0x169] sm:$0xff] %vm832_vm0, %v2660_v21 }
 0x201   : > { %v2576_v35 = vmul.f32 %v5750_v57, %v2509_v5  ;;  %v2554_v4 = vpop.f32.mrf.mxu3  ;;  %v2837_v5 = vld [vmem:[#allocation2 + $0x79] ss:$2 sm:$0xff] }
 0x202   : > { %v2594_v3 = vmul.f32 %v5750_v57, %v2554_v4 }
 0x203   : > { %v2611_v27 = vadd.f32 %v5759_v51, %v2576_v35 }
 0x204   : > { %v2629_v61 = vadd.f32 %v5759_v51, %v2594_v3 }
 0x205   : > { %v2643_v56 = vadd.f32 %v2611_v27, %v5263_v47 }
 0x206   : > { %v2661_v48 = vadd.f32 %v2629_v61, %v6335_v8  ;;  %v2852_v8 = vmul.f32 %v5843_v54, %v2837_v5 }
 0x207   : > { %2675 = vst.msk [vmem:[#allocation2 + $0x99] sm:$0xff] %vm832_vm0, %v2643_v56 }
 0x208   : > { %2693 = vst.msk [vmem:[#allocation2 + $0x171] sm:$0xff] %vm832_vm0, %v2661_v48  ;;  %v2871_v48 = vld [vmem:[#allocation2 + $0x7a] ss:$2 sm:$0xff] }
 0x20d   : > { %v2512_v24 = vpop.f32.mrf.mxu1 }
 0x20e   : > { %v2557_v20 = vpop.f32.mrf.mxu3  ;;  %v2577_v12 = vmul.f32 %v5750_v57, %v2512_v24  ;;  %v2704_v15 = vld [vmem:[#allocation2 + $0x90] ss:$2 sm:$0xff]  ;;  %v2738_v63 = vld [vmem:[#allocation2 + $0x91] ss:$2 sm:$0xff] }
 0x20f   : > { %v2595_v39 = vmul.f32 %v5750_v57, %v2557_v20  ;;  %v2718_v19 = vmul.f32 %v5800_v13, %v2704_v15  ;;  %v2752_v0 = vmul.f32 %v5807_v45, %v2738_v63  ;;  %v2772_v3 = vld [vmem:[#allocation2 + $0x92] ss:$2 sm:$0xff] }
 0x210   : > { %v2612_v37 = vadd.f32 %v5759_v51, %v2577_v12  ;;  %v2904_v24 = vld [vmem:[#allocation2 + $0x90] ss:$2 sm:$0xff]  ;;  %v2786_v20 = vmul.f32 %v5818_v26, %v2772_v3 }
 0x211   : > { %v2630_v11 = vadd.f32 %v5759_v51, %v2595_v39  ;;  %v2760_v56 = vadd.f32 %v2752_v0, %v2718_v19 }
 0x212   : > { %v2644_v14 = vadd.f32 %v2612_v37, %v5386_v59 }
 0x213   : > { %v2662_v47 = vadd.f32 %v2630_v11, %v5335_v31  ;;  %v2717_v31 = vmul.f32 %v5800_v13, %v2702_v55  ;;  %v2794_v11 = vadd.f32 %v2786_v20, %v2760_v56  ;;  %v2938_v55 = vld [vmem:[#allocation2 + $0x91] ss:$2 sm:$0xff] }
 0x214   : > { %2676 = vst.msk [vmem:[#allocation2 + $0xa9] sm:$0xff] %vm832_vm0, %v2644_v14  ;;  %v2886_v14 = vmul.f32 %v5850_v36, %v2871_v48 }
 0x215   : > { %2694 = vst.msk [vmem:[#allocation2 + $0x181] sm:$0xff] %vm832_vm0, %v2662_v47  ;;  %v2514_v29 = vpop.f32.mrf.mxu1  ;;  %v2759_v28 = vadd.f32 %v2751_v17, %v2717_v31  ;;  %v2919_v47 = vmul.f32 %v5858_v10, %v2904_v24  ;;  %v2953_v17 = vmul.f32 %v5876_v7, %v2938_v55 }
 0x216   : > { %v2559_v34 = vpop.f32.mrf.mxu3  ;;  %v2578_v58 = vmul.f32 %v5750_v57, %v2514_v29 }
 0x217   : > { %v2596_v25 = vmul.f32 %v5750_v57, %v2559_v34  ;;  %v2793_v21 = vadd.f32 %v2785_v9, %v2759_v28 }
 0x218   : > { %v2613_v38 = vadd.f32 %v5759_v51, %v2578_v58 }
 0x219   : > { %v2631_v62 = vadd.f32 %v5759_v51, %v2596_v25  ;;  %v2826_v35 = vadd.f32 %v2818_v23, %v2793_v21 }
 0x21a   : > { %v2645_v59 = vadd.f32 %v2613_v38, %v5395_v22 }
 0x21b   : > { %v2663_v49 = vadd.f32 %v2631_v62, %v5338_v52  ;;  %v2860_v39 = vadd.f32 %v2852_v8, %v2826_v35 }
 0x21c   : > { %2677 = vst.msk [vmem:[#allocation2 + $0xb1] sm:$0xff] %vm832_vm0, %v2645_v59 }
 0x21d   : > { %2695 = vst.msk [vmem:[#allocation2 + $0x189] sm:$0xff] %vm832_vm0, %v2663_v49  ;;  %v2517_v30 = vpop.f32.mrf.mxu1  ;;  %v2894_v58 = vadd.f32 %v2886_v14, %v2860_v39  ;;  %v2972_v49 = vld [vmem:[#allocation2 + $0x92] ss:$2 sm:$0xff] }
 0x21e   : > { %v2579_v53 = vmul.f32 %v5750_v57, %v2517_v30 }
 0x21f   : > { %v2927_v62 = vadd.f32 %v2919_v47, %v2894_v58 }
 0x220   : > { %v2614_v22 = vadd.f32 %v5759_v51, %v2579_v53 }
 0x221   : > { %v2961_v50 = vadd.f32 %v2953_v17, %v2927_v62  ;;  %v2710_v17 = vld [vmem:[#allocation2 + $0x120] ss:$2 sm:$0xff] }
 0x222   : > { %v2646_v52 = vadd.f32 %v2614_v22, %v5457_v46  ;;  %v2987_v22 = vmul.f32 %v5887_v16, %v2972_v49  ;;  %v2744_v49 = vld [vmem:[#allocation2 + $0x121] ss:$2 sm:$0xff] }
 0x223   : > { %v2805_v27 = vld [vmem:[#allocation2 + $0xa8] ss:$2 sm:$0xff]  ;;  %v2839_v29 = vld [vmem:[#allocation2 + $0xa9] ss:$2 sm:$0xff] }
 0x224   : > { %2678 = vst.msk [vmem:[#allocation2 + $0xc1] sm:$0xff] %vm832_vm0, %v2646_v52  ;;  %v2819_v12 = vmul.f32 %v5829_v43, %v2805_v27  ;;  %v2853_v38 = vmul.f32 %v5843_v54, %v2839_v29  ;;  %v2873_v59 = vld [vmem:[#allocation2 + $0xaa] ss:$2 sm:$0xff] }
 0x225   : > { %v2519_v4 = vpop.f32.mrf.mxu1  ;;  %v2887_v2 = vmul.f32 %v5850_v36, %v2873_v59 }
 0x226   : > { %v2580_v61 = vmul.f32 %v5750_v57, %v2519_v4  ;;  %v2827_v34 = vadd.f32 %v2819_v12, %v2794_v11 }
 0x228   : > { %v2615_v46 = vadd.f32 %v5759_v51, %v2580_v61  ;;  %v2861_v31 = vadd.f32 %v2853_v38, %v2827_v34 }
 0x22a   : > { %v2647_v37 = vadd.f32 %v2615_v46, %v5460_v41  ;;  %v2895_v15 = vadd.f32 %v2887_v2, %v2861_v31  ;;  %v2746_v2 = vld [vmem:[#allocation2 + $0x151] ss:$2 sm:$0xff] }
 0x22c   : > { %2679 = vst.msk [vmem:[#allocation2 + $0xc9] sm:$0xff] %vm832_vm0, %v2647_v37 }
 0x22d   : > { %v2522_v25 = vpop.f32.mrf.mxu1 }
 0x22e   : > { %v2581_v44 = vmul.f32 %v5750_v57, %v2522_v25 }
 0x230   : > { %v2616_v41 = vadd.f32 %v5759_v51, %v2581_v44 }
 0x232   : > { %v2648_v30 = vadd.f32 %v2616_v41, %v5529_v32  ;;  %v2995_v32 = vadd.f32 %v2987_v22, %v2961_v50  ;;  %v2755_v22 = vmul.f32 %v5807_v45, %v2744_v49 }
 0x233   : > { %v2906_v53 = vld [vmem:[#allocation2 + $0xc0] ss:$2 sm:$0xff]  ;;  %v2940_v28 = vld [vmem:[#allocation2 + $0xc1] ss:$2 sm:$0xff] }
 0x234   : > { %2680 = vst.msk [vmem:[#allocation2 + $0xd9] sm:$0xff] %vm832_vm0, %v2648_v30  ;;  %v2920_v63 = vmul.f32 %v5858_v10, %v2906_v53  ;;  %v2974_v23 = vld [vmem:[#allocation2 + $0xc2] ss:$2 sm:$0xff]  ;;  %v2954_v0 = vmul.f32 %v5876_v7, %v2940_v28  ;;  %v3006_v27 = vmul.f32 %v5901_v6, %v2995_v32  ;;  %v2740_v29 = vld [vmem:[#allocation2 + $0xc1] ss:$2 sm:$0xff] }
 0x235   : > { %v2524_v9 = vpop.f32.mrf.mxu1  ;;  %v2988_v35 = vmul.f32 %v5887_v16, %v2974_v23  ;;  %v2706_v47 = vld [vmem:[#allocation2 + $0xc0] ss:$2 sm:$0xff]  ;;  %v2753_v25 = vmul.f32 %v5807_v45, %v2740_v29  ;;  %v2712_v30 = vld [vmem:[#allocation2 + $0x150] ss:$2 sm:$0xff] }
 0x236   : > { %v2582_v52 = vmul.f32 %v5750_v57, %v2524_v9  ;;  %v2928_v19 = vadd.f32 %v2920_v63, %v2895_v15  ;;  %v3017_v48 = vadd.f32 %v5912_v18, %v3006_v27  ;;  %v2719_v58 = vmul.f32 %v5800_v13, %v2706_v47  ;;  %v2774_v44 = vld [vmem:[#allocation2 + $0xc2] ss:$2 sm:$0xff] }
 0x237   : > { %v2787_v41 = vmul.f32 %v5818_v26, %v2774_v44  ;;  %v2721_v63 = vmul.f32 %v5800_v13, %v2710_v17  ;;  %v2722_v23 = vmul.f32 %v5800_v13, %v2712_v30  ;;  %v2879_v17 = vld [vmem:[#allocation2 + $0x13a] ss:$2 sm:$0xff]  ;;  %v2881_v30 = vld [vmem:[#allocation2 + $0x16a] ss:$2 sm:$0xff] }
 0x238   : > { %v2617_v21 = vadd.f32 %v5759_v51, %v2582_v52  ;;  %v2962_v5 = vadd.f32 %v2954_v0, %v2928_v19  ;;  %v2756_v52 = vmul.f32 %v5807_v45, %v2746_v2  ;;  %v2778_v19 = vld [vmem:[#allocation2 + $0x122] ss:$2 sm:$0xff]  ;;  %v2780_v0 = vld [vmem:[#allocation2 + $0x152] ss:$2 sm:$0xff] }
 0x23a   : > { %v2649_v4 = vadd.f32 %v2617_v21, %v5536_v42  ;;  %v2996_v3 = vadd.f32 %v2988_v35, %v2962_v5  ;;  %v2764_v27 = vadd.f32 %v2756_v52, %v2722_v23  ;;  %v2891_v23 = vmul.f32 %v5850_v36, %v2881_v30  ;;  %v2912_v52 = vld [vmem:[#allocation2 + $0x150] ss:$2 sm:$0xff] }
 0x23c   : > { %2681 = vst.msk [vmem:[#allocation2 + $0xe1] sm:$0xff] %vm832_vm0, %v2649_v4  ;;  %v3007_v61 = vmul.f32 %v5901_v6, %v2996_v3  ;;  %v2763_v4 = vadd.f32 %v2755_v22, %v2721_v63  ;;  %v2978_v22 = vld [vmem:[#allocation2 + $0x122] ss:$2 sm:$0xff] }
 0x23d   : > { %v2527_v56 = vpop.f32.mrf.mxu1 }
 0x23e   : > { %v2583_v8 = vmul.f32 %v5750_v57, %v2527_v56  ;;  %v3018_v24 = vadd.f32 %v5912_v18, %v3007_v61  ;;  %v2790_v61 = vmul.f32 %v5818_v26, %v2780_v0  ;;  %v2811_v56 = vld [vmem:[#allocation2 + $0x138] ss:$2 sm:$0xff] }
 0x240   : > { %v2618_v46 = vadd.f32 %v5759_v51, %v2583_v8  ;;  %v3024_v20 = vpack.c.bf16 %v3018_v24, %v3017_v48  ;;  %v2813_v48 = vld [vmem:[#allocation2 + $0x168] ss:$2 sm:$0xff] }
 0x242   : > { %v2650_v12 = vadd.f32 %v2618_v46, %v5578_v40  ;;  %3566 = vmatmul.msk.bf16.gmra.mxu2 %vm832_vm0, %v3024_v20  ;;  %v2822_v20 = vmul.f32 %v5829_v43, %v2811_v56 }
 0x243   : > { %v2807_v38 = vld [vmem:[#allocation2 + $0xd8] ss:$2 sm:$0xff]  ;;  %v2841_v15 = vld [vmem:[#allocation2 + $0xd9] ss:$2 sm:$0xff] }
 0x244   : > { %2682 = vst.msk [vmem:[#allocation2 + $0xf1] sm:$0xff] %vm832_vm0, %v2650_v12  ;;  %v2820_v31 = vmul.f32 %v5829_v43, %v2807_v38  ;;  %v2854_v21 = vmul.f32 %v5843_v54, %v2841_v15  ;;  %v2875_v5 = vld [vmem:[#allocation2 + $0xda] ss:$2 sm:$0xff] }
 0x245   : > { %v2529_v42 = vpop.f32.mrf.mxu1  ;;  %v2888_v46 = vmul.f32 %v5850_v36, %v2875_v5  ;;  %v2923_v5 = vmul.f32 %v5858_v10, %v2912_v52 }
 0x246   : > { %v2584_v39 = vmul.f32 %v5750_v57, %v2529_v42 }
 0x248   : > { %v2619_v37 = vadd.f32 %v5759_v51, %v2584_v39  ;;  %v2798_v39 = vadd.f32 %v2790_v61, %v2764_v27  ;;  %v2946_v27 = vld [vmem:[#allocation2 + $0x151] ss:$2 sm:$0xff]  ;;  %v2948_v61 = vld [vmem:[#allocation2 + $0x181] ss:$2 sm:$0xff] }
 0x24a   : > { %v2651_v11 = vadd.f32 %v2619_v37, %v5581_v33  ;;  %v2761_v33 = vadd.f32 %v2753_v25, %v2719_v58  ;;  %v2823_v37 = vmul.f32 %v5829_v43, %v2813_v48 }
 0x24c   : > { %2683 = vst.msk [vmem:[#allocation2 + $0xf9] sm:$0xff] %vm832_vm0, %v2651_v11  ;;  %v2795_v53 = vadd.f32 %v2787_v41, %v2761_v33  ;;  %v2845_v11 = vld [vmem:[#allocation2 + $0x139] ss:$2 sm:$0xff] }
 0x24d   : > { %v2532_v14 = vpop.f32.mrf.mxu1  ;;  %v2856_v38 = vmul.f32 %v5843_v54, %v2845_v11 }
 0x24e   : > { %v2585_v34 = vmul.f32 %v5750_v57, %v2532_v14  ;;  %v2828_v9 = vadd.f32 %v2820_v31, %v2795_v53  ;;  %v2847_v14 = vld [vmem:[#allocation2 + $0x169] ss:$2 sm:$0xff]  ;;  %v2831_v31 = vadd.f32 %v2823_v37, %v2798_v39  ;;  %v3594_v53 = vld [vmem:[%s6168_s17] sm:$0xff] }
 0x24f   : > { %v2857_v33 = vmul.f32 %v5843_v54, %v2847_v14  ;;  %3131 = vmatpush.bf16.msra.mxu3 %v3594_v53  ;;  %v3596_v53 = vld [vmem:[%s6171_s20 + $0x8] sm:$0xff] }
 0x250   : > { %v2620_v40 = vadd.f32 %v5759_v51, %v2585_v34  ;;  %v2862_v3 = vadd.f32 %v2854_v21, %v2828_v9  ;;  %v2990_v21 = vmul.f32 %v5887_v16, %v2978_v22  ;;  %3286 = vmatpush.bf16.msra.mxu2 %v3596_v53 }
 0x251   : > { %v2865_v9 = vadd.f32 %v2857_v33, %v2831_v31 }
 0x252   : > { %v2652_v55 = vadd.f32 %v2620_v40, %v5621_v60  ;;  %v2896_v42 = vadd.f32 %v2888_v46, %v2862_v3 }
 0x253   : > { %v2708_v60 = vld [vmem:[#allocation2 + $0xf0] ss:$2 sm:$0xff]  ;;  %v2742_v28 = vld [vmem:[#allocation2 + $0xf1] ss:$2 sm:$0xff] }
 0x254   : > { %2684 = vst.msk [vmem:[#allocation2 + $0x109] sm:$0xff] %vm832_vm0, %v2652_v55  ;;  %v2754_v32 = vmul.f32 %v5807_v45, %v2742_v28  ;;  %v2908_v35 = vld [vmem:[#allocation2 + $0xf0] ss:$2 sm:$0xff]  ;;  %v2942_v34 = vld [vmem:[#allocation2 + $0xf1] ss:$2 sm:$0xff] }
 0x255   : > { %v2534_v62 = vpop.f32.mrf.mxu1  ;;  %v2776_v8 = vld [vmem:[#allocation2 + $0xf2] ss:$2 sm:$0xff]  ;;  %v2955_v41 = vmul.f32 %v5876_v7, %v2942_v34  ;;  %v2944_v28 = vld [vmem:[#allocation2 + $0x121] ss:$2 sm:$0xff] }
 0x256   : > { %v2586_v59 = vmul.f32 %v5750_v57, %v2534_v62  ;;  %v2788_v12 = vmul.f32 %v5818_v26, %v2776_v8  ;;  %v2976_v49 = vld [vmem:[#allocation2 + $0xf2] ss:$2 sm:$0xff]  ;;  %v2957_v8 = vmul.f32 %v5876_v7, %v2946_v27 }
 0x258   : > { %v2621_v50 = vadd.f32 %v5759_v51, %v2586_v59  ;;  %v2720_v51 = vmul.f32 %v5800_v13, %v2708_v60  ;;  %v2921_v13 = vmul.f32 %v5858_v10, %v2908_v35  ;;  %v2910_v59 = vld [vmem:[#allocation2 + $0x120] ss:$2 sm:$0xff] }
 0x259   : > { %v2922_v60 = vmul.f32 %v5858_v10, %v2910_v59 }
 0x25a   : > { %v2653_v57 = vadd.f32 %v2621_v50, %v5624_v1  ;;  %v2789_v1 = vmul.f32 %v5818_v26, %v2778_v19  ;;  %v2762_v24 = vadd.f32 %v2754_v32, %v2720_v51  ;;  %v2929_v25 = vadd.f32 %v2921_v13, %v2896_v42  ;;  %v2914_v19 = vld [vmem:[#allocation2 + $0x180] ss:$2 sm:$0xff] }
 0x25b   : > { %v2956_v51 = vmul.f32 %v5876_v7, %v2944_v28  ;;  %v2924_v3 = vmul.f32 %v5858_v10, %v2914_v19  ;;  %v2958_v13 = vmul.f32 %v5876_v7, %v2948_v61 }
 0x25c   : > { %2685 = vst.msk [vmem:[#allocation2 + $0x111] sm:$0xff] %vm832_vm0, %v2653_v57  ;;  %v2797_v45 = vadd.f32 %v2789_v1, %v2763_v4  ;;  %v2796_v40 = vadd.f32 %v2788_v12, %v2762_v24  ;;  %v2963_v50 = vadd.f32 %v2955_v41, %v2929_v25  ;;  %v2989_v57 = vmul.f32 %v5887_v16, %v2976_v49 }
 0x25d   : > { %v2899_v1 = vadd.f32 %v2891_v23, %v2865_v9  ;;  %v6089_v9 = vld [vmem:[#allocation8] ss:$0 sm:$0xff] }
 0x25e   : > { %v2830_v44 = vadd.f32 %v2822_v20, %v2797_v45  ;;  %v2997_v32 = vadd.f32 %v2989_v57, %v2963_v50  ;;  %v2980_v45 = vld [vmem:[#allocation2 + $0x152] ss:$2 sm:$0xff]  ;;  %v2982_v20 = vld [vmem:[#allocation2 + $0x182] ss:$2 sm:$0xff] }
 0x25f   : > { %v2932_v46 = vadd.f32 %v2924_v3, %v2899_v1  ;;  %v2991_v10 = vmul.f32 %v5887_v16, %v2980_v45  ;;  %v2992_v14 = vmul.f32 %v5887_v16, %v2982_v20  ;;  %v6086_v57 = vld [vmem:[#allocation7] ss:$0 sm:$0xff] }
 0x260   : > { %v2864_v15 = vadd.f32 %v2856_v38, %v2830_v44 }
 0x261   : > { %v2966_v11 = vadd.f32 %v2958_v13, %v2932_v46 }
 0x263   : > { %v2809_v47 = vld [vmem:[#allocation2 + $0x108] ss:$2 sm:$0xff]  ;;  %v2843_v29 = vld [vmem:[#allocation2 + $0x109] ss:$2 sm:$0xff]  ;;  %v3000_v34 = vadd.f32 %v2992_v14, %v2966_v11 }
 0x264   : > { %v2821_v58 = vmul.f32 %v5829_v43, %v2809_v47  ;;  %v2877_v55 = vld [vmem:[#allocation2 + $0x10a] ss:$2 sm:$0xff]  ;;  %v2855_v62 = vmul.f32 %v5843_v54, %v2843_v29  ;;  %v2890_v54 = vmul.f32 %v5850_v36, %v2879_v17 }
 0x265   : > { %v2889_v43 = vmul.f32 %v5850_v36, %v2877_v55  ;;  %v3008_v36 = vmul.f32 %v5901_v6, %v2997_v32  ;;  %v3698_v55 = vld [vmem:[#allocation5] ss:$0 sm:$0xff] }
 0x266   : > { %v2829_v26 = vadd.f32 %v2821_v58, %v2796_v40  ;;  %v2898_v4 = vadd.f32 %v2890_v54, %v2864_v15  ;;  %v3697_v40 = vld [vmem:[#allocation3] ss:$0 sm:$0xff]  ;;  %v3011_v58 = vmul.f32 %v5901_v6, %v3000_v34  ;;  %v3595_v15 = vld [vmem:[%s6171_s20] sm:$0xff] }
 0x267   : > { %v3019_v12 = vadd.f32 %v5912_v18, %v3008_v36  ;;  %3287 = vmatpush.bf16.msra.mxu2 %v3595_v15 }
 0x268   : > { %v2863_v2 = vadd.f32 %v2855_v62, %v2829_v26  ;;  %v2931_v24 = vadd.f32 %v2923_v5, %v2898_v4  ;;  %v3022_v33 = vadd.f32 %v5912_v18, %v3011_v58 }
 0x26a   : > { %v2897_v63 = vadd.f32 %v2889_v43, %v2863_v2  ;;  %v2965_v37 = vadd.f32 %v2957_v8, %v2931_v24 }
 0x26c   : > { %v2930_v0 = vadd.f32 %v2922_v60, %v2897_v63  ;;  %v2999_v29 = vadd.f32 %v2991_v10, %v2965_v37 }
 0x26e   : > { %v2964_v35 = vadd.f32 %v2956_v51, %v2930_v0  ;;  %v3010_v7 = vmul.f32 %v5901_v6, %v2999_v29 }
 0x270   : > { %v2998_v56 = vadd.f32 %v2990_v21, %v2964_v35  ;;  %v3021_v38 = vadd.f32 %v5912_v18, %v3010_v7 }
 0x272   : > { %v3009_v48 = vmul.f32 %v5901_v6, %v2998_v56  ;;  %v3026_v59 = vpack.c.bf16 %v3022_v33, %v3021_v38 }
 0x274   : > { %v3020_v42 = vadd.f32 %v5912_v18, %v3009_v48 }
 0x276   : > { %v3025_v39 = vpack.c.bf16 %v3020_v42, %v3019_v12  ;;  %v3052_v47 = vpop.f32.mrf.mxu2 }
 0x277   : > { %v3076_v25 = vmul.f32 %v3697_v40, %v3052_v47 }
 0x278   : > { %3567 = vmatmul.msk.bf16.gmra.mxu2 %vm832_vm0, %v3025_v39 }
 0x279   : > { %v6059_v62 = vadd.f32 %v3698_v55, %v3076_v25 }
 0x27e   : > { %v3054_v44 = vpop.f32.mrf.mxu2 }
 0x27f   : > { %v3077_v26 = vmul.f32 %v3697_v40, %v3054_v44 }
 0x281   : > { %v6061_v16 = vadd.f32 %v3698_v55, %v3077_v26 }
 0x283   : > { %v3100_v41 = vpack.c.bf16 %v6061_v16, %v6059_v62 }
 0x285   : > { %3573 = vmatmul.msk.bf16.vlgmr.msra.gmra.mxu3 %vm2424_vm3, %v3100_v41 }
 0x288   : > { %3568 = vmatmul.msk.bf16.gmra.mxu2 %vm832_vm0, %v3026_v59 }
 0x2c5   : > { %v3057_v6 = vpop.f32.mrf.mxu2 }
 0x2c6   : > { %v3078_v31 = vmul.f32 %v3697_v40, %v3057_v6 }
 0x2c8   : > { %v6067_v30 = vadd.f32 %v3698_v55, %v3078_v31 }
 0x2cd   : > { %v3059_v17 = vpop.f32.mrf.mxu2 }
 0x2ce   : > { %v3079_v49 = vmul.f32 %v3697_v40, %v3059_v17 }
 0x2d0   : > { %v6069_v18 = vadd.f32 %v3698_v55, %v3079_v49 }
 0x2d2   : > { %v3101_v2 = vpack.c.bf16 %v6069_v18, %v6067_v30 }
 0x2d4   : > { %3574 = vmatmul.msk.bf16.gmra.mxu3 %vm2424_vm3, %v3101_v2 }
 0x2fb   : > { %v3062_v43 = vpop.f32.mrf.mxu2 }
 0x2fc   : > { %v3080_v50 = vmul.f32 %v3697_v40, %v3062_v43 }
 0x2fe   : > { %v6080_v54 = vadd.f32 %v3698_v55, %v3080_v50 }
 0x303   : > { %v3064_v60 = vpop.f32.mrf.mxu2 }
 0x304   : > { %v3081_v28 = vmul.f32 %v3697_v40, %v3064_v60 }
 0x306   : > { %v6082_v63 = vadd.f32 %v3698_v55, %v3081_v28 }
 0x308   : > { %v3102_v22 = vpack.c.bf16 %v6082_v63, %v6080_v54  ;;  %v3133_v52 = vpop.f32.mrf.mxu3 }
 0x309   : > { %v3156_v19 = vmul.f32 %v6086_v57, %v3133_v52 }
 0x30a   : > { %3575 = vmatmul.msk.bf16.gmra.mxu3 %vm2424_vm3, %v3102_v22 }
 0x30b   : > { %v3067_v23 = vpop.f32.mrf.mxu2  ;;  %v3167_v0 = vadd.f32 %v6089_v9, %v3156_v19 }
 0x30c   : > { %v3082_v32 = vmul.f32 %v3697_v40, %v3067_v23 }
 0x30d   : > { %v3183_v51 = vmul.f32 0.044715, %v3167_v0  ;;  %v3175_v39 = vmul.f32 0.5, %v3167_v0 }
 0x30e   : > { %v6094_v27 = vadd.f32 %v3698_v55, %v3082_v32 }
 0x30f   : > { %v3191_v21 = vmul.f32 %v3183_v51, %v3167_v0 }
 0x310   : > { %v3135_v35 = vpop.f32.mrf.mxu3 }
 0x311   : > { %v3199_v1 = vmul.f32 %v3191_v21, %v3167_v0  ;;  %v3157_v3 = vmul.f32 %v6086_v57, %v3135_v35 }
 0x313   : > { %v3069_v5 = vpop.f32.mrf.mxu2  ;;  %v3207_v56 = vadd.f32 %v3199_v1, %v3167_v0  ;;  %v3168_v36 = vadd.f32 %v6089_v9, %v3157_v3 }
 0x314   : > { %v3083_v4 = vmul.f32 %v3697_v40, %v3069_v5 }
 0x315   : > { %v3184_v48 = vmul.f32 0.044715, %v3168_v36  ;;  %v3215_v24 = vmul.f32 0.7978846, %v3207_v56  ;;  %v3176_v37 = vmul.f32 0.5, %v3168_v36 }
 0x316   : > { %v6096_v61 = vadd.f32 %v3698_v55, %v3083_v4 }
 0x317   : > { %v3192_v46 = vmul.f32 %v3184_v48, %v3168_v36  ;;  %3767 = vtanh.f32 %v3215_v24 }
 0x318   : > { %v3103_v8 = vpack.c.bf16 %v6096_v61, %v6094_v27 }
 0x319   : > { %v3200_v13 = vmul.f32 %v3192_v46, %v3168_v36 }
 0x31a   : > { %3576 = vmatmul.msk.bf16.gmra.mxu3 %vm2424_vm3, %v3103_v8 }
 0x31b   : > { %v3208_v45 = vadd.f32 %v3200_v13, %v3168_v36 }
 0x31d   : > { %v3216_v20 = vmul.f32 0.7978846, %v3208_v45  ;;  %v3768_v12 = vpop.eup %3767 }
 0x31e   : > { %v3231_v42 = vadd.f32 1.0, %v3768_v12 }
 0x31f   : > { %3769 = vtanh.f32 %v3216_v20 }
 0x320   : > { %v3239_v14 = vmul.f32 %v3231_v42, %v3175_v39 }
 0x325   : > { %v3770_v10 = vpop.eup %3769 }
 0x326   : > { %v3232_v11 = vadd.f32 1.0, %v3770_v10 }
 0x328   : > { %v3240_v47 = vmul.f32 %v3232_v11, %v3176_v37 }
 0x32a   : > { %v3247_v29 = vpack.c.bf16 %v3240_v47, %v3239_v14 }
 0x32c   : > { %3585 = vmatmul.msk.bf16.vlgmr.msra.gmra.mxu2 %vm3267_vm4, %v3247_v29 }
 0x357   : > { %v3138_v34 = vpop.f32.mrf.mxu3 }
 0x358   : > { %v3158_v40 = vmul.f32 %v6086_v57, %v3138_v34 }
 0x35a   : > { %v3169_v7 = vadd.f32 %v6089_v9, %v3158_v40 }
 0x35c   : > { %v3185_v58 = vmul.f32 0.044715, %v3169_v7  ;;  %v3177_v53 = vmul.f32 0.5, %v3169_v7 }
 0x35e   : > { %v3193_v25 = vmul.f32 %v3185_v58, %v3169_v7 }
 0x35f   : > { %v3140_v55 = vpop.f32.mrf.mxu3 }
 0x360   : > { %v3159_v44 = vmul.f32 %v6086_v57, %v3140_v55  ;;  %v3201_v38 = vmul.f32 %v3193_v25, %v3169_v7 }
 0x362   : > { %v3170_v33 = vadd.f32 %v6089_v9, %v3159_v44  ;;  %v3209_v26 = vadd.f32 %v3201_v38, %v3169_v7 }
 0x364   : > { %v3186_v59 = vmul.f32 0.044715, %v3170_v33  ;;  %v3217_v6 = vmul.f32 0.7978846, %v3209_v26  ;;  %v3178_v60 = vmul.f32 0.5, %v3170_v33 }
 0x366   : > { %v3194_v41 = vmul.f32 %v3186_v59, %v3170_v33  ;;  %3771 = vtanh.f32 %v3217_v6  ;;  %v3701_v59 = vld [vmem:[#allocation10] ss:$0 sm:$0xff] }
 0x368   : > { %v3202_v31 = vmul.f32 %v3194_v41, %v3170_v33 }
 0x36a   : > { %v3210_v17 = vadd.f32 %v3202_v31, %v3170_v33 }
 0x36c   : > { %v3218_v49 = vmul.f32 0.7978846, %v3210_v17  ;;  %v3772_v2 = vpop.eup %3771 }
 0x36d   : > { %v3233_v43 = vadd.f32 1.0, %v3772_v2 }
 0x36e   : > { %3773 = vtanh.f32 %v3218_v49 }
 0x36f   : > { %v3241_v15 = vmul.f32 %v3233_v43, %v3177_v53 }
 0x374   : > { %v3774_v50 = vpop.eup %3773 }
 0x375   : > { %v3234_v28 = vadd.f32 1.0, %v3774_v50 }
 0x377   : > { %v3242_v22 = vmul.f32 %v3234_v28, %v3178_v60 }
 0x379   : > { %v3248_v23 = vpack.c.bf16 %v3242_v22, %v3241_v15 }
 0x37b   : > { %3586 = vmatmul.msk.bf16.gmra.mxu2 %vm3267_vm4, %v3248_v23 }
 0x38d   : > { %v3143_v52 = vpop.f32.mrf.mxu3 }
 0x38e   : > { %v3160_v19 = vmul.f32 %v6086_v57, %v3143_v52 }
 0x390   : > { %v3171_v0 = vadd.f32 %v6089_v9, %v3160_v19 }
 0x392   : > { %v3187_v51 = vmul.f32 0.044715, %v3171_v0  ;;  %v3179_v40 = vmul.f32 0.5, %v3171_v0 }
 0x394   : > { %v3195_v32 = vmul.f32 %v3187_v51, %v3171_v0 }
 0x395   : > { %v3145_v21 = vpop.f32.mrf.mxu3 }
 0x396   : > { %v3161_v5 = vmul.f32 %v6086_v57, %v3145_v21  ;;  %v3203_v35 = vmul.f32 %v3195_v32, %v3171_v0 }
 0x398   : > { %v3172_v4 = vadd.f32 %v6089_v9, %v3161_v5  ;;  %v3211_v1 = vadd.f32 %v3203_v35, %v3171_v0 }
 0x39a   : > { %v3188_v3 = vmul.f32 0.044715, %v3172_v4  ;;  %v3219_v36 = vmul.f32 0.7978846, %v3211_v1  ;;  %v3180_v7 = vmul.f32 0.5, %v3172_v4 }
 0x39c   : > { %v3196_v56 = vmul.f32 %v3188_v3, %v3172_v4  ;;  %3775 = vtanh.f32 %v3219_v36 }
 0x39d   : > { %v3148_v8 = vpop.f32.mrf.mxu3 }
 0x39e   : > { %v3162_v48 = vmul.f32 %v6086_v57, %v3148_v8  ;;  %v3204_v24 = vmul.f32 %v3196_v56, %v3172_v4 }
 0x3a0   : > { %v3173_v46 = vadd.f32 %v6089_v9, %v3162_v48  ;;  %v3212_v13 = vadd.f32 %v3204_v24, %v3172_v4 }
 0x3a2   : > { %v3189_v45 = vmul.f32 0.044715, %v3173_v46  ;;  %v3220_v20 = vmul.f32 0.7978846, %v3212_v13  ;;  %v3776_v10 = vpop.eup %3775  ;;  %v3181_v60 = vmul.f32 0.5, %v3173_v46 }
 0x3a3   : > { %v3235_v47 = vadd.f32 1.0, %v3776_v10 }
 0x3a4   : > { %3777 = vtanh.f32 %v3220_v20  ;;  %v3197_v12 = vmul.f32 %v3189_v45, %v3173_v46 }
 0x3a5   : > { %v3150_v42 = vpop.f32.mrf.mxu3  ;;  %v3243_v44 = vmul.f32 %v3235_v47, %v3179_v40 }
 0x3a6   : > { %v3163_v39 = vmul.f32 %v6086_v57, %v3150_v42  ;;  %v3205_v37 = vmul.f32 %v3197_v12, %v3173_v46  ;;  %v3702_v57 = vld [vmem:[#allocation11] ss:$0 sm:$0xff] }
 0x3a8   : > { %v3174_v11 = vadd.f32 %v6089_v9, %v3163_v39  ;;  %v3213_v14 = vadd.f32 %v3205_v37, %v3173_v46 }
 0x3aa   : > { %v3778_v29 = vpop.eup %3777  ;;  %v3190_v34 = vmul.f32 0.044715, %v3174_v11  ;;  %v3221_v55 = vmul.f32 0.7978846, %v3213_v14  ;;  %v3182_v28 = vmul.f32 0.5, %v3174_v11 }
 0x3ab   : > { %v3236_v58 = vadd.f32 1.0, %v3778_v29 }
 0x3ac   : > { %v3198_v25 = vmul.f32 %v3190_v34, %v3174_v11  ;;  %3779 = vtanh.f32 %v3221_v55 }
 0x3ad   : > { %v3244_v38 = vmul.f32 %v3236_v58, %v3180_v7 }
 0x3ae   : > { %v3206_v33 = vmul.f32 %v3198_v25, %v3174_v11 }
 0x3af   : > { %v3249_v26 = vpack.c.bf16 %v3244_v38, %v3243_v44  ;;  %v3289_v9 = vpop.f32.mrf.mxu2 }
 0x3b0   : > { %v3214_v41 = vadd.f32 %v3206_v33, %v3174_v11  ;;  %v3312_v31 = vmul.f32 %v3701_v59, %v3289_v9 }
 0x3b1   : > { %3587 = vmatmul.msk.bf16.gmra.mxu2 %vm3267_vm4, %v3249_v26 }
 0x3b2   : > { %v3222_v6 = vmul.f32 0.7978846, %v3214_v41  ;;  %v3323_v17 = vadd.f32 %v3702_v57, %v3312_v31  ;;  %v3780_v49 = vpop.eup %3779 }
 0x3b3   : > { %v3237_v43 = vadd.f32 1.0, %v3780_v49 }
 0x3b4   : > { %3781 = vtanh.f32 %v3222_v6  ;;  %v3331_v2 = vadd.f32 %v3323_v17, %v6059_v62 }
 0x3b5   : > { %v3245_v23 = vmul.f32 %v3237_v43, %v3181_v60 }
 0x3b6   : > { %3339 = vst.msk [vmem:[%s6121_s28] sm:$0xff] %vm2424_vm3, %v3331_v2 }
 0x3b7   : > { %v3291_v53 = vpop.f32.mrf.mxu2 }
 0x3b8   : > { %v3313_v22 = vmul.f32 %v3701_v59, %v3291_v53 }
 0x3ba   : > { %v3782_v50 = vpop.eup %3781  ;;  %v3324_v19 = vadd.f32 %v3702_v57, %v3313_v22 }
 0x3bb   : > { %v3238_v15 = vadd.f32 1.0, %v3782_v50 }
 0x3bc   : > { %v3332_v51 = vadd.f32 %v3324_v19, %v6061_v16 }
 0x3bd   : > { %v3246_v52 = vmul.f32 %v3238_v15, %v3182_v28 }
 0x3be   : > { %3340 = vst.msk [vmem:[%s6121_s28 + $0x8] sm:$0xff] %vm2424_vm3, %v3332_v51 }
 0x3bf   : > { %v3250_v0 = vpack.c.bf16 %v3246_v52, %v3245_v23 }
 0x3c1   : > { %3588 = vmatmul.msk.bf16.gmra.mxu2 %vm3267_vm4, %v3250_v0 }
 0x3fe   : > { %v3294_v62 = vpop.f32.mrf.mxu2 }
 0x3ff   : > { %v3314_v32 = vmul.f32 %v3701_v59, %v3294_v62 }
 0x401   : > { %v3325_v21 = vadd.f32 %v3702_v57, %v3314_v32 }
 0x403   : > { %v3333_v5 = vadd.f32 %v3325_v21, %v6067_v30 }
 0x405   : > { %3341 = vst.msk [vmem:[%s6121_s28 + $0x10] sm:$0xff] %vm2424_vm3, %v3333_v5 }
 0x406   : > { %v3296_v35 = vpop.f32.mrf.mxu2 }
 0x407   : > { %v3315_v4 = vmul.f32 %v3701_v59, %v3296_v35 }
 0x409   : > { %v3326_v1 = vadd.f32 %v3702_v57, %v3315_v4 }
 0x40b   : > { %v3334_v3 = vadd.f32 %v3326_v1, %v6069_v18 }
 0x40d   : > { %3342 = vst.msk [vmem:[%s6121_s28 + $0x18] sm:$0xff] %vm2424_vm3, %v3334_v3 }
 0x434   : > { %v3299_v16 = vpop.f32.mrf.mxu2 }
 0x435   : > { %v3316_v56 = vmul.f32 %v3701_v59, %v3299_v16 }
 0x437   : > { %v3327_v36 = vadd.f32 %v3702_v57, %v3316_v56 }
 0x439   : > { %v3335_v8 = vadd.f32 %v3327_v36, %v6080_v54 }
 0x43b   : > { %3343 = vst.msk [vmem:[%s6121_s28 + $0x20] sm:$0xff] %vm2424_vm3, %v3335_v8 }
 0x43c   : > { %v3301_v30 = vpop.f32.mrf.mxu2 }
 0x43d   : > { %v3317_v48 = vmul.f32 %v3701_v59, %v3301_v30 }
 0x43f   : > { %v3328_v24 = vadd.f32 %v3702_v57, %v3317_v48 }
 0x441   : > { %v3336_v46 = vadd.f32 %v3328_v24, %v6082_v63 }
 0x443   : > { %3344 = vst.msk [vmem:[%s6121_s28 + $0x28] sm:$0xff] %vm2424_vm3, %v3336_v46 }
 0x444   : > { %v3304_v13 = vpop.f32.mrf.mxu2 }
 0x445   : > { %v3318_v18 = vmul.f32 %v3701_v59, %v3304_v13 }
 0x447   : > { %v3329_v45 = vadd.f32 %v3702_v57, %v3318_v18 }
 0x449   : > { %v3337_v20 = vadd.f32 %v3329_v45, %v6094_v27 }
 0x44b   : > { %3345 = vst.msk [vmem:[%s6121_s28 + $0x30] sm:$0xff] %vm2424_vm3, %v3337_v20 }
 0x44c   : > { %v3306_v12 = vpop.f32.mrf.mxu2 }
 0x44d   : > { %v3319_v42 = vmul.f32 %v3701_v59, %v3306_v12 }
 0x44f   : > { %v3330_v54 = vadd.f32 %v3702_v57, %v3319_v42 }
 0x451   : > { %v3338_v10 = vadd.f32 %v3330_v54, %v6096_v61 }
 0x453   : > { %3346 = vst.msk [vmem:[%s6121_s28 + $0x38] sm:$0xff] %vm2424_vm3, %v3338_v10 }
 0x454 PF: > { %s37_s4 = sadd.s32 1, %s3999_s4  }
 0x455   : > { %p34_p7 = scmp.ge.s32.totalorder %s37_s4, 4  }
 0x457   :  { %36 = sbr.rel (!%p34_p7) target bundleno = 16 (0x10), region = 238 }
 0x45c   :  { %3368 = vsyncpa [#allocation4], 1 }
 0x45d   :  { %3370 = vsyncpa [#allocation4 + $0x1], 1 }
 0x45e   :  { %3371 = vsyncpa [#allocation6], 1 }
 0x45f   :  { %3372 = vsyncpa [#allocation9], 1 }
 0x460   :  { %3373 = vsyncpa [#allocation12], 1 }

</bundles_post_ra>
